<compile_context>
chip_gen: v7x
topology: tpu7x:2x2x1
jax: 0.10.0
libtpu: 0.0.40
codegen_flags: <defaults>
</compile_context>

<pallas_src>
import numpy as np
import jax
import jax.numpy as jnp
from jax.experimental import pallas as pl
from jax.experimental.pallas import tpu as pltpu

# ---------------- Config (small, consistent with the module) ----------------
VOCAB = 128
DIM = 32
N_LAYERS = 2
N_HEADS = 4
N_SPLATS = 4
MAX_SEQ = 16
HEAD_DIM = DIM // N_HEADS
LN_EPS = 1e-5           # PyTorch nn.LayerNorm default
NEG_INF = -1e30         # cross-batch attention mask value


# --------------------------- Fused forward kernel ----------------------------
def make_forward(B, T):
    BT = B * T

    def kernel(tok_ref, emb_ref, pos_ref, eye_ref, cross_ref,
               ln1_g_ref, ln1_b_ref, qkv_w_ref, qkv_b_ref,
               qkn_g_ref, qkn_b_ref, cen_ref, out_w_ref, out_b_ref,
               ln2_g_ref, ln2_b_ref, w1_ref, b1_ref, w2_ref, b2_ref,
               nf_g_ref, nf_b_ref,
               amp_eff_ref, diag_amp_ref, const_ref, imp_ref,
               o_ref):
        f32 = jnp.float32

        def ln(v, g, b):
            mu = jnp.mean(v, axis=-1, keepdims=True)
            var = jnp.mean(jnp.square(v - mu), axis=-1, keepdims=True)
            return (v - mu) * jax.lax.rsqrt(var + LN_EPS) * g + b

        def erf(z):
            # TODO(synk): lax.erf has no Mosaic lowering; use the A&S 7.1.26
            # polynomial (|err| < 1.5e-7, float32-level) so the exact erf-GELU
            # of nn.GELU() stays inside the fused kernel.
            t = 1.0 / (1.0 + 0.3275911 * jnp.abs(z))
            poly = t * (0.254829592 + t * (-0.284496736 + t * (1.421413741
                        + t * (-1.453152027 + t * 1.061405429))))
            pos_val = 1.0 - poly * jnp.exp(-z * z)
            return jnp.where(z >= 0.0, pos_val, -pos_val)

        def gelu(z):
            return 0.5 * z * (1.0 + erf(z * 0.7071067811865476))

        emb = emb_ref[...]            # (VOCAB, DIM)
        eye = eye_ref[...]            # (BT, BT)
        cross = cross_ref[...]        # (BT, BT) 0 / -1e30 cross-batch mask

        # Token embedding as an exact one-hot matmul (keeps the gather in-kernel).
        col = jax.lax.broadcasted_iota(jnp.int32, (BT, VOCAB), 1)
        onehot = (col == tok_ref[...]).astype(f32)                     # (BT, VOCAB)
        x = jnp.dot(onehot, emb, preferred_element_type=f32) + pos_ref[...]

        for l in range(N_LAYERS):
            # -------------------- Gaussian-splat attention --------------------
            h = ln(x, ln1_g_ref[l], ln1_b_ref[l])
            qkv = jnp.dot(h, qkv_w_ref[l], preferred_element_type=f32) + qkv_b_ref[l]
            qg, qb = qkn_g_ref[l], qkn_b_ref[l]
            w_out = out_w_ref[l]                                        # (DIM, DIM)
            attn = out_b_ref[l]                                         # (1, DIM) bias
            for hh in range(N_HEADS):
                lo = hh * HEAD_DIM
                q = ln(qkv[:, lo:lo + HEAD_DIM], qg, qb)                # (BT, hd)
                k = ln(qkv[:, DIM + lo:DIM + lo + HEAD_DIM], qg, qb)    # (BT, hd)
                v = qkv[:, 2 * DIM + lo:2 * DIM + lo + HEAD_DIM]        # (BT, hd)

                qk = jax.lax.dot_general(q, k, (((1,), (1,)), ((), ())),
                                         preferred_element_type=f32)   # (BT, BT)
                c = cen_ref[l, hh]                                      # (S, hd)
                qc = jax.lax.dot_general(q, c, (((1,), (1,)), ((), ())),
                                         preferred_element_type=f32)   # (BT, S)
                kc = jax.lax.dot_general(c, k, (((1,), (1,)), ((), ())),
                                         preferred_element_type=f32)   # (S, BT)

                p_mix = jnp.zeros((BT, BT), f32)
                for s in range(N_SPLATS):
                    i = (l * N_HEADS + hh) * N_SPLATS + s
                    # amp/s^2 * ((q-c)(k-c)^T) + 0.01*amp*I, expanded form.
                    att = (amp_eff_ref[i] * (qk - qc[:, s:s + 1] - kc[s:s + 1, :])
                           + const_ref[i] + diag_amp_ref[i] * eye + cross)
                    att = att - jnp.max(att, axis=-1, keepdims=True)
                    e = jnp.exp(att)
                    p = e / jnp.sum(e, axis=-1, keepdims=True)
                    p_mix = p_mix + imp_ref[i] * p

                head_out = jnp.dot(p_mix, v, preferred_element_type=f32)  # (BT, hd)
                # out_proj folded per head: combined @ W == sum_h head_h @ W[h-rows]
                attn = attn + jnp.dot(head_out, w_out[lo:lo + HEAD_DIM, :],
                                      preferred_element_type=f32)
            x = x + attn

            # ------------------------------- MLP -------------------------------
            h2 = ln(x, ln2_g_ref[l], ln2_b_ref[l])
            m = jnp.dot(h2, w1_ref[l], preferred_element_type=f32) + b1_ref[l]
            m = gelu(m)
            m = jnp.dot(m, w2_ref[l], preferred_element_type=f32) + b2_ref[l]
            x = x + m

        xf = ln(x, nf_g_ref[...], nf_b_ref[...])
        # Tied, bias-free output projection: logits = xf @ emb.T (lane-dense 128).
        o_ref[...] = jax.lax.dot_general(xf, emb, (((1,), (1,)), ((), ())),
                                         preferred_element_type=f32)

    vmem = pl.BlockSpec(memory_space=pltpu.MemorySpace.VMEM)
    smem = pl.BlockSpec(memory_space=pltpu.MemorySpace.SMEM)
    fused = pl.pallas_call(
        kernel,
        out_shape=jax.ShapeDtypeStruct((BT, VOCAB), jnp.float32),
        in_specs=[vmem] * 22 + [smem] * 4,
        out_specs=vmem,
    )

    # Constant masks (built once on the host, static B/T).
    bid = np.arange(BT, dtype=np.int64) // T
    eye_const = jnp.asarray(np.eye(BT, dtype=np.float32))
    cross_const = jnp.asarray(
        np.where(bid[:, None] == bid[None, :], 0.0, NEG_INF).astype(np.float32))

    def forward(packed, tokens):
        tok = tokens.reshape(BT, 1).astype(jnp.int32)
        pos_bt = jnp.broadcast_to(packed["pos"][:T], (B, T, DIM)).reshape(BT, DIM)
        logits = fused(
            tok, packed["emb"], pos_bt, eye_const, cross_const,
            packed["ln1_g"], packed["ln1_b"], packed["qkv_w"], packed["qkv_b"],
            packed["qkn_g"], packed["qkn_b"], packed["centers"],
            packed["out_w"], packed["out_b"], packed["ln2_g"], packed["ln2_b"],
            packed["w1"], packed["b1"], packed["w2"], packed["b2"],
            packed["nf_g"], packed["nf_b"],
            packed["amp_eff"], packed["diag_amp"], packed["const"], packed["imp"])
        return logits.reshape(B, T, VOCAB)

    return jax.jit(forward)


# ----------------------------- Parameter init --------------------------------
def init_params(key):
    keys = iter(jax.random.split(key, 4 + N_LAYERS * 8))
    nk = lambda: next(keys)

    def xavier(k, shape):  # stored pre-transposed as (in, out)
        bound = (6.0 / (shape[0] + shape[1])) ** 0.5
        return jax.random.uniform(k, shape, jnp.float32, -bound, bound)

    emb = 0.02 * jax.random.normal(nk(), (VOCAB, DIM), jnp.float32)
    pos = jnp.zeros((MAX_SEQ, DIM), jnp.float32)

    layers = []
    for _ in range(N_LAYERS):
        layers.append(dict(
            n1_g=jnp.ones((DIM,), jnp.float32), n1_b=jnp.zeros((DIM,), jnp.float32),
            n2_g=jnp.ones((DIM,), jnp.float32), n2_b=jnp.zeros((DIM,), jnp.float32),
            qkv_w=xavier(nk(), (DIM, 3 * DIM)),
            qkv_b=jnp.zeros((3 * DIM,), jnp.float32),
            out_w=xavier(nk(), (DIM, DIM)),
            out_b=jnp.zeros((DIM,), jnp.float32),
            qkn_g=jnp.ones((HEAD_DIM,), jnp.float32),
            qkn_b=jnp.zeros((HEAD_DIM,), jnp.float32),
            centers=0.3 * jax.random.normal(nk(), (N_HEADS, N_SPLATS, HEAD_DIM),
                                            jnp.float32),
            log_scale=0.5 * jax.random.normal(nk(), (N_HEADS, N_SPLATS), jnp.float32),
            amp=2.0 * jax.random.uniform(nk(), (N_HEADS, N_SPLATS), jnp.float32),
            w1=xavier(nk(), (DIM, 4 * DIM)),
            b1=jnp.zeros((4 * DIM,), jnp.float32),
            w2=xavier(nk(), (4 * DIM, DIM)),
            b2=jnp.zeros((DIM,), jnp.float32),
        ))

    return dict(emb=emb, pos=pos, layers=layers,
                norm_g=jnp.ones((DIM,), jnp.float32),
                norm_b=jnp.zeros((DIM,), jnp.float32))


def pack_params(p):
    """Stack per-layer params and pre-fold the per-splat scalars (host side)."""
    st = lambda n: jnp.stack([lp[n] for lp in p["layers"]])
    centers = st("centers")                                  # (L, H, S, hd)
    log_scale = st("log_scale")                              # (L, H, S)
    amp = st("amp")                                          # (L, H, S)
    scale = jnp.clip(jnp.exp(log_scale), 1e-4, 10.0)
    amp_eff = amp / (scale * scale)                          # amp / s^2
    cc = jnp.sum(centers * centers, axis=-1)                 # |c|^2
    row = lambda a: a[:, None, :]                            # (L, F) -> (L, 1, F)
    return dict(
        emb=p["emb"], pos=p["pos"],
        ln1_g=row(st("n1_g")), ln1_b=row(st("n1_b")),
        qkv_w=st("qkv_w"), qkv_b=row(st("qkv_b")),
        qkn_g=row(st("qkn_g")), qkn_b=row(st("qkn_b")),
        centers=centers,
        out_w=st("out_w"), out_b=row(st("out_b")),
        ln2_g=row(st("n2_g")), ln2_b=row(st("n2_b")),
        w1=st("w1"), b1=row(st("b1")),
        w2=st("w2"), b2=row(st("b2")),
        nf_g=p["norm_g"][None, :], nf_b=p["norm_b"][None, :],
        amp_eff=amp_eff.reshape(-1),                         # SMEM scalar tables
        diag_amp=(0.01 * amp).reshape(-1),
        const=(amp_eff * cc).reshape(-1),
        imp=jax.nn.softmax(amp, axis=-1).reshape(-1),
    )


# -------------------- Pure-JAX reference (mirrors PyTorch) -------------------
def _ln_ref(v, g, b):
    mu = jnp.mean(v, axis=-1, keepdims=True)
    var = jnp.mean(jnp.square(v - mu), axis=-1, keepdims=True)
    return (v - mu) * jax.lax.rsqrt(var + LN_EPS) * g + b


def forward_reference(params, tokens):
    B, T = tokens.shape
    x = jnp.take(params["emb"], tokens, axis=0) + params["pos"][None, :T, :]
    for lp in params["layers"]:
        h = _ln_ref(x, lp["n1_g"], lp["n1_b"])
        qkv = h @ lp["qkv_w"] + lp["qkv_b"]
        q, k, v = jnp.split(qkv, 3, axis=-1)
        split = lambda t: t.reshape(B, T, N_HEADS, HEAD_DIM).transpose(0, 2, 1, 3)
        q, k, v = split(q), split(k), split(v)
        q = _ln_ref(q, lp["qkn_g"], lp["qkn_b"])
        k = _ln_ref(k, lp["qkn_g"], lp["qkn_b"])
        scale = jnp.clip(jnp.exp(lp["log_scale"]), 1e-4, 10.0)
        imp = jax.nn.softmax(lp["amp"], axis=-1)
        heads = []
        for hh in range(N_HEADS):
            out_h = jnp.zeros((B, T, HEAD_DIM), jnp.float32)
            for s in range(N_SPLATS):
                c = lp["centers"][hh, s]
                qs = (q[:, hh] - c) / scale[hh, s]
                ks = (k[:, hh] - c) / scale[hh, s]
                att = lp["amp"][hh, s] * jnp.einsum("bqd,bkd->bqk", qs, ks)
                att = att + 0.01 * lp["amp"][hh, s] * jnp.eye(T, dtype=jnp.float32)[None]
                p = jax.nn.softmax(att, axis=-1)
                out_h = out_h + imp[hh, s] * jnp.einsum("bqk,bkd->bqd", p, v[:, hh])
            heads.append(out_h)
        comb = jnp.stack(heads, axis=1).transpose(0, 2, 1, 3).reshape(B, T, DIM)
        x = x + comb @ lp["out_w"] + lp["out_b"]
        h2 = _ln_ref(x, lp["n2_g"], lp["n2_b"])
        m = jax.nn.gelu(h2 @ lp["w1"] + lp["b1"], approximate=False)
        x = x + m @ lp["w2"] + lp["b2"]
    x = _ln_ref(x, params["norm_g"], params["norm_b"])
    return x @ params["emb"].T


# ----------------------------------- Main -------------------------------------
if __name__ == "__main__":
    root = jax.random.PRNGKey(0)
    pkey, tkey = jax.random.split(root)
    params = init_params(pkey)
    packed = pack_params(params)

    B, T = 2, 8
    tokens = jax.random.randint(tkey, (B, T), 0, VOCAB, dtype=jnp.int32)

    forward = make_forward(B, T)
    logits = forward(packed, tokens)
    jax.block_until_ready(logits)

    assert logits.shape == (B, T, VOCAB), logits.shape
    assert logits.dtype == jnp.float32
    assert bool(jnp.all(jnp.isfinite(logits)))

    ref = jax.jit(forward_reference)(params, tokens)
    max_err = float(jnp.max(jnp.abs(logits - ref)))
    assert max_err < 5e-3, f"mismatch vs pure-JAX reference: {max_err}"

    print("KERNEL_OK")
</pallas_src>

<mosaic_0001>
module attributes {stable_mosaic.version = 11 : i64} {
  func.func @kernel(%arg0: memref<16x1xi32, #tpu.memory_space<vmem>>, %arg1: memref<128x32xf32, #tpu.memory_space<vmem>>, %arg2: memref<16x32xf32, #tpu.memory_space<vmem>>, %arg3: memref<16x16xf32, #tpu.memory_space<vmem>>, %arg4: memref<16x16xf32, #tpu.memory_space<vmem>>, %arg5: memref<2x1x32xf32, #tpu.memory_space<vmem>>, %arg6: memref<2x1x32xf32, #tpu.memory_space<vmem>>, %arg7: memref<2x32x96xf32, #tpu.memory_space<vmem>>, %arg8: memref<2x1x96xf32, #tpu.memory_space<vmem>>, %arg9: memref<2x1x8xf32, #tpu.memory_space<vmem>>, %arg10: memref<2x1x8xf32, #tpu.memory_space<vmem>>, %arg11: memref<2x4x4x8xf32, #tpu.memory_space<vmem>>, %arg12: memref<2x32x32xf32, #tpu.memory_space<vmem>>, %arg13: memref<2x1x32xf32, #tpu.memory_space<vmem>>, %arg14: memref<2x1x32xf32, #tpu.memory_space<vmem>>, %arg15: memref<2x1x32xf32, #tpu.memory_space<vmem>>, %arg16: memref<2x32x128xf32, #tpu.memory_space<vmem>>, %arg17: memref<2x1x128xf32, #tpu.memory_space<vmem>>, %arg18: memref<2x128x32xf32, #tpu.memory_space<vmem>>, %arg19: memref<2x1x32xf32, #tpu.memory_space<vmem>>, %arg20: memref<1x32xf32, #tpu.memory_space<vmem>>, %arg21: memref<1x32xf32, #tpu.memory_space<vmem>>, %arg22: memref<32xf32, #tpu.memory_space<smem>>, %arg23: memref<32xf32, #tpu.memory_space<smem>>, %arg24: memref<32xf32, #tpu.memory_space<smem>>, %arg25: memref<32xf32, #tpu.memory_space<smem>>, %arg26: memref<16x128xf32, #tpu.memory_space<vmem>>) attributes {dimension_semantics = [], scalar_prefetch = 0 : i64, scratch_operands = 0 : i64, tpu.core_type = #tpu.core_type<tc>} {
    %c0 = arith.constant 0 : index
    %c0_0 = arith.constant 0 : index
    %0 = vector.load %arg1[%c0, %c0_0] : memref<128x32xf32, #tpu.memory_space<vmem>>, vector<128x32xf32>
    %c0_1 = arith.constant 0 : index
    %c0_2 = arith.constant 0 : index
    %1 = vector.load %arg3[%c0_1, %c0_2] : memref<16x16xf32, #tpu.memory_space<vmem>>, vector<16x16xf32>
    %c0_3 = arith.constant 0 : index
    %c0_4 = arith.constant 0 : index
    %2 = vector.load %arg4[%c0_3, %c0_4] : memref<16x16xf32, #tpu.memory_space<vmem>>, vector<16x16xf32>
    %3 = tpu.iota {dimensions = array<i32: 1>} : vector<16x128xi32>
    %c0_5 = arith.constant 0 : index
    %c0_6 = arith.constant 0 : index
    %4 = vector.load %arg0[%c0_5, %c0_6] : memref<16x1xi32, #tpu.memory_space<vmem>>, vector<16x1xi32>
    %5 = vector.broadcast %4 : vector<16x1xi32> to vector<16x128xi32>
    %6 = arith.cmpi eq, %3, %5 : vector<16x128xi32>
    %7 = arith.extui %6 : vector<16x128xi1> to vector<16x128xi32>
    %8 = arith.sitofp %7 : vector<16x128xi32> to vector<16x128xf32>
    %cst = arith.constant dense<0.000000e+00> : vector<16x32xf32>
    %9 = tpu.matmul %8, %0, %cst {dimension_numbers = #tpu.dot_dimension_numbers<[1], [0], [0], [1], [0, 0, 1, 1], [], []>} : vector<16x128xf32>, vector<128x32xf32>, vector<16x32xf32> -> vector<16x32xf32>
    %c0_7 = arith.constant 0 : index
    %c0_8 = arith.constant 0 : index
    %10 = vector.load %arg2[%c0_7, %c0_8] : memref<16x32xf32, #tpu.memory_space<vmem>>, vector<16x32xf32>
    %11 = arith.addf %9, %10 : vector<16x32xf32>
    %c0_9 = arith.constant 0 : index
    %c0_10 = arith.constant 0 : index
    %c0_11 = arith.constant 0 : index
    %12 = vector.load %arg5[%c0_9, %c0_10, %c0_11] : memref<2x1x32xf32, #tpu.memory_space<vmem>>, vector<1x1x32xf32>
    %13 = vector.shape_cast %12 : vector<1x1x32xf32> to vector<1x32xf32>
    %c0_12 = arith.constant 0 : index
    %c0_13 = arith.constant 0 : index
    %c0_14 = arith.constant 0 : index
    %14 = vector.load %arg6[%c0_12, %c0_13, %c0_14] : memref<2x1x32xf32, #tpu.memory_space<vmem>>, vector<1x1x32xf32>
    %15 = vector.shape_cast %14 : vector<1x1x32xf32> to vector<1x32xf32>
    %cst_15 = arith.constant dense<0.000000e+00> : vector<16xf32>
    %16 = vector.multi_reduction <add>, %11, %cst_15 [1] : vector<16x32xf32> to vector<16xf32>
    %17 = vector.shape_cast %16 : vector<16xf32> to vector<16x1xf32>
    %cst_16 = arith.constant 3.200000e+01 : f32
    %18 = vector.broadcast %cst_16 : f32 to vector<16x1xf32>
    %19 = arith.divf %17, %18 : vector<16x1xf32>
    %20 = vector.broadcast %19 : vector<16x1xf32> to vector<16x32xf32>
    %21 = arith.subf %11, %20 : vector<16x32xf32>
    %22 = arith.mulf %21, %21 : vector<16x32xf32>
    %cst_17 = arith.constant dense<0.000000e+00> : vector<16xf32>
    %23 = vector.multi_reduction <add>, %22, %cst_17 [1] : vector<16x32xf32> to vector<16xf32>
    %24 = vector.shape_cast %23 : vector<16xf32> to vector<16x1xf32>
    %cst_18 = arith.constant 3.200000e+01 : f32
    %25 = vector.broadcast %cst_18 : f32 to vector<16x1xf32>
    %26 = arith.divf %24, %25 : vector<16x1xf32>
    %27 = vector.broadcast %19 : vector<16x1xf32> to vector<16x32xf32>
    %28 = arith.subf %11, %27 : vector<16x32xf32>
    %cst_19 = arith.constant 9.99999974E-6 : f32
    %29 = vector.broadcast %cst_19 : f32 to vector<16x1xf32>
    %30 = arith.addf %26, %29 : vector<16x1xf32>
    %31 = math.rsqrt %30 : vector<16x1xf32>
    %32 = vector.broadcast %31 : vector<16x1xf32> to vector<16x32xf32>
    %33 = arith.mulf %28, %32 : vector<16x32xf32>
    %34 = vector.broadcast %13 : vector<1x32xf32> to vector<16x32xf32>
    %35 = arith.mulf %33, %34 : vector<16x32xf32>
    %36 = vector.broadcast %15 : vector<1x32xf32> to vector<16x32xf32>
    %37 = arith.addf %35, %36 : vector<16x32xf32>
    %c0_20 = arith.constant 0 : index
    %c0_21 = arith.constant 0 : index
    %c0_22 = arith.constant 0 : index
    %38 = vector.load %arg7[%c0_20, %c0_21, %c0_22] : memref<2x32x96xf32, #tpu.memory_space<vmem>>, vector<1x32x96xf32>
    %39 = vector.shape_cast %38 : vector<1x32x96xf32> to vector<32x96xf32>
    %cst_23 = arith.constant dense<0.000000e+00> : vector<16x96xf32>
    %40 = tpu.matmul %37, %39, %cst_23 {dimension_numbers = #tpu.dot_dimension_numbers<[1], [0], [0], [1], [0, 0, 1, 1], [], []>} : vector<16x32xf32>, vector<32x96xf32>, vector<16x96xf32> -> vector<16x96xf32>
    %c0_24 = arith.constant 0 : index
    %c0_25 = arith.constant 0 : index
    %c0_26 = arith.constant 0 : index
    %41 = vector.load %arg8[%c0_24, %c0_25, %c0_26] : memref<2x1x96xf32, #tpu.memory_space<vmem>>, vector<1x1x96xf32>
    %42 = vector.shape_cast %41 : vector<1x1x96xf32> to vector<1x96xf32>
    %43 = vector.broadcast %42 : vector<1x96xf32> to vector<16x96xf32>
    %44 = arith.addf %40, %43 : vector<16x96xf32>
    %c0_27 = arith.constant 0 : index
    %c0_28 = arith.constant 0 : index
    %c0_29 = arith.constant 0 : index
    %45 = vector.load %arg9[%c0_27, %c0_28, %c0_29] : memref<2x1x8xf32, #tpu.memory_space<vmem>>, vector<1x1x8xf32>
    %46 = vector.shape_cast %45 : vector<1x1x8xf32> to vector<1x8xf32>
    %c0_30 = arith.constant 0 : index
    %c0_31 = arith.constant 0 : index
    %c0_32 = arith.constant 0 : index
    %47 = vector.load %arg10[%c0_30, %c0_31, %c0_32] : memref<2x1x8xf32, #tpu.memory_space<vmem>>, vector<1x1x8xf32>
    %48 = vector.shape_cast %47 : vector<1x1x8xf32> to vector<1x8xf32>
    %c0_33 = arith.constant 0 : index
    %c0_34 = arith.constant 0 : index
    %c0_35 = arith.constant 0 : index
    %49 = vector.load %arg12[%c0_33, %c0_34, %c0_35] : memref<2x32x32xf32, #tpu.memory_space<vmem>>, vector<1x32x32xf32>
    %50 = vector.shape_cast %49 : vector<1x32x32xf32> to vector<32x32xf32>
    %c0_36 = arith.constant 0 : index
    %c0_37 = arith.constant 0 : index
    %c0_38 = arith.constant 0 : index
    %51 = vector.load %arg13[%c0_36, %c0_37, %c0_38] : memref<2x1x32xf32, #tpu.memory_space<vmem>>, vector<1x1x32xf32>
    %52 = vector.shape_cast %51 : vector<1x1x32xf32> to vector<1x32xf32>
    %53 = vector.extract_strided_slice %44 {offsets = [0, 0], sizes = [16, 8], strides = [1, 1]} : vector<16x96xf32> to vector<16x8xf32>
    %cst_39 = arith.constant dense<0.000000e+00> : vector<16xf32>
    %54 = vector.multi_reduction <add>, %53, %cst_39 [1] : vector<16x8xf32> to vector<16xf32>
    %55 = vector.shape_cast %54 : vector<16xf32> to vector<16x1xf32>
    %cst_40 = arith.constant 8.000000e+00 : f32
    %56 = vector.broadcast %cst_40 : f32 to vector<16x1xf32>
    %57 = arith.divf %55, %56 : vector<16x1xf32>
    %58 = vector.broadcast %57 : vector<16x1xf32> to vector<16x8xf32>
    %59 = arith.subf %53, %58 : vector<16x8xf32>
    %60 = arith.mulf %59, %59 : vector<16x8xf32>
    %cst_41 = arith.constant dense<0.000000e+00> : vector<16xf32>
    %61 = vector.multi_reduction <add>, %60, %cst_41 [1] : vector<16x8xf32> to vector<16xf32>
    %62 = vector.shape_cast %61 : vector<16xf32> to vector<16x1xf32>
    %cst_42 = arith.constant 8.000000e+00 : f32
    %63 = vector.broadcast %cst_42 : f32 to vector<16x1xf32>
    %64 = arith.divf %62, %63 : vector<16x1xf32>
    %65 = vector.broadcast %57 : vector<16x1xf32> to vector<16x8xf32>
    %66 = arith.subf %53, %65 : vector<16x8xf32>
    %cst_43 = arith.constant 9.99999974E-6 : f32
    %67 = vector.broadcast %cst_43 : f32 to vector<16x1xf32>
    %68 = arith.addf %64, %67 : vector<16x1xf32>
    %69 = math.rsqrt %68 : vector<16x1xf32>
    %70 = vector.broadcast %69 : vector<16x1xf32> to vector<16x8xf32>
    %71 = arith.mulf %66, %70 : vector<16x8xf32>
    %72 = vector.broadcast %46 : vector<1x8xf32> to vector<16x8xf32>
    %73 = arith.mulf %71, %72 : vector<16x8xf32>
    %74 = vector.broadcast %48 : vector<1x8xf32> to vector<16x8xf32>
    %75 = arith.addf %73, %74 : vector<16x8xf32>
    %76 = vector.extract_strided_slice %44 {offsets = [0, 32], sizes = [16, 8], strides = [1, 1]} : vector<16x96xf32> to vector<16x8xf32>
    %cst_44 = arith.constant dense<0.000000e+00> : vector<16xf32>
    %77 = vector.multi_reduction <add>, %76, %cst_44 [1] : vector<16x8xf32> to vector<16xf32>
    %78 = vector.shape_cast %77 : vector<16xf32> to vector<16x1xf32>
    %cst_45 = arith.constant 8.000000e+00 : f32
    %79 = vector.broadcast %cst_45 : f32 to vector<16x1xf32>
    %80 = arith.divf %78, %79 : vector<16x1xf32>
    %81 = vector.broadcast %80 : vector<16x1xf32> to vector<16x8xf32>
    %82 = arith.subf %76, %81 : vector<16x8xf32>
    %83 = arith.mulf %82, %82 : vector<16x8xf32>
    %cst_46 = arith.constant dense<0.000000e+00> : vector<16xf32>
    %84 = vector.multi_reduction <add>, %83, %cst_46 [1] : vector<16x8xf32> to vector<16xf32>
    %85 = vector.shape_cast %84 : vector<16xf32> to vector<16x1xf32>
    %cst_47 = arith.constant 8.000000e+00 : f32
    %86 = vector.broadcast %cst_47 : f32 to vector<16x1xf32>
    %87 = arith.divf %85, %86 : vector<16x1xf32>
    %88 = vector.broadcast %80 : vector<16x1xf32> to vector<16x8xf32>
    %89 = arith.subf %76, %88 : vector<16x8xf32>
    %cst_48 = arith.constant 9.99999974E-6 : f32
    %90 = vector.broadcast %cst_48 : f32 to vector<16x1xf32>
    %91 = arith.addf %87, %90 : vector<16x1xf32>
    %92 = math.rsqrt %91 : vector<16x1xf32>
    %93 = vector.broadcast %92 : vector<16x1xf32> to vector<16x8xf32>
    %94 = arith.mulf %89, %93 : vector<16x8xf32>
    %95 = vector.broadcast %46 : vector<1x8xf32> to vector<16x8xf32>
    %96 = arith.mulf %94, %95 : vector<16x8xf32>
    %97 = vector.broadcast %48 : vector<1x8xf32> to vector<16x8xf32>
    %98 = arith.addf %96, %97 : vector<16x8xf32>
    %99 = vector.extract_strided_slice %44 {offsets = [0, 64], sizes = [16, 8], strides = [1, 1]} : vector<16x96xf32> to vector<16x8xf32>
    %cst_49 = arith.constant dense<0.000000e+00> : vector<16x16xf32>
    %100 = tpu.matmul %75, %98, %cst_49 {dimension_numbers = #tpu.dot_dimension_numbers<[1], [1], [0], [0], [0, 0, 1, 0], [], []>} : vector<16x8xf32>, vector<16x8xf32>, vector<16x16xf32> -> vector<16x16xf32>
    %c0_50 = arith.constant 0 : index
    %c0_51 = arith.constant 0 : index
    %c0_52 = arith.constant 0 : index
    %c0_53 = arith.constant 0 : index
    %101 = vector.load %arg11[%c0_50, %c0_51, %c0_52, %c0_53] : memref<2x4x4x8xf32, #tpu.memory_space<vmem>>, vector<1x1x4x8xf32>
    %102 = vector.shape_cast %101 : vector<1x1x4x8xf32> to vector<4x8xf32>
    %cst_54 = arith.constant dense<0.000000e+00> : vector<16x4xf32>
    %103 = tpu.matmul %75, %102, %cst_54 {dimension_numbers = #tpu.dot_dimension_numbers<[1], [1], [0], [0], [0, 0, 1, 0], [], []>} : vector<16x8xf32>, vector<4x8xf32>, vector<16x4xf32> -> vector<16x4xf32>
    %cst_55 = arith.constant dense<0.000000e+00> : vector<4x16xf32>
    %104 = tpu.matmul %102, %98, %cst_55 {dimension_numbers = #tpu.dot_dimension_numbers<[1], [1], [0], [0], [0, 0, 1, 0], [], []>} : vector<4x8xf32>, vector<16x8xf32>, vector<4x16xf32> -> vector<4x16xf32>
    %cst_56 = arith.constant 0.000000e+00 : f32
    %105 = vector.broadcast %cst_56 : f32 to vector<16x16xf32>
    %c0_57 = arith.constant 0 : index
    %106 = memref.load %arg22[%c0_57] : memref<32xf32, #tpu.memory_space<smem>>
    %107 = vector.extract_strided_slice %103 {offsets = [0, 0], sizes = [16, 1], strides = [1, 1]} : vector<16x4xf32> to vector<16x1xf32>
    %108 = vector.broadcast %107 : vector<16x1xf32> to vector<16x16xf32>
    %109 = arith.subf %100, %108 : vector<16x16xf32>
    %110 = vector.extract_strided_slice %104 {offsets = [0, 0], sizes = [1, 16], strides = [1, 1]} : vector<4x16xf32> to vector<1x16xf32>
    %111 = vector.broadcast %110 : vector<1x16xf32> to vector<16x16xf32>
    %112 = arith.subf %109, %111 : vector<16x16xf32>
    %113 = vector.broadcast %106 : f32 to vector<16x16xf32>
    %114 = arith.mulf %113, %112 : vector<16x16xf32>
    %c0_58 = arith.constant 0 : index
    %115 = memref.load %arg24[%c0_58] : memref<32xf32, #tpu.memory_space<smem>>
    %116 = vector.broadcast %115 : f32 to vector<16x16xf32>
    %117 = arith.addf %114, %116 : vector<16x16xf32>
    %c0_59 = arith.constant 0 : index
    %118 = memref.load %arg23[%c0_59] : memref<32xf32, #tpu.memory_space<smem>>
    %119 = vector.broadcast %118 : f32 to vector<16x16xf32>
    %120 = arith.mulf %119, %1 : vector<16x16xf32>
    %121 = arith.addf %117, %120 : vector<16x16xf32>
    %122 = arith.addf %121, %2 : vector<16x16xf32>
    %cst_60 = arith.constant dense<0xFF800000> : vector<16xf32>
    %123 = vector.multi_reduction <maximumf>, %122, %cst_60 [1] : vector<16x16xf32> to vector<16xf32>
    %124 = vector.shape_cast %123 : vector<16xf32> to vector<16x1xf32>
    %125 = vector.broadcast %124 : vector<16x1xf32> to vector<16x16xf32>
    %126 = arith.subf %122, %125 : vector<16x16xf32>
    %127 = math.exp %126 : vector<16x16xf32>
    %cst_61 = arith.constant dense<0.000000e+00> : vector<16xf32>
    %128 = vector.multi_reduction <add>, %127, %cst_61 [1] : vector<16x16xf32> to vector<16xf32>
    %129 = vector.shape_cast %128 : vector<16xf32> to vector<16x1xf32>
    %130 = vector.broadcast %129 : vector<16x1xf32> to vector<16x16xf32>
    %131 = arith.divf %127, %130 : vector<16x16xf32>
    %c0_62 = arith.constant 0 : index
    %132 = memref.load %arg25[%c0_62] : memref<32xf32, #tpu.memory_space<smem>>
    %133 = vector.broadcast %132 : f32 to vector<16x16xf32>
    %134 = arith.mulf %133, %131 : vector<16x16xf32>
    %135 = arith.addf %105, %134 : vector<16x16xf32>
    %c1 = arith.constant 1 : index
    %136 = memref.load %arg22[%c1] : memref<32xf32, #tpu.memory_space<smem>>
    %137 = vector.extract_strided_slice %103 {offsets = [0, 1], sizes = [16, 1], strides = [1, 1]} : vector<16x4xf32> to vector<16x1xf32>
    %138 = vector.broadcast %137 : vector<16x1xf32> to vector<16x16xf32>
    %139 = arith.subf %100, %138 : vector<16x16xf32>
    %140 = vector.extract_strided_slice %104 {offsets = [1, 0], sizes = [1, 16], strides = [1, 1]} : vector<4x16xf32> to vector<1x16xf32>
    %141 = vector.broadcast %140 : vector<1x16xf32> to vector<16x16xf32>
    %142 = arith.subf %139, %141 : vector<16x16xf32>
    %143 = vector.broadcast %136 : f32 to vector<16x16xf32>
    %144 = arith.mulf %143, %142 : vector<16x16xf32>
    %c1_63 = arith.constant 1 : index
    %145 = memref.load %arg24[%c1_63] : memref<32xf32, #tpu.memory_space<smem>>
    %146 = vector.broadcast %145 : f32 to vector<16x16xf32>
    %147 = arith.addf %144, %146 : vector<16x16xf32>
    %c1_64 = arith.constant 1 : index
    %148 = memref.load %arg23[%c1_64] : memref<32xf32, #tpu.memory_space<smem>>
    %149 = vector.broadcast %148 : f32 to vector<16x16xf32>
    %150 = arith.mulf %149, %1 : vector<16x16xf32>
    %151 = arith.addf %147, %150 : vector<16x16xf32>
    %152 = arith.addf %151, %2 : vector<16x16xf32>
    %cst_65 = arith.constant dense<0xFF800000> : vector<16xf32>
    %153 = vector.multi_reduction <maximumf>, %152, %cst_65 [1] : vector<16x16xf32> to vector<16xf32>
    %154 = vector.shape_cast %153 : vector<16xf32> to vector<16x1xf32>
    %155 = vector.broadcast %154 : vector<16x1xf32> to vector<16x16xf32>
    %156 = arith.subf %152, %155 : vector<16x16xf32>
    %157 = math.exp %156 : vector<16x16xf32>
    %cst_66 = arith.constant dense<0.000000e+00> : vector<16xf32>
    %158 = vector.multi_reduction <add>, %157, %cst_66 [1] : vector<16x16xf32> to vector<16xf32>
    %159 = vector.shape_cast %158 : vector<16xf32> to vector<16x1xf32>
    %160 = vector.broadcast %159 : vector<16x1xf32> to vector<16x16xf32>
    %161 = arith.divf %157, %160 : vector<16x16xf32>
    %c1_67 = arith.constant 1 : index
    %162 = memref.load %arg25[%c1_67] : memref<32xf32, #tpu.memory_space<smem>>
    %163 = vector.broadcast %162 : f32 to vector<16x16xf32>
    %164 = arith.mulf %163, %161 : vector<16x16xf32>
    %165 = arith.addf %135, %164 : vector<16x16xf32>
    %c2 = arith.constant 2 : index
    %166 = memref.load %arg22[%c2] : memref<32xf32, #tpu.memory_space<smem>>
    %167 = vector.extract_strided_slice %103 {offsets = [0, 2], sizes = [16, 1], strides = [1, 1]} : vector<16x4xf32> to vector<16x1xf32>
    %168 = vector.broadcast %167 : vector<16x1xf32> to vector<16x16xf32>
    %169 = arith.subf %100, %168 : vector<16x16xf32>
    %170 = vector.extract_strided_slice %104 {offsets = [2, 0], sizes = [1, 16], strides = [1, 1]} : vector<4x16xf32> to vector<1x16xf32>
    %171 = vector.broadcast %170 : vector<1x16xf32> to vector<16x16xf32>
    %172 = arith.subf %169, %171 : vector<16x16xf32>
    %173 = vector.broadcast %166 : f32 to vector<16x16xf32>
    %174 = arith.mulf %173, %172 : vector<16x16xf32>
    %c2_68 = arith.constant 2 : index
    %175 = memref.load %arg24[%c2_68] : memref<32xf32, #tpu.memory_space<smem>>
    %176 = vector.broadcast %175 : f32 to vector<16x16xf32>
    %177 = arith.addf %174, %176 : vector<16x16xf32>
    %c2_69 = arith.constant 2 : index
    %178 = memref.load %arg23[%c2_69] : memref<32xf32, #tpu.memory_space<smem>>
    %179 = vector.broadcast %178 : f32 to vector<16x16xf32>
    %180 = arith.mulf %179, %1 : vector<16x16xf32>
    %181 = arith.addf %177, %180 : vector<16x16xf32>
    %182 = arith.addf %181, %2 : vector<16x16xf32>
    %cst_70 = arith.constant dense<0xFF800000> : vector<16xf32>
    %183 = vector.multi_reduction <maximumf>, %182, %cst_70 [1] : vector<16x16xf32> to vector<16xf32>
    %184 = vector.shape_cast %183 : vector<16xf32> to vector<16x1xf32>
    %185 = vector.broadcast %184 : vector<16x1xf32> to vector<16x16xf32>
    %186 = arith.subf %182, %185 : vector<16x16xf32>
    %187 = math.exp %186 : vector<16x16xf32>
    %cst_71 = arith.constant dense<0.000000e+00> : vector<16xf32>
    %188 = vector.multi_reduction <add>, %187, %cst_71 [1] : vector<16x16xf32> to vector<16xf32>
    %189 = vector.shape_cast %188 : vector<16xf32> to vector<16x1xf32>
    %190 = vector.broadcast %189 : vector<16x1xf32> to vector<16x16xf32>
    %191 = arith.divf %187, %190 : vector<16x16xf32>
    %c2_72 = arith.constant 2 : index
    %192 = memref.load %arg25[%c2_72] : memref<32xf32, #tpu.memory_space<smem>>
    %193 = vector.broadcast %192 : f32 to vector<16x16xf32>
    %194 = arith.mulf %193, %191 : vector<16x16xf32>
    %195 = arith.addf %165, %194 : vector<16x16xf32>
    %c3 = arith.constant 3 : index
    %196 = memref.load %arg22[%c3] : memref<32xf32, #tpu.memory_space<smem>>
    %197 = vector.extract_strided_slice %103 {offsets = [0, 3], sizes = [16, 1], strides = [1, 1]} : vector<16x4xf32> to vector<16x1xf32>
    %198 = vector.broadcast %197 : vector<16x1xf32> to vector<16x16xf32>
    %199 = arith.subf %100, %198 : vector<16x16xf32>
    %200 = vector.extract_strided_slice %104 {offsets = [3, 0], sizes = [1, 16], strides = [1, 1]} : vector<4x16xf32> to vector<1x16xf32>
    %201 = vector.broadcast %200 : vector<1x16xf32> to vector<16x16xf32>
    %202 = arith.subf %199, %201 : vector<16x16xf32>
    %203 = vector.broadcast %196 : f32 to vector<16x16xf32>
    %204 = arith.mulf %203, %202 : vector<16x16xf32>
    %c3_73 = arith.constant 3 : index
    %205 = memref.load %arg24[%c3_73] : memref<32xf32, #tpu.memory_space<smem>>
    %206 = vector.broadcast %205 : f32 to vector<16x16xf32>
    %207 = arith.addf %204, %206 : vector<16x16xf32>
    %c3_74 = arith.constant 3 : index
    %208 = memref.load %arg23[%c3_74] : memref<32xf32, #tpu.memory_space<smem>>
    %209 = vector.broadcast %208 : f32 to vector<16x16xf32>
    %210 = arith.mulf %209, %1 : vector<16x16xf32>
    %211 = arith.addf %207, %210 : vector<16x16xf32>
    %212 = arith.addf %211, %2 : vector<16x16xf32>
    %cst_75 = arith.constant dense<0xFF800000> : vector<16xf32>
    %213 = vector.multi_reduction <maximumf>, %212, %cst_75 [1] : vector<16x16xf32> to vector<16xf32>
    %214 = vector.shape_cast %213 : vector<16xf32> to vector<16x1xf32>
    %215 = vector.broadcast %214 : vector<16x1xf32> to vector<16x16xf32>
    %216 = arith.subf %212, %215 : vector<16x16xf32>
    %217 = math.exp %216 : vector<16x16xf32>
    %cst_76 = arith.constant dense<0.000000e+00> : vector<16xf32>
    %218 = vector.multi_reduction <add>, %217, %cst_76 [1] : vector<16x16xf32> to vector<16xf32>
    %219 = vector.shape_cast %218 : vector<16xf32> to vector<16x1xf32>
    %220 = vector.broadcast %219 : vector<16x1xf32> to vector<16x16xf32>
    %221 = arith.divf %217, %220 : vector<16x16xf32>
    %c3_77 = arith.constant 3 : index
    %222 = memref.load %arg25[%c3_77] : memref<32xf32, #tpu.memory_space<smem>>
    %223 = vector.broadcast %222 : f32 to vector<16x16xf32>
    %224 = arith.mulf %223, %221 : vector<16x16xf32>
    %225 = arith.addf %195, %224 : vector<16x16xf32>
    %cst_78 = arith.constant dense<0.000000e+00> : vector<16x8xf32>
    %226 = tpu.matmul %225, %99, %cst_78 {dimension_numbers = #tpu.dot_dimension_numbers<[1], [0], [0], [1], [0, 0, 1, 1], [], []>} : vector<16x16xf32>, vector<16x8xf32>, vector<16x8xf32> -> vector<16x8xf32>
    %227 = vector.extract_strided_slice %50 {offsets = [0, 0], sizes = [8, 32], strides = [1, 1]} : vector<32x32xf32> to vector<8x32xf32>
    %cst_79 = arith.constant dense<0.000000e+00> : vector<16x32xf32>
    %228 = tpu.matmul %226, %227, %cst_79 {dimension_numbers = #tpu.dot_dimension_numbers<[1], [0], [0], [1], [0, 0, 1, 1], [], []>} : vector<16x8xf32>, vector<8x32xf32>, vector<16x32xf32> -> vector<16x32xf32>
    %229 = vector.broadcast %52 : vector<1x32xf32> to vector<16x32xf32>
    %230 = arith.addf %229, %228 : vector<16x32xf32>
    %231 = vector.extract_strided_slice %44 {offsets = [0, 8], sizes = [16, 8], strides = [1, 1]} : vector<16x96xf32> to vector<16x8xf32>
    %cst_80 = arith.constant dense<0.000000e+00> : vector<16xf32>
    %232 = vector.multi_reduction <add>, %231, %cst_80 [1] : vector<16x8xf32> to vector<16xf32>
    %233 = vector.shape_cast %232 : vector<16xf32> to vector<16x1xf32>
    %cst_81 = arith.constant 8.000000e+00 : f32
    %234 = vector.broadcast %cst_81 : f32 to vector<16x1xf32>
    %235 = arith.divf %233, %234 : vector<16x1xf32>
    %236 = vector.broadcast %235 : vector<16x1xf32> to vector<16x8xf32>
    %237 = arith.subf %231, %236 : vector<16x8xf32>
    %238 = arith.mulf %237, %237 : vector<16x8xf32>
    %cst_82 = arith.constant dense<0.000000e+00> : vector<16xf32>
    %239 = vector.multi_reduction <add>, %238, %cst_82 [1] : vector<16x8xf32> to vector<16xf32>
    %240 = vector.shape_cast %239 : vector<16xf32> to vector<16x1xf32>
    %cst_83 = arith.constant 8.000000e+00 : f32
    %241 = vector.broadcast %cst_83 : f32 to vector<16x1xf32>
    %242 = arith.divf %240, %241 : vector<16x1xf32>
    %243 = vector.broadcast %235 : vector<16x1xf32> to vector<16x8xf32>
    %244 = arith.subf %231, %243 : vector<16x8xf32>
    %cst_84 = arith.constant 9.99999974E-6 : f32
    %245 = vector.broadcast %cst_84 : f32 to vector<16x1xf32>
    %246 = arith.addf %242, %245 : vector<16x1xf32>
    %247 = math.rsqrt %246 : vector<16x1xf32>
    %248 = vector.broadcast %247 : vector<16x1xf32> to vector<16x8xf32>
    %249 = arith.mulf %244, %248 : vector<16x8xf32>
    %250 = vector.broadcast %46 : vector<1x8xf32> to vector<16x8xf32>
    %251 = arith.mulf %249, %250 : vector<16x8xf32>
    %252 = vector.broadcast %48 : vector<1x8xf32> to vector<16x8xf32>
    %253 = arith.addf %251, %252 : vector<16x8xf32>
    %254 = vector.extract_strided_slice %44 {offsets = [0, 40], sizes = [16, 8], strides = [1, 1]} : vector<16x96xf32> to vector<16x8xf32>
    %cst_85 = arith.constant dense<0.000000e+00> : vector<16xf32>
    %255 = vector.multi_reduction <add>, %254, %cst_85 [1] : vector<16x8xf32> to vector<16xf32>
    %256 = vector.shape_cast %255 : vector<16xf32> to vector<16x1xf32>
    %cst_86 = arith.constant 8.000000e+00 : f32
    %257 = vector.broadcast %cst_86 : f32 to vector<16x1xf32>
    %258 = arith.divf %256, %257 : vector<16x1xf32>
    %259 = vector.broadcast %258 : vector<16x1xf32> to vector<16x8xf32>
    %260 = arith.subf %254, %259 : vector<16x8xf32>
    %261 = arith.mulf %260, %260 : vector<16x8xf32>
    %cst_87 = arith.constant dense<0.000000e+00> : vector<16xf32>
    %262 = vector.multi_reduction <add>, %261, %cst_87 [1] : vector<16x8xf32> to vector<16xf32>
    %263 = vector.shape_cast %262 : vector<16xf32> to vector<16x1xf32>
    %cst_88 = arith.constant 8.000000e+00 : f32
    %264 = vector.broadcast %cst_88 : f32 to vector<16x1xf32>
    %265 = arith.divf %263, %264 : vector<16x1xf32>
    %266 = vector.broadcast %258 : vector<16x1xf32> to vector<16x8xf32>
    %267 = arith.subf %254, %266 : vector<16x8xf32>
    %cst_89 = arith.constant 9.99999974E-6 : f32
    %268 = vector.broadcast %cst_89 : f32 to vector<16x1xf32>
    %269 = arith.addf %265, %268 : vector<16x1xf32>
    %270 = math.rsqrt %269 : vector<16x1xf32>
    %271 = vector.broadcast %270 : vector<16x1xf32> to vector<16x8xf32>
    %272 = arith.mulf %267, %271 : vector<16x8xf32>
    %273 = vector.broadcast %46 : vector<1x8xf32> to vector<16x8xf32>
    %274 = arith.mulf %272, %273 : vector<16x8xf32>
    %275 = vector.broadcast %48 : vector<1x8xf32> to vector<16x8xf32>
    %276 = arith.addf %274, %275 : vector<16x8xf32>
    %277 = vector.extract_strided_slice %44 {offsets = [0, 72], sizes = [16, 8], strides = [1, 1]} : vector<16x96xf32> to vector<16x8xf32>
    %cst_90 = arith.constant dense<0.000000e+00> : vector<16x16xf32>
    %278 = tpu.matmul %253, %276, %cst_90 {dimension_numbers = #tpu.dot_dimension_numbers<[1], [1], [0], [0], [0, 0, 1, 0], [], []>} : vector<16x8xf32>, vector<16x8xf32>, vector<16x16xf32> -> vector<16x16xf32>
    %c0_91 = arith.constant 0 : index
    %c1_92 = arith.constant 1 : index
    %c0_93 = arith.constant 0 : index
    %c0_94 = arith.constant 0 : index
    %279 = vector.load %arg11[%c0_91, %c1_92, %c0_93, %c0_94] : memref<2x4x4x8xf32, #tpu.memory_space<vmem>>, vector<1x1x4x8xf32>
    %280 = vector.shape_cast %279 : vector<1x1x4x8xf32> to vector<4x8xf32>
    %cst_95 = arith.constant dense<0.000000e+00> : vector<16x4xf32>
    %281 = tpu.matmul %253, %280, %cst_95 {dimension_numbers = #tpu.dot_dimension_numbers<[1], [1], [0], [0], [0, 0, 1, 0], [], []>} : vector<16x8xf32>, vector<4x8xf32>, vector<16x4xf32> -> vector<16x4xf32>
    %cst_96 = arith.constant dense<0.000000e+00> : vector<4x16xf32>
    %282 = tpu.matmul %280, %276, %cst_96 {dimension_numbers = #tpu.dot_dimension_numbers<[1], [1], [0], [0], [0, 0, 1, 0], [], []>} : vector<4x8xf32>, vector<16x8xf32>, vector<4x16xf32> -> vector<4x16xf32>
    %cst_97 = arith.constant 0.000000e+00 : f32
    %283 = vector.broadcast %cst_97 : f32 to vector<16x16xf32>
    %c4 = arith.constant 4 : index
    %284 = memref.load %arg22[%c4] : memref<32xf32, #tpu.memory_space<smem>>
    %285 = vector.extract_strided_slice %281 {offsets = [0, 0], sizes = [16, 1], strides = [1, 1]} : vector<16x4xf32> to vector<16x1xf32>
    %286 = vector.broadcast %285 : vector<16x1xf32> to vector<16x16xf32>
    %287 = arith.subf %278, %286 : vector<16x16xf32>
    %288 = vector.extract_strided_slice %282 {offsets = [0, 0], sizes = [1, 16], strides = [1, 1]} : vector<4x16xf32> to vector<1x16xf32>
    %289 = vector.broadcast %288 : vector<1x16xf32> to vector<16x16xf32>
    %290 = arith.subf %287, %289 : vector<16x16xf32>
    %291 = vector.broadcast %284 : f32 to vector<16x16xf32>
    %292 = arith.mulf %291, %290 : vector<16x16xf32>
    %c4_98 = arith.constant 4 : index
    %293 = memref.load %arg24[%c4_98] : memref<32xf32, #tpu.memory_space<smem>>
    %294 = vector.broadcast %293 : f32 to vector<16x16xf32>
    %295 = arith.addf %292, %294 : vector<16x16xf32>
    %c4_99 = arith.constant 4 : index
    %296 = memref.load %arg23[%c4_99] : memref<32xf32, #tpu.memory_space<smem>>
    %297 = vector.broadcast %296 : f32 to vector<16x16xf32>
    %298 = arith.mulf %297, %1 : vector<16x16xf32>
    %299 = arith.addf %295, %298 : vector<16x16xf32>
    %300 = arith.addf %299, %2 : vector<16x16xf32>
    %cst_100 = arith.constant dense<0xFF800000> : vector<16xf32>
    %301 = vector.multi_reduction <maximumf>, %300, %cst_100 [1] : vector<16x16xf32> to vector<16xf32>
    %302 = vector.shape_cast %301 : vector<16xf32> to vector<16x1xf32>
    %303 = vector.broadcast %302 : vector<16x1xf32> to vector<16x16xf32>
    %304 = arith.subf %300, %303 : vector<16x16xf32>
    %305 = math.exp %304 : vector<16x16xf32>
    %cst_101 = arith.constant dense<0.000000e+00> : vector<16xf32>
    %306 = vector.multi_reduction <add>, %305, %cst_101 [1] : vector<16x16xf32> to vector<16xf32>
    %307 = vector.shape_cast %306 : vector<16xf32> to vector<16x1xf32>
    %308 = vector.broadcast %307 : vector<16x1xf32> to vector<16x16xf32>
    %309 = arith.divf %305, %308 : vector<16x16xf32>
    %c4_102 = arith.constant 4 : index
    %310 = memref.load %arg25[%c4_102] : memref<32xf32, #tpu.memory_space<smem>>
    %311 = vector.broadcast %310 : f32 to vector<16x16xf32>
    %312 = arith.mulf %311, %309 : vector<16x16xf32>
    %313 = arith.addf %283, %312 : vector<16x16xf32>
    %c5 = arith.constant 5 : index
    %314 = memref.load %arg22[%c5] : memref<32xf32, #tpu.memory_space<smem>>
    %315 = vector.extract_strided_slice %281 {offsets = [0, 1], sizes = [16, 1], strides = [1, 1]} : vector<16x4xf32> to vector<16x1xf32>
    %316 = vector.broadcast %315 : vector<16x1xf32> to vector<16x16xf32>
    %317 = arith.subf %278, %316 : vector<16x16xf32>
    %318 = vector.extract_strided_slice %282 {offsets = [1, 0], sizes = [1, 16], strides = [1, 1]} : vector<4x16xf32> to vector<1x16xf32>
    %319 = vector.broadcast %318 : vector<1x16xf32> to vector<16x16xf32>
    %320 = arith.subf %317, %319 : vector<16x16xf32>
    %321 = vector.broadcast %314 : f32 to vector<16x16xf32>
    %322 = arith.mulf %321, %320 : vector<16x16xf32>
    %c5_103 = arith.constant 5 : index
    %323 = memref.load %arg24[%c5_103] : memref<32xf32, #tpu.memory_space<smem>>
    %324 = vector.broadcast %323 : f32 to vector<16x16xf32>
    %325 = arith.addf %322, %324 : vector<16x16xf32>
    %c5_104 = arith.constant 5 : index
    %326 = memref.load %arg23[%c5_104] : memref<32xf32, #tpu.memory_space<smem>>
    %327 = vector.broadcast %326 : f32 to vector<16x16xf32>
    %328 = arith.mulf %327, %1 : vector<16x16xf32>
    %329 = arith.addf %325, %328 : vector<16x16xf32>
    %330 = arith.addf %329, %2 : vector<16x16xf32>
    %cst_105 = arith.constant dense<0xFF800000> : vector<16xf32>
    %331 = vector.multi_reduction <maximumf>, %330, %cst_105 [1] : vector<16x16xf32> to vector<16xf32>
    %332 = vector.shape_cast %331 : vector<16xf32> to vector<16x1xf32>
    %333 = vector.broadcast %332 : vector<16x1xf32> to vector<16x16xf32>
    %334 = arith.subf %330, %333 : vector<16x16xf32>
    %335 = math.exp %334 : vector<16x16xf32>
    %cst_106 = arith.constant dense<0.000000e+00> : vector<16xf32>
    %336 = vector.multi_reduction <add>, %335, %cst_106 [1] : vector<16x16xf32> to vector<16xf32>
    %337 = vector.shape_cast %336 : vector<16xf32> to vector<16x1xf32>
    %338 = vector.broadcast %337 : vector<16x1xf32> to vector<16x16xf32>
    %339 = arith.divf %335, %338 : vector<16x16xf32>
    %c5_107 = arith.constant 5 : index
    %340 = memref.load %arg25[%c5_107] : memref<32xf32, #tpu.memory_space<smem>>
    %341 = vector.broadcast %340 : f32 to vector<16x16xf32>
    %342 = arith.mulf %341, %339 : vector<16x16xf32>
    %343 = arith.addf %313, %342 : vector<16x16xf32>
    %c6 = arith.constant 6 : index
    %344 = memref.load %arg22[%c6] : memref<32xf32, #tpu.memory_space<smem>>
    %345 = vector.extract_strided_slice %281 {offsets = [0, 2], sizes = [16, 1], strides = [1, 1]} : vector<16x4xf32> to vector<16x1xf32>
    %346 = vector.broadcast %345 : vector<16x1xf32> to vector<16x16xf32>
    %347 = arith.subf %278, %346 : vector<16x16xf32>
    %348 = vector.extract_strided_slice %282 {offsets = [2, 0], sizes = [1, 16], strides = [1, 1]} : vector<4x16xf32> to vector<1x16xf32>
    %349 = vector.broadcast %348 : vector<1x16xf32> to vector<16x16xf32>
    %350 = arith.subf %347, %349 : vector<16x16xf32>
    %351 = vector.broadcast %344 : f32 to vector<16x16xf32>
    %352 = arith.mulf %351, %350 : vector<16x16xf32>
    %c6_108 = arith.constant 6 : index
    %353 = memref.load %arg24[%c6_108] : memref<32xf32, #tpu.memory_space<smem>>
    %354 = vector.broadcast %353 : f32 to vector<16x16xf32>
    %355 = arith.addf %352, %354 : vector<16x16xf32>
    %c6_109 = arith.constant 6 : index
    %356 = memref.load %arg23[%c6_109] : memref<32xf32, #tpu.memory_space<smem>>
    %357 = vector.broadcast %356 : f32 to vector<16x16xf32>
    %358 = arith.mulf %357, %1 : vector<16x16xf32>
    %359 = arith.addf %355, %358 : vector<16x16xf32>
    %360 = arith.addf %359, %2 : vector<16x16xf32>
    %cst_110 = arith.constant dense<0xFF800000> : vector<16xf32>
    %361 = vector.multi_reduction <maximumf>, %360, %cst_110 [1] : vector<16x16xf32> to vector<16xf32>
    %362 = vector.shape_cast %361 : vector<16xf32> to vector<16x1xf32>
    %363 = vector.broadcast %362 : vector<16x1xf32> to vector<16x16xf32>
    %364 = arith.subf %360, %363 : vector<16x16xf32>
    %365 = math.exp %364 : vector<16x16xf32>
    %cst_111 = arith.constant dense<0.000000e+00> : vector<16xf32>
    %366 = vector.multi_reduction <add>, %365, %cst_111 [1] : vector<16x16xf32> to vector<16xf32>
    %367 = vector.shape_cast %366 : vector<16xf32> to vector<16x1xf32>
    %368 = vector.broadcast %367 : vector<16x1xf32> to vector<16x16xf32>
    %369 = arith.divf %365, %368 : vector<16x16xf32>
    %c6_112 = arith.constant 6 : index
    %370 = memref.load %arg25[%c6_112] : memref<32xf32, #tpu.memory_space<smem>>
    %371 = vector.broadcast %370 : f32 to vector<16x16xf32>
    %372 = arith.mulf %371, %369 : vector<16x16xf32>
    %373 = arith.addf %343, %372 : vector<16x16xf32>
    %c7 = arith.constant 7 : index
    %374 = memref.load %arg22[%c7] : memref<32xf32, #tpu.memory_space<smem>>
    %375 = vector.extract_strided_slice %281 {offsets = [0, 3], sizes = [16, 1], strides = [1, 1]} : vector<16x4xf32> to vector<16x1xf32>
    %376 = vector.broadcast %375 : vector<16x1xf32> to vector<16x16xf32>
    %377 = arith.subf %278, %376 : vector<16x16xf32>
    %378 = vector.extract_strided_slice %282 {offsets = [3, 0], sizes = [1, 16], strides = [1, 1]} : vector<4x16xf32> to vector<1x16xf32>
    %379 = vector.broadcast %378 : vector<1x16xf32> to vector<16x16xf32>
    %380 = arith.subf %377, %379 : vector<16x16xf32>
    %381 = vector.broadcast %374 : f32 to vector<16x16xf32>
    %382 = arith.mulf %381, %380 : vector<16x16xf32>
    %c7_113 = arith.constant 7 : index
    %383 = memref.load %arg24[%c7_113] : memref<32xf32, #tpu.memory_space<smem>>
    %384 = vector.broadcast %383 : f32 to vector<16x16xf32>
    %385 = arith.addf %382, %384 : vector<16x16xf32>
    %c7_114 = arith.constant 7 : index
    %386 = memref.load %arg23[%c7_114] : memref<32xf32, #tpu.memory_space<smem>>
    %387 = vector.broadcast %386 : f32 to vector<16x16xf32>
    %388 = arith.mulf %387, %1 : vector<16x16xf32>
    %389 = arith.addf %385, %388 : vector<16x16xf32>
    %390 = arith.addf %389, %2 : vector<16x16xf32>
    %cst_115 = arith.constant dense<0xFF800000> : vector<16xf32>
    %391 = vector.multi_reduction <maximumf>, %390, %cst_115 [1] : vector<16x16xf32> to vector<16xf32>
    %392 = vector.shape_cast %391 : vector<16xf32> to vector<16x1xf32>
    %393 = vector.broadcast %392 : vector<16x1xf32> to vector<16x16xf32>
    %394 = arith.subf %390, %393 : vector<16x16xf32>
    %395 = math.exp %394 : vector<16x16xf32>
    %cst_116 = arith.constant dense<0.000000e+00> : vector<16xf32>
    %396 = vector.multi_reduction <add>, %395, %cst_116 [1] : vector<16x16xf32> to vector<16xf32>
    %397 = vector.shape_cast %396 : vector<16xf32> to vector<16x1xf32>
    %398 = vector.broadcast %397 : vector<16x1xf32> to vector<16x16xf32>
    %399 = arith.divf %395, %398 : vector<16x16xf32>
    %c7_117 = arith.constant 7 : index
    %400 = memref.load %arg25[%c7_117] : memref<32xf32, #tpu.memory_space<smem>>
    %401 = vector.broadcast %400 : f32 to vector<16x16xf32>
    %402 = arith.mulf %401, %399 : vector<16x16xf32>
    %403 = arith.addf %373, %402 : vector<16x16xf32>
    %cst_118 = arith.constant dense<0.000000e+00> : vector<16x8xf32>
    %404 = tpu.matmul %403, %277, %cst_118 {dimension_numbers = #tpu.dot_dimension_numbers<[1], [0], [0], [1], [0, 0, 1, 1], [], []>} : vector<16x16xf32>, vector<16x8xf32>, vector<16x8xf32> -> vector<16x8xf32>
    %405 = vector.extract_strided_slice %50 {offsets = [8, 0], sizes = [8, 32], strides = [1, 1]} : vector<32x32xf32> to vector<8x32xf32>
    %cst_119 = arith.constant dense<0.000000e+00> : vector<16x32xf32>
    %406 = tpu.matmul %404, %405, %cst_119 {dimension_numbers = #tpu.dot_dimension_numbers<[1], [0], [0], [1], [0, 0, 1, 1], [], []>} : vector<16x8xf32>, vector<8x32xf32>, vector<16x32xf32> -> vector<16x32xf32>
    %407 = arith.addf %230, %406 : vector<16x32xf32>
    %408 = vector.extract_strided_slice %44 {offsets = [0, 16], sizes = [16, 8], strides = [1, 1]} : vector<16x96xf32> to vector<16x8xf32>
    %cst_120 = arith.constant dense<0.000000e+00> : vector<16xf32>
    %409 = vector.multi_reduction <add>, %408, %cst_120 [1] : vector<16x8xf32> to vector<16xf32>
    %410 = vector.shape_cast %409 : vector<16xf32> to vector<16x1xf32>
    %cst_121 = arith.constant 8.000000e+00 : f32
    %411 = vector.broadcast %cst_121 : f32 to vector<16x1xf32>
    %412 = arith.divf %410, %411 : vector<16x1xf32>
    %413 = vector.broadcast %412 : vector<16x1xf32> to vector<16x8xf32>
    %414 = arith.subf %408, %413 : vector<16x8xf32>
    %415 = arith.mulf %414, %414 : vector<16x8xf32>
    %cst_122 = arith.constant dense<0.000000e+00> : vector<16xf32>
    %416 = vector.multi_reduction <add>, %415, %cst_122 [1] : vector<16x8xf32> to vector<16xf32>
    %417 = vector.shape_cast %416 : vector<16xf32> to vector<16x1xf32>
    %cst_123 = arith.constant 8.000000e+00 : f32
    %418 = vector.broadcast %cst_123 : f32 to vector<16x1xf32>
    %419 = arith.divf %417, %418 : vector<16x1xf32>
    %420 = vector.broadcast %412 : vector<16x1xf32> to vector<16x8xf32>
    %421 = arith.subf %408, %420 : vector<16x8xf32>
    %cst_124 = arith.constant 9.99999974E-6 : f32
    %422 = vector.broadcast %cst_124 : f32 to vector<16x1xf32>
    %423 = arith.addf %419, %422 : vector<16x1xf32>
    %424 = math.rsqrt %423 : vector<16x1xf32>
    %425 = vector.broadcast %424 : vector<16x1xf32> to vector<16x8xf32>
    %426 = arith.mulf %421, %425 : vector<16x8xf32>
    %427 = vector.broadcast %46 : vector<1x8xf32> to vector<16x8xf32>
    %428 = arith.mulf %426, %427 : vector<16x8xf32>
    %429 = vector.broadcast %48 : vector<1x8xf32> to vector<16x8xf32>
    %430 = arith.addf %428, %429 : vector<16x8xf32>
    %431 = vector.extract_strided_slice %44 {offsets = [0, 48], sizes = [16, 8], strides = [1, 1]} : vector<16x96xf32> to vector<16x8xf32>
    %cst_125 = arith.constant dense<0.000000e+00> : vector<16xf32>
    %432 = vector.multi_reduction <add>, %431, %cst_125 [1] : vector<16x8xf32> to vector<16xf32>
    %433 = vector.shape_cast %432 : vector<16xf32> to vector<16x1xf32>
    %cst_126 = arith.constant 8.000000e+00 : f32
    %434 = vector.broadcast %cst_126 : f32 to vector<16x1xf32>
    %435 = arith.divf %433, %434 : vector<16x1xf32>
    %436 = vector.broadcast %435 : vector<16x1xf32> to vector<16x8xf32>
    %437 = arith.subf %431, %436 : vector<16x8xf32>
    %438 = arith.mulf %437, %437 : vector<16x8xf32>
    %cst_127 = arith.constant dense<0.000000e+00> : vector<16xf32>
    %439 = vector.multi_reduction <add>, %438, %cst_127 [1] : vector<16x8xf32> to vector<16xf32>
    %440 = vector.shape_cast %439 : vector<16xf32> to vector<16x1xf32>
    %cst_128 = arith.constant 8.000000e+00 : f32
    %441 = vector.broadcast %cst_128 : f32 to vector<16x1xf32>
    %442 = arith.divf %440, %441 : vector<16x1xf32>
    %443 = vector.broadcast %435 : vector<16x1xf32> to vector<16x8xf32>
    %444 = arith.subf %431, %443 : vector<16x8xf32>
    %cst_129 = arith.constant 9.99999974E-6 : f32
    %445 = vector.broadcast %cst_129 : f32 to vector<16x1xf32>
    %446 = arith.addf %442, %445 : vector<16x1xf32>
    %447 = math.rsqrt %446 : vector<16x1xf32>
    %448 = vector.broadcast %447 : vector<16x1xf32> to vector<16x8xf32>
    %449 = arith.mulf %444, %448 : vector<16x8xf32>
    %450 = vector.broadcast %46 : vector<1x8xf32> to vector<16x8xf32>
    %451 = arith.mulf %449, %450 : vector<16x8xf32>
    %452 = vector.broadcast %48 : vector<1x8xf32> to vector<16x8xf32>
    %453 = arith.addf %451, %452 : vector<16x8xf32>
    %454 = vector.extract_strided_slice %44 {offsets = [0, 80], sizes = [16, 8], strides = [1, 1]} : vector<16x96xf32> to vector<16x8xf32>
    %cst_130 = arith.constant dense<0.000000e+00> : vector<16x16xf32>
    %455 = tpu.matmul %430, %453, %cst_130 {dimension_numbers = #tpu.dot_dimension_numbers<[1], [1], [0], [0], [0, 0, 1, 0], [], []>} : vector<16x8xf32>, vector<16x8xf32>, vector<16x16xf32> -> vector<16x16xf32>
    %c0_131 = arith.constant 0 : index
    %c2_132 = arith.constant 2 : index
    %c0_133 = arith.constant 0 : index
    %c0_134 = arith.constant 0 : index
    %456 = vector.load %arg11[%c0_131, %c2_132, %c0_133, %c0_134] : memref<2x4x4x8xf32, #tpu.memory_space<vmem>>, vector<1x1x4x8xf32>
    %457 = vector.shape_cast %456 : vector<1x1x4x8xf32> to vector<4x8xf32>
    %cst_135 = arith.constant dense<0.000000e+00> : vector<16x4xf32>
    %458 = tpu.matmul %430, %457, %cst_135 {dimension_numbers = #tpu.dot_dimension_numbers<[1], [1], [0], [0], [0, 0, 1, 0], [], []>} : vector<16x8xf32>, vector<4x8xf32>, vector<16x4xf32> -> vector<16x4xf32>
    %cst_136 = arith.constant dense<0.000000e+00> : vector<4x16xf32>
    %459 = tpu.matmul %457, %453, %cst_136 {dimension_numbers = #tpu.dot_dimension_numbers<[1], [1], [0], [0], [0, 0, 1, 0], [], []>} : vector<4x8xf32>, vector<16x8xf32>, vector<4x16xf32> -> vector<4x16xf32>
    %cst_137 = arith.constant 0.000000e+00 : f32
    %460 = vector.broadcast %cst_137 : f32 to vector<16x16xf32>
    %c8 = arith.constant 8 : index
    %461 = memref.load %arg22[%c8] : memref<32xf32, #tpu.memory_space<smem>>
    %462 = vector.extract_strided_slice %458 {offsets = [0, 0], sizes = [16, 1], strides = [1, 1]} : vector<16x4xf32> to vector<16x1xf32>
    %463 = vector.broadcast %462 : vector<16x1xf32> to vector<16x16xf32>
    %464 = arith.subf %455, %463 : vector<16x16xf32>
    %465 = vector.extract_strided_slice %459 {offsets = [0, 0], sizes = [1, 16], strides = [1, 1]} : vector<4x16xf32> to vector<1x16xf32>
    %466 = vector.broadcast %465 : vector<1x16xf32> to vector<16x16xf32>
    %467 = arith.subf %464, %466 : vector<16x16xf32>
    %468 = vector.broadcast %461 : f32 to vector<16x16xf32>
    %469 = arith.mulf %468, %467 : vector<16x16xf32>
    %c8_138 = arith.constant 8 : index
    %470 = memref.load %arg24[%c8_138] : memref<32xf32, #tpu.memory_space<smem>>
    %471 = vector.broadcast %470 : f32 to vector<16x16xf32>
    %472 = arith.addf %469, %471 : vector<16x16xf32>
    %c8_139 = arith.constant 8 : index
    %473 = memref.load %arg23[%c8_139] : memref<32xf32, #tpu.memory_space<smem>>
    %474 = vector.broadcast %473 : f32 to vector<16x16xf32>
    %475 = arith.mulf %474, %1 : vector<16x16xf32>
    %476 = arith.addf %472, %475 : vector<16x16xf32>
    %477 = arith.addf %476, %2 : vector<16x16xf32>
    %cst_140 = arith.constant dense<0xFF800000> : vector<16xf32>
    %478 = vector.multi_reduction <maximumf>, %477, %cst_140 [1] : vector<16x16xf32> to vector<16xf32>
    %479 = vector.shape_cast %478 : vector<16xf32> to vector<16x1xf32>
    %480 = vector.broadcast %479 : vector<16x1xf32> to vector<16x16xf32>
    %481 = arith.subf %477, %480 : vector<16x16xf32>
    %482 = math.exp %481 : vector<16x16xf32>
    %cst_141 = arith.constant dense<0.000000e+00> : vector<16xf32>
    %483 = vector.multi_reduction <add>, %482, %cst_141 [1] : vector<16x16xf32> to vector<16xf32>
    %484 = vector.shape_cast %483 : vector<16xf32> to vector<16x1xf32>
    %485 = vector.broadcast %484 : vector<16x1xf32> to vector<16x16xf32>
    %486 = arith.divf %482, %485 : vector<16x16xf32>
    %c8_142 = arith.constant 8 : index
    %487 = memref.load %arg25[%c8_142] : memref<32xf32, #tpu.memory_space<smem>>
    %488 = vector.broadcast %487 : f32 to vector<16x16xf32>
    %489 = arith.mulf %488, %486 : vector<16x16xf32>
    %490 = arith.addf %460, %489 : vector<16x16xf32>
    %c9 = arith.constant 9 : index
    %491 = memref.load %arg22[%c9] : memref<32xf32, #tpu.memory_space<smem>>
    %492 = vector.extract_strided_slice %458 {offsets = [0, 1], sizes = [16, 1], strides = [1, 1]} : vector<16x4xf32> to vector<16x1xf32>
    %493 = vector.broadcast %492 : vector<16x1xf32> to vector<16x16xf32>
    %494 = arith.subf %455, %493 : vector<16x16xf32>
    %495 = vector.extract_strided_slice %459 {offsets = [1, 0], sizes = [1, 16], strides = [1, 1]} : vector<4x16xf32> to vector<1x16xf32>
    %496 = vector.broadcast %495 : vector<1x16xf32> to vector<16x16xf32>
    %497 = arith.subf %494, %496 : vector<16x16xf32>
    %498 = vector.broadcast %491 : f32 to vector<16x16xf32>
    %499 = arith.mulf %498, %497 : vector<16x16xf32>
    %c9_143 = arith.constant 9 : index
    %500 = memref.load %arg24[%c9_143] : memref<32xf32, #tpu.memory_space<smem>>
    %501 = vector.broadcast %500 : f32 to vector<16x16xf32>
    %502 = arith.addf %499, %501 : vector<16x16xf32>
    %c9_144 = arith.constant 9 : index
    %503 = memref.load %arg23[%c9_144] : memref<32xf32, #tpu.memory_space<smem>>
    %504 = vector.broadcast %503 : f32 to vector<16x16xf32>
    %505 = arith.mulf %504, %1 : vector<16x16xf32>
    %506 = arith.addf %502, %505 : vector<16x16xf32>
    %507 = arith.addf %506, %2 : vector<16x16xf32>
    %cst_145 = arith.constant dense<0xFF800000> : vector<16xf32>
    %508 = vector.multi_reduction <maximumf>, %507, %cst_145 [1] : vector<16x16xf32> to vector<16xf32>
    %509 = vector.shape_cast %508 : vector<16xf32> to vector<16x1xf32>
    %510 = vector.broadcast %509 : vector<16x1xf32> to vector<16x16xf32>
    %511 = arith.subf %507, %510 : vector<16x16xf32>
    %512 = math.exp %511 : vector<16x16xf32>
    %cst_146 = arith.constant dense<0.000000e+00> : vector<16xf32>
    %513 = vector.multi_reduction <add>, %512, %cst_146 [1] : vector<16x16xf32> to vector<16xf32>
    %514 = vector.shape_cast %513 : vector<16xf32> to vector<16x1xf32>
    %515 = vector.broadcast %514 : vector<16x1xf32> to vector<16x16xf32>
    %516 = arith.divf %512, %515 : vector<16x16xf32>
    %c9_147 = arith.constant 9 : index
    %517 = memref.load %arg25[%c9_147] : memref<32xf32, #tpu.memory_space<smem>>
    %518 = vector.broadcast %517 : f32 to vector<16x16xf32>
    %519 = arith.mulf %518, %516 : vector<16x16xf32>
    %520 = arith.addf %490, %519 : vector<16x16xf32>
    %c10 = arith.constant 10 : index
    %521 = memref.load %arg22[%c10] : memref<32xf32, #tpu.memory_space<smem>>
    %522 = vector.extract_strided_slice %458 {offsets = [0, 2], sizes = [16, 1], strides = [1, 1]} : vector<16x4xf32> to vector<16x1xf32>
    %523 = vector.broadcast %522 : vector<16x1xf32> to vector<16x16xf32>
    %524 = arith.subf %455, %523 : vector<16x16xf32>
    %525 = vector.extract_strided_slice %459 {offsets = [2, 0], sizes = [1, 16], strides = [1, 1]} : vector<4x16xf32> to vector<1x16xf32>
    %526 = vector.broadcast %525 : vector<1x16xf32> to vector<16x16xf32>
    %527 = arith.subf %524, %526 : vector<16x16xf32>
    %528 = vector.broadcast %521 : f32 to vector<16x16xf32>
    %529 = arith.mulf %528, %527 : vector<16x16xf32>
    %c10_148 = arith.constant 10 : index
    %530 = memref.load %arg24[%c10_148] : memref<32xf32, #tpu.memory_space<smem>>
    %531 = vector.broadcast %530 : f32 to vector<16x16xf32>
    %532 = arith.addf %529, %531 : vector<16x16xf32>
    %c10_149 = arith.constant 10 : index
    %533 = memref.load %arg23[%c10_149] : memref<32xf32, #tpu.memory_space<smem>>
    %534 = vector.broadcast %533 : f32 to vector<16x16xf32>
    %535 = arith.mulf %534, %1 : vector<16x16xf32>
    %536 = arith.addf %532, %535 : vector<16x16xf32>
    %537 = arith.addf %536, %2 : vector<16x16xf32>
    %cst_150 = arith.constant dense<0xFF800000> : vector<16xf32>
    %538 = vector.multi_reduction <maximumf>, %537, %cst_150 [1] : vector<16x16xf32> to vector<16xf32>
    %539 = vector.shape_cast %538 : vector<16xf32> to vector<16x1xf32>
    %540 = vector.broadcast %539 : vector<16x1xf32> to vector<16x16xf32>
    %541 = arith.subf %537, %540 : vector<16x16xf32>
    %542 = math.exp %541 : vector<16x16xf32>
    %cst_151 = arith.constant dense<0.000000e+00> : vector<16xf32>
    %543 = vector.multi_reduction <add>, %542, %cst_151 [1] : vector<16x16xf32> to vector<16xf32>
    %544 = vector.shape_cast %543 : vector<16xf32> to vector<16x1xf32>
    %545 = vector.broadcast %544 : vector<16x1xf32> to vector<16x16xf32>
    %546 = arith.divf %542, %545 : vector<16x16xf32>
    %c10_152 = arith.constant 10 : index
    %547 = memref.load %arg25[%c10_152] : memref<32xf32, #tpu.memory_space<smem>>
    %548 = vector.broadcast %547 : f32 to vector<16x16xf32>
    %549 = arith.mulf %548, %546 : vector<16x16xf32>
    %550 = arith.addf %520, %549 : vector<16x16xf32>
    %c11 = arith.constant 11 : index
    %551 = memref.load %arg22[%c11] : memref<32xf32, #tpu.memory_space<smem>>
    %552 = vector.extract_strided_slice %458 {offsets = [0, 3], sizes = [16, 1], strides = [1, 1]} : vector<16x4xf32> to vector<16x1xf32>
    %553 = vector.broadcast %552 : vector<16x1xf32> to vector<16x16xf32>
    %554 = arith.subf %455, %553 : vector<16x16xf32>
    %555 = vector.extract_strided_slice %459 {offsets = [3, 0], sizes = [1, 16], strides = [1, 1]} : vector<4x16xf32> to vector<1x16xf32>
    %556 = vector.broadcast %555 : vector<1x16xf32> to vector<16x16xf32>
    %557 = arith.subf %554, %556 : vector<16x16xf32>
    %558 = vector.broadcast %551 : f32 to vector<16x16xf32>
    %559 = arith.mulf %558, %557 : vector<16x16xf32>
    %c11_153 = arith.constant 11 : index
    %560 = memref.load %arg24[%c11_153] : memref<32xf32, #tpu.memory_space<smem>>
    %561 = vector.broadcast %560 : f32 to vector<16x16xf32>
    %562 = arith.addf %559, %561 : vector<16x16xf32>
    %c11_154 = arith.constant 11 : index
    %563 = memref.load %arg23[%c11_154] : memref<32xf32, #tpu.memory_space<smem>>
    %564 = vector.broadcast %563 : f32 to vector<16x16xf32>
    %565 = arith.mulf %564, %1 : vector<16x16xf32>
    %566 = arith.addf %562, %565 : vector<16x16xf32>
    %567 = arith.addf %566, %2 : vector<16x16xf32>
    %cst_155 = arith.constant dense<0xFF800000> : vector<16xf32>
    %568 = vector.multi_reduction <maximumf>, %567, %cst_155 [1] : vector<16x16xf32> to vector<16xf32>
    %569 = vector.shape_cast %568 : vector<16xf32> to vector<16x1xf32>
    %570 = vector.broadcast %569 : vector<16x1xf32> to vector<16x16xf32>
    %571 = arith.subf %567, %570 : vector<16x16xf32>
    %572 = math.exp %571 : vector<16x16xf32>
    %cst_156 = arith.constant dense<0.000000e+00> : vector<16xf32>
    %573 = vector.multi_reduction <add>, %572, %cst_156 [1] : vector<16x16xf32> to vector<16xf32>
    %574 = vector.shape_cast %573 : vector<16xf32> to vector<16x1xf32>
    %575 = vector.broadcast %574 : vector<16x1xf32> to vector<16x16xf32>
    %576 = arith.divf %572, %575 : vector<16x16xf32>
    %c11_157 = arith.constant 11 : index
    %577 = memref.load %arg25[%c11_157] : memref<32xf32, #tpu.memory_space<smem>>
    %578 = vector.broadcast %577 : f32 to vector<16x16xf32>
    %579 = arith.mulf %578, %576 : vector<16x16xf32>
    %580 = arith.addf %550, %579 : vector<16x16xf32>
    %cst_158 = arith.constant dense<0.000000e+00> : vector<16x8xf32>
    %581 = tpu.matmul %580, %454, %cst_158 {dimension_numbers = #tpu.dot_dimension_numbers<[1], [0], [0], [1], [0, 0, 1, 1], [], []>} : vector<16x16xf32>, vector<16x8xf32>, vector<16x8xf32> -> vector<16x8xf32>
    %582 = vector.extract_strided_slice %50 {offsets = [16, 0], sizes = [8, 32], strides = [1, 1]} : vector<32x32xf32> to vector<8x32xf32>
    %cst_159 = arith.constant dense<0.000000e+00> : vector<16x32xf32>
    %583 = tpu.matmul %581, %582, %cst_159 {dimension_numbers = #tpu.dot_dimension_numbers<[1], [0], [0], [1], [0, 0, 1, 1], [], []>} : vector<16x8xf32>, vector<8x32xf32>, vector<16x32xf32> -> vector<16x32xf32>
    %584 = arith.addf %407, %583 : vector<16x32xf32>
    %585 = vector.extract_strided_slice %44 {offsets = [0, 24], sizes = [16, 8], strides = [1, 1]} : vector<16x96xf32> to vector<16x8xf32>
    %cst_160 = arith.constant dense<0.000000e+00> : vector<16xf32>
    %586 = vector.multi_reduction <add>, %585, %cst_160 [1] : vector<16x8xf32> to vector<16xf32>
    %587 = vector.shape_cast %586 : vector<16xf32> to vector<16x1xf32>
    %cst_161 = arith.constant 8.000000e+00 : f32
    %588 = vector.broadcast %cst_161 : f32 to vector<16x1xf32>
    %589 = arith.divf %587, %588 : vector<16x1xf32>
    %590 = vector.broadcast %589 : vector<16x1xf32> to vector<16x8xf32>
    %591 = arith.subf %585, %590 : vector<16x8xf32>
    %592 = arith.mulf %591, %591 : vector<16x8xf32>
    %cst_162 = arith.constant dense<0.000000e+00> : vector<16xf32>
    %593 = vector.multi_reduction <add>, %592, %cst_162 [1] : vector<16x8xf32> to vector<16xf32>
    %594 = vector.shape_cast %593 : vector<16xf32> to vector<16x1xf32>
    %cst_163 = arith.constant 8.000000e+00 : f32
    %595 = vector.broadcast %cst_163 : f32 to vector<16x1xf32>
    %596 = arith.divf %594, %595 : vector<16x1xf32>
    %597 = vector.broadcast %589 : vector<16x1xf32> to vector<16x8xf32>
    %598 = arith.subf %585, %597 : vector<16x8xf32>
    %cst_164 = arith.constant 9.99999974E-6 : f32
    %599 = vector.broadcast %cst_164 : f32 to vector<16x1xf32>
    %600 = arith.addf %596, %599 : vector<16x1xf32>
    %601 = math.rsqrt %600 : vector<16x1xf32>
    %602 = vector.broadcast %601 : vector<16x1xf32> to vector<16x8xf32>
    %603 = arith.mulf %598, %602 : vector<16x8xf32>
    %604 = vector.broadcast %46 : vector<1x8xf32> to vector<16x8xf32>
    %605 = arith.mulf %603, %604 : vector<16x8xf32>
    %606 = vector.broadcast %48 : vector<1x8xf32> to vector<16x8xf32>
    %607 = arith.addf %605, %606 : vector<16x8xf32>
    %608 = vector.extract_strided_slice %44 {offsets = [0, 56], sizes = [16, 8], strides = [1, 1]} : vector<16x96xf32> to vector<16x8xf32>
    %cst_165 = arith.constant dense<0.000000e+00> : vector<16xf32>
    %609 = vector.multi_reduction <add>, %608, %cst_165 [1] : vector<16x8xf32> to vector<16xf32>
    %610 = vector.shape_cast %609 : vector<16xf32> to vector<16x1xf32>
    %cst_166 = arith.constant 8.000000e+00 : f32
    %611 = vector.broadcast %cst_166 : f32 to vector<16x1xf32>
    %612 = arith.divf %610, %611 : vector<16x1xf32>
    %613 = vector.broadcast %612 : vector<16x1xf32> to vector<16x8xf32>
    %614 = arith.subf %608, %613 : vector<16x8xf32>
    %615 = arith.mulf %614, %614 : vector<16x8xf32>
    %cst_167 = arith.constant dense<0.000000e+00> : vector<16xf32>
    %616 = vector.multi_reduction <add>, %615, %cst_167 [1] : vector<16x8xf32> to vector<16xf32>
    %617 = vector.shape_cast %616 : vector<16xf32> to vector<16x1xf32>
    %cst_168 = arith.constant 8.000000e+00 : f32
    %618 = vector.broadcast %cst_168 : f32 to vector<16x1xf32>
    %619 = arith.divf %617, %618 : vector<16x1xf32>
    %620 = vector.broadcast %612 : vector<16x1xf32> to vector<16x8xf32>
    %621 = arith.subf %608, %620 : vector<16x8xf32>
    %cst_169 = arith.constant 9.99999974E-6 : f32
    %622 = vector.broadcast %cst_169 : f32 to vector<16x1xf32>
    %623 = arith.addf %619, %622 : vector<16x1xf32>
    %624 = math.rsqrt %623 : vector<16x1xf32>
    %625 = vector.broadcast %624 : vector<16x1xf32> to vector<16x8xf32>
    %626 = arith.mulf %621, %625 : vector<16x8xf32>
    %627 = vector.broadcast %46 : vector<1x8xf32> to vector<16x8xf32>
    %628 = arith.mulf %626, %627 : vector<16x8xf32>
    %629 = vector.broadcast %48 : vector<1x8xf32> to vector<16x8xf32>
    %630 = arith.addf %628, %629 : vector<16x8xf32>
    %631 = vector.extract_strided_slice %44 {offsets = [0, 88], sizes = [16, 8], strides = [1, 1]} : vector<16x96xf32> to vector<16x8xf32>
    %cst_170 = arith.constant dense<0.000000e+00> : vector<16x16xf32>
    %632 = tpu.matmul %607, %630, %cst_170 {dimension_numbers = #tpu.dot_dimension_numbers<[1], [1], [0], [0], [0, 0, 1, 0], [], []>} : vector<16x8xf32>, vector<16x8xf32>, vector<16x16xf32> -> vector<16x16xf32>
    %c0_171 = arith.constant 0 : index
    %c3_172 = arith.constant 3 : index
    %c0_173 = arith.constant 0 : index
    %c0_174 = arith.constant 0 : index
    %633 = vector.load %arg11[%c0_171, %c3_172, %c0_173, %c0_174] : memref<2x4x4x8xf32, #tpu.memory_space<vmem>>, vector<1x1x4x8xf32>
    %634 = vector.shape_cast %633 : vector<1x1x4x8xf32> to vector<4x8xf32>
    %cst_175 = arith.constant dense<0.000000e+00> : vector<16x4xf32>
    %635 = tpu.matmul %607, %634, %cst_175 {dimension_numbers = #tpu.dot_dimension_numbers<[1], [1], [0], [0], [0, 0, 1, 0], [], []>} : vector<16x8xf32>, vector<4x8xf32>, vector<16x4xf32> -> vector<16x4xf32>
    %cst_176 = arith.constant dense<0.000000e+00> : vector<4x16xf32>
    %636 = tpu.matmul %634, %630, %cst_176 {dimension_numbers = #tpu.dot_dimension_numbers<[1], [1], [0], [0], [0, 0, 1, 0], [], []>} : vector<4x8xf32>, vector<16x8xf32>, vector<4x16xf32> -> vector<4x16xf32>
    %cst_177 = arith.constant 0.000000e+00 : f32
    %637 = vector.broadcast %cst_177 : f32 to vector<16x16xf32>
    %c12 = arith.constant 12 : index
    %638 = memref.load %arg22[%c12] : memref<32xf32, #tpu.memory_space<smem>>
    %639 = vector.extract_strided_slice %635 {offsets = [0, 0], sizes = [16, 1], strides = [1, 1]} : vector<16x4xf32> to vector<16x1xf32>
    %640 = vector.broadcast %639 : vector<16x1xf32> to vector<16x16xf32>
    %641 = arith.subf %632, %640 : vector<16x16xf32>
    %642 = vector.extract_strided_slice %636 {offsets = [0, 0], sizes = [1, 16], strides = [1, 1]} : vector<4x16xf32> to vector<1x16xf32>
    %643 = vector.broadcast %642 : vector<1x16xf32> to vector<16x16xf32>
    %644 = arith.subf %641, %643 : vector<16x16xf32>
    %645 = vector.broadcast %638 : f32 to vector<16x16xf32>
    %646 = arith.mulf %645, %644 : vector<16x16xf32>
    %c12_178 = arith.constant 12 : index
    %647 = memref.load %arg24[%c12_178] : memref<32xf32, #tpu.memory_space<smem>>
    %648 = vector.broadcast %647 : f32 to vector<16x16xf32>
    %649 = arith.addf %646, %648 : vector<16x16xf32>
    %c12_179 = arith.constant 12 : index
    %650 = memref.load %arg23[%c12_179] : memref<32xf32, #tpu.memory_space<smem>>
    %651 = vector.broadcast %650 : f32 to vector<16x16xf32>
    %652 = arith.mulf %651, %1 : vector<16x16xf32>
    %653 = arith.addf %649, %652 : vector<16x16xf32>
    %654 = arith.addf %653, %2 : vector<16x16xf32>
    %cst_180 = arith.constant dense<0xFF800000> : vector<16xf32>
    %655 = vector.multi_reduction <maximumf>, %654, %cst_180 [1] : vector<16x16xf32> to vector<16xf32>
    %656 = vector.shape_cast %655 : vector<16xf32> to vector<16x1xf32>
    %657 = vector.broadcast %656 : vector<16x1xf32> to vector<16x16xf32>
    %658 = arith.subf %654, %657 : vector<16x16xf32>
    %659 = math.exp %658 : vector<16x16xf32>
    %cst_181 = arith.constant dense<0.000000e+00> : vector<16xf32>
    %660 = vector.multi_reduction <add>, %659, %cst_181 [1] : vector<16x16xf32> to vector<16xf32>
    %661 = vector.shape_cast %660 : vector<16xf32> to vector<16x1xf32>
    %662 = vector.broadcast %661 : vector<16x1xf32> to vector<16x16xf32>
    %663 = arith.divf %659, %662 : vector<16x16xf32>
    %c12_182 = arith.constant 12 : index
    %664 = memref.load %arg25[%c12_182] : memref<32xf32, #tpu.memory_space<smem>>
    %665 = vector.broadcast %664 : f32 to vector<16x16xf32>
    %666 = arith.mulf %665, %663 : vector<16x16xf32>
    %667 = arith.addf %637, %666 : vector<16x16xf32>
    %c13 = arith.constant 13 : index
    %668 = memref.load %arg22[%c13] : memref<32xf32, #tpu.memory_space<smem>>
    %669 = vector.extract_strided_slice %635 {offsets = [0, 1], sizes = [16, 1], strides = [1, 1]} : vector<16x4xf32> to vector<16x1xf32>
    %670 = vector.broadcast %669 : vector<16x1xf32> to vector<16x16xf32>
    %671 = arith.subf %632, %670 : vector<16x16xf32>
    %672 = vector.extract_strided_slice %636 {offsets = [1, 0], sizes = [1, 16], strides = [1, 1]} : vector<4x16xf32> to vector<1x16xf32>
    %673 = vector.broadcast %672 : vector<1x16xf32> to vector<16x16xf32>
    %674 = arith.subf %671, %673 : vector<16x16xf32>
    %675 = vector.broadcast %668 : f32 to vector<16x16xf32>
    %676 = arith.mulf %675, %674 : vector<16x16xf32>
    %c13_183 = arith.constant 13 : index
    %677 = memref.load %arg24[%c13_183] : memref<32xf32, #tpu.memory_space<smem>>
    %678 = vector.broadcast %677 : f32 to vector<16x16xf32>
    %679 = arith.addf %676, %678 : vector<16x16xf32>
    %c13_184 = arith.constant 13 : index
    %680 = memref.load %arg23[%c13_184] : memref<32xf32, #tpu.memory_space<smem>>
    %681 = vector.broadcast %680 : f32 to vector<16x16xf32>
    %682 = arith.mulf %681, %1 : vector<16x16xf32>
    %683 = arith.addf %679, %682 : vector<16x16xf32>
    %684 = arith.addf %683, %2 : vector<16x16xf32>
    %cst_185 = arith.constant dense<0xFF800000> : vector<16xf32>
    %685 = vector.multi_reduction <maximumf>, %684, %cst_185 [1] : vector<16x16xf32> to vector<16xf32>
    %686 = vector.shape_cast %685 : vector<16xf32> to vector<16x1xf32>
    %687 = vector.broadcast %686 : vector<16x1xf32> to vector<16x16xf32>
    %688 = arith.subf %684, %687 : vector<16x16xf32>
    %689 = math.exp %688 : vector<16x16xf32>
    %cst_186 = arith.constant dense<0.000000e+00> : vector<16xf32>
    %690 = vector.multi_reduction <add>, %689, %cst_186 [1] : vector<16x16xf32> to vector<16xf32>
    %691 = vector.shape_cast %690 : vector<16xf32> to vector<16x1xf32>
    %692 = vector.broadcast %691 : vector<16x1xf32> to vector<16x16xf32>
    %693 = arith.divf %689, %692 : vector<16x16xf32>
    %c13_187 = arith.constant 13 : index
    %694 = memref.load %arg25[%c13_187] : memref<32xf32, #tpu.memory_space<smem>>
    %695 = vector.broadcast %694 : f32 to vector<16x16xf32>
    %696 = arith.mulf %695, %693 : vector<16x16xf32>
    %697 = arith.addf %667, %696 : vector<16x16xf32>
    %c14 = arith.constant 14 : index
    %698 = memref.load %arg22[%c14] : memref<32xf32, #tpu.memory_space<smem>>
    %699 = vector.extract_strided_slice %635 {offsets = [0, 2], sizes = [16, 1], strides = [1, 1]} : vector<16x4xf32> to vector<16x1xf32>
    %700 = vector.broadcast %699 : vector<16x1xf32> to vector<16x16xf32>
    %701 = arith.subf %632, %700 : vector<16x16xf32>
    %702 = vector.extract_strided_slice %636 {offsets = [2, 0], sizes = [1, 16], strides = [1, 1]} : vector<4x16xf32> to vector<1x16xf32>
    %703 = vector.broadcast %702 : vector<1x16xf32> to vector<16x16xf32>
    %704 = arith.subf %701, %703 : vector<16x16xf32>
    %705 = vector.broadcast %698 : f32 to vector<16x16xf32>
    %706 = arith.mulf %705, %704 : vector<16x16xf32>
    %c14_188 = arith.constant 14 : index
    %707 = memref.load %arg24[%c14_188] : memref<32xf32, #tpu.memory_space<smem>>
    %708 = vector.broadcast %707 : f32 to vector<16x16xf32>
    %709 = arith.addf %706, %708 : vector<16x16xf32>
    %c14_189 = arith.constant 14 : index
    %710 = memref.load %arg23[%c14_189] : memref<32xf32, #tpu.memory_space<smem>>
    %711 = vector.broadcast %710 : f32 to vector<16x16xf32>
    %712 = arith.mulf %711, %1 : vector<16x16xf32>
    %713 = arith.addf %709, %712 : vector<16x16xf32>
    %714 = arith.addf %713, %2 : vector<16x16xf32>
    %cst_190 = arith.constant dense<0xFF800000> : vector<16xf32>
    %715 = vector.multi_reduction <maximumf>, %714, %cst_190 [1] : vector<16x16xf32> to vector<16xf32>
    %716 = vector.shape_cast %715 : vector<16xf32> to vector<16x1xf32>
    %717 = vector.broadcast %716 : vector<16x1xf32> to vector<16x16xf32>
    %718 = arith.subf %714, %717 : vector<16x16xf32>
    %719 = math.exp %718 : vector<16x16xf32>
    %cst_191 = arith.constant dense<0.000000e+00> : vector<16xf32>
    %720 = vector.multi_reduction <add>, %719, %cst_191 [1] : vector<16x16xf32> to vector<16xf32>
    %721 = vector.shape_cast %720 : vector<16xf32> to vector<16x1xf32>
    %722 = vector.broadcast %721 : vector<16x1xf32> to vector<16x16xf32>
    %723 = arith.divf %719, %722 : vector<16x16xf32>
    %c14_192 = arith.constant 14 : index
    %724 = memref.load %arg25[%c14_192] : memref<32xf32, #tpu.memory_space<smem>>
    %725 = vector.broadcast %724 : f32 to vector<16x16xf32>
    %726 = arith.mulf %725, %723 : vector<16x16xf32>
    %727 = arith.addf %697, %726 : vector<16x16xf32>
    %c15 = arith.constant 15 : index
    %728 = memref.load %arg22[%c15] : memref<32xf32, #tpu.memory_space<smem>>
    %729 = vector.extract_strided_slice %635 {offsets = [0, 3], sizes = [16, 1], strides = [1, 1]} : vector<16x4xf32> to vector<16x1xf32>
    %730 = vector.broadcast %729 : vector<16x1xf32> to vector<16x16xf32>
    %731 = arith.subf %632, %730 : vector<16x16xf32>
    %732 = vector.extract_strided_slice %636 {offsets = [3, 0], sizes = [1, 16], strides = [1, 1]} : vector<4x16xf32> to vector<1x16xf32>
    %733 = vector.broadcast %732 : vector<1x16xf32> to vector<16x16xf32>
    %734 = arith.subf %731, %733 : vector<16x16xf32>
    %735 = vector.broadcast %728 : f32 to vector<16x16xf32>
    %736 = arith.mulf %735, %734 : vector<16x16xf32>
    %c15_193 = arith.constant 15 : index
    %737 = memref.load %arg24[%c15_193] : memref<32xf32, #tpu.memory_space<smem>>
    %738 = vector.broadcast %737 : f32 to vector<16x16xf32>
    %739 = arith.addf %736, %738 : vector<16x16xf32>
    %c15_194 = arith.constant 15 : index
    %740 = memref.load %arg23[%c15_194] : memref<32xf32, #tpu.memory_space<smem>>
    %741 = vector.broadcast %740 : f32 to vector<16x16xf32>
    %742 = arith.mulf %741, %1 : vector<16x16xf32>
    %743 = arith.addf %739, %742 : vector<16x16xf32>
    %744 = arith.addf %743, %2 : vector<16x16xf32>
    %cst_195 = arith.constant dense<0xFF800000> : vector<16xf32>
    %745 = vector.multi_reduction <maximumf>, %744, %cst_195 [1] : vector<16x16xf32> to vector<16xf32>
    %746 = vector.shape_cast %745 : vector<16xf32> to vector<16x1xf32>
    %747 = vector.broadcast %746 : vector<16x1xf32> to vector<16x16xf32>
    %748 = arith.subf %744, %747 : vector<16x16xf32>
    %749 = math.exp %748 : vector<16x16xf32>
    %cst_196 = arith.constant dense<0.000000e+00> : vector<16xf32>
    %750 = vector.multi_reduction <add>, %749, %cst_196 [1] : vector<16x16xf32> to vector<16xf32>
    %751 = vector.shape_cast %750 : vector<16xf32> to vector<16x1xf32>
    %752 = vector.broadcast %751 : vector<16x1xf32> to vector<16x16xf32>
    %753 = arith.divf %749, %752 : vector<16x16xf32>
    %c15_197 = arith.constant 15 : index
    %754 = memref.load %arg25[%c15_197] : memref<32xf32, #tpu.memory_space<smem>>
    %755 = vector.broadcast %754 : f32 to vector<16x16xf32>
    %756 = arith.mulf %755, %753 : vector<16x16xf32>
    %757 = arith.addf %727, %756 : vector<16x16xf32>
    %cst_198 = arith.constant dense<0.000000e+00> : vector<16x8xf32>
    %758 = tpu.matmul %757, %631, %cst_198 {dimension_numbers = #tpu.dot_dimension_numbers<[1], [0], [0], [1], [0, 0, 1, 1], [], []>} : vector<16x16xf32>, vector<16x8xf32>, vector<16x8xf32> -> vector<16x8xf32>
    %759 = vector.extract_strided_slice %50 {offsets = [24, 0], sizes = [8, 32], strides = [1, 1]} : vector<32x32xf32> to vector<8x32xf32>
    %cst_199 = arith.constant dense<0.000000e+00> : vector<16x32xf32>
    %760 = tpu.matmul %758, %759, %cst_199 {dimension_numbers = #tpu.dot_dimension_numbers<[1], [0], [0], [1], [0, 0, 1, 1], [], []>} : vector<16x8xf32>, vector<8x32xf32>, vector<16x32xf32> -> vector<16x32xf32>
    %761 = arith.addf %584, %760 : vector<16x32xf32>
    %762 = arith.addf %11, %761 : vector<16x32xf32>
    %c0_200 = arith.constant 0 : index
    %c0_201 = arith.constant 0 : index
    %c0_202 = arith.constant 0 : index
    %763 = vector.load %arg14[%c0_200, %c0_201, %c0_202] : memref<2x1x32xf32, #tpu.memory_space<vmem>>, vector<1x1x32xf32>
    %764 = vector.shape_cast %763 : vector<1x1x32xf32> to vector<1x32xf32>
    %c0_203 = arith.constant 0 : index
    %c0_204 = arith.constant 0 : index
    %c0_205 = arith.constant 0 : index
    %765 = vector.load %arg15[%c0_203, %c0_204, %c0_205] : memref<2x1x32xf32, #tpu.memory_space<vmem>>, vector<1x1x32xf32>
    %766 = vector.shape_cast %765 : vector<1x1x32xf32> to vector<1x32xf32>
    %cst_206 = arith.constant dense<0.000000e+00> : vector<16xf32>
    %767 = vector.multi_reduction <add>, %762, %cst_206 [1] : vector<16x32xf32> to vector<16xf32>
    %768 = vector.shape_cast %767 : vector<16xf32> to vector<16x1xf32>
    %cst_207 = arith.constant 3.200000e+01 : f32
    %769 = vector.broadcast %cst_207 : f32 to vector<16x1xf32>
    %770 = arith.divf %768, %769 : vector<16x1xf32>
    %771 = vector.broadcast %770 : vector<16x1xf32> to vector<16x32xf32>
    %772 = arith.subf %762, %771 : vector<16x32xf32>
    %773 = arith.mulf %772, %772 : vector<16x32xf32>
    %cst_208 = arith.constant dense<0.000000e+00> : vector<16xf32>
    %774 = vector.multi_reduction <add>, %773, %cst_208 [1] : vector<16x32xf32> to vector<16xf32>
    %775 = vector.shape_cast %774 : vector<16xf32> to vector<16x1xf32>
    %cst_209 = arith.constant 3.200000e+01 : f32
    %776 = vector.broadcast %cst_209 : f32 to vector<16x1xf32>
    %777 = arith.divf %775, %776 : vector<16x1xf32>
    %778 = vector.broadcast %770 : vector<16x1xf32> to vector<16x32xf32>
    %779 = arith.subf %762, %778 : vector<16x32xf32>
    %cst_210 = arith.constant 9.99999974E-6 : f32
    %780 = vector.broadcast %cst_210 : f32 to vector<16x1xf32>
    %781 = arith.addf %777, %780 : vector<16x1xf32>
    %782 = math.rsqrt %781 : vector<16x1xf32>
    %783 = vector.broadcast %782 : vector<16x1xf32> to vector<16x32xf32>
    %784 = arith.mulf %779, %783 : vector<16x32xf32>
    %785 = vector.broadcast %764 : vector<1x32xf32> to vector<16x32xf32>
    %786 = arith.mulf %784, %785 : vector<16x32xf32>
    %787 = vector.broadcast %766 : vector<1x32xf32> to vector<16x32xf32>
    %788 = arith.addf %786, %787 : vector<16x32xf32>
    %c0_211 = arith.constant 0 : index
    %c0_212 = arith.constant 0 : index
    %c0_213 = arith.constant 0 : index
    %789 = vector.load %arg16[%c0_211, %c0_212, %c0_213] : memref<2x32x128xf32, #tpu.memory_space<vmem>>, vector<1x32x128xf32>
    %790 = vector.shape_cast %789 : vector<1x32x128xf32> to vector<32x128xf32>
    %cst_214 = arith.constant dense<0.000000e+00> : vector<16x128xf32>
    %791 = tpu.matmul %788, %790, %cst_214 {dimension_numbers = #tpu.dot_dimension_numbers<[1], [0], [0], [1], [0, 0, 1, 1], [], []>} : vector<16x32xf32>, vector<32x128xf32>, vector<16x128xf32> -> vector<16x128xf32>
    %c0_215 = arith.constant 0 : index
    %c0_216 = arith.constant 0 : index
    %c0_217 = arith.constant 0 : index
    %792 = vector.load %arg17[%c0_215, %c0_216, %c0_217] : memref<2x1x128xf32, #tpu.memory_space<vmem>>, vector<1x1x128xf32>
    %793 = vector.shape_cast %792 : vector<1x1x128xf32> to vector<1x128xf32>
    %794 = vector.broadcast %793 : vector<1x128xf32> to vector<16x128xf32>
    %795 = arith.addf %791, %794 : vector<16x128xf32>
    %cst_218 = arith.constant 5.000000e-01 : f32
    %796 = vector.broadcast %cst_218 : f32 to vector<16x128xf32>
    %797 = arith.mulf %796, %795 : vector<16x128xf32>
    %cst_219 = arith.constant 0.707106769 : f32
    %798 = vector.broadcast %cst_219 : f32 to vector<16x128xf32>
    %799 = arith.mulf %795, %798 : vector<16x128xf32>
    %800 = math.absf %799 : vector<16x128xf32>
    %cst_220 = arith.constant 0.327591091 : f32
    %801 = vector.broadcast %cst_220 : f32 to vector<16x128xf32>
    %802 = arith.mulf %801, %800 : vector<16x128xf32>
    %cst_221 = arith.constant 1.000000e+00 : f32
    %803 = vector.broadcast %cst_221 : f32 to vector<16x128xf32>
    %804 = arith.addf %803, %802 : vector<16x128xf32>
    %cst_222 = arith.constant 1.000000e+00 : f32
    %805 = vector.broadcast %cst_222 : f32 to vector<16x128xf32>
    %806 = arith.divf %805, %804 : vector<16x128xf32>
    %cst_223 = arith.constant 1.06140542 : f32
    %807 = vector.broadcast %cst_223 : f32 to vector<16x128xf32>
    %808 = arith.mulf %806, %807 : vector<16x128xf32>
    %cst_224 = arith.constant -1.45315206 : f32
    %809 = vector.broadcast %cst_224 : f32 to vector<16x128xf32>
    %810 = arith.addf %809, %808 : vector<16x128xf32>
    %811 = arith.mulf %806, %810 : vector<16x128xf32>
    %cst_225 = arith.constant 1.42141378 : f32
    %812 = vector.broadcast %cst_225 : f32 to vector<16x128xf32>
    %813 = arith.addf %812, %811 : vector<16x128xf32>
    %814 = arith.mulf %806, %813 : vector<16x128xf32>
    %cst_226 = arith.constant -0.284496725 : f32
    %815 = vector.broadcast %cst_226 : f32 to vector<16x128xf32>
    %816 = arith.addf %815, %814 : vector<16x128xf32>
    %817 = arith.mulf %806, %816 : vector<16x128xf32>
    %cst_227 = arith.constant 0.254829586 : f32
    %818 = vector.broadcast %cst_227 : f32 to vector<16x128xf32>
    %819 = arith.addf %818, %817 : vector<16x128xf32>
    %820 = arith.mulf %806, %819 : vector<16x128xf32>
    %cst_228 = arith.constant 0.000000e+00 : f32
    %821 = vector.broadcast %cst_228 : f32 to vector<16x128xf32>
    %822 = arith.subf %821, %799 : vector<16x128xf32>
    %823 = arith.mulf %822, %799 : vector<16x128xf32>
    %824 = math.exp %823 : vector<16x128xf32>
    %825 = arith.mulf %820, %824 : vector<16x128xf32>
    %cst_229 = arith.constant 1.000000e+00 : f32
    %826 = vector.broadcast %cst_229 : f32 to vector<16x128xf32>
    %827 = arith.subf %826, %825 : vector<16x128xf32>
    %cst_230 = arith.constant 0.000000e+00 : f32
    %828 = vector.broadcast %cst_230 : f32 to vector<16x128xf32>
    %829 = arith.cmpf oge, %799, %828 : vector<16x128xf32>
    %cst_231 = arith.constant 0.000000e+00 : f32
    %830 = vector.broadcast %cst_231 : f32 to vector<16x128xf32>
    %831 = arith.subf %830, %827 : vector<16x128xf32>
    %832 = arith.select %829, %827, %831 : vector<16x128xi1>, vector<16x128xf32>
    %cst_232 = arith.constant 1.000000e+00 : f32
    %833 = vector.broadcast %cst_232 : f32 to vector<16x128xf32>
    %834 = arith.addf %833, %832 : vector<16x128xf32>
    %835 = arith.mulf %797, %834 : vector<16x128xf32>
    %c0_233 = arith.constant 0 : index
    %c0_234 = arith.constant 0 : index
    %c0_235 = arith.constant 0 : index
    %836 = vector.load %arg18[%c0_233, %c0_234, %c0_235] : memref<2x128x32xf32, #tpu.memory_space<vmem>>, vector<1x128x32xf32>
    %837 = vector.shape_cast %836 : vector<1x128x32xf32> to vector<128x32xf32>
    %cst_236 = arith.constant dense<0.000000e+00> : vector<16x32xf32>
    %838 = tpu.matmul %835, %837, %cst_236 {dimension_numbers = #tpu.dot_dimension_numbers<[1], [0], [0], [1], [0, 0, 1, 1], [], []>} : vector<16x128xf32>, vector<128x32xf32>, vector<16x32xf32> -> vector<16x32xf32>
    %c0_237 = arith.constant 0 : index
    %c0_238 = arith.constant 0 : index
    %c0_239 = arith.constant 0 : index
    %839 = vector.load %arg19[%c0_237, %c0_238, %c0_239] : memref<2x1x32xf32, #tpu.memory_space<vmem>>, vector<1x1x32xf32>
    %840 = vector.shape_cast %839 : vector<1x1x32xf32> to vector<1x32xf32>
    %841 = vector.broadcast %840 : vector<1x32xf32> to vector<16x32xf32>
    %842 = arith.addf %838, %841 : vector<16x32xf32>
    %843 = arith.addf %762, %842 : vector<16x32xf32>
    %c1_240 = arith.constant 1 : index
    %c0_241 = arith.constant 0 : index
    %c0_242 = arith.constant 0 : index
    %844 = vector.load %arg5[%c1_240, %c0_241, %c0_242] : memref<2x1x32xf32, #tpu.memory_space<vmem>>, vector<1x1x32xf32>
    %845 = vector.shape_cast %844 : vector<1x1x32xf32> to vector<1x32xf32>
    %c1_243 = arith.constant 1 : index
    %c0_244 = arith.constant 0 : index
    %c0_245 = arith.constant 0 : index
    %846 = vector.load %arg6[%c1_243, %c0_244, %c0_245] : memref<2x1x32xf32, #tpu.memory_space<vmem>>, vector<1x1x32xf32>
    %847 = vector.shape_cast %846 : vector<1x1x32xf32> to vector<1x32xf32>
    %cst_246 = arith.constant dense<0.000000e+00> : vector<16xf32>
    %848 = vector.multi_reduction <add>, %843, %cst_246 [1] : vector<16x32xf32> to vector<16xf32>
    %849 = vector.shape_cast %848 : vector<16xf32> to vector<16x1xf32>
    %cst_247 = arith.constant 3.200000e+01 : f32
    %850 = vector.broadcast %cst_247 : f32 to vector<16x1xf32>
    %851 = arith.divf %849, %850 : vector<16x1xf32>
    %852 = vector.broadcast %851 : vector<16x1xf32> to vector<16x32xf32>
    %853 = arith.subf %843, %852 : vector<16x32xf32>
    %854 = arith.mulf %853, %853 : vector<16x32xf32>
    %cst_248 = arith.constant dense<0.000000e+00> : vector<16xf32>
    %855 = vector.multi_reduction <add>, %854, %cst_248 [1] : vector<16x32xf32> to vector<16xf32>
    %856 = vector.shape_cast %855 : vector<16xf32> to vector<16x1xf32>
    %cst_249 = arith.constant 3.200000e+01 : f32
    %857 = vector.broadcast %cst_249 : f32 to vector<16x1xf32>
    %858 = arith.divf %856, %857 : vector<16x1xf32>
    %859 = vector.broadcast %851 : vector<16x1xf32> to vector<16x32xf32>
    %860 = arith.subf %843, %859 : vector<16x32xf32>
    %cst_250 = arith.constant 9.99999974E-6 : f32
    %861 = vector.broadcast %cst_250 : f32 to vector<16x1xf32>
    %862 = arith.addf %858, %861 : vector<16x1xf32>
    %863 = math.rsqrt %862 : vector<16x1xf32>
    %864 = vector.broadcast %863 : vector<16x1xf32> to vector<16x32xf32>
    %865 = arith.mulf %860, %864 : vector<16x32xf32>
    %866 = vector.broadcast %845 : vector<1x32xf32> to vector<16x32xf32>
    %867 = arith.mulf %865, %866 : vector<16x32xf32>
    %868 = vector.broadcast %847 : vector<1x32xf32> to vector<16x32xf32>
    %869 = arith.addf %867, %868 : vector<16x32xf32>
    %c1_251 = arith.constant 1 : index
    %c0_252 = arith.constant 0 : index
    %c0_253 = arith.constant 0 : index
    %870 = vector.load %arg7[%c1_251, %c0_252, %c0_253] : memref<2x32x96xf32, #tpu.memory_space<vmem>>, vector<1x32x96xf32>
    %871 = vector.shape_cast %870 : vector<1x32x96xf32> to vector<32x96xf32>
    %cst_254 = arith.constant dense<0.000000e+00> : vector<16x96xf32>
    %872 = tpu.matmul %869, %871, %cst_254 {dimension_numbers = #tpu.dot_dimension_numbers<[1], [0], [0], [1], [0, 0, 1, 1], [], []>} : vector<16x32xf32>, vector<32x96xf32>, vector<16x96xf32> -> vector<16x96xf32>
    %c1_255 = arith.constant 1 : index
    %c0_256 = arith.constant 0 : index
    %c0_257 = arith.constant 0 : index
    %873 = vector.load %arg8[%c1_255, %c0_256, %c0_257] : memref<2x1x96xf32, #tpu.memory_space<vmem>>, vector<1x1x96xf32>
    %874 = vector.shape_cast %873 : vector<1x1x96xf32> to vector<1x96xf32>
    %875 = vector.broadcast %874 : vector<1x96xf32> to vector<16x96xf32>
    %876 = arith.addf %872, %875 : vector<16x96xf32>
    %c1_258 = arith.constant 1 : index
    %c0_259 = arith.constant 0 : index
    %c0_260 = arith.constant 0 : index
    %877 = vector.load %arg9[%c1_258, %c0_259, %c0_260] : memref<2x1x8xf32, #tpu.memory_space<vmem>>, vector<1x1x8xf32>
    %878 = vector.shape_cast %877 : vector<1x1x8xf32> to vector<1x8xf32>
    %c1_261 = arith.constant 1 : index
    %c0_262 = arith.constant 0 : index
    %c0_263 = arith.constant 0 : index
    %879 = vector.load %arg10[%c1_261, %c0_262, %c0_263] : memref<2x1x8xf32, #tpu.memory_space<vmem>>, vector<1x1x8xf32>
    %880 = vector.shape_cast %879 : vector<1x1x8xf32> to vector<1x8xf32>
    %c1_264 = arith.constant 1 : index
    %c0_265 = arith.constant 0 : index
    %c0_266 = arith.constant 0 : index
    %881 = vector.load %arg12[%c1_264, %c0_265, %c0_266] : memref<2x32x32xf32, #tpu.memory_space<vmem>>, vector<1x32x32xf32>
    %882 = vector.shape_cast %881 : vector<1x32x32xf32> to vector<32x32xf32>
    %c1_267 = arith.constant 1 : index
    %c0_268 = arith.constant 0 : index
    %c0_269 = arith.constant 0 : index
    %883 = vector.load %arg13[%c1_267, %c0_268, %c0_269] : memref<2x1x32xf32, #tpu.memory_space<vmem>>, vector<1x1x32xf32>
    %884 = vector.shape_cast %883 : vector<1x1x32xf32> to vector<1x32xf32>
    %885 = vector.extract_strided_slice %876 {offsets = [0, 0], sizes = [16, 8], strides = [1, 1]} : vector<16x96xf32> to vector<16x8xf32>
    %cst_270 = arith.constant dense<0.000000e+00> : vector<16xf32>
    %886 = vector.multi_reduction <add>, %885, %cst_270 [1] : vector<16x8xf32> to vector<16xf32>
    %887 = vector.shape_cast %886 : vector<16xf32> to vector<16x1xf32>
    %cst_271 = arith.constant 8.000000e+00 : f32
    %888 = vector.broadcast %cst_271 : f32 to vector<16x1xf32>
    %889 = arith.divf %887, %888 : vector<16x1xf32>
    %890 = vector.broadcast %889 : vector<16x1xf32> to vector<16x8xf32>
    %891 = arith.subf %885, %890 : vector<16x8xf32>
    %892 = arith.mulf %891, %891 : vector<16x8xf32>
    %cst_272 = arith.constant dense<0.000000e+00> : vector<16xf32>
    %893 = vector.multi_reduction <add>, %892, %cst_272 [1] : vector<16x8xf32> to vector<16xf32>
    %894 = vector.shape_cast %893 : vector<16xf32> to vector<16x1xf32>
    %cst_273 = arith.constant 8.000000e+00 : f32
    %895 = vector.broadcast %cst_273 : f32 to vector<16x1xf32>
    %896 = arith.divf %894, %895 : vector<16x1xf32>
    %897 = vector.broadcast %889 : vector<16x1xf32> to vector<16x8xf32>
    %898 = arith.subf %885, %897 : vector<16x8xf32>
    %cst_274 = arith.constant 9.99999974E-6 : f32
    %899 = vector.broadcast %cst_274 : f32 to vector<16x1xf32>
    %900 = arith.addf %896, %899 : vector<16x1xf32>
    %901 = math.rsqrt %900 : vector<16x1xf32>
    %902 = vector.broadcast %901 : vector<16x1xf32> to vector<16x8xf32>
    %903 = arith.mulf %898, %902 : vector<16x8xf32>
    %904 = vector.broadcast %878 : vector<1x8xf32> to vector<16x8xf32>
    %905 = arith.mulf %903, %904 : vector<16x8xf32>
    %906 = vector.broadcast %880 : vector<1x8xf32> to vector<16x8xf32>
    %907 = arith.addf %905, %906 : vector<16x8xf32>
    %908 = vector.extract_strided_slice %876 {offsets = [0, 32], sizes = [16, 8], strides = [1, 1]} : vector<16x96xf32> to vector<16x8xf32>
    %cst_275 = arith.constant dense<0.000000e+00> : vector<16xf32>
    %909 = vector.multi_reduction <add>, %908, %cst_275 [1] : vector<16x8xf32> to vector<16xf32>
    %910 = vector.shape_cast %909 : vector<16xf32> to vector<16x1xf32>
    %cst_276 = arith.constant 8.000000e+00 : f32
    %911 = vector.broadcast %cst_276 : f32 to vector<16x1xf32>
    %912 = arith.divf %910, %911 : vector<16x1xf32>
    %913 = vector.broadcast %912 : vector<16x1xf32> to vector<16x8xf32>
    %914 = arith.subf %908, %913 : vector<16x8xf32>
    %915 = arith.mulf %914, %914 : vector<16x8xf32>
    %cst_277 = arith.constant dense<0.000000e+00> : vector<16xf32>
    %916 = vector.multi_reduction <add>, %915, %cst_277 [1] : vector<16x8xf32> to vector<16xf32>
    %917 = vector.shape_cast %916 : vector<16xf32> to vector<16x1xf32>
    %cst_278 = arith.constant 8.000000e+00 : f32
    %918 = vector.broadcast %cst_278 : f32 to vector<16x1xf32>
    %919 = arith.divf %917, %918 : vector<16x1xf32>
    %920 = vector.broadcast %912 : vector<16x1xf32> to vector<16x8xf32>
    %921 = arith.subf %908, %920 : vector<16x8xf32>
    %cst_279 = arith.constant 9.99999974E-6 : f32
    %922 = vector.broadcast %cst_279 : f32 to vector<16x1xf32>
    %923 = arith.addf %919, %922 : vector<16x1xf32>
    %924 = math.rsqrt %923 : vector<16x1xf32>
    %925 = vector.broadcast %924 : vector<16x1xf32> to vector<16x8xf32>
    %926 = arith.mulf %921, %925 : vector<16x8xf32>
    %927 = vector.broadcast %878 : vector<1x8xf32> to vector<16x8xf32>
    %928 = arith.mulf %926, %927 : vector<16x8xf32>
    %929 = vector.broadcast %880 : vector<1x8xf32> to vector<16x8xf32>
    %930 = arith.addf %928, %929 : vector<16x8xf32>
    %931 = vector.extract_strided_slice %876 {offsets = [0, 64], sizes = [16, 8], strides = [1, 1]} : vector<16x96xf32> to vector<16x8xf32>
    %cst_280 = arith.constant dense<0.000000e+00> : vector<16x16xf32>
    %932 = tpu.matmul %907, %930, %cst_280 {dimension_numbers = #tpu.dot_dimension_numbers<[1], [1], [0], [0], [0, 0, 1, 0], [], []>} : vector<16x8xf32>, vector<16x8xf32>, vector<16x16xf32> -> vector<16x16xf32>
    %c1_281 = arith.constant 1 : index
    %c0_282 = arith.constant 0 : index
    %c0_283 = arith.constant 0 : index
    %c0_284 = arith.constant 0 : index
    %933 = vector.load %arg11[%c1_281, %c0_282, %c0_283, %c0_284] : memref<2x4x4x8xf32, #tpu.memory_space<vmem>>, vector<1x1x4x8xf32>
    %934 = vector.shape_cast %933 : vector<1x1x4x8xf32> to vector<4x8xf32>
    %cst_285 = arith.constant dense<0.000000e+00> : vector<16x4xf32>
    %935 = tpu.matmul %907, %934, %cst_285 {dimension_numbers = #tpu.dot_dimension_numbers<[1], [1], [0], [0], [0, 0, 1, 0], [], []>} : vector<16x8xf32>, vector<4x8xf32>, vector<16x4xf32> -> vector<16x4xf32>
    %cst_286 = arith.constant dense<0.000000e+00> : vector<4x16xf32>
    %936 = tpu.matmul %934, %930, %cst_286 {dimension_numbers = #tpu.dot_dimension_numbers<[1], [1], [0], [0], [0, 0, 1, 0], [], []>} : vector<4x8xf32>, vector<16x8xf32>, vector<4x16xf32> -> vector<4x16xf32>
    %cst_287 = arith.constant 0.000000e+00 : f32
    %937 = vector.broadcast %cst_287 : f32 to vector<16x16xf32>
    %c16 = arith.constant 16 : index
    %938 = memref.load %arg22[%c16] : memref<32xf32, #tpu.memory_space<smem>>
    %939 = vector.extract_strided_slice %935 {offsets = [0, 0], sizes = [16, 1], strides = [1, 1]} : vector<16x4xf32> to vector<16x1xf32>
    %940 = vector.broadcast %939 : vector<16x1xf32> to vector<16x16xf32>
    %941 = arith.subf %932, %940 : vector<16x16xf32>
    %942 = vector.extract_strided_slice %936 {offsets = [0, 0], sizes = [1, 16], strides = [1, 1]} : vector<4x16xf32> to vector<1x16xf32>
    %943 = vector.broadcast %942 : vector<1x16xf32> to vector<16x16xf32>
    %944 = arith.subf %941, %943 : vector<16x16xf32>
    %945 = vector.broadcast %938 : f32 to vector<16x16xf32>
    %946 = arith.mulf %945, %944 : vector<16x16xf32>
    %c16_288 = arith.constant 16 : index
    %947 = memref.load %arg24[%c16_288] : memref<32xf32, #tpu.memory_space<smem>>
    %948 = vector.broadcast %947 : f32 to vector<16x16xf32>
    %949 = arith.addf %946, %948 : vector<16x16xf32>
    %c16_289 = arith.constant 16 : index
    %950 = memref.load %arg23[%c16_289] : memref<32xf32, #tpu.memory_space<smem>>
    %951 = vector.broadcast %950 : f32 to vector<16x16xf32>
    %952 = arith.mulf %951, %1 : vector<16x16xf32>
    %953 = arith.addf %949, %952 : vector<16x16xf32>
    %954 = arith.addf %953, %2 : vector<16x16xf32>
    %cst_290 = arith.constant dense<0xFF800000> : vector<16xf32>
    %955 = vector.multi_reduction <maximumf>, %954, %cst_290 [1] : vector<16x16xf32> to vector<16xf32>
    %956 = vector.shape_cast %955 : vector<16xf32> to vector<16x1xf32>
    %957 = vector.broadcast %956 : vector<16x1xf32> to vector<16x16xf32>
    %958 = arith.subf %954, %957 : vector<16x16xf32>
    %959 = math.exp %958 : vector<16x16xf32>
    %cst_291 = arith.constant dense<0.000000e+00> : vector<16xf32>
    %960 = vector.multi_reduction <add>, %959, %cst_291 [1] : vector<16x16xf32> to vector<16xf32>
    %961 = vector.shape_cast %960 : vector<16xf32> to vector<16x1xf32>
    %962 = vector.broadcast %961 : vector<16x1xf32> to vector<16x16xf32>
    %963 = arith.divf %959, %962 : vector<16x16xf32>
    %c16_292 = arith.constant 16 : index
    %964 = memref.load %arg25[%c16_292] : memref<32xf32, #tpu.memory_space<smem>>
    %965 = vector.broadcast %964 : f32 to vector<16x16xf32>
    %966 = arith.mulf %965, %963 : vector<16x16xf32>
    %967 = arith.addf %937, %966 : vector<16x16xf32>
    %c17 = arith.constant 17 : index
    %968 = memref.load %arg22[%c17] : memref<32xf32, #tpu.memory_space<smem>>
    %969 = vector.extract_strided_slice %935 {offsets = [0, 1], sizes = [16, 1], strides = [1, 1]} : vector<16x4xf32> to vector<16x1xf32>
    %970 = vector.broadcast %969 : vector<16x1xf32> to vector<16x16xf32>
    %971 = arith.subf %932, %970 : vector<16x16xf32>
    %972 = vector.extract_strided_slice %936 {offsets = [1, 0], sizes = [1, 16], strides = [1, 1]} : vector<4x16xf32> to vector<1x16xf32>
    %973 = vector.broadcast %972 : vector<1x16xf32> to vector<16x16xf32>
    %974 = arith.subf %971, %973 : vector<16x16xf32>
    %975 = vector.broadcast %968 : f32 to vector<16x16xf32>
    %976 = arith.mulf %975, %974 : vector<16x16xf32>
    %c17_293 = arith.constant 17 : index
    %977 = memref.load %arg24[%c17_293] : memref<32xf32, #tpu.memory_space<smem>>
    %978 = vector.broadcast %977 : f32 to vector<16x16xf32>
    %979 = arith.addf %976, %978 : vector<16x16xf32>
    %c17_294 = arith.constant 17 : index
    %980 = memref.load %arg23[%c17_294] : memref<32xf32, #tpu.memory_space<smem>>
    %981 = vector.broadcast %980 : f32 to vector<16x16xf32>
    %982 = arith.mulf %981, %1 : vector<16x16xf32>
    %983 = arith.addf %979, %982 : vector<16x16xf32>
    %984 = arith.addf %983, %2 : vector<16x16xf32>
    %cst_295 = arith.constant dense<0xFF800000> : vector<16xf32>
    %985 = vector.multi_reduction <maximumf>, %984, %cst_295 [1] : vector<16x16xf32> to vector<16xf32>
    %986 = vector.shape_cast %985 : vector<16xf32> to vector<16x1xf32>
    %987 = vector.broadcast %986 : vector<16x1xf32> to vector<16x16xf32>
    %988 = arith.subf %984, %987 : vector<16x16xf32>
    %989 = math.exp %988 : vector<16x16xf32>
    %cst_296 = arith.constant dense<0.000000e+00> : vector<16xf32>
    %990 = vector.multi_reduction <add>, %989, %cst_296 [1] : vector<16x16xf32> to vector<16xf32>
    %991 = vector.shape_cast %990 : vector<16xf32> to vector<16x1xf32>
    %992 = vector.broadcast %991 : vector<16x1xf32> to vector<16x16xf32>
    %993 = arith.divf %989, %992 : vector<16x16xf32>
    %c17_297 = arith.constant 17 : index
    %994 = memref.load %arg25[%c17_297] : memref<32xf32, #tpu.memory_space<smem>>
    %995 = vector.broadcast %994 : f32 to vector<16x16xf32>
    %996 = arith.mulf %995, %993 : vector<16x16xf32>
    %997 = arith.addf %967, %996 : vector<16x16xf32>
    %c18 = arith.constant 18 : index
    %998 = memref.load %arg22[%c18] : memref<32xf32, #tpu.memory_space<smem>>
    %999 = vector.extract_strided_slice %935 {offsets = [0, 2], sizes = [16, 1], strides = [1, 1]} : vector<16x4xf32> to vector<16x1xf32>
    %1000 = vector.broadcast %999 : vector<16x1xf32> to vector<16x16xf32>
    %1001 = arith.subf %932, %1000 : vector<16x16xf32>
    %1002 = vector.extract_strided_slice %936 {offsets = [2, 0], sizes = [1, 16], strides = [1, 1]} : vector<4x16xf32> to vector<1x16xf32>
    %1003 = vector.broadcast %1002 : vector<1x16xf32> to vector<16x16xf32>
    %1004 = arith.subf %1001, %1003 : vector<16x16xf32>
    %1005 = vector.broadcast %998 : f32 to vector<16x16xf32>
    %1006 = arith.mulf %1005, %1004 : vector<16x16xf32>
    %c18_298 = arith.constant 18 : index
    %1007 = memref.load %arg24[%c18_298] : memref<32xf32, #tpu.memory_space<smem>>
    %1008 = vector.broadcast %1007 : f32 to vector<16x16xf32>
    %1009 = arith.addf %1006, %1008 : vector<16x16xf32>
    %c18_299 = arith.constant 18 : index
    %1010 = memref.load %arg23[%c18_299] : memref<32xf32, #tpu.memory_space<smem>>
    %1011 = vector.broadcast %1010 : f32 to vector<16x16xf32>
    %1012 = arith.mulf %1011, %1 : vector<16x16xf32>
    %1013 = arith.addf %1009, %1012 : vector<16x16xf32>
    %1014 = arith.addf %1013, %2 : vector<16x16xf32>
    %cst_300 = arith.constant dense<0xFF800000> : vector<16xf32>
    %1015 = vector.multi_reduction <maximumf>, %1014, %cst_300 [1] : vector<16x16xf32> to vector<16xf32>
    %1016 = vector.shape_cast %1015 : vector<16xf32> to vector<16x1xf32>
    %1017 = vector.broadcast %1016 : vector<16x1xf32> to vector<16x16xf32>
    %1018 = arith.subf %1014, %1017 : vector<16x16xf32>
    %1019 = math.exp %1018 : vector<16x16xf32>
    %cst_301 = arith.constant dense<0.000000e+00> : vector<16xf32>
    %1020 = vector.multi_reduction <add>, %1019, %cst_301 [1] : vector<16x16xf32> to vector<16xf32>
    %1021 = vector.shape_cast %1020 : vector<16xf32> to vector<16x1xf32>
    %1022 = vector.broadcast %1021 : vector<16x1xf32> to vector<16x16xf32>
    %1023 = arith.divf %1019, %1022 : vector<16x16xf32>
    %c18_302 = arith.constant 18 : index
    %1024 = memref.load %arg25[%c18_302] : memref<32xf32, #tpu.memory_space<smem>>
    %1025 = vector.broadcast %1024 : f32 to vector<16x16xf32>
    %1026 = arith.mulf %1025, %1023 : vector<16x16xf32>
    %1027 = arith.addf %997, %1026 : vector<16x16xf32>
    %c19 = arith.constant 19 : index
    %1028 = memref.load %arg22[%c19] : memref<32xf32, #tpu.memory_space<smem>>
    %1029 = vector.extract_strided_slice %935 {offsets = [0, 3], sizes = [16, 1], strides = [1, 1]} : vector<16x4xf32> to vector<16x1xf32>
    %1030 = vector.broadcast %1029 : vector<16x1xf32> to vector<16x16xf32>
    %1031 = arith.subf %932, %1030 : vector<16x16xf32>
    %1032 = vector.extract_strided_slice %936 {offsets = [3, 0], sizes = [1, 16], strides = [1, 1]} : vector<4x16xf32> to vector<1x16xf32>
    %1033 = vector.broadcast %1032 : vector<1x16xf32> to vector<16x16xf32>
    %1034 = arith.subf %1031, %1033 : vector<16x16xf32>
    %1035 = vector.broadcast %1028 : f32 to vector<16x16xf32>
    %1036 = arith.mulf %1035, %1034 : vector<16x16xf32>
    %c19_303 = arith.constant 19 : index
    %1037 = memref.load %arg24[%c19_303] : memref<32xf32, #tpu.memory_space<smem>>
    %1038 = vector.broadcast %1037 : f32 to vector<16x16xf32>
    %1039 = arith.addf %1036, %1038 : vector<16x16xf32>
    %c19_304 = arith.constant 19 : index
    %1040 = memref.load %arg23[%c19_304] : memref<32xf32, #tpu.memory_space<smem>>
    %1041 = vector.broadcast %1040 : f32 to vector<16x16xf32>
    %1042 = arith.mulf %1041, %1 : vector<16x16xf32>
    %1043 = arith.addf %1039, %1042 : vector<16x16xf32>
    %1044 = arith.addf %1043, %2 : vector<16x16xf32>
    %cst_305 = arith.constant dense<0xFF800000> : vector<16xf32>
    %1045 = vector.multi_reduction <maximumf>, %1044, %cst_305 [1] : vector<16x16xf32> to vector<16xf32>
    %1046 = vector.shape_cast %1045 : vector<16xf32> to vector<16x1xf32>
    %1047 = vector.broadcast %1046 : vector<16x1xf32> to vector<16x16xf32>
    %1048 = arith.subf %1044, %1047 : vector<16x16xf32>
    %1049 = math.exp %1048 : vector<16x16xf32>
    %cst_306 = arith.constant dense<0.000000e+00> : vector<16xf32>
    %1050 = vector.multi_reduction <add>, %1049, %cst_306 [1] : vector<16x16xf32> to vector<16xf32>
    %1051 = vector.shape_cast %1050 : vector<16xf32> to vector<16x1xf32>
    %1052 = vector.broadcast %1051 : vector<16x1xf32> to vector<16x16xf32>
    %1053 = arith.divf %1049, %1052 : vector<16x16xf32>
    %c19_307 = arith.constant 19 : index
    %1054 = memref.load %arg25[%c19_307] : memref<32xf32, #tpu.memory_space<smem>>
    %1055 = vector.broadcast %1054 : f32 to vector<16x16xf32>
    %1056 = arith.mulf %1055, %1053 : vector<16x16xf32>
    %1057 = arith.addf %1027, %1056 : vector<16x16xf32>
    %cst_308 = arith.constant dense<0.000000e+00> : vector<16x8xf32>
    %1058 = tpu.matmul %1057, %931, %cst_308 {dimension_numbers = #tpu.dot_dimension_numbers<[1], [0], [0], [1], [0, 0, 1, 1], [], []>} : vector<16x16xf32>, vector<16x8xf32>, vector<16x8xf32> -> vector<16x8xf32>
    %1059 = vector.extract_strided_slice %882 {offsets = [0, 0], sizes = [8, 32], strides = [1, 1]} : vector<32x32xf32> to vector<8x32xf32>
    %cst_309 = arith.constant dense<0.000000e+00> : vector<16x32xf32>
    %1060 = tpu.matmul %1058, %1059, %cst_309 {dimension_numbers = #tpu.dot_dimension_numbers<[1], [0], [0], [1], [0, 0, 1, 1], [], []>} : vector<16x8xf32>, vector<8x32xf32>, vector<16x32xf32> -> vector<16x32xf32>
    %1061 = vector.broadcast %884 : vector<1x32xf32> to vector<16x32xf32>
    %1062 = arith.addf %1061, %1060 : vector<16x32xf32>
    %1063 = vector.extract_strided_slice %876 {offsets = [0, 8], sizes = [16, 8], strides = [1, 1]} : vector<16x96xf32> to vector<16x8xf32>
    %cst_310 = arith.constant dense<0.000000e+00> : vector<16xf32>
    %1064 = vector.multi_reduction <add>, %1063, %cst_310 [1] : vector<16x8xf32> to vector<16xf32>
    %1065 = vector.shape_cast %1064 : vector<16xf32> to vector<16x1xf32>
    %cst_311 = arith.constant 8.000000e+00 : f32
    %1066 = vector.broadcast %cst_311 : f32 to vector<16x1xf32>
    %1067 = arith.divf %1065, %1066 : vector<16x1xf32>
    %1068 = vector.broadcast %1067 : vector<16x1xf32> to vector<16x8xf32>
    %1069 = arith.subf %1063, %1068 : vector<16x8xf32>
    %1070 = arith.mulf %1069, %1069 : vector<16x8xf32>
    %cst_312 = arith.constant dense<0.000000e+00> : vector<16xf32>
    %1071 = vector.multi_reduction <add>, %1070, %cst_312 [1] : vector<16x8xf32> to vector<16xf32>
    %1072 = vector.shape_cast %1071 : vector<16xf32> to vector<16x1xf32>
    %cst_313 = arith.constant 8.000000e+00 : f32
    %1073 = vector.broadcast %cst_313 : f32 to vector<16x1xf32>
    %1074 = arith.divf %1072, %1073 : vector<16x1xf32>
    %1075 = vector.broadcast %1067 : vector<16x1xf32> to vector<16x8xf32>
    %1076 = arith.subf %1063, %1075 : vector<16x8xf32>
    %cst_314 = arith.constant 9.99999974E-6 : f32
    %1077 = vector.broadcast %cst_314 : f32 to vector<16x1xf32>
    %1078 = arith.addf %1074, %1077 : vector<16x1xf32>
    %1079 = math.rsqrt %1078 : vector<16x1xf32>
    %1080 = vector.broadcast %1079 : vector<16x1xf32> to vector<16x8xf32>
    %1081 = arith.mulf %1076, %1080 : vector<16x8xf32>
    %1082 = vector.broadcast %878 : vector<1x8xf32> to vector<16x8xf32>
    %1083 = arith.mulf %1081, %1082 : vector<16x8xf32>
    %1084 = vector.broadcast %880 : vector<1x8xf32> to vector<16x8xf32>
    %1085 = arith.addf %1083, %1084 : vector<16x8xf32>
    %1086 = vector.extract_strided_slice %876 {offsets = [0, 40], sizes = [16, 8], strides = [1, 1]} : vector<16x96xf32> to vector<16x8xf32>
    %cst_315 = arith.constant dense<0.000000e+00> : vector<16xf32>
    %1087 = vector.multi_reduction <add>, %1086, %cst_315 [1] : vector<16x8xf32> to vector<16xf32>
    %1088 = vector.shape_cast %1087 : vector<16xf32> to vector<16x1xf32>
    %cst_316 = arith.constant 8.000000e+00 : f32
    %1089 = vector.broadcast %cst_316 : f32 to vector<16x1xf32>
    %1090 = arith.divf %1088, %1089 : vector<16x1xf32>
    %1091 = vector.broadcast %1090 : vector<16x1xf32> to vector<16x8xf32>
    %1092 = arith.subf %1086, %1091 : vector<16x8xf32>
    %1093 = arith.mulf %1092, %1092 : vector<16x8xf32>
    %cst_317 = arith.constant dense<0.000000e+00> : vector<16xf32>
    %1094 = vector.multi_reduction <add>, %1093, %cst_317 [1] : vector<16x8xf32> to vector<16xf32>
    %1095 = vector.shape_cast %1094 : vector<16xf32> to vector<16x1xf32>
    %cst_318 = arith.constant 8.000000e+00 : f32
    %1096 = vector.broadcast %cst_318 : f32 to vector<16x1xf32>
    %1097 = arith.divf %1095, %1096 : vector<16x1xf32>
    %1098 = vector.broadcast %1090 : vector<16x1xf32> to vector<16x8xf32>
    %1099 = arith.subf %1086, %1098 : vector<16x8xf32>
    %cst_319 = arith.constant 9.99999974E-6 : f32
    %1100 = vector.broadcast %cst_319 : f32 to vector<16x1xf32>
    %1101 = arith.addf %1097, %1100 : vector<16x1xf32>
    %1102 = math.rsqrt %1101 : vector<16x1xf32>
    %1103 = vector.broadcast %1102 : vector<16x1xf32> to vector<16x8xf32>
    %1104 = arith.mulf %1099, %1103 : vector<16x8xf32>
    %1105 = vector.broadcast %878 : vector<1x8xf32> to vector<16x8xf32>
    %1106 = arith.mulf %1104, %1105 : vector<16x8xf32>
    %1107 = vector.broadcast %880 : vector<1x8xf32> to vector<16x8xf32>
    %1108 = arith.addf %1106, %1107 : vector<16x8xf32>
    %1109 = vector.extract_strided_slice %876 {offsets = [0, 72], sizes = [16, 8], strides = [1, 1]} : vector<16x96xf32> to vector<16x8xf32>
    %cst_320 = arith.constant dense<0.000000e+00> : vector<16x16xf32>
    %1110 = tpu.matmul %1085, %1108, %cst_320 {dimension_numbers = #tpu.dot_dimension_numbers<[1], [1], [0], [0], [0, 0, 1, 0], [], []>} : vector<16x8xf32>, vector<16x8xf32>, vector<16x16xf32> -> vector<16x16xf32>
    %c1_321 = arith.constant 1 : index
    %c1_322 = arith.constant 1 : index
    %c0_323 = arith.constant 0 : index
    %c0_324 = arith.constant 0 : index
    %1111 = vector.load %arg11[%c1_321, %c1_322, %c0_323, %c0_324] : memref<2x4x4x8xf32, #tpu.memory_space<vmem>>, vector<1x1x4x8xf32>
    %1112 = vector.shape_cast %1111 : vector<1x1x4x8xf32> to vector<4x8xf32>
    %cst_325 = arith.constant dense<0.000000e+00> : vector<16x4xf32>
    %1113 = tpu.matmul %1085, %1112, %cst_325 {dimension_numbers = #tpu.dot_dimension_numbers<[1], [1], [0], [0], [0, 0, 1, 0], [], []>} : vector<16x8xf32>, vector<4x8xf32>, vector<16x4xf32> -> vector<16x4xf32>
    %cst_326 = arith.constant dense<0.000000e+00> : vector<4x16xf32>
    %1114 = tpu.matmul %1112, %1108, %cst_326 {dimension_numbers = #tpu.dot_dimension_numbers<[1], [1], [0], [0], [0, 0, 1, 0], [], []>} : vector<4x8xf32>, vector<16x8xf32>, vector<4x16xf32> -> vector<4x16xf32>
    %cst_327 = arith.constant 0.000000e+00 : f32
    %1115 = vector.broadcast %cst_327 : f32 to vector<16x16xf32>
    %c20 = arith.constant 20 : index
    %1116 = memref.load %arg22[%c20] : memref<32xf32, #tpu.memory_space<smem>>
    %1117 = vector.extract_strided_slice %1113 {offsets = [0, 0], sizes = [16, 1], strides = [1, 1]} : vector<16x4xf32> to vector<16x1xf32>
    %1118 = vector.broadcast %1117 : vector<16x1xf32> to vector<16x16xf32>
    %1119 = arith.subf %1110, %1118 : vector<16x16xf32>
    %1120 = vector.extract_strided_slice %1114 {offsets = [0, 0], sizes = [1, 16], strides = [1, 1]} : vector<4x16xf32> to vector<1x16xf32>
    %1121 = vector.broadcast %1120 : vector<1x16xf32> to vector<16x16xf32>
    %1122 = arith.subf %1119, %1121 : vector<16x16xf32>
    %1123 = vector.broadcast %1116 : f32 to vector<16x16xf32>
    %1124 = arith.mulf %1123, %1122 : vector<16x16xf32>
    %c20_328 = arith.constant 20 : index
    %1125 = memref.load %arg24[%c20_328] : memref<32xf32, #tpu.memory_space<smem>>
    %1126 = vector.broadcast %1125 : f32 to vector<16x16xf32>
    %1127 = arith.addf %1124, %1126 : vector<16x16xf32>
    %c20_329 = arith.constant 20 : index
    %1128 = memref.load %arg23[%c20_329] : memref<32xf32, #tpu.memory_space<smem>>
    %1129 = vector.broadcast %1128 : f32 to vector<16x16xf32>
    %1130 = arith.mulf %1129, %1 : vector<16x16xf32>
    %1131 = arith.addf %1127, %1130 : vector<16x16xf32>
    %1132 = arith.addf %1131, %2 : vector<16x16xf32>
    %cst_330 = arith.constant dense<0xFF800000> : vector<16xf32>
    %1133 = vector.multi_reduction <maximumf>, %1132, %cst_330 [1] : vector<16x16xf32> to vector<16xf32>
    %1134 = vector.shape_cast %1133 : vector<16xf32> to vector<16x1xf32>
    %1135 = vector.broadcast %1134 : vector<16x1xf32> to vector<16x16xf32>
    %1136 = arith.subf %1132, %1135 : vector<16x16xf32>
    %1137 = math.exp %1136 : vector<16x16xf32>
    %cst_331 = arith.constant dense<0.000000e+00> : vector<16xf32>
    %1138 = vector.multi_reduction <add>, %1137, %cst_331 [1] : vector<16x16xf32> to vector<16xf32>
    %1139 = vector.shape_cast %1138 : vector<16xf32> to vector<16x1xf32>
    %1140 = vector.broadcast %1139 : vector<16x1xf32> to vector<16x16xf32>
    %1141 = arith.divf %1137, %1140 : vector<16x16xf32>
    %c20_332 = arith.constant 20 : index
    %1142 = memref.load %arg25[%c20_332] : memref<32xf32, #tpu.memory_space<smem>>
    %1143 = vector.broadcast %1142 : f32 to vector<16x16xf32>
    %1144 = arith.mulf %1143, %1141 : vector<16x16xf32>
    %1145 = arith.addf %1115, %1144 : vector<16x16xf32>
    %c21 = arith.constant 21 : index
    %1146 = memref.load %arg22[%c21] : memref<32xf32, #tpu.memory_space<smem>>
    %1147 = vector.extract_strided_slice %1113 {offsets = [0, 1], sizes = [16, 1], strides = [1, 1]} : vector<16x4xf32> to vector<16x1xf32>
    %1148 = vector.broadcast %1147 : vector<16x1xf32> to vector<16x16xf32>
    %1149 = arith.subf %1110, %1148 : vector<16x16xf32>
    %1150 = vector.extract_strided_slice %1114 {offsets = [1, 0], sizes = [1, 16], strides = [1, 1]} : vector<4x16xf32> to vector<1x16xf32>
    %1151 = vector.broadcast %1150 : vector<1x16xf32> to vector<16x16xf32>
    %1152 = arith.subf %1149, %1151 : vector<16x16xf32>
    %1153 = vector.broadcast %1146 : f32 to vector<16x16xf32>
    %1154 = arith.mulf %1153, %1152 : vector<16x16xf32>
    %c21_333 = arith.constant 21 : index
    %1155 = memref.load %arg24[%c21_333] : memref<32xf32, #tpu.memory_space<smem>>
    %1156 = vector.broadcast %1155 : f32 to vector<16x16xf32>
    %1157 = arith.addf %1154, %1156 : vector<16x16xf32>
    %c21_334 = arith.constant 21 : index
    %1158 = memref.load %arg23[%c21_334] : memref<32xf32, #tpu.memory_space<smem>>
    %1159 = vector.broadcast %1158 : f32 to vector<16x16xf32>
    %1160 = arith.mulf %1159, %1 : vector<16x16xf32>
    %1161 = arith.addf %1157, %1160 : vector<16x16xf32>
    %1162 = arith.addf %1161, %2 : vector<16x16xf32>
    %cst_335 = arith.constant dense<0xFF800000> : vector<16xf32>
    %1163 = vector.multi_reduction <maximumf>, %1162, %cst_335 [1] : vector<16x16xf32> to vector<16xf32>
    %1164 = vector.shape_cast %1163 : vector<16xf32> to vector<16x1xf32>
    %1165 = vector.broadcast %1164 : vector<16x1xf32> to vector<16x16xf32>
    %1166 = arith.subf %1162, %1165 : vector<16x16xf32>
    %1167 = math.exp %1166 : vector<16x16xf32>
    %cst_336 = arith.constant dense<0.000000e+00> : vector<16xf32>
    %1168 = vector.multi_reduction <add>, %1167, %cst_336 [1] : vector<16x16xf32> to vector<16xf32>
    %1169 = vector.shape_cast %1168 : vector<16xf32> to vector<16x1xf32>
    %1170 = vector.broadcast %1169 : vector<16x1xf32> to vector<16x16xf32>
    %1171 = arith.divf %1167, %1170 : vector<16x16xf32>
    %c21_337 = arith.constant 21 : index
    %1172 = memref.load %arg25[%c21_337] : memref<32xf32, #tpu.memory_space<smem>>
    %1173 = vector.broadcast %1172 : f32 to vector<16x16xf32>
    %1174 = arith.mulf %1173, %1171 : vector<16x16xf32>
    %1175 = arith.addf %1145, %1174 : vector<16x16xf32>
    %c22 = arith.constant 22 : index
    %1176 = memref.load %arg22[%c22] : memref<32xf32, #tpu.memory_space<smem>>
    %1177 = vector.extract_strided_slice %1113 {offsets = [0, 2], sizes = [16, 1], strides = [1, 1]} : vector<16x4xf32> to vector<16x1xf32>
    %1178 = vector.broadcast %1177 : vector<16x1xf32> to vector<16x16xf32>
    %1179 = arith.subf %1110, %1178 : vector<16x16xf32>
    %1180 = vector.extract_strided_slice %1114 {offsets = [2, 0], sizes = [1, 16], strides = [1, 1]} : vector<4x16xf32> to vector<1x16xf32>
    %1181 = vector.broadcast %1180 : vector<1x16xf32> to vector<16x16xf32>
    %1182 = arith.subf %1179, %1181 : vector<16x16xf32>
    %1183 = vector.broadcast %1176 : f32 to vector<16x16xf32>
    %1184 = arith.mulf %1183, %1182 : vector<16x16xf32>
    %c22_338 = arith.constant 22 : index
    %1185 = memref.load %arg24[%c22_338] : memref<32xf32, #tpu.memory_space<smem>>
    %1186 = vector.broadcast %1185 : f32 to vector<16x16xf32>
    %1187 = arith.addf %1184, %1186 : vector<16x16xf32>
    %c22_339 = arith.constant 22 : index
    %1188 = memref.load %arg23[%c22_339] : memref<32xf32, #tpu.memory_space<smem>>
    %1189 = vector.broadcast %1188 : f32 to vector<16x16xf32>
    %1190 = arith.mulf %1189, %1 : vector<16x16xf32>
    %1191 = arith.addf %1187, %1190 : vector<16x16xf32>
    %1192 = arith.addf %1191, %2 : vector<16x16xf32>
    %cst_340 = arith.constant dense<0xFF800000> : vector<16xf32>
    %1193 = vector.multi_reduction <maximumf>, %1192, %cst_340 [1] : vector<16x16xf32> to vector<16xf32>
    %1194 = vector.shape_cast %1193 : vector<16xf32> to vector<16x1xf32>
    %1195 = vector.broadcast %1194 : vector<16x1xf32> to vector<16x16xf32>
    %1196 = arith.subf %1192, %1195 : vector<16x16xf32>
    %1197 = math.exp %1196 : vector<16x16xf32>
    %cst_341 = arith.constant dense<0.000000e+00> : vector<16xf32>
    %1198 = vector.multi_reduction <add>, %1197, %cst_341 [1] : vector<16x16xf32> to vector<16xf32>
    %1199 = vector.shape_cast %1198 : vector<16xf32> to vector<16x1xf32>
    %1200 = vector.broadcast %1199 : vector<16x1xf32> to vector<16x16xf32>
    %1201 = arith.divf %1197, %1200 : vector<16x16xf32>
    %c22_342 = arith.constant 22 : index
    %1202 = memref.load %arg25[%c22_342] : memref<32xf32, #tpu.memory_space<smem>>
    %1203 = vector.broadcast %1202 : f32 to vector<16x16xf32>
    %1204 = arith.mulf %1203, %1201 : vector<16x16xf32>
    %1205 = arith.addf %1175, %1204 : vector<16x16xf32>
    %c23 = arith.constant 23 : index
    %1206 = memref.load %arg22[%c23] : memref<32xf32, #tpu.memory_space<smem>>
    %1207 = vector.extract_strided_slice %1113 {offsets = [0, 3], sizes = [16, 1], strides = [1, 1]} : vector<16x4xf32> to vector<16x1xf32>
    %1208 = vector.broadcast %1207 : vector<16x1xf32> to vector<16x16xf32>
    %1209 = arith.subf %1110, %1208 : vector<16x16xf32>
    %1210 = vector.extract_strided_slice %1114 {offsets = [3, 0], sizes = [1, 16], strides = [1, 1]} : vector<4x16xf32> to vector<1x16xf32>
    %1211 = vector.broadcast %1210 : vector<1x16xf32> to vector<16x16xf32>
    %1212 = arith.subf %1209, %1211 : vector<16x16xf32>
    %1213 = vector.broadcast %1206 : f32 to vector<16x16xf32>
    %1214 = arith.mulf %1213, %1212 : vector<16x16xf32>
    %c23_343 = arith.constant 23 : index
    %1215 = memref.load %arg24[%c23_343] : memref<32xf32, #tpu.memory_space<smem>>
    %1216 = vector.broadcast %1215 : f32 to vector<16x16xf32>
    %1217 = arith.addf %1214, %1216 : vector<16x16xf32>
    %c23_344 = arith.constant 23 : index
    %1218 = memref.load %arg23[%c23_344] : memref<32xf32, #tpu.memory_space<smem>>
    %1219 = vector.broadcast %1218 : f32 to vector<16x16xf32>
    %1220 = arith.mulf %1219, %1 : vector<16x16xf32>
    %1221 = arith.addf %1217, %1220 : vector<16x16xf32>
    %1222 = arith.addf %1221, %2 : vector<16x16xf32>
    %cst_345 = arith.constant dense<0xFF800000> : vector<16xf32>
    %1223 = vector.multi_reduction <maximumf>, %1222, %cst_345 [1] : vector<16x16xf32> to vector<16xf32>
    %1224 = vector.shape_cast %1223 : vector<16xf32> to vector<16x1xf32>
    %1225 = vector.broadcast %1224 : vector<16x1xf32> to vector<16x16xf32>
    %1226 = arith.subf %1222, %1225 : vector<16x16xf32>
    %1227 = math.exp %1226 : vector<16x16xf32>
    %cst_346 = arith.constant dense<0.000000e+00> : vector<16xf32>
    %1228 = vector.multi_reduction <add>, %1227, %cst_346 [1] : vector<16x16xf32> to vector<16xf32>
    %1229 = vector.shape_cast %1228 : vector<16xf32> to vector<16x1xf32>
    %1230 = vector.broadcast %1229 : vector<16x1xf32> to vector<16x16xf32>
    %1231 = arith.divf %1227, %1230 : vector<16x16xf32>
    %c23_347 = arith.constant 23 : index
    %1232 = memref.load %arg25[%c23_347] : memref<32xf32, #tpu.memory_space<smem>>
    %1233 = vector.broadcast %1232 : f32 to vector<16x16xf32>
    %1234 = arith.mulf %1233, %1231 : vector<16x16xf32>
    %1235 = arith.addf %1205, %1234 : vector<16x16xf32>
    %cst_348 = arith.constant dense<0.000000e+00> : vector<16x8xf32>
    %1236 = tpu.matmul %1235, %1109, %cst_348 {dimension_numbers = #tpu.dot_dimension_numbers<[1], [0], [0], [1], [0, 0, 1, 1], [], []>} : vector<16x16xf32>, vector<16x8xf32>, vector<16x8xf32> -> vector<16x8xf32>
    %1237 = vector.extract_strided_slice %882 {offsets = [8, 0], sizes = [8, 32], strides = [1, 1]} : vector<32x32xf32> to vector<8x32xf32>
    %cst_349 = arith.constant dense<0.000000e+00> : vector<16x32xf32>
    %1238 = tpu.matmul %1236, %1237, %cst_349 {dimension_numbers = #tpu.dot_dimension_numbers<[1], [0], [0], [1], [0, 0, 1, 1], [], []>} : vector<16x8xf32>, vector<8x32xf32>, vector<16x32xf32> -> vector<16x32xf32>
    %1239 = arith.addf %1062, %1238 : vector<16x32xf32>
    %1240 = vector.extract_strided_slice %876 {offsets = [0, 16], sizes = [16, 8], strides = [1, 1]} : vector<16x96xf32> to vector<16x8xf32>
    %cst_350 = arith.constant dense<0.000000e+00> : vector<16xf32>
    %1241 = vector.multi_reduction <add>, %1240, %cst_350 [1] : vector<16x8xf32> to vector<16xf32>
    %1242 = vector.shape_cast %1241 : vector<16xf32> to vector<16x1xf32>
    %cst_351 = arith.constant 8.000000e+00 : f32
    %1243 = vector.broadcast %cst_351 : f32 to vector<16x1xf32>
    %1244 = arith.divf %1242, %1243 : vector<16x1xf32>
    %1245 = vector.broadcast %1244 : vector<16x1xf32> to vector<16x8xf32>
    %1246 = arith.subf %1240, %1245 : vector<16x8xf32>
    %1247 = arith.mulf %1246, %1246 : vector<16x8xf32>
    %cst_352 = arith.constant dense<0.000000e+00> : vector<16xf32>
    %1248 = vector.multi_reduction <add>, %1247, %cst_352 [1] : vector<16x8xf32> to vector<16xf32>
    %1249 = vector.shape_cast %1248 : vector<16xf32> to vector<16x1xf32>
    %cst_353 = arith.constant 8.000000e+00 : f32
    %1250 = vector.broadcast %cst_353 : f32 to vector<16x1xf32>
    %1251 = arith.divf %1249, %1250 : vector<16x1xf32>
    %1252 = vector.broadcast %1244 : vector<16x1xf32> to vector<16x8xf32>
    %1253 = arith.subf %1240, %1252 : vector<16x8xf32>
    %cst_354 = arith.constant 9.99999974E-6 : f32
    %1254 = vector.broadcast %cst_354 : f32 to vector<16x1xf32>
    %1255 = arith.addf %1251, %1254 : vector<16x1xf32>
    %1256 = math.rsqrt %1255 : vector<16x1xf32>
    %1257 = vector.broadcast %1256 : vector<16x1xf32> to vector<16x8xf32>
    %1258 = arith.mulf %1253, %1257 : vector<16x8xf32>
    %1259 = vector.broadcast %878 : vector<1x8xf32> to vector<16x8xf32>
    %1260 = arith.mulf %1258, %1259 : vector<16x8xf32>
    %1261 = vector.broadcast %880 : vector<1x8xf32> to vector<16x8xf32>
    %1262 = arith.addf %1260, %1261 : vector<16x8xf32>
    %1263 = vector.extract_strided_slice %876 {offsets = [0, 48], sizes = [16, 8], strides = [1, 1]} : vector<16x96xf32> to vector<16x8xf32>
    %cst_355 = arith.constant dense<0.000000e+00> : vector<16xf32>
    %1264 = vector.multi_reduction <add>, %1263, %cst_355 [1] : vector<16x8xf32> to vector<16xf32>
    %1265 = vector.shape_cast %1264 : vector<16xf32> to vector<16x1xf32>
    %cst_356 = arith.constant 8.000000e+00 : f32
    %1266 = vector.broadcast %cst_356 : f32 to vector<16x1xf32>
    %1267 = arith.divf %1265, %1266 : vector<16x1xf32>
    %1268 = vector.broadcast %1267 : vector<16x1xf32> to vector<16x8xf32>
    %1269 = arith.subf %1263, %1268 : vector<16x8xf32>
    %1270 = arith.mulf %1269, %1269 : vector<16x8xf32>
    %cst_357 = arith.constant dense<0.000000e+00> : vector<16xf32>
    %1271 = vector.multi_reduction <add>, %1270, %cst_357 [1] : vector<16x8xf32> to vector<16xf32>
    %1272 = vector.shape_cast %1271 : vector<16xf32> to vector<16x1xf32>
    %cst_358 = arith.constant 8.000000e+00 : f32
    %1273 = vector.broadcast %cst_358 : f32 to vector<16x1xf32>
    %1274 = arith.divf %1272, %1273 : vector<16x1xf32>
    %1275 = vector.broadcast %1267 : vector<16x1xf32> to vector<16x8xf32>
    %1276 = arith.subf %1263, %1275 : vector<16x8xf32>
    %cst_359 = arith.constant 9.99999974E-6 : f32
    %1277 = vector.broadcast %cst_359 : f32 to vector<16x1xf32>
    %1278 = arith.addf %1274, %1277 : vector<16x1xf32>
    %1279 = math.rsqrt %1278 : vector<16x1xf32>
    %1280 = vector.broadcast %1279 : vector<16x1xf32> to vector<16x8xf32>
    %1281 = arith.mulf %1276, %1280 : vector<16x8xf32>
    %1282 = vector.broadcast %878 : vector<1x8xf32> to vector<16x8xf32>
    %1283 = arith.mulf %1281, %1282 : vector<16x8xf32>
    %1284 = vector.broadcast %880 : vector<1x8xf32> to vector<16x8xf32>
    %1285 = arith.addf %1283, %1284 : vector<16x8xf32>
    %1286 = vector.extract_strided_slice %876 {offsets = [0, 80], sizes = [16, 8], strides = [1, 1]} : vector<16x96xf32> to vector<16x8xf32>
    %cst_360 = arith.constant dense<0.000000e+00> : vector<16x16xf32>
    %1287 = tpu.matmul %1262, %1285, %cst_360 {dimension_numbers = #tpu.dot_dimension_numbers<[1], [1], [0], [0], [0, 0, 1, 0], [], []>} : vector<16x8xf32>, vector<16x8xf32>, vector<16x16xf32> -> vector<16x16xf32>
    %c1_361 = arith.constant 1 : index
    %c2_362 = arith.constant 2 : index
    %c0_363 = arith.constant 0 : index
    %c0_364 = arith.constant 0 : index
    %1288 = vector.load %arg11[%c1_361, %c2_362, %c0_363, %c0_364] : memref<2x4x4x8xf32, #tpu.memory_space<vmem>>, vector<1x1x4x8xf32>
    %1289 = vector.shape_cast %1288 : vector<1x1x4x8xf32> to vector<4x8xf32>
    %cst_365 = arith.constant dense<0.000000e+00> : vector<16x4xf32>
    %1290 = tpu.matmul %1262, %1289, %cst_365 {dimension_numbers = #tpu.dot_dimension_numbers<[1], [1], [0], [0], [0, 0, 1, 0], [], []>} : vector<16x8xf32>, vector<4x8xf32>, vector<16x4xf32> -> vector<16x4xf32>
    %cst_366 = arith.constant dense<0.000000e+00> : vector<4x16xf32>
    %1291 = tpu.matmul %1289, %1285, %cst_366 {dimension_numbers = #tpu.dot_dimension_numbers<[1], [1], [0], [0], [0, 0, 1, 0], [], []>} : vector<4x8xf32>, vector<16x8xf32>, vector<4x16xf32> -> vector<4x16xf32>
    %cst_367 = arith.constant 0.000000e+00 : f32
    %1292 = vector.broadcast %cst_367 : f32 to vector<16x16xf32>
    %c24 = arith.constant 24 : index
    %1293 = memref.load %arg22[%c24] : memref<32xf32, #tpu.memory_space<smem>>
    %1294 = vector.extract_strided_slice %1290 {offsets = [0, 0], sizes = [16, 1], strides = [1, 1]} : vector<16x4xf32> to vector<16x1xf32>
    %1295 = vector.broadcast %1294 : vector<16x1xf32> to vector<16x16xf32>
    %1296 = arith.subf %1287, %1295 : vector<16x16xf32>
    %1297 = vector.extract_strided_slice %1291 {offsets = [0, 0], sizes = [1, 16], strides = [1, 1]} : vector<4x16xf32> to vector<1x16xf32>
    %1298 = vector.broadcast %1297 : vector<1x16xf32> to vector<16x16xf32>
    %1299 = arith.subf %1296, %1298 : vector<16x16xf32>
    %1300 = vector.broadcast %1293 : f32 to vector<16x16xf32>
    %1301 = arith.mulf %1300, %1299 : vector<16x16xf32>
    %c24_368 = arith.constant 24 : index
    %1302 = memref.load %arg24[%c24_368] : memref<32xf32, #tpu.memory_space<smem>>
    %1303 = vector.broadcast %1302 : f32 to vector<16x16xf32>
    %1304 = arith.addf %1301, %1303 : vector<16x16xf32>
    %c24_369 = arith.constant 24 : index
    %1305 = memref.load %arg23[%c24_369] : memref<32xf32, #tpu.memory_space<smem>>
    %1306 = vector.broadcast %1305 : f32 to vector<16x16xf32>
    %1307 = arith.mulf %1306, %1 : vector<16x16xf32>
    %1308 = arith.addf %1304, %1307 : vector<16x16xf32>
    %1309 = arith.addf %1308, %2 : vector<16x16xf32>
    %cst_370 = arith.constant dense<0xFF800000> : vector<16xf32>
    %1310 = vector.multi_reduction <maximumf>, %1309, %cst_370 [1] : vector<16x16xf32> to vector<16xf32>
    %1311 = vector.shape_cast %1310 : vector<16xf32> to vector<16x1xf32>
    %1312 = vector.broadcast %1311 : vector<16x1xf32> to vector<16x16xf32>
    %1313 = arith.subf %1309, %1312 : vector<16x16xf32>
    %1314 = math.exp %1313 : vector<16x16xf32>
    %cst_371 = arith.constant dense<0.000000e+00> : vector<16xf32>
    %1315 = vector.multi_reduction <add>, %1314, %cst_371 [1] : vector<16x16xf32> to vector<16xf32>
    %1316 = vector.shape_cast %1315 : vector<16xf32> to vector<16x1xf32>
    %1317 = vector.broadcast %1316 : vector<16x1xf32> to vector<16x16xf32>
    %1318 = arith.divf %1314, %1317 : vector<16x16xf32>
    %c24_372 = arith.constant 24 : index
    %1319 = memref.load %arg25[%c24_372] : memref<32xf32, #tpu.memory_space<smem>>
    %1320 = vector.broadcast %1319 : f32 to vector<16x16xf32>
    %1321 = arith.mulf %1320, %1318 : vector<16x16xf32>
    %1322 = arith.addf %1292, %1321 : vector<16x16xf32>
    %c25 = arith.constant 25 : index
    %1323 = memref.load %arg22[%c25] : memref<32xf32, #tpu.memory_space<smem>>
    %1324 = vector.extract_strided_slice %1290 {offsets = [0, 1], sizes = [16, 1], strides = [1, 1]} : vector<16x4xf32> to vector<16x1xf32>
    %1325 = vector.broadcast %1324 : vector<16x1xf32> to vector<16x16xf32>
    %1326 = arith.subf %1287, %1325 : vector<16x16xf32>
    %1327 = vector.extract_strided_slice %1291 {offsets = [1, 0], sizes = [1, 16], strides = [1, 1]} : vector<4x16xf32> to vector<1x16xf32>
    %1328 = vector.broadcast %1327 : vector<1x16xf32> to vector<16x16xf32>
    %1329 = arith.subf %1326, %1328 : vector<16x16xf32>
    %1330 = vector.broadcast %1323 : f32 to vector<16x16xf32>
    %1331 = arith.mulf %1330, %1329 : vector<16x16xf32>
    %c25_373 = arith.constant 25 : index
    %1332 = memref.load %arg24[%c25_373] : memref<32xf32, #tpu.memory_space<smem>>
    %1333 = vector.broadcast %1332 : f32 to vector<16x16xf32>
    %1334 = arith.addf %1331, %1333 : vector<16x16xf32>
    %c25_374 = arith.constant 25 : index
    %1335 = memref.load %arg23[%c25_374] : memref<32xf32, #tpu.memory_space<smem>>
    %1336 = vector.broadcast %1335 : f32 to vector<16x16xf32>
    %1337 = arith.mulf %1336, %1 : vector<16x16xf32>
    %1338 = arith.addf %1334, %1337 : vector<16x16xf32>
    %1339 = arith.addf %1338, %2 : vector<16x16xf32>
    %cst_375 = arith.constant dense<0xFF800000> : vector<16xf32>
    %1340 = vector.multi_reduction <maximumf>, %1339, %cst_375 [1] : vector<16x16xf32> to vector<16xf32>
    %1341 = vector.shape_cast %1340 : vector<16xf32> to vector<16x1xf32>
    %1342 = vector.broadcast %1341 : vector<16x1xf32> to vector<16x16xf32>
    %1343 = arith.subf %1339, %1342 : vector<16x16xf32>
    %1344 = math.exp %1343 : vector<16x16xf32>
    %cst_376 = arith.constant dense<0.000000e+00> : vector<16xf32>
    %1345 = vector.multi_reduction <add>, %1344, %cst_376 [1] : vector<16x16xf32> to vector<16xf32>
    %1346 = vector.shape_cast %1345 : vector<16xf32> to vector<16x1xf32>
    %1347 = vector.broadcast %1346 : vector<16x1xf32> to vector<16x16xf32>
    %1348 = arith.divf %1344, %1347 : vector<16x16xf32>
    %c25_377 = arith.constant 25 : index
    %1349 = memref.load %arg25[%c25_377] : memref<32xf32, #tpu.memory_space<smem>>
    %1350 = vector.broadcast %1349 : f32 to vector<16x16xf32>
    %1351 = arith.mulf %1350, %1348 : vector<16x16xf32>
    %1352 = arith.addf %1322, %1351 : vector<16x16xf32>
    %c26 = arith.constant 26 : index
    %1353 = memref.load %arg22[%c26] : memref<32xf32, #tpu.memory_space<smem>>
    %1354 = vector.extract_strided_slice %1290 {offsets = [0, 2], sizes = [16, 1], strides = [1, 1]} : vector<16x4xf32> to vector<16x1xf32>
    %1355 = vector.broadcast %1354 : vector<16x1xf32> to vector<16x16xf32>
    %1356 = arith.subf %1287, %1355 : vector<16x16xf32>
    %1357 = vector.extract_strided_slice %1291 {offsets = [2, 0], sizes = [1, 16], strides = [1, 1]} : vector<4x16xf32> to vector<1x16xf32>
    %1358 = vector.broadcast %1357 : vector<1x16xf32> to vector<16x16xf32>
    %1359 = arith.subf %1356, %1358 : vector<16x16xf32>
    %1360 = vector.broadcast %1353 : f32 to vector<16x16xf32>
    %1361 = arith.mulf %1360, %1359 : vector<16x16xf32>
    %c26_378 = arith.constant 26 : index
    %1362 = memref.load %arg24[%c26_378] : memref<32xf32, #tpu.memory_space<smem>>
    %1363 = vector.broadcast %1362 : f32 to vector<16x16xf32>
    %1364 = arith.addf %1361, %1363 : vector<16x16xf32>
    %c26_379 = arith.constant 26 : index
    %1365 = memref.load %arg23[%c26_379] : memref<32xf32, #tpu.memory_space<smem>>
    %1366 = vector.broadcast %1365 : f32 to vector<16x16xf32>
    %1367 = arith.mulf %1366, %1 : vector<16x16xf32>
    %1368 = arith.addf %1364, %1367 : vector<16x16xf32>
    %1369 = arith.addf %1368, %2 : vector<16x16xf32>
    %cst_380 = arith.constant dense<0xFF800000> : vector<16xf32>
    %1370 = vector.multi_reduction <maximumf>, %1369, %cst_380 [1] : vector<16x16xf32> to vector<16xf32>
    %1371 = vector.shape_cast %1370 : vector<16xf32> to vector<16x1xf32>
    %1372 = vector.broadcast %1371 : vector<16x1xf32> to vector<16x16xf32>
    %1373 = arith.subf %1369, %1372 : vector<16x16xf32>
    %1374 = math.exp %1373 : vector<16x16xf32>
    %cst_381 = arith.constant dense<0.000000e+00> : vector<16xf32>
    %1375 = vector.multi_reduction <add>, %1374, %cst_381 [1] : vector<16x16xf32> to vector<16xf32>
    %1376 = vector.shape_cast %1375 : vector<16xf32> to vector<16x1xf32>
    %1377 = vector.broadcast %1376 : vector<16x1xf32> to vector<16x16xf32>
    %1378 = arith.divf %1374, %1377 : vector<16x16xf32>
    %c26_382 = arith.constant 26 : index
    %1379 = memref.load %arg25[%c26_382] : memref<32xf32, #tpu.memory_space<smem>>
    %1380 = vector.broadcast %1379 : f32 to vector<16x16xf32>
    %1381 = arith.mulf %1380, %1378 : vector<16x16xf32>
    %1382 = arith.addf %1352, %1381 : vector<16x16xf32>
    %c27 = arith.constant 27 : index
    %1383 = memref.load %arg22[%c27] : memref<32xf32, #tpu.memory_space<smem>>
    %1384 = vector.extract_strided_slice %1290 {offsets = [0, 3], sizes = [16, 1], strides = [1, 1]} : vector<16x4xf32> to vector<16x1xf32>
    %1385 = vector.broadcast %1384 : vector<16x1xf32> to vector<16x16xf32>
    %1386 = arith.subf %1287, %1385 : vector<16x16xf32>
    %1387 = vector.extract_strided_slice %1291 {offsets = [3, 0], sizes = [1, 16], strides = [1, 1]} : vector<4x16xf32> to vector<1x16xf32>
    %1388 = vector.broadcast %1387 : vector<1x16xf32> to vector<16x16xf32>
    %1389 = arith.subf %1386, %1388 : vector<16x16xf32>
    %1390 = vector.broadcast %1383 : f32 to vector<16x16xf32>
    %1391 = arith.mulf %1390, %1389 : vector<16x16xf32>
    %c27_383 = arith.constant 27 : index
    %1392 = memref.load %arg24[%c27_383] : memref<32xf32, #tpu.memory_space<smem>>
    %1393 = vector.broadcast %1392 : f32 to vector<16x16xf32>
    %1394 = arith.addf %1391, %1393 : vector<16x16xf32>
    %c27_384 = arith.constant 27 : index
    %1395 = memref.load %arg23[%c27_384] : memref<32xf32, #tpu.memory_space<smem>>
    %1396 = vector.broadcast %1395 : f32 to vector<16x16xf32>
    %1397 = arith.mulf %1396, %1 : vector<16x16xf32>
    %1398 = arith.addf %1394, %1397 : vector<16x16xf32>
    %1399 = arith.addf %1398, %2 : vector<16x16xf32>
    %cst_385 = arith.constant dense<0xFF800000> : vector<16xf32>
    %1400 = vector.multi_reduction <maximumf>, %1399, %cst_385 [1] : vector<16x16xf32> to vector<16xf32>
    %1401 = vector.shape_cast %1400 : vector<16xf32> to vector<16x1xf32>
    %1402 = vector.broadcast %1401 : vector<16x1xf32> to vector<16x16xf32>
    %1403 = arith.subf %1399, %1402 : vector<16x16xf32>
    %1404 = math.exp %1403 : vector<16x16xf32>
    %cst_386 = arith.constant dense<0.000000e+00> : vector<16xf32>
    %1405 = vector.multi_reduction <add>, %1404, %cst_386 [1] : vector<16x16xf32> to vector<16xf32>
    %1406 = vector.shape_cast %1405 : vector<16xf32> to vector<16x1xf32>
    %1407 = vector.broadcast %1406 : vector<16x1xf32> to vector<16x16xf32>
    %1408 = arith.divf %1404, %1407 : vector<16x16xf32>
    %c27_387 = arith.constant 27 : index
    %1409 = memref.load %arg25[%c27_387] : memref<32xf32, #tpu.memory_space<smem>>
    %1410 = vector.broadcast %1409 : f32 to vector<16x16xf32>
    %1411 = arith.mulf %1410, %1408 : vector<16x16xf32>
    %1412 = arith.addf %1382, %1411 : vector<16x16xf32>
    %cst_388 = arith.constant dense<0.000000e+00> : vector<16x8xf32>
    %1413 = tpu.matmul %1412, %1286, %cst_388 {dimension_numbers = #tpu.dot_dimension_numbers<[1], [0], [0], [1], [0, 0, 1, 1], [], []>} : vector<16x16xf32>, vector<16x8xf32>, vector<16x8xf32> -> vector<16x8xf32>
    %1414 = vector.extract_strided_slice %882 {offsets = [16, 0], sizes = [8, 32], strides = [1, 1]} : vector<32x32xf32> to vector<8x32xf32>
    %cst_389 = arith.constant dense<0.000000e+00> : vector<16x32xf32>
    %1415 = tpu.matmul %1413, %1414, %cst_389 {dimension_numbers = #tpu.dot_dimension_numbers<[1], [0], [0], [1], [0, 0, 1, 1], [], []>} : vector<16x8xf32>, vector<8x32xf32>, vector<16x32xf32> -> vector<16x32xf32>
    %1416 = arith.addf %1239, %1415 : vector<16x32xf32>
    %1417 = vector.extract_strided_slice %876 {offsets = [0, 24], sizes = [16, 8], strides = [1, 1]} : vector<16x96xf32> to vector<16x8xf32>
    %cst_390 = arith.constant dense<0.000000e+00> : vector<16xf32>
    %1418 = vector.multi_reduction <add>, %1417, %cst_390 [1] : vector<16x8xf32> to vector<16xf32>
    %1419 = vector.shape_cast %1418 : vector<16xf32> to vector<16x1xf32>
    %cst_391 = arith.constant 8.000000e+00 : f32
    %1420 = vector.broadcast %cst_391 : f32 to vector<16x1xf32>
    %1421 = arith.divf %1419, %1420 : vector<16x1xf32>
    %1422 = vector.broadcast %1421 : vector<16x1xf32> to vector<16x8xf32>
    %1423 = arith.subf %1417, %1422 : vector<16x8xf32>
    %1424 = arith.mulf %1423, %1423 : vector<16x8xf32>
    %cst_392 = arith.constant dense<0.000000e+00> : vector<16xf32>
    %1425 = vector.multi_reduction <add>, %1424, %cst_392 [1] : vector<16x8xf32> to vector<16xf32>
    %1426 = vector.shape_cast %1425 : vector<16xf32> to vector<16x1xf32>
    %cst_393 = arith.constant 8.000000e+00 : f32
    %1427 = vector.broadcast %cst_393 : f32 to vector<16x1xf32>
    %1428 = arith.divf %1426, %1427 : vector<16x1xf32>
    %1429 = vector.broadcast %1421 : vector<16x1xf32> to vector<16x8xf32>
    %1430 = arith.subf %1417, %1429 : vector<16x8xf32>
    %cst_394 = arith.constant 9.99999974E-6 : f32
    %1431 = vector.broadcast %cst_394 : f32 to vector<16x1xf32>
    %1432 = arith.addf %1428, %1431 : vector<16x1xf32>
    %1433 = math.rsqrt %1432 : vector<16x1xf32>
    %1434 = vector.broadcast %1433 : vector<16x1xf32> to vector<16x8xf32>
    %1435 = arith.mulf %1430, %1434 : vector<16x8xf32>
    %1436 = vector.broadcast %878 : vector<1x8xf32> to vector<16x8xf32>
    %1437 = arith.mulf %1435, %1436 : vector<16x8xf32>
    %1438 = vector.broadcast %880 : vector<1x8xf32> to vector<16x8xf32>
    %1439 = arith.addf %1437, %1438 : vector<16x8xf32>
    %1440 = vector.extract_strided_slice %876 {offsets = [0, 56], sizes = [16, 8], strides = [1, 1]} : vector<16x96xf32> to vector<16x8xf32>
    %cst_395 = arith.constant dense<0.000000e+00> : vector<16xf32>
    %1441 = vector.multi_reduction <add>, %1440, %cst_395 [1] : vector<16x8xf32> to vector<16xf32>
    %1442 = vector.shape_cast %1441 : vector<16xf32> to vector<16x1xf32>
    %cst_396 = arith.constant 8.000000e+00 : f32
    %1443 = vector.broadcast %cst_396 : f32 to vector<16x1xf32>
    %1444 = arith.divf %1442, %1443 : vector<16x1xf32>
    %1445 = vector.broadcast %1444 : vector<16x1xf32> to vector<16x8xf32>
    %1446 = arith.subf %1440, %1445 : vector<16x8xf32>
    %1447 = arith.mulf %1446, %1446 : vector<16x8xf32>
    %cst_397 = arith.constant dense<0.000000e+00> : vector<16xf32>
    %1448 = vector.multi_reduction <add>, %1447, %cst_397 [1] : vector<16x8xf32> to vector<16xf32>
    %1449 = vector.shape_cast %1448 : vector<16xf32> to vector<16x1xf32>
    %cst_398 = arith.constant 8.000000e+00 : f32
    %1450 = vector.broadcast %cst_398 : f32 to vector<16x1xf32>
    %1451 = arith.divf %1449, %1450 : vector<16x1xf32>
    %1452 = vector.broadcast %1444 : vector<16x1xf32> to vector<16x8xf32>
    %1453 = arith.subf %1440, %1452 : vector<16x8xf32>
    %cst_399 = arith.constant 9.99999974E-6 : f32
    %1454 = vector.broadcast %cst_399 : f32 to vector<16x1xf32>
    %1455 = arith.addf %1451, %1454 : vector<16x1xf32>
    %1456 = math.rsqrt %1455 : vector<16x1xf32>
    %1457 = vector.broadcast %1456 : vector<16x1xf32> to vector<16x8xf32>
    %1458 = arith.mulf %1453, %1457 : vector<16x8xf32>
    %1459 = vector.broadcast %878 : vector<1x8xf32> to vector<16x8xf32>
    %1460 = arith.mulf %1458, %1459 : vector<16x8xf32>
    %1461 = vector.broadcast %880 : vector<1x8xf32> to vector<16x8xf32>
    %1462 = arith.addf %1460, %1461 : vector<16x8xf32>
    %1463 = vector.extract_strided_slice %876 {offsets = [0, 88], sizes = [16, 8], strides = [1, 1]} : vector<16x96xf32> to vector<16x8xf32>
    %cst_400 = arith.constant dense<0.000000e+00> : vector<16x16xf32>
    %1464 = tpu.matmul %1439, %1462, %cst_400 {dimension_numbers = #tpu.dot_dimension_numbers<[1], [1], [0], [0], [0, 0, 1, 0], [], []>} : vector<16x8xf32>, vector<16x8xf32>, vector<16x16xf32> -> vector<16x16xf32>
    %c1_401 = arith.constant 1 : index
    %c3_402 = arith.constant 3 : index
    %c0_403 = arith.constant 0 : index
    %c0_404 = arith.constant 0 : index
    %1465 = vector.load %arg11[%c1_401, %c3_402, %c0_403, %c0_404] : memref<2x4x4x8xf32, #tpu.memory_space<vmem>>, vector<1x1x4x8xf32>
    %1466 = vector.shape_cast %1465 : vector<1x1x4x8xf32> to vector<4x8xf32>
    %cst_405 = arith.constant dense<0.000000e+00> : vector<16x4xf32>
    %1467 = tpu.matmul %1439, %1466, %cst_405 {dimension_numbers = #tpu.dot_dimension_numbers<[1], [1], [0], [0], [0, 0, 1, 0], [], []>} : vector<16x8xf32>, vector<4x8xf32>, vector<16x4xf32> -> vector<16x4xf32>
    %cst_406 = arith.constant dense<0.000000e+00> : vector<4x16xf32>
    %1468 = tpu.matmul %1466, %1462, %cst_406 {dimension_numbers = #tpu.dot_dimension_numbers<[1], [1], [0], [0], [0, 0, 1, 0], [], []>} : vector<4x8xf32>, vector<16x8xf32>, vector<4x16xf32> -> vector<4x16xf32>
    %cst_407 = arith.constant 0.000000e+00 : f32
    %1469 = vector.broadcast %cst_407 : f32 to vector<16x16xf32>
    %c28 = arith.constant 28 : index
    %1470 = memref.load %arg22[%c28] : memref<32xf32, #tpu.memory_space<smem>>
    %1471 = vector.extract_strided_slice %1467 {offsets = [0, 0], sizes = [16, 1], strides = [1, 1]} : vector<16x4xf32> to vector<16x1xf32>
    %1472 = vector.broadcast %1471 : vector<16x1xf32> to vector<16x16xf32>
    %1473 = arith.subf %1464, %1472 : vector<16x16xf32>
    %1474 = vector.extract_strided_slice %1468 {offsets = [0, 0], sizes = [1, 16], strides = [1, 1]} : vector<4x16xf32> to vector<1x16xf32>
    %1475 = vector.broadcast %1474 : vector<1x16xf32> to vector<16x16xf32>
    %1476 = arith.subf %1473, %1475 : vector<16x16xf32>
    %1477 = vector.broadcast %1470 : f32 to vector<16x16xf32>
    %1478 = arith.mulf %1477, %1476 : vector<16x16xf32>
    %c28_408 = arith.constant 28 : index
    %1479 = memref.load %arg24[%c28_408] : memref<32xf32, #tpu.memory_space<smem>>
    %1480 = vector.broadcast %1479 : f32 to vector<16x16xf32>
    %1481 = arith.addf %1478, %1480 : vector<16x16xf32>
    %c28_409 = arith.constant 28 : index
    %1482 = memref.load %arg23[%c28_409] : memref<32xf32, #tpu.memory_space<smem>>
    %1483 = vector.broadcast %1482 : f32 to vector<16x16xf32>
    %1484 = arith.mulf %1483, %1 : vector<16x16xf32>
    %1485 = arith.addf %1481, %1484 : vector<16x16xf32>
    %1486 = arith.addf %1485, %2 : vector<16x16xf32>
    %cst_410 = arith.constant dense<0xFF800000> : vector<16xf32>
    %1487 = vector.multi_reduction <maximumf>, %1486, %cst_410 [1] : vector<16x16xf32> to vector<16xf32>
    %1488 = vector.shape_cast %1487 : vector<16xf32> to vector<16x1xf32>
    %1489 = vector.broadcast %1488 : vector<16x1xf32> to vector<16x16xf32>
    %1490 = arith.subf %1486, %1489 : vector<16x16xf32>
    %1491 = math.exp %1490 : vector<16x16xf32>
    %cst_411 = arith.constant dense<0.000000e+00> : vector<16xf32>
    %1492 = vector.multi_reduction <add>, %1491, %cst_411 [1] : vector<16x16xf32> to vector<16xf32>
    %1493 = vector.shape_cast %1492 : vector<16xf32> to vector<16x1xf32>
    %1494 = vector.broadcast %1493 : vector<16x1xf32> to vector<16x16xf32>
    %1495 = arith.divf %1491, %1494 : vector<16x16xf32>
    %c28_412 = arith.constant 28 : index
    %1496 = memref.load %arg25[%c28_412] : memref<32xf32, #tpu.memory_space<smem>>
    %1497 = vector.broadcast %1496 : f32 to vector<16x16xf32>
    %1498 = arith.mulf %1497, %1495 : vector<16x16xf32>
    %1499 = arith.addf %1469, %1498 : vector<16x16xf32>
    %c29 = arith.constant 29 : index
    %1500 = memref.load %arg22[%c29] : memref<32xf32, #tpu.memory_space<smem>>
    %1501 = vector.extract_strided_slice %1467 {offsets = [0, 1], sizes = [16, 1], strides = [1, 1]} : vector<16x4xf32> to vector<16x1xf32>
    %1502 = vector.broadcast %1501 : vector<16x1xf32> to vector<16x16xf32>
    %1503 = arith.subf %1464, %1502 : vector<16x16xf32>
    %1504 = vector.extract_strided_slice %1468 {offsets = [1, 0], sizes = [1, 16], strides = [1, 1]} : vector<4x16xf32> to vector<1x16xf32>
    %1505 = vector.broadcast %1504 : vector<1x16xf32> to vector<16x16xf32>
    %1506 = arith.subf %1503, %1505 : vector<16x16xf32>
    %1507 = vector.broadcast %1500 : f32 to vector<16x16xf32>
    %1508 = arith.mulf %1507, %1506 : vector<16x16xf32>
    %c29_413 = arith.constant 29 : index
    %1509 = memref.load %arg24[%c29_413] : memref<32xf32, #tpu.memory_space<smem>>
    %1510 = vector.broadcast %1509 : f32 to vector<16x16xf32>
    %1511 = arith.addf %1508, %1510 : vector<16x16xf32>
    %c29_414 = arith.constant 29 : index
    %1512 = memref.load %arg23[%c29_414] : memref<32xf32, #tpu.memory_space<smem>>
    %1513 = vector.broadcast %1512 : f32 to vector<16x16xf32>
    %1514 = arith.mulf %1513, %1 : vector<16x16xf32>
    %1515 = arith.addf %1511, %1514 : vector<16x16xf32>
    %1516 = arith.addf %1515, %2 : vector<16x16xf32>
    %cst_415 = arith.constant dense<0xFF800000> : vector<16xf32>
    %1517 = vector.multi_reduction <maximumf>, %1516, %cst_415 [1] : vector<16x16xf32> to vector<16xf32>
    %1518 = vector.shape_cast %1517 : vector<16xf32> to vector<16x1xf32>
    %1519 = vector.broadcast %1518 : vector<16x1xf32> to vector<16x16xf32>
    %1520 = arith.subf %1516, %1519 : vector<16x16xf32>
    %1521 = math.exp %1520 : vector<16x16xf32>
    %cst_416 = arith.constant dense<0.000000e+00> : vector<16xf32>
    %1522 = vector.multi_reduction <add>, %1521, %cst_416 [1] : vector<16x16xf32> to vector<16xf32>
    %1523 = vector.shape_cast %1522 : vector<16xf32> to vector<16x1xf32>
    %1524 = vector.broadcast %1523 : vector<16x1xf32> to vector<16x16xf32>
    %1525 = arith.divf %1521, %1524 : vector<16x16xf32>
    %c29_417 = arith.constant 29 : index
    %1526 = memref.load %arg25[%c29_417] : memref<32xf32, #tpu.memory_space<smem>>
    %1527 = vector.broadcast %1526 : f32 to vector<16x16xf32>
    %1528 = arith.mulf %1527, %1525 : vector<16x16xf32>
    %1529 = arith.addf %1499, %1528 : vector<16x16xf32>
    %c30 = arith.constant 30 : index
    %1530 = memref.load %arg22[%c30] : memref<32xf32, #tpu.memory_space<smem>>
    %1531 = vector.extract_strided_slice %1467 {offsets = [0, 2], sizes = [16, 1], strides = [1, 1]} : vector<16x4xf32> to vector<16x1xf32>
    %1532 = vector.broadcast %1531 : vector<16x1xf32> to vector<16x16xf32>
    %1533 = arith.subf %1464, %1532 : vector<16x16xf32>
    %1534 = vector.extract_strided_slice %1468 {offsets = [2, 0], sizes = [1, 16], strides = [1, 1]} : vector<4x16xf32> to vector<1x16xf32>
    %1535 = vector.broadcast %1534 : vector<1x16xf32> to vector<16x16xf32>
    %1536 = arith.subf %1533, %1535 : vector<16x16xf32>
    %1537 = vector.broadcast %1530 : f32 to vector<16x16xf32>
    %1538 = arith.mulf %1537, %1536 : vector<16x16xf32>
    %c30_418 = arith.constant 30 : index
    %1539 = memref.load %arg24[%c30_418] : memref<32xf32, #tpu.memory_space<smem>>
    %1540 = vector.broadcast %1539 : f32 to vector<16x16xf32>
    %1541 = arith.addf %1538, %1540 : vector<16x16xf32>
    %c30_419 = arith.constant 30 : index
    %1542 = memref.load %arg23[%c30_419] : memref<32xf32, #tpu.memory_space<smem>>
    %1543 = vector.broadcast %1542 : f32 to vector<16x16xf32>
    %1544 = arith.mulf %1543, %1 : vector<16x16xf32>
    %1545 = arith.addf %1541, %1544 : vector<16x16xf32>
    %1546 = arith.addf %1545, %2 : vector<16x16xf32>
    %cst_420 = arith.constant dense<0xFF800000> : vector<16xf32>
    %1547 = vector.multi_reduction <maximumf>, %1546, %cst_420 [1] : vector<16x16xf32> to vector<16xf32>
    %1548 = vector.shape_cast %1547 : vector<16xf32> to vector<16x1xf32>
    %1549 = vector.broadcast %1548 : vector<16x1xf32> to vector<16x16xf32>
    %1550 = arith.subf %1546, %1549 : vector<16x16xf32>
    %1551 = math.exp %1550 : vector<16x16xf32>
    %cst_421 = arith.constant dense<0.000000e+00> : vector<16xf32>
    %1552 = vector.multi_reduction <add>, %1551, %cst_421 [1] : vector<16x16xf32> to vector<16xf32>
    %1553 = vector.shape_cast %1552 : vector<16xf32> to vector<16x1xf32>
    %1554 = vector.broadcast %1553 : vector<16x1xf32> to vector<16x16xf32>
    %1555 = arith.divf %1551, %1554 : vector<16x16xf32>
    %c30_422 = arith.constant 30 : index
    %1556 = memref.load %arg25[%c30_422] : memref<32xf32, #tpu.memory_space<smem>>
    %1557 = vector.broadcast %1556 : f32 to vector<16x16xf32>
    %1558 = arith.mulf %1557, %1555 : vector<16x16xf32>
    %1559 = arith.addf %1529, %1558 : vector<16x16xf32>
    %c31 = arith.constant 31 : index
    %1560 = memref.load %arg22[%c31] : memref<32xf32, #tpu.memory_space<smem>>
    %1561 = vector.extract_strided_slice %1467 {offsets = [0, 3], sizes = [16, 1], strides = [1, 1]} : vector<16x4xf32> to vector<16x1xf32>
    %1562 = vector.broadcast %1561 : vector<16x1xf32> to vector<16x16xf32>
    %1563 = arith.subf %1464, %1562 : vector<16x16xf32>
    %1564 = vector.extract_strided_slice %1468 {offsets = [3, 0], sizes = [1, 16], strides = [1, 1]} : vector<4x16xf32> to vector<1x16xf32>
    %1565 = vector.broadcast %1564 : vector<1x16xf32> to vector<16x16xf32>
    %1566 = arith.subf %1563, %1565 : vector<16x16xf32>
    %1567 = vector.broadcast %1560 : f32 to vector<16x16xf32>
    %1568 = arith.mulf %1567, %1566 : vector<16x16xf32>
    %c31_423 = arith.constant 31 : index
    %1569 = memref.load %arg24[%c31_423] : memref<32xf32, #tpu.memory_space<smem>>
    %1570 = vector.broadcast %1569 : f32 to vector<16x16xf32>
    %1571 = arith.addf %1568, %1570 : vector<16x16xf32>
    %c31_424 = arith.constant 31 : index
    %1572 = memref.load %arg23[%c31_424] : memref<32xf32, #tpu.memory_space<smem>>
    %1573 = vector.broadcast %1572 : f32 to vector<16x16xf32>
    %1574 = arith.mulf %1573, %1 : vector<16x16xf32>
    %1575 = arith.addf %1571, %1574 : vector<16x16xf32>
    %1576 = arith.addf %1575, %2 : vector<16x16xf32>
    %cst_425 = arith.constant dense<0xFF800000> : vector<16xf32>
    %1577 = vector.multi_reduction <maximumf>, %1576, %cst_425 [1] : vector<16x16xf32> to vector<16xf32>
    %1578 = vector.shape_cast %1577 : vector<16xf32> to vector<16x1xf32>
    %1579 = vector.broadcast %1578 : vector<16x1xf32> to vector<16x16xf32>
    %1580 = arith.subf %1576, %1579 : vector<16x16xf32>
    %1581 = math.exp %1580 : vector<16x16xf32>
    %cst_426 = arith.constant dense<0.000000e+00> : vector<16xf32>
    %1582 = vector.multi_reduction <add>, %1581, %cst_426 [1] : vector<16x16xf32> to vector<16xf32>
    %1583 = vector.shape_cast %1582 : vector<16xf32> to vector<16x1xf32>
    %1584 = vector.broadcast %1583 : vector<16x1xf32> to vector<16x16xf32>
    %1585 = arith.divf %1581, %1584 : vector<16x16xf32>
    %c31_427 = arith.constant 31 : index
    %1586 = memref.load %arg25[%c31_427] : memref<32xf32, #tpu.memory_space<smem>>
    %1587 = vector.broadcast %1586 : f32 to vector<16x16xf32>
    %1588 = arith.mulf %1587, %1585 : vector<16x16xf32>
    %1589 = arith.addf %1559, %1588 : vector<16x16xf32>
    %cst_428 = arith.constant dense<0.000000e+00> : vector<16x8xf32>
    %1590 = tpu.matmul %1589, %1463, %cst_428 {dimension_numbers = #tpu.dot_dimension_numbers<[1], [0], [0], [1], [0, 0, 1, 1], [], []>} : vector<16x16xf32>, vector<16x8xf32>, vector<16x8xf32> -> vector<16x8xf32>
    %1591 = vector.extract_strided_slice %882 {offsets = [24, 0], sizes = [8, 32], strides = [1, 1]} : vector<32x32xf32> to vector<8x32xf32>
    %cst_429 = arith.constant dense<0.000000e+00> : vector<16x32xf32>
    %1592 = tpu.matmul %1590, %1591, %cst_429 {dimension_numbers = #tpu.dot_dimension_numbers<[1], [0], [0], [1], [0, 0, 1, 1], [], []>} : vector<16x8xf32>, vector<8x32xf32>, vector<16x32xf32> -> vector<16x32xf32>
    %1593 = arith.addf %1416, %1592 : vector<16x32xf32>
    %1594 = arith.addf %843, %1593 : vector<16x32xf32>
    %c1_430 = arith.constant 1 : index
    %c0_431 = arith.constant 0 : index
    %c0_432 = arith.constant 0 : index
    %1595 = vector.load %arg14[%c1_430, %c0_431, %c0_432] : memref<2x1x32xf32, #tpu.memory_space<vmem>>, vector<1x1x32xf32>
    %1596 = vector.shape_cast %1595 : vector<1x1x32xf32> to vector<1x32xf32>
    %c1_433 = arith.constant 1 : index
    %c0_434 = arith.constant 0 : index
    %c0_435 = arith.constant 0 : index
    %1597 = vector.load %arg15[%c1_433, %c0_434, %c0_435] : memref<2x1x32xf32, #tpu.memory_space<vmem>>, vector<1x1x32xf32>
    %1598 = vector.shape_cast %1597 : vector<1x1x32xf32> to vector<1x32xf32>
    %cst_436 = arith.constant dense<0.000000e+00> : vector<16xf32>
    %1599 = vector.multi_reduction <add>, %1594, %cst_436 [1] : vector<16x32xf32> to vector<16xf32>
    %1600 = vector.shape_cast %1599 : vector<16xf32> to vector<16x1xf32>
    %cst_437 = arith.constant 3.200000e+01 : f32
    %1601 = vector.broadcast %cst_437 : f32 to vector<16x1xf32>
    %1602 = arith.divf %1600, %1601 : vector<16x1xf32>
    %1603 = vector.broadcast %1602 : vector<16x1xf32> to vector<16x32xf32>
    %1604 = arith.subf %1594, %1603 : vector<16x32xf32>
    %1605 = arith.mulf %1604, %1604 : vector<16x32xf32>
    %cst_438 = arith.constant dense<0.000000e+00> : vector<16xf32>
    %1606 = vector.multi_reduction <add>, %1605, %cst_438 [1] : vector<16x32xf32> to vector<16xf32>
    %1607 = vector.shape_cast %1606 : vector<16xf32> to vector<16x1xf32>
    %cst_439 = arith.constant 3.200000e+01 : f32
    %1608 = vector.broadcast %cst_439 : f32 to vector<16x1xf32>
    %1609 = arith.divf %1607, %1608 : vector<16x1xf32>
    %1610 = vector.broadcast %1602 : vector<16x1xf32> to vector<16x32xf32>
    %1611 = arith.subf %1594, %1610 : vector<16x32xf32>
    %cst_440 = arith.constant 9.99999974E-6 : f32
    %1612 = vector.broadcast %cst_440 : f32 to vector<16x1xf32>
    %1613 = arith.addf %1609, %1612 : vector<16x1xf32>
    %1614 = math.rsqrt %1613 : vector<16x1xf32>
    %1615 = vector.broadcast %1614 : vector<16x1xf32> to vector<16x32xf32>
    %1616 = arith.mulf %1611, %1615 : vector<16x32xf32>
    %1617 = vector.broadcast %1596 : vector<1x32xf32> to vector<16x32xf32>
    %1618 = arith.mulf %1616, %1617 : vector<16x32xf32>
    %1619 = vector.broadcast %1598 : vector<1x32xf32> to vector<16x32xf32>
    %1620 = arith.addf %1618, %1619 : vector<16x32xf32>
    %c1_441 = arith.constant 1 : index
    %c0_442 = arith.constant 0 : index
    %c0_443 = arith.constant 0 : index
    %1621 = vector.load %arg16[%c1_441, %c0_442, %c0_443] : memref<2x32x128xf32, #tpu.memory_space<vmem>>, vector<1x32x128xf32>
    %1622 = vector.shape_cast %1621 : vector<1x32x128xf32> to vector<32x128xf32>
    %cst_444 = arith.constant dense<0.000000e+00> : vector<16x128xf32>
    %1623 = tpu.matmul %1620, %1622, %cst_444 {dimension_numbers = #tpu.dot_dimension_numbers<[1], [0], [0], [1], [0, 0, 1, 1], [], []>} : vector<16x32xf32>, vector<32x128xf32>, vector<16x128xf32> -> vector<16x128xf32>
    %c1_445 = arith.constant 1 : index
    %c0_446 = arith.constant 0 : index
    %c0_447 = arith.constant 0 : index
    %1624 = vector.load %arg17[%c1_445, %c0_446, %c0_447] : memref<2x1x128xf32, #tpu.memory_space<vmem>>, vector<1x1x128xf32>
    %1625 = vector.shape_cast %1624 : vector<1x1x128xf32> to vector<1x128xf32>
    %1626 = vector.broadcast %1625 : vector<1x128xf32> to vector<16x128xf32>
    %1627 = arith.addf %1623, %1626 : vector<16x128xf32>
    %cst_448 = arith.constant 5.000000e-01 : f32
    %1628 = vector.broadcast %cst_448 : f32 to vector<16x128xf32>
    %1629 = arith.mulf %1628, %1627 : vector<16x128xf32>
    %cst_449 = arith.constant 0.707106769 : f32
    %1630 = vector.broadcast %cst_449 : f32 to vector<16x128xf32>
    %1631 = arith.mulf %1627, %1630 : vector<16x128xf32>
    %1632 = math.absf %1631 : vector<16x128xf32>
    %cst_450 = arith.constant 0.327591091 : f32
    %1633 = vector.broadcast %cst_450 : f32 to vector<16x128xf32>
    %1634 = arith.mulf %1633, %1632 : vector<16x128xf32>
    %cst_451 = arith.constant 1.000000e+00 : f32
    %1635 = vector.broadcast %cst_451 : f32 to vector<16x128xf32>
    %1636 = arith.addf %1635, %1634 : vector<16x128xf32>
    %cst_452 = arith.constant 1.000000e+00 : f32
    %1637 = vector.broadcast %cst_452 : f32 to vector<16x128xf32>
    %1638 = arith.divf %1637, %1636 : vector<16x128xf32>
    %cst_453 = arith.constant 1.06140542 : f32
    %1639 = vector.broadcast %cst_453 : f32 to vector<16x128xf32>
    %1640 = arith.mulf %1638, %1639 : vector<16x128xf32>
    %cst_454 = arith.constant -1.45315206 : f32
    %1641 = vector.broadcast %cst_454 : f32 to vector<16x128xf32>
    %1642 = arith.addf %1641, %1640 : vector<16x128xf32>
    %1643 = arith.mulf %1638, %1642 : vector<16x128xf32>
    %cst_455 = arith.constant 1.42141378 : f32
    %1644 = vector.broadcast %cst_455 : f32 to vector<16x128xf32>
    %1645 = arith.addf %1644, %1643 : vector<16x128xf32>
    %1646 = arith.mulf %1638, %1645 : vector<16x128xf32>
    %cst_456 = arith.constant -0.284496725 : f32
    %1647 = vector.broadcast %cst_456 : f32 to vector<16x128xf32>
    %1648 = arith.addf %1647, %1646 : vector<16x128xf32>
    %1649 = arith.mulf %1638, %1648 : vector<16x128xf32>
    %cst_457 = arith.constant 0.254829586 : f32
    %1650 = vector.broadcast %cst_457 : f32 to vector<16x128xf32>
    %1651 = arith.addf %1650, %1649 : vector<16x128xf32>
    %1652 = arith.mulf %1638, %1651 : vector<16x128xf32>
    %cst_458 = arith.constant 0.000000e+00 : f32
    %1653 = vector.broadcast %cst_458 : f32 to vector<16x128xf32>
    %1654 = arith.subf %1653, %1631 : vector<16x128xf32>
    %1655 = arith.mulf %1654, %1631 : vector<16x128xf32>
    %1656 = math.exp %1655 : vector<16x128xf32>
    %1657 = arith.mulf %1652, %1656 : vector<16x128xf32>
    %cst_459 = arith.constant 1.000000e+00 : f32
    %1658 = vector.broadcast %cst_459 : f32 to vector<16x128xf32>
    %1659 = arith.subf %1658, %1657 : vector<16x128xf32>
    %cst_460 = arith.constant 0.000000e+00 : f32
    %1660 = vector.broadcast %cst_460 : f32 to vector<16x128xf32>
    %1661 = arith.cmpf oge, %1631, %1660 : vector<16x128xf32>
    %cst_461 = arith.constant 0.000000e+00 : f32
    %1662 = vector.broadcast %cst_461 : f32 to vector<16x128xf32>
    %1663 = arith.subf %1662, %1659 : vector<16x128xf32>
    %1664 = arith.select %1661, %1659, %1663 : vector<16x128xi1>, vector<16x128xf32>
    %cst_462 = arith.constant 1.000000e+00 : f32
    %1665 = vector.broadcast %cst_462 : f32 to vector<16x128xf32>
    %1666 = arith.addf %1665, %1664 : vector<16x128xf32>
    %1667 = arith.mulf %1629, %1666 : vector<16x128xf32>
    %c1_463 = arith.constant 1 : index
    %c0_464 = arith.constant 0 : index
    %c0_465 = arith.constant 0 : index
    %1668 = vector.load %arg18[%c1_463, %c0_464, %c0_465] : memref<2x128x32xf32, #tpu.memory_space<vmem>>, vector<1x128x32xf32>
    %1669 = vector.shape_cast %1668 : vector<1x128x32xf32> to vector<128x32xf32>
    %cst_466 = arith.constant dense<0.000000e+00> : vector<16x32xf32>
    %1670 = tpu.matmul %1667, %1669, %cst_466 {dimension_numbers = #tpu.dot_dimension_numbers<[1], [0], [0], [1], [0, 0, 1, 1], [], []>} : vector<16x128xf32>, vector<128x32xf32>, vector<16x32xf32> -> vector<16x32xf32>
    %c1_467 = arith.constant 1 : index
    %c0_468 = arith.constant 0 : index
    %c0_469 = arith.constant 0 : index
    %1671 = vector.load %arg19[%c1_467, %c0_468, %c0_469] : memref<2x1x32xf32, #tpu.memory_space<vmem>>, vector<1x1x32xf32>
    %1672 = vector.shape_cast %1671 : vector<1x1x32xf32> to vector<1x32xf32>
    %1673 = vector.broadcast %1672 : vector<1x32xf32> to vector<16x32xf32>
    %1674 = arith.addf %1670, %1673 : vector<16x32xf32>
    %1675 = arith.addf %1594, %1674 : vector<16x32xf32>
    %c0_470 = arith.constant 0 : index
    %c0_471 = arith.constant 0 : index
    %1676 = vector.load %arg20[%c0_470, %c0_471] : memref<1x32xf32, #tpu.memory_space<vmem>>, vector<1x32xf32>
    %c0_472 = arith.constant 0 : index
    %c0_473 = arith.constant 0 : index
    %1677 = vector.load %arg21[%c0_472, %c0_473] : memref<1x32xf32, #tpu.memory_space<vmem>>, vector<1x32xf32>
    %cst_474 = arith.constant dense<0.000000e+00> : vector<16xf32>
    %1678 = vector.multi_reduction <add>, %1675, %cst_474 [1] : vector<16x32xf32> to vector<16xf32>
    %1679 = vector.shape_cast %1678 : vector<16xf32> to vector<16x1xf32>
    %cst_475 = arith.constant 3.200000e+01 : f32
    %1680 = vector.broadcast %cst_475 : f32 to vector<16x1xf32>
    %1681 = arith.divf %1679, %1680 : vector<16x1xf32>
    %1682 = vector.broadcast %1681 : vector<16x1xf32> to vector<16x32xf32>
    %1683 = arith.subf %1675, %1682 : vector<16x32xf32>
    %1684 = arith.mulf %1683, %1683 : vector<16x32xf32>
    %cst_476 = arith.constant dense<0.000000e+00> : vector<16xf32>
    %1685 = vector.multi_reduction <add>, %1684, %cst_476 [1] : vector<16x32xf32> to vector<16xf32>
    %1686 = vector.shape_cast %1685 : vector<16xf32> to vector<16x1xf32>
    %cst_477 = arith.constant 3.200000e+01 : f32
    %1687 = vector.broadcast %cst_477 : f32 to vector<16x1xf32>
    %1688 = arith.divf %1686, %1687 : vector<16x1xf32>
    %1689 = vector.broadcast %1681 : vector<16x1xf32> to vector<16x32xf32>
    %1690 = arith.subf %1675, %1689 : vector<16x32xf32>
    %cst_478 = arith.constant 9.99999974E-6 : f32
    %1691 = vector.broadcast %cst_478 : f32 to vector<16x1xf32>
    %1692 = arith.addf %1688, %1691 : vector<16x1xf32>
    %1693 = math.rsqrt %1692 : vector<16x1xf32>
    %1694 = vector.broadcast %1693 : vector<16x1xf32> to vector<16x32xf32>
    %1695 = arith.mulf %1690, %1694 : vector<16x32xf32>
    %1696 = vector.broadcast %1676 : vector<1x32xf32> to vector<16x32xf32>
    %1697 = arith.mulf %1695, %1696 : vector<16x32xf32>
    %1698 = vector.broadcast %1677 : vector<1x32xf32> to vector<16x32xf32>
    %1699 = arith.addf %1697, %1698 : vector<16x32xf32>
    %cst_479 = arith.constant dense<0.000000e+00> : vector<16x128xf32>
    %1700 = tpu.matmul %1699, %0, %cst_479 {dimension_numbers = #tpu.dot_dimension_numbers<[1], [1], [0], [0], [0, 0, 1, 0], [], []>} : vector<16x32xf32>, vector<128x32xf32>, vector<16x128xf32> -> vector<16x128xf32>
    %c0_480 = arith.constant 0 : index
    %c0_481 = arith.constant 0 : index
    %1701 = vector.load %arg26[%c0_480, %c0_481] : memref<16x128xf32, #tpu.memory_space<vmem>>, vector<16x128xf32>
    tpu.vector_store %arg26[%c0_480, %c0_481], %1700 {strides = array<i32>} : memref<16x128xf32, #tpu.memory_space<vmem>>, vector<16x128xf32>,
    return
  }
}

</mosaic_0001>

<bundles_post_ra>
// kernel: forward.1
= control target key start
LH: loop header
LB: loop body
LE: loop exit
PB: predicated region body
PF: predicated region fallthrough
CT: control target
= control target key end

     0   :  { %s11670_s0 = inlined_call_operand.vmem [shape: s32[16,1], index: 0, kind: input, shape index: {}]   ;;  %s11671_s1 = inlined_call_operand.vmem [shape: f32[128,32], index: 1, kind: input, shape index: {}]   ;;  %s11672_s2 = inlined_call_operand.vmem [shape: f32[16,32], index: 2, kind: input, shape index: {}]   ;;  %s11673_s3 = inlined_call_operand.vmem [shape: f32[16,16], index: 3, kind: input, shape index: {}]   ;;  %s11674_s4 = inlined_call_operand.vmem [shape: f32[16,16], index: 4, kind: input, shape index: {}]   ;;  %s11675_s5 = inlined_call_operand.vmem [shape: f32[2,1,32], index: 5, kind: input, shape index: {}]   ;;  %s11676_s6 = inlined_call_operand.vmem [shape: f32[2,1,32], index: 6, kind: input, shape index: {}]   ;;  %s11677_s7 = inlined_call_operand.vmem [shape: f32[2,32,96], index: 7, kind: input, shape index: {}]   ;;  %s11678_s8 = inlined_call_operand.vmem [shape: f32[2,1,96], index: 8, kind: input, shape index: {}]   ;;  %s11679_s9 = inlined_call_operand.vmem [shape: f32[2,1,8], index: 9, kind: input, shape index: {}]   ;;  %s11680_s10 = inlined_call_operand.vmem [shape: f32[2,1,8], index: 10, kind: input, shape index: {}]   ;;  %s11681_s11 = inlined_call_operand.vmem [shape: f32[2,4,4,8], index: 11, kind: input, shape index: {}]   ;;  %s11682_s12 = inlined_call_operand.vmem [shape: f32[2,32,32], index: 12, kind: input, shape index: {}]   ;;  %s11683_s13 = inlined_call_operand.vmem [shape: f32[2,1,32], index: 13, kind: input, shape index: {}]   ;;  %s11684_s14 = inlined_call_operand.vmem [shape: f32[2,1,32], index: 14, kind: input, shape index: {}]   ;;  %s11685_s15 = inlined_call_operand.vmem [shape: f32[2,1,32], index: 15, kind: input, shape index: {}]   ;;  %s11686_s16 = inlined_call_operand.vmem [shape: f32[2,32,128], index: 16, kind: input, shape index: {}]   ;;  %s11687_s17 = inlined_call_operand.vmem [shape: f32[2,1,128], index: 17, kind: input, shape index: {}]   ;;  %s11688_s18 = inlined_call_operand.vmem [shape: f32[2,128,32], index: 18, kind: input, shape index: {}]   ;;  %s11689_s19 = inlined_call_operand.vmem [shape: f32[2,1,32], index: 19, kind: input, shape index: {}]   ;;  %s11690_s20 = inlined_call_operand.vmem [shape: f32[1,32], index: 20, kind: input, shape index: {}]   ;;  %s11691_s21 = inlined_call_operand.vmem [shape: f32[1,32], index: 21, kind: input, shape index: {}]   ;;  %s11692_s22 = inlined_call_operand.vmem [shape: f32[32], index: 22, kind: input, shape index: {}]   ;;  %s11693_s23 = inlined_call_operand.vmem [shape: f32[32], index: 23, kind: input, shape index: {}]   ;;  %s11694_s24 = inlined_call_operand.vmem [shape: f32[32], index: 24, kind: input, shape index: {}]   ;;  %s11695_s25 = inlined_call_operand.vmem [shape: f32[32], index: 25, kind: input, shape index: {}]   ;;  %s11696_s26 = inlined_call_operand.hbm [shape: f32[16,128], index: 26, kind: output, shape index: {}]  }
   0x1   :  { %11746 = sst [smem:[#allocation15_spill]] %s11670_s0 }
   0x2   :  { %11747 = sst [smem:[#allocation16_spill]] %s11671_s1 }
   0x3   :  { %11748 = sst [smem:[#allocation17_spill]] %s11672_s2 }
   0x4   :  { %11749 = sst [smem:[#allocation18_spill]] %s11673_s3 }
   0x5   :  { %11750 = sst [smem:[#allocation19_spill]] %s11674_s4 }
   0x6   :  { %11751 = sst [smem:[#allocation20_spill]] %s11675_s5 }
   0x7   :  { %11752 = sst [smem:[#allocation21_spill]] %s11676_s6 }
   0x8   :  { %11753 = sst [smem:[#allocation22_spill]] %s11677_s7 }
   0x9   :  { %11754 = sst [smem:[#allocation23_spill]] %s11678_s8 }
   0xa   :  { %11755 = sst [smem:[#allocation24_spill]] %s11679_s9 }
   0xb   :  { %11756 = sst [smem:[#allocation25_spill]] %s11680_s10 }
   0xc   :  { %11757 = sst [smem:[#allocation26_spill]] %s11690_s20 }
   0xd   :  { %11758 = sst [smem:[#allocation27_spill]] %s11691_s21 }
   0xe   :  { %11759 = sst [smem:[#allocation28_spill]] %s11696_s26 }
   0xf   :  { %31 = vsyncpa [#allocation4], 0 }
  0x10   :  { %32 = vsyncpa [#allocation6], 0 }
  0x11   :  { %33 = vsyncpa [#allocation9], 0  ;;  %s95_s7 = sshll.u32 %s11693_s23, 4  ;;  %s96_s7 = int_to_ptr.vmem [resolvable:$true] %s95_s7 }
  0x12   :  { %34 = vsyncpa [#allocation3], 0  ;;  %s85_s4 = sshll.u32 %s11692_s22, 4  ;;  %s9216_s29 = scalar_lea.vmem %s96_s7, 16  ;;  %s86_s4 = int_to_ptr.vmem [resolvable:$true] %s85_s4 }
  0x13   :  { %p9217_p0 = scmp.ne.s32.totalorder %s96_s7, %s9216_s29  ;;  %p9221_p1 = scmp.lt.s32.totalorder %s96_s7, %s96_s7 }
  0x14   :  { %p9222_p2 = scmp.lt.s32.totalorder %s9216_s29, %s9216_s29 }
  0x16   :  { %p9223_p3 = por %p9222_p2, %p9221_p1 }
  0x18   :  { %p9224_p4 = pnand %p9223_p3, %p9217_p0 }
  0x1a   :  { %9227 = shalt.err (!%p9224_p4)
}
  0x1b   :  { %s9294_s0 = smov [#allocation5]   ;;  %s9228_s9 = scalar_lea.vmem %s86_s4, 16 }
  0x1c   :  { %98 = dma.vmem_to_smem %s96_s7, 16, %s9294_s0, [#allocation6]  }
  0x1d   :  { %p9229_p5 = scmp.ne.s32.totalorder %s86_s4, %s9228_s9  ;;  %p9233_p6 = scmp.lt.s32.totalorder %s86_s4, %s86_s4 }
  0x1e   :  { %p9234_p7 = scmp.lt.s32.totalorder %s9228_s9, %s9228_s9 }
  0x20   :  { %p9235_p8 = por %p9234_p7, %p9233_p6 }
  0x22   :  { %p9236_p9 = pnand %p9235_p8, %p9229_p5 }
  0x24   :  { %9239 = shalt.err (!%p9236_p9)
}
  0x25   :  { %s9295_s23 = smov [#allocation2]   ;;  %s105_s2 = sshll.u32 %s11694_s24, 4  ;;  %s106_s2 = int_to_ptr.vmem [resolvable:$true] %s105_s2 }
  0x26   :  { %88 = dma.vmem_to_smem %s86_s4, 16, %s9295_s23, [#allocation4]  }
  0x27   :  { %s115_s6 = sshll.u32 %s11695_s25, 4  ;;  %s9240_s1 = scalar_lea.vmem %s106_s2, 16  ;;  %s116_s6 = int_to_ptr.vmem [resolvable:$true] %s115_s6 }
  0x28   :  { %p9241_p10 = scmp.ne.s32.totalorder %s106_s2, %s9240_s1  ;;  %p9245_p11 = scmp.lt.s32.totalorder %s106_s2, %s106_s2 }
  0x29   :  { %p9246_p12 = scmp.lt.s32.totalorder %s9240_s1, %s9240_s1 }
  0x2b   :  { %p9247_p13 = por %p9246_p12, %p9245_p11 }
  0x2d   :  { %p9248_p0 = pnand %p9247_p13, %p9241_p10 }
  0x2f   :  { %9251 = shalt.err (!%p9248_p0)
}
  0x30   :  { %s9296_s27 = smov [#allocation7]   ;;  %s9252_s3 = scalar_lea.vmem %s116_s6, 16 }
  0x31   :  { %108 = dma.vmem_to_smem %s106_s2, 16, %s9296_s27, [#allocation6]  }
  0x32   :  { %p9253_p1 = scmp.ne.s32.totalorder %s116_s6, %s9252_s3  ;;  %p9257_p2 = scmp.lt.s32.totalorder %s116_s6, %s116_s6 }
  0x33   :  { %p9258_p3 = scmp.lt.s32.totalorder %s9252_s3, %s9252_s3 }
  0x35   :  { %p9259_p4 = por %p9258_p3, %p9257_p2 }
  0x37   :  { %p9260_p5 = pnand %p9259_p4, %p9253_p1 }
  0x39   :  { %9263 = shalt.err (!%p9260_p5)
}
  0x3a   :  { %s9297_s24 = smov [#allocation8]  }
  0x3b   :  { %118 = dma.vmem_to_smem %s116_s6, 16, %s9297_s24, [#allocation9]  }
  0x3c   :  { %9286 = dma.done.wait [#allocation4], 16  }
  0x3d   :  { %9287 = vsyncadd [#allocation4], 4294967280 }
  0x3e   :  { %9288 = dma.done.wait [#allocation6], 32  }
  0x3f   :  { %9289 = vsyncadd [#allocation6], 4294967264 }
  0x40   :  { %9290 = dma.done.wait [#allocation9], 16  }
  0x41   :  { %9291 = vsyncadd [#allocation9], 4294967280 }
  0x42   :  { %131 = sfence }
  0x43   :  { %s11760_s28 = sld [smem:[#allocation15_spill]]  ;;  %s11761_s29 = sld [smem:[#allocation16_spill]]  ;;  %v11719_v2 = vmov 0   ;;  %v152_v27 = vlaneseq  ;;  %v9299_v30 = vmov 1.0   ;;  %vm247_vm2 = vcmask 261120  }
  0x44   :  { %8705 = vset.pattern.permute.xlu0 %v11719_v2  ;;  %s11763_s23 = sld [smem:[#allocation22_spill]]  ;;  %s11764_s3 = sld [smem:[#allocation20_spill]]  ;;  %vm390_vm3 = vcmask 64512   ;;  %vm9304_vm4 = vmmov 0   ;;  %vm760_vm6 = vcmask 130048   ;;  %vm11595_vm11 = vmpackc.low %vm247_vm2, %vm247_vm2 }
  0x45   :  { %v153_v28 = vand.u32 127, %v152_v27  ;;  %s11766_s8 = sld [smem:[#allocation23_spill]]  ;;  %s11710_s4 = smov 96   ;;  %vm9665_vm5 = vmpackc.low %vm390_vm3, %vm390_vm3 }
  0x46   :  { %s11767_s2 = sld [smem:[#allocation25_spill]]  ;;  %s11768_s6 = sld [smem:[#allocation24_spill]] }
  0x47   :  { %s11708_s1 = smov 32   ;;  %s9688_s27 = sld [smem:[#allocation2 + $0x1]] }
  0x48   :  { %s9690_s24 = sld [smem:[#allocation5 + $0x1]]  ;;  %s9692_s25 = sld [smem:[#allocation5]] }
  0x49   :  { %v154_v0 = vld [vmem:[%s11760_s28] sm:$0xff]  ;;  %v133_v3 = vld [vmem:[%s11761_s29 + $0x8] sm:$0xff]  ;;  %v134_v4 = vld [vmem:[%s11761_s29 + $0x10] sm:$0xff]  ;;  %s9694_s7 = sld [smem:[#allocation2]]  ;;  %s9698_s0 = sld [smem:[#allocation2 + $0x2]] }
  0x4a   :  { %v132_v1 = vld [vmem:[%s11761_s29] sm:$0xff]  ;;  %v135_v5 = vld [vmem:[%s11761_s29 + $0x18] sm:$0xff]  ;;  %157 = vperm.xlu0 %8705, %v154_v0   ;;  %v155_v8 = vld [vmem:[%s11760_s28 + $0x8] sm:$0xff]  ;;  %s11762_s28 = sld [smem:[#allocation17_spill]]  ;;  %s9700_s9 = sld [smem:[#allocation2 + $0x3]] }
  0x4b   :  { %v9486_v6 = vpack.c.bf16 %v133_v3, %v132_v1  ;;  %v9488_v7 = vpack.c.bf16 %v135_v5, %v134_v4  ;;  %v136_v9 = vld [vmem:[%s11761_s29 + $0x20] sm:$0xff]  ;;  %v137_v10 = vld [vmem:[%s11761_s29 + $0x28] sm:$0xff]  ;;  %v138_v12 = vld [vmem:[%s11761_s29 + $0x30] sm:$0xff]  ;;  %s9702_s22 = sld [smem:[#allocation7 + $0x1]]  ;;  %s9704_s30 = sld [smem:[#allocation7]] }
  0x4c   :  { %v9502_v11 = vpack.c.bf16 %v137_v10, %v136_v9  ;;  %v139_v13 = vld [vmem:[%s11761_s29 + $0x38] sm:$0xff]  ;;  %v140_v15 = vld [vmem:[%s11761_s29 + $0x40] sm:$0xff]  ;;  %v141_v16 = vld [vmem:[%s11761_s29 + $0x48] sm:$0xff]  ;;  %s9707_s5 = sld [smem:[#allocation7 + $0x2]]  ;;  %s9748_s21 = sld [smem:[#allocation7 + $0x3]] }
  0x4d   :  { %8373 = vmatprep.subr.bf16.mxu0 %v9486_v6  ;;  %v9512_v14 = vpack.c.bf16 %v139_v13, %v138_v12  ;;  %v9522_v17 = vpack.c.bf16 %v141_v16, %v140_v15  ;;  %v142_v18 = vld [vmem:[%s11761_s29 + $0x50] sm:$0xff]  ;;  %v143_v19 = vld [vmem:[%s11761_s29 + $0x58] sm:$0xff]  ;;  %v144_v21 = vld [vmem:[%s11761_s29 + $0x60] sm:$0xff]  ;;  %s9839_s10 = sld [smem:[#allocation8 + $0x3]]  ;;  %s11725_s26 = smov 8  }
  0x4e   :  { %8375 = vmatpush3.bf16.msra.mxu0 %v9486_v6  ;;  %160 = vperm.xlu0 %8705, %v155_v8   ;;  %v9532_v20 = vpack.c.bf16 %v143_v19, %v142_v18  ;;  %v145_v22 = vld [vmem:[%s11761_s29 + $0x68] sm:$0xff]  ;;  %v146_v24 = vld [vmem:[%s11761_s29 + $0x70] sm:$0xff]  ;;  %v147_v25 = vld [vmem:[%s11761_s29 + $0x78] sm:$0xff]  ;;  %s11765_s29 = sld [smem:[#allocation21_spill]]  ;;  %s10189_s20 = sld [smem:[#allocation5 + $0xb]] }
  0x4f   :  { %8377 = vmatprep.subr.bf16.mxu0 %v9488_v7  ;;  %v9542_v23 = vpack.c.bf16 %v145_v22, %v144_v21  ;;  %v9552_v26 = vpack.c.bf16 %v147_v25, %v146_v24  ;;  %v291_v50 = vld [vmem:[%s11763_s23] sm:$0xff]  ;;  %v292_v51 = vld [vmem:[%s11763_s23 + $0x8] sm:$0xff]  ;;  %v293_v52 = vld [vmem:[%s11763_s23 + $0x10] sm:$0xff] }
  0x50   :  { %v168_v32 = vld [vmem:[%s11762_s28] sm:$0xff]  ;;  %v169_v34 = vld [vmem:[%s11762_s28 + $0x8] sm:$0xff]  ;;  %v8404_v53 = vpack.c.bf16 %v292_v51, %v291_v50  ;;  %v294_v54 = vld [vmem:[%s11763_s23 + $0x18] sm:$0xff]  ;;  %s9696_s28 = sld [smem:[#allocation5 + $0x2]] }
  0x51   :  { %v8408_v55 = vpack.c.bf16 %v294_v54, %v293_v52  ;;  %v7379_v63 = vld [vmem:[%s11764_s3] ss:$0 sm:$0xff] }
  0x52   :  { %8379 = vmatpush3.bf16.msra.mxu0 %v9488_v7  ;;  %v7381_v12 = vld [vmem:[%s11766_s8] ss:$0 sm:$0xff] }
  0x53   :  { %8381 = vmatprep.subr.bf16.mxu0 %v9502_v11  ;;  %v9639_v54 = vld [vmem:[%s11767_s2] ss:$0 sm:$0xff] }
  0x54   :  { %v7380_v1 = vld [vmem:[%s11765_s29] ss:$0 sm:$0xff] }
  0x56   :  { %8383 = vmatpush3.bf16.msra.mxu0 %v9502_v11 }
  0x57   :  { %8385 = vmatprep.subr.bf16.mxu0 %v9512_v14 }
  0x5a   :  { %8387 = vmatpush3.bf16.msra.mxu0 %v9512_v14 }
  0x5b   :  { %8389 = vmatprep.subr.bf16.mxu0 %v9522_v17 }
  0x5e   :  { %8391 = vmatpush3.bf16.msra.mxu0 %v9522_v17 }
  0x5f   :  { %8393 = vmatprep.subr.bf16.mxu0 %v9532_v20 }
  0x62   :  { %8395 = vmatpush3.bf16.msra.mxu0 %v9532_v20 }
  0x63   :  { %8397 = vmatprep.subr.bf16.mxu0 %v9542_v23 }
  0x66   :  { %8399 = vmatpush3.bf16.msra.mxu0 %v9542_v23 }
  0x67   :  { %8401 = vmatprep.subr.bf16.mxu0 %v9552_v26 }
  0x6a   :  { %8403 = vmatpush3.bf16.msra.mxu0 %v9552_v26 }
  0x6b   :  { %8405 = vmatprep.subr.bf16.mxu0 %v8404_v53 }
  0xc9   :  { %v158_v29 = vpop.permute.xlu0 %157 }
  0xca   :  { %vm162_vm0 = vcmp.eq.s32.totalorder %v153_v28, %v158_v29 }
  0xcb   :  { %7972 = vmatprep.mubr.msk.f32.mxu0 %vm162_vm0, %v9299_v30 }
  0xcd   :  { %v161_v31 = vpop.permute.xlu0 %160 }
  0xce   :  { %vm163_vm1 = vcmp.eq.s32.totalorder %v153_v28, %v161_v31 }
  0xcf   :  { %7973 = vmatmul.mubr.msk.f32.vlgmr.msra.gmra.mrb[0].mxu0 %vm163_vm1, %v9299_v30 }
  0xd0   :  { %8407 = vmatpush3.bf16.msra.mxu0 %v8404_v53 }
  0xd1   :  { %8409 = vmatprep.subr.bf16.mxu0 %v8408_v55 }
  0xd4   :  { %8411 = vmatpush3.bf16.msra.mxu0 %v8408_v55  ;;  %v9644_v55 = vld [vmem:[%s11768_s6] ss:$0 sm:$0xff] }
 0x1a2   :  { %v7974_v33 = vpop.f32.mrb[0].mxu0 }
 0x1a3   :  { %v236_v35 = vpop.f32.mrb[1].mxu0  ;;  %v9566_v37 = vadd.f32 %v7974_v33, %v169_v34 }
 0x1a4   :  { %v9564_v36 = vadd.f32 %v236_v35, %v168_v32 }
 0x1a5   :  { %v251_v39 = vsel %vm247_vm2, %v9566_v37, 0.0 }
 0x1a6   :  { %v248_v38 = vsel %vm247_vm2, %v9564_v36, 0.0 }
 0x1a7   :  { %249 = vadd.xlane.f32.xlu1 %v248_v38 }
 0x1ab   :  { %252 = vadd.xlane.f32.xlu1 %v251_v39 }
 0x234   :  { %v250_v40 = vpop.xlane.xlu1 %249 }
 0x235   :  { %v255_v41 = vmul.f32 0.03125, %v250_v40 }
 0x237   :  { %v257_v42 = vsub.f32 %v9564_v36, %v255_v41 }
 0x238   :  { %v253_v43 = vpop.xlane.xlu1 %252 }
 0x239   :  { %v256_v44 = vmul.f32 0.03125, %v253_v43  ;;  %v259_v45 = vmul.f32 %v257_v42, %v257_v42 }
 0x23b   :  { %v258_v46 = vsub.f32 %v9566_v37, %v256_v44  ;;  %v261_v47 = vsel %vm247_vm2, %v259_v45, 0.0 }
 0x23c   :  { %262 = vadd.xlane.f32.xlu0 %v261_v47 }
 0x23d   :  { %v260_v48 = vmul.f32 %v258_v46, %v258_v46 }
 0x23f   :  { %v264_v49 = vsel %vm247_vm2, %v260_v48, 0.0 }
 0x240   :  { %265 = vadd.xlane.f32.xlu1 %v264_v49  ;;  %v9628_v49 = vld [vmem:[%s11681_s11] sm:$0xf] }
 0x241   :  { %7993 = vmatprep.subr.msk.mxu1 %vm390_vm3, %v9628_v49 }
 0x242   :  { %7994 = vmatpush3.xpose.msk.msra.mxu1 %vm390_vm3, %v9628_v49 }
 0x2c9   :  { %v263_v56 = vpop.xlane.xlu0 %262 }
 0x2ca   :  { %v267_v57 = vmul.f32 0.03125, %v263_v56 }
 0x2cc   :  { %v269_v58 = vadd.f32 1e-05, %v267_v57 }
 0x2cd   :  { %v266_v59 = vpop.xlane.xlu1 %265 }
 0x2ce   :  { %8844 = vrsqrt.f32 %v269_v58  ;;  %v268_v60 = vmul.f32 0.03125, %v266_v59 }
 0x2d0   :  { %v270_v61 = vadd.f32 1e-05, %v268_v60 }
 0x2d2   :  { %8846 = vrsqrt.f32 %v270_v61 }
 0x2d8   :  { %v8845_v62 = vpop.eup %8844 }
 0x2d9   :  { %v273_v0 = vmul.f32 %v8845_v62, %v257_v42 }
 0x2db   :  { %v281_v3 = vmul.f32 %v7379_v63, %v273_v0 }
 0x2dc   :  { %v8847_v4 = vpop.eup %8846 }
 0x2dd   :  { %v274_v5 = vmul.f32 %v8847_v4, %v258_v46  ;;  %v289_v8 = vadd.f32 %v7380_v1, %v281_v3 }
 0x2df   :  { %v282_v9 = vmul.f32 %v7379_v63, %v274_v5  ;;  %7983 = vmatprep.mubr.msk.f32.mxu0 %vm247_vm2, %v289_v8 }
 0x2e1   :  { %v290_v10 = vadd.f32 %v7380_v1, %v282_v9 }
 0x2e3   :  { %7984 = vmatmul.mubr.msk.f32.vlgmr.msra.gmra.mrb[2].mxu0 %vm247_vm2, %v290_v10 }
 0x3b6   :  { %v7985_v13 = vpop.f32.mrb[2].mxu0 }
 0x3b7   :  { %v374_v15 = vpop.f32.mrb[3].mxu0  ;;  %v9603_v18 = vadd.f32 %v7985_v13, %v7381_v12 }
 0x3b8   :  { %v9599_v16 = vadd.f32 %v7381_v12, %v374_v15 }
 0x3b9   :  { %v394_v28 = vsel %vm390_vm3, %v9603_v18, 0.0 }
 0x3ba   :  { %436 = vrot.lane.b32.xlu1 %v9599_v16, %s11710_s4  ;;  %v391_v25 = vsel %vm390_vm3, %v9599_v16, 0.0 }
 0x3be   :  { %438 = vrot.lane.b32.xlu1 %v9603_v18, %s11710_s4 }
 0x42c   :  { %v437_v19 = vpop.permute.xlu1 %436 }
 0x42d   :  { %v442_v21 = vsel %vm390_vm3, %v437_v19, 0.0 }
 0x42e   :  { %443 = vadd.xlane.f32.xlu1 %v442_v21 }
 0x430   :  { %v439_v22 = vpop.permute.xlu1 %438 }
 0x431   :  { %v445_v24 = vsel %vm390_vm3, %v439_v22, 0.0 }
 0x432   :  { %446 = vadd.xlane.f32.xlu0 %v445_v24 }
 0x436   :  { %392 = vadd.xlane.f32.xlu0 %v391_v25  ;;  %v11723_v25 = vmov 0.0|0.0  }
 0x437   :  { %8418 = vmatprep.subr.bf16.mxu1 %v11723_v25 }
 0x43a   :  { %395 = vadd.xlane.f32.xlu0 %v394_v28 }
 0x4bb   :  { %v444_v29 = vpop.xlane.xlu1 %443 }
 0x4bc   :  { %v448_v30 = vmul.f32 0.125, %v444_v29 }
 0x4be   :  { %v450_v31 = vsub.f32 %v9599_v16, %v448_v30 }
 0x4bf   :  { %v447_v32 = vpop.xlane.xlu0 %446 }
 0x4c0   :  { %v449_v33 = vmul.f32 0.125, %v447_v32  ;;  %v452_v34 = vmul.f32 %v450_v31, %v450_v31 }
 0x4c2   :  { %v9615_v35 = vsub.f32 %v9603_v18, %v449_v33  ;;  %456 = vrot.lane.b32.xlu0 %v452_v34, %s11710_s4 }
 0x4c3   :  { %v393_v39 = vpop.xlane.xlu0 %392 }
 0x4c4   :  { %v453_v38 = vmul.f32 %v9615_v35, %v9615_v35  ;;  %v398_v40 = vmul.f32 0.125, %v393_v39  ;;  %v11715_v39 = vmov 1  }
 0x4c5   :  { %8711 = vset.pattern.permute.xlu1 %v11715_v39 }
 0x4c6   :  { %458 = vrot.lane.b32.xlu1 %v453_v38, %s11710_s4  ;;  %v400_v42 = vsub.f32 %v9599_v16, %v398_v40  ;;  %v11721_v40 = vmov 0.0  }
 0x4c7   :  { %v396_v41 = vpop.xlane.xlu0 %395 }
 0x4c8   :  { %v399_v43 = vmul.f32 0.125, %v396_v41  ;;  %v402_v45 = vmul.f32 %v400_v42, %v400_v42 }
 0x4ca   :  { %v401_v44 = vsub.f32 %v9603_v18, %v399_v43  ;;  %v404_v46 = vsel %vm390_vm3, %v402_v45, 0.0 }
 0x4cc   :  { %v403_v47 = vmul.f32 %v401_v44, %v401_v44 }
 0x4ce   :  { %v407_v48 = vsel %vm390_vm3, %v403_v47, 0.0  ;;  %v11717_v47 = vmov 2  }
 0x4e1   :  { %405 = vadd.xlane.f32.xlu0 %v404_v46 }
 0x4e5   :  { %408 = vadd.xlane.f32.xlu0 %v407_v48  ;;  %v11713_v48 = vmov 3  }
 0x534   :  { %v457_v50 = vpop.permute.xlu0 %456 }
 0x535   :  { %v462_v51 = vsel %vm390_vm3, %v457_v50, 0.0 }
 0x536   :  { %463 = vadd.xlane.f32.xlu0 %v462_v51 }
 0x538   :  { %v459_v52 = vpop.permute.xlu1 %458 }
 0x539   :  { %v465_v53 = vsel %vm390_vm3, %v459_v52, 0.0 }
 0x53a   :  { %466 = vadd.xlane.f32.xlu1 %v465_v53  ;;  %v740_v53 = vshrl.u32 %v152_v27, 7 }
 0x53c   :  { %v9722_v27 = vsub.s32 3, %v740_v53 }
 0x54b   :  { %481 = vrot.lane.b32.xlu1 %v9639_v54, %s11708_s1 }
 0x54c   :  { %476 = vrot.lane.b32.xlu0 %v9644_v55, %s11708_s1  ;;  %s9738_s1 = sld [smem:[#allocation5 + $0x3]] }
 0x56e   :  { %v406_v56 = vpop.xlane.xlu0 %405 }
 0x56f   :  { %v410_v57 = vmul.f32 0.125, %v406_v56 }
 0x571   :  { %v412_v58 = vadd.f32 1e-05, %v410_v57  ;;  %v9709_v57 = vsub.s32 0, %v740_v53 }
 0x572   :  { %v409_v59 = vpop.xlane.xlu0 %408 }
 0x573   :  { %8848 = vrsqrt.f32 %v412_v58  ;;  %v411_v60 = vmul.f32 0.125, %v409_v59 }
 0x575   :  { %v413_v61 = vadd.f32 1e-05, %v411_v60  ;;  %v814_v60 = vstv %s9690_s24  ;;  %s11772_s24 = sld [smem:[#allocation19_spill]] }
 0x577   :  { %8850 = vrsqrt.f32 %v413_v61  ;;  %v753_v61 = vstv %s9692_s25  ;;  %s9936_s25 = sld [smem:[#allocation5 + $0x6]] }
 0x57d   :  { %v8849_v62 = vpop.eup %8848 }
 0x57e   :  { %v416_v63 = vmul.f32 %v8849_v62, %v400_v42  ;;  %v9718_v62 = vsub.s32 1, %v740_v53 }
 0x580   :  { %v424_v0 = vmul.f32 %v9644_v55, %v416_v63  ;;  %v9720_v63 = vsub.s32 2, %v740_v53 }
 0x581   :  { %v8851_v1 = vpop.eup %8850 }
 0x582   :  { %v432_v3 = vadd.f32 %v9639_v54, %v424_v0  ;;  %v417_v4 = vmul.f32 %v8851_v1, %v401_v44  ;;  %v874_v0 = vstv %s9696_s28  ;;  %s11736_s28 = smov 120  }
 0x584   :  { %7990 = vmatprep.mubr.msk.f32.mxu0 %vm390_vm3, %v432_v3  ;;  %7995 = vmatprep.mubr.msk.f32.mxu1 %vm390_vm3, %v432_v3  ;;  %v425_v5 = vmul.f32 %v9644_v55, %v417_v4  ;;  %v806_v3 = vstv %s9688_s27  ;;  %v745_v4 = vstv %s9694_s7  ;;  %s11738_s27 = smov 40   ;;  %s9938_s7 = sld [smem:[#allocation2 + $0x6]] }
 0x586   :  { %v433_v8 = vadd.f32 %v9639_v54, %v425_v5  ;;  %v866_v5 = vstv %s9698_s0  ;;  %s11734_s0 = smov 88  }
 0x588   :  { %7996 = vmatmul.mubr.msk.f32.vlgmr.msra.gmra.mrb[0].mxu1 %vm390_vm3, %v433_v8 }
 0x589   :  { %8002 = vmatprep.mubr.msk.f32.mxu1 %vm9304_vm4, %v11721_v40 }
 0x5c3   :  { %v464_v9 = vpop.xlane.xlu0 %463 }
 0x5c4   :  { %v468_v10 = vmul.f32 0.125, %v464_v9 }
 0x5c6   :  { %v470_v12 = vadd.f32 1e-05, %v468_v10  ;;  %v810_v10 = vstv %s9702_s22  ;;  %s9832_s22 = sld [smem:[#allocation8]] }
 0x5c7   :  { %v467_v13 = vpop.xlane.xlu1 %466  ;;  %v477_v24 = vpop.permute.xlu0 %476 }
 0x5c8   :  { %8852 = vrsqrt.f32 %v470_v12  ;;  %v469_v15 = vmul.f32 0.125, %v467_v13  ;;  %v749_v13 = vstv %s9704_s30  ;;  %s9834_s30 = sld [smem:[#allocation8 + $0x1]] }
 0x5ca   :  { %v471_v19 = vadd.f32 1e-05, %v469_v15 }
 0x5cb   :  { %v482_v32 = vpop.permute.xlu1 %481 }
 0x5cc   :  { %8854 = vrsqrt.f32 %v471_v19 }
 0x5d2   :  { %v8853_v21 = vpop.eup %8852 }
 0x5d3   :  { %v474_v22 = vmul.f32 %v8853_v21, %v450_v31 }
 0x5d5   :  { %v479_v29 = vmul.f32 %v477_v24, %v474_v22  ;;  %v870_v22 = vstv %s9707_s5  ;;  %s9836_s5 = sld [smem:[#allocation8 + $0x2]] }
 0x5d6   :  { %v8855_v28 = vpop.eup %8854 }
 0x5d7   :  { %v475_v30 = vmul.f32 %v8855_v28, %v9615_v35  ;;  %v484_v34 = vadd.f32 %v482_v32, %v479_v29 }
 0x5d9   :  { %v480_v33 = vmul.f32 %v477_v24, %v475_v30 }
 0x5db   :  { %v485_v38 = vadd.f32 %v482_v32, %v480_v33 }
 0x5dd   :  { %v8706_v31 = vpack.i.bf16 %v485_v38, %v484_v34 }
 0x5df   :  { %8707 = vrot.lane.b32.xlu0 %v8706_v31, %s11710_s4  ;;  %s11771_s4 = sld [smem:[#allocation18_spill]] }
 0x5e5   :  { %v9714_v59 = vld [vmem:[%s11771_s4 + $0x8] sm:$0xff]  ;;  %v9728_v1 = vld [vmem:[%s11771_s4] sm:$0xff] }
 0x5e6   :  { %v816_v12 = vmul.f32 %v814_v60, %v9714_v59  ;;  %v755_v15 = vmul.f32 %v753_v61, %v9714_v59  ;;  %v876_v24 = vmul.f32 %v874_v0, %v9714_v59  ;;  %v754_v28 = vmul.f32 %v753_v61, %v9728_v1 }
 0x5e7   :  { %v815_v29 = vmul.f32 %v814_v60, %v9728_v1 }
 0x651   :  { %v8708_v41 = vpop.permute.xlu0 %8707 }
 0x652   :  { %v8710_v42 = vunpack.i.h.bf16 %v8708_v41  ;;  %v8709_v43 = vunpack.i.l.bf16 %v8708_v41 }
 0x654   :  { %v8412_v44 = vpack.c.bf16 %v8710_v42, %v8709_v43 }
 0x656   :  { %8414 = vmatprep.subr.msk.bf16.mxu0 %vm9665_vm5, %v8412_v44  ;;  %8421 = vmatpush3.bf16.xpose.msk.msra.mxu1 %vm9665_vm5, %v8412_v44 }
 0x657   :  { %8417 = vmatpush3.bf16.xpose.msk.msra.mxu0 %vm9665_vm5, %v8412_v44 }
 0x65b   :  { %v7997_v45 = vpop.f32.mrb[0].mxu1 }
 0x65c   :  { %v647_v46 = vpop.f32.mrb[1].mxu1 }
 0x65d   :  { %791 = vperm.xlu1 %8711, %v647_v46   ;;  %729 = vperm.xlu0 %8705, %v647_v46  }
 0x65e   :  { %8003 = vmatmul.mubr.msk.f32.vlgmr.msra.gmra.mrb[2].mxu1 %vm390_vm3, %v9628_v49  ;;  %7991 = vmatmul.mubr.msk.f32.vlgmr.msra.gmra.mrb[4].mxu0 %vm390_vm3, %v433_v8  ;;  %v926_v8 = vstv %s9700_s9  ;;  %s11727_s9 = smov 64  }
 0x661   :  { %795 = vperm.xlu1 %8711, %v7997_v45   ;;  %734 = vperm.xlu0 %8705, %v7997_v45  }
 0x665   :  { %8713 = vset.pattern.permute.xlu1 %v11717_v47  ;;  %8712 = vset.pattern.permute.xlu0 %v11717_v47 }
 0x666   :  { %855 = vperm.xlu1 %8713, %v7997_v45   ;;  %851 = vperm.xlu0 %8712, %v647_v46  }
 0x66a   :  { %8714 = vset.pattern.permute.xlu1 %v11713_v48  ;;  %8715 = vset.pattern.permute.xlu0 %v11713_v48 }
 0x66b   :  { %911 = vperm.xlu1 %8714, %v647_v46   ;;  %915 = vperm.xlu0 %8715, %v7997_v45  }
 0x66f   :  { %8726 = vset.pattern.permute.xlu1 %v11719_v2  ;;  %8727 = vset.pattern.permute.xlu0 %v11715_v39 }
 0x6dc   :  { %v9684_v49 = vpop.permute.xlu0 %729  ;;  %v9686_v50 = vpop.permute.xlu1 %791 }
 0x6e0   :  { %v735_v51 = vpop.permute.xlu0 %734  ;;  %v796_v52 = vpop.permute.xlu1 %795 }
 0x6e5   :  { %v852_v56 = vpop.permute.xlu0 %851  ;;  %v856_v58 = vpop.permute.xlu1 %855 }
 0x6ea   :  { %v916_v9 = vpop.permute.xlu0 %915  ;;  %v912_v41 = vpop.permute.xlu1 %911 }
 0x731   :  { %v722_v19 = vpop.f32.mrb[2].mxu1  ;;  %v7992_v21 = vpop.f32.mrb[4].mxu0 }
 0x732   :  { %v742_v30 = vrot.slane %v722_v19, %v9709_v57  ;;  %v803_v32 = vrot.slane %v722_v19, %v9718_v62  ;;  %v863_v33 = vrot.slane %v722_v19, %v9720_v63  ;;  %v923_v34 = vrot.slane %v722_v19, %v9722_v27  ;;  %v8004_v38 = vpop.f32.mrb[3].mxu1  ;;  %v568_v31 = vpop.f32.mrb[5].mxu0 }
 0x733   :  { %v738_v42 = vsub.f32 %v7992_v21, %v735_v51  ;;  %v799_v43 = vsub.f32 %v7992_v21, %v796_v52  ;;  %v859_v44 = vsub.f32 %v7992_v21, %v856_v58  ;;  %v919_v45 = vsub.f32 %v7992_v21, %v916_v9 }
 0x734   :  { %v737_v46 = vsub.f32 %v568_v31, %v9684_v49  ;;  %v798_v53 = vsub.f32 %v568_v31, %v9686_v50  ;;  %v858_v60 = vsub.f32 %v568_v31, %v852_v56  ;;  %v918_v61 = vsub.f32 %v568_v31, %v912_v41 }
 0x735   :  { %v744_v48 = vsub.f32 %v738_v42, %v742_v30  ;;  %v805_v39 = vsub.f32 %v799_v43, %v803_v32  ;;  %v865_v47 = vsub.f32 %v859_v44, %v863_v33  ;;  %v925_v19 = vsub.f32 %v919_v45, %v923_v34 }
 0x736   :  { %v743_v38 = vsub.f32 %v737_v46, %v742_v30  ;;  %v804_v2 = vsub.f32 %v798_v53, %v803_v32  ;;  %v864_v40 = vsub.f32 %v858_v60, %v863_v33  ;;  %v924_v51 = vsub.f32 %v918_v61, %v923_v34  ;;  %v9757_v30 = vld [vmem:[%s11772_s24 + $0x8] sm:$0xff] }
 0x737   :  { %v808_v52 = vmul.f32 %v806_v3, %v805_v39  ;;  %v747_v58 = vmul.f32 %v745_v4, %v744_v48  ;;  %v868_v9 = vmul.f32 %v866_v5, %v865_v47  ;;  %v875_v21 = vmul.f32 %v874_v0, %v9728_v1 }
 0x738   :  { %v746_v25 = vmul.f32 %v745_v4, %v743_v38  ;;  %v807_v49 = vmul.f32 %v806_v3, %v804_v2  ;;  %v867_v50 = vmul.f32 %v866_v5, %v864_v40  ;;  %v934_v56 = vstv %s9738_s1  ;;  %v9763_v2 = vld [vmem:[%s11772_s24] sm:$0xff]  ;;  %s9932_s1 = sld [smem:[#allocation7 + $0x5]] }
 0x739   :  { %v812_v31 = vadd.f32 %v810_v10, %v808_v52  ;;  %v751_v41 = vadd.f32 %v749_v13, %v747_v58  ;;  %v872_v42 = vadd.f32 %v870_v22, %v868_v9  ;;  %v928_v43 = vmul.f32 %v926_v8, %v925_v19 }
 0x73a   :  { %v750_v32 = vadd.f32 %v749_v13, %v746_v25  ;;  %v811_v39 = vadd.f32 %v810_v10, %v807_v49  ;;  %v871_v48 = vadd.f32 %v870_v22, %v867_v50  ;;  %v927_v47 = vmul.f32 %v926_v8, %v924_v51 }
 0x73b   :  { %v818_v33 = vadd.f32 %v816_v12, %v812_v31  ;;  %v757_v0 = vadd.f32 %v755_v15, %v751_v41  ;;  %v878_v4 = vadd.f32 %v876_v24, %v872_v42  ;;  %v930_v34 = vstv %s9748_s21  ;;  %s9934_s21 = sld [smem:[#allocation7 + $0x4]] }
 0x73c   :  { %v756_v40 = vadd.f32 %v754_v28, %v750_v32  ;;  %v936_v25 = vmul.f32 %v934_v56, %v9714_v59  ;;  %v935_v10 = vmul.f32 %v934_v56, %v9728_v1  ;;  %v817_v8 = vadd.f32 %v815_v29, %v811_v39 }
 0x73d   :  { %v820_v3 = vadd.f32 %v818_v33, %v9757_v30  ;;  %v759_v5 = vadd.f32 %v757_v0, %v9757_v30  ;;  %v877_v12 = vadd.f32 %v875_v21, %v871_v48  ;;  %v932_v13 = vadd.f32 %v930_v34, %v928_v43 }
 0x73e   :  { %v931_v15 = vadd.f32 %v930_v34, %v927_v47  ;;  %v880_v44 = vadd.f32 %v878_v4, %v9757_v30  ;;  %v758_v28 = vadd.f32 %v756_v40, %v9763_v2  ;;  %v819_v29 = vadd.f32 %v817_v8, %v9763_v2 }
 0x73f   :  { %v824_v22 = vsel %vm760_vm6, %v820_v3, -inf  ;;  %v764_v24 = vsel %vm760_vm6, %v759_v5, -inf  ;;  %v938_v45 = vadd.f32 %v936_v25, %v932_v13  ;;  %v879_v61 = vadd.f32 %v877_v12, %v9763_v2 }
 0x740   :  { %825 = vmax.xlane.f32.xlu0 %v824_v22  ;;  %765 = vmax.xlane.f32.xlu1 %v764_v24  ;;  %v937_v46 = vadd.f32 %v935_v10, %v931_v15  ;;  %v884_v53 = vsel %vm760_vm6, %v880_v44, -inf  ;;  %v761_v60 = vsel %vm760_vm6, %v758_v28, -inf  ;;  %v821_v19 = vsel %vm760_vm6, %v819_v29, -inf }
 0x741   :  { %v881_v38 = vsel %vm760_vm6, %v879_v61, -inf  ;;  %v940_v51 = vadd.f32 %v938_v45, %v9757_v30 }
 0x742   :  { %v939_v52 = vadd.f32 %v937_v46, %v9763_v2 }
 0x743   :  { %v944_v58 = vsel %vm760_vm6, %v940_v51, -inf }
 0x744   :  { %885 = vmax.xlane.f32.xlu0 %v884_v53  ;;  %762 = vmax.xlane.f32.xlu1 %v761_v60  ;;  %v941_v9 = vsel %vm760_vm6, %v939_v52, -inf }
 0x748   :  { %822 = vmax.xlane.f32.xlu0 %v821_v19  ;;  %882 = vmax.xlane.f32.xlu1 %v881_v38 }
 0x74c   :  { %945 = vmax.xlane.f32.xlu0 %v944_v58  ;;  %942 = vmax.xlane.f32.xlu1 %v941_v9 }
 0x75d   :  { %1145 = vrot.lane.b32.xlu1 %v9599_v16, %s11736_s28 }
 0x761   :  { %1195 = vrot.lane.b32.xlu1 %v9599_v16, %s11734_s0 }
 0x762   :  { %1147 = vrot.lane.b32.xlu0 %v9603_v18, %s11736_s28 }
 0x7cd   :  { %v826_v21 = vpop.xlane.xlu0 %825  ;;  %v766_v49 = vpop.xlane.xlu1 %765 }
 0x7ce   :  { %v828_v50 = vsub.f32 %v820_v3, %v826_v21  ;;  %v768_v56 = vsub.f32 %v759_v5, %v766_v49  ;;  %v9824_v49 = vpack.i.bf16 %v9603_v18, %v9599_v16 }
 0x7d0   :  { %v831_v31 = vmul.f32 1.442695, %v828_v50  ;;  %v771_v41 = vmul.f32 1.442695, %v768_v56 }
 0x7d1   :  { %v886_v42 = vpop.xlane.xlu0 %885  ;;  %v763_v43 = vpop.xlane.xlu1 %762 }
 0x7d2   :  { %8856 = vpow2.f32 %v831_v31  ;;  %v888_v32 = vsub.f32 %v880_v44, %v886_v42  ;;  %v767_v39 = vsub.f32 %v758_v28, %v763_v43 }
 0x7d3   :  { %8858 = vpow2.f32 %v771_v41 }
 0x7d4   :  { %v891_v48 = vmul.f32 1.442695, %v888_v32  ;;  %v769_v47 = vmul.f32 1.442695, %v767_v39 }
 0x7d5   :  { %v823_v33 = vpop.xlane.xlu0 %822  ;;  %v883_v0 = vpop.xlane.xlu1 %882 }
 0x7d6   :  { %8860 = vpow2.f32 %v891_v48  ;;  %v887_v4 = vsub.f32 %v879_v61, %v883_v0  ;;  %v827_v34 = vsub.f32 %v819_v29, %v823_v33 }
 0x7d7   :  { %8862 = vpow2.f32 %v769_v47 }
 0x7d8   :  { %v889_v40 = vmul.f32 1.442695, %v887_v4  ;;  %v829_v12 = vmul.f32 1.442695, %v827_v34 }
 0x7d9   :  { %v946_v25 = vpop.xlane.xlu0 %945  ;;  %v943_v3 = vpop.xlane.xlu1 %942 }
 0x7da   :  { %v948_v5 = vsub.f32 %v940_v51, %v946_v25  ;;  %v947_v10 = vsub.f32 %v939_v52, %v943_v3  ;;  %8864 = vpow2.f32 %v889_v40 }
 0x7dc   :  { %v9789_v8 = vpop.eup %8856  ;;  %v951_v13 = vmul.f32 1.442695, %v948_v5  ;;  %v949_v22 = vmul.f32 1.442695, %v947_v10 }
 0x7dd   :  { %v9791_v15 = vpop.eup %8858  ;;  %v836_v24 = vsel %vm760_vm6, %v9789_v8, 0.0  ;;  %v1146_v60 = vpop.permute.xlu1 %1145 }
 0x7de   :  { %8866 = vpow2.f32 %v951_v13  ;;  %837 = vadd.xlane.f32.xlu0 %v836_v24  ;;  %v776_v44 = vsel %vm760_vm6, %v9791_v15, 0.0  ;;  %v1151_v29 = vsel %vm390_vm3, %v1146_v60, 0.0  ;;  %v1148_v50 = vpop.permute.xlu0 %1147 }
 0x7df   :  { %777 = vadd.xlane.f32.xlu1 %v776_v44  ;;  %8868 = vpow2.f32 %v829_v12  ;;  %v1154_v56 = vsel %vm390_vm3, %v1148_v50, 0.0 }
 0x7e0   :  { %v9797_v28 = vpop.eup %8860  ;;  %8870 = vpow2.f32 %v949_v22 }
 0x7e1   :  { %v9799_v45 = vpop.eup %8862  ;;  %v896_v46 = vsel %vm760_vm6, %v9797_v28, 0.0  ;;  %v1196_v31 = vpop.permute.xlu1 %1195 }
 0x7e2   :  { %897 = vadd.xlane.f32.xlu0 %v896_v46  ;;  %v773_v53 = vsel %vm760_vm6, %v9799_v45, 0.0  ;;  %v1201_v41 = vsel %vm390_vm3, %v1196_v31, 0.0 }
 0x7e3   :  { %774 = vadd.xlane.f32.xlu1 %v773_v53 }
 0x7e4   :  { %v9806_v61 = vpop.eup %8864 }
 0x7e5   :  { %v893_v52 = vsel %vm760_vm6, %v9806_v61, 0.0 }
 0x7e7   :  { %1152 = vadd.xlane.f32.xlu1 %v1151_v29 }
 0x7e8   :  { %v9808_v19 = vpop.eup %8866 }
 0x7e9   :  { %v956_v38 = vsel %vm760_vm6, %v9808_v19, 0.0  ;;  %v9812_v51 = vpop.eup %8868 }
 0x7ea   :  { %957 = vadd.xlane.f32.xlu0 %v956_v38  ;;  %v9816_v58 = vpop.eup %8870  ;;  %v833_v9 = vsel %vm760_vm6, %v9812_v51, 0.0  ;;  %v784_v38 = vstv %s9832_s22  ;;  %s9924_s22 = sld [smem:[#allocation2 + $0x4]] }
 0x7eb   :  { %894 = vadd.xlane.f32.xlu1 %v893_v52  ;;  %v953_v21 = vsel %vm760_vm6, %v9816_v58, 0.0  ;;  %v844_v52 = vstv %s9834_s30  ;;  %s9926_s30 = sld [smem:[#allocation2 + $0x5]] }
 0x7ee   :  { %834 = vadd.xlane.f32.xlu0 %v833_v9 }
 0x7ef   :  { %954 = vadd.xlane.f32.xlu1 %v953_v21 }
 0x800   :  { %8717 = vrot.lane.b32.xlu1 %v9824_v49, %s11727_s9  ;;  %s9951_s9 = sld [smem:[#allocation2 + $0x7]] }
 0x804   :  { %1197 = vrot.lane.b32.xlu0 %v9603_v18, %s11734_s0 }
 0x823   :  { %1155 = vadd.xlane.f32.xlu0 %v1154_v56 }
 0x827   :  { %1202 = vadd.xlane.f32.xlu0 %v1201_v41  ;;  %v904_v41 = vstv %s9836_s5  ;;  %s9928_s5 = sld [smem:[#allocation5 + $0x5]] }
 0x86b   :  { %v838_v43 = vpop.xlane.xlu0 %837 }
 0x86c   :  { %v778_v42 = vpop.xlane.xlu1 %777  ;;  %8872 = vrcp.f32 %v838_v43 }
 0x86d   :  { %8874 = vrcp.f32 %v778_v42 }
 0x86f   :  { %v898_v39 = vpop.xlane.xlu0 %897 }
 0x870   :  { %v775_v32 = vpop.xlane.xlu1 %774 }
 0x871   :  { %8876 = vrcp.f32 %v775_v32 }
 0x872   :  { %8878 = vrcp.f32 %v898_v39  ;;  %v964_v39 = vstv %s9839_s10  ;;  %s9930_s10 = sld [smem:[#allocation5 + $0x4]] }
 0x874   :  { %v1153_v48 = vpop.xlane.xlu1 %1152 }
 0x876   :  { %v8873_v40 = vpop.eup %8872 }
 0x877   :  { %v958_v47 = vpop.xlane.xlu0 %957  ;;  %v8875_v5 = vpop.eup %8874  ;;  %v842_v46 = vmul.f32 %v8873_v40, %v9789_v8 }
 0x878   :  { %v895_v33 = vpop.xlane.xlu1 %894  ;;  %v782_v53 = vmul.f32 %v8875_v5, %v9791_v15 }
 0x879   :  { %8880 = vrcp.f32 %v895_v33  ;;  %v846_v42 = vmul.f32 %v844_v52, %v842_v46  ;;  %v385_v46 = vld [vmem:[%s11682_s12] sm:$0xff] }
 0x87a   :  { %8882 = vrcp.f32 %v958_v47  ;;  %v786_v15 = vmul.f32 %v784_v38, %v782_v53  ;;  %8012 = vmatprep.subr.mxu0 %v385_v46 }
 0x87b   :  { %v835_v0 = vpop.xlane.xlu0 %834  ;;  %v8877_v13 = vpop.eup %8876  ;;  %8013 = vmatpush3.msra.mxu0 %v385_v46 }
 0x87c   :  { %8884 = vrcp.f32 %v835_v0  ;;  %v955_v4 = vpop.xlane.xlu1 %954  ;;  %v8879_v22 = vpop.eup %8878  ;;  %v780_v29 = vmul.f32 %v8877_v13, %v9799_v45 }
 0x87d   :  { %8886 = vrcp.f32 %v955_v4  ;;  %v902_v21 = vmul.f32 %v8879_v22, %v9797_v28  ;;  %v848_v4 = vadd.f32 %v846_v42, %v786_v15 }
 0x87e   :  { %v785_v43 = vmul.f32 %v784_v38, %v780_v29 }
 0x87f   :  { %v1198_v34 = vpop.permute.xlu0 %1197  ;;  %v906_v47 = vmul.f32 %v904_v41, %v902_v21 }
 0x880   :  { %v8718_v25 = vpop.permute.xlu1 %8717  ;;  %v1204_v3 = vsel %vm390_vm3, %v1198_v34, 0.0  ;;  %v1157_v34 = vmul.f32 0.125, %v1153_v48 }
 0x881   :  { %v8720_v10 = vunpack.i.h.bf16 %v8718_v25  ;;  %v8719_v12 = vunpack.i.l.bf16 %v8718_v25  ;;  %1205 = vadd.xlane.f32.xlu0 %v1204_v3  ;;  %v908_v25 = vadd.f32 %v906_v47, %v848_v4 }
 0x883   :  { %v8422_v24 = vpack.c.bf16 %v8720_v10, %v8719_v12  ;;  %v8881_v44 = vpop.eup %8880 }
 0x884   :  { %v8883_v60 = vpop.eup %8882  ;;  %v900_v56 = vmul.f32 %v8881_v44, %v9806_v61 }
 0x885   :  { %8423 = vmatprep.subr.bf16.mxu1 %v8422_v24  ;;  %v962_v8 = vmul.f32 %v8883_v60, %v9808_v19  ;;  %v9854_v19 = vsub.f32 %v9599_v16, %v1157_v34 }
 0x886   :  { %v8885_v9 = vpop.eup %8884  ;;  %8425 = vmatpush3.bf16.msra.mxu1 %v8422_v24  ;;  %v905_v0 = vmul.f32 %v904_v41, %v900_v56 }
 0x887   :  { %v8887_v50 = vpop.eup %8886  ;;  %v840_v31 = vmul.f32 %v8885_v9, %v9812_v51  ;;  %v966_v28 = vmul.f32 %v964_v39, %v962_v8 }
 0x888   :  { %v960_v32 = vmul.f32 %v8887_v50, %v9816_v58  ;;  %v1161_v58 = vmul.f32 %v9854_v19, %v9854_v19 }
 0x889   :  { %v845_v45 = vmul.f32 %v844_v52, %v840_v31  ;;  %v968_v3 = vadd.f32 %v966_v28, %v908_v25 }
 0x88a   :  { %v965_v61 = vmul.f32 %v964_v39, %v960_v32  ;;  %v7417_v39 = vld [vmem:[%s11681_s11 + $0x4] sm:$0xf] }
 0x88b   :  { %v847_v33 = vadd.f32 %v845_v45, %v785_v43  ;;  %8024 = vmatprep.subr.msk.mxu0 %vm390_vm3, %v7417_v39 }
 0x88d   :  { %v907_v40 = vadd.f32 %v905_v0, %v847_v33 }
 0x88f   :  { %v967_v51 = vadd.f32 %v965_v61, %v907_v40 }
 0x891   :  { %8009 = vmatprep.mubr.msk.f32.mxu1 %vm760_vm6, %v967_v51 }
 0x892   :  { %8010 = vmatmul.mubr.msk.f32.vlgmr.msra.gmra.mrb[4].mxu1 %vm760_vm6, %v968_v3 }
 0x897   :  { %1165 = vrot.lane.b32.xlu0 %v1161_v58, %s11736_s28 }
 0x8b0   :  { %v1156_v5 = vpop.xlane.xlu0 %1155 }
 0x8b1   :  { %v1158_v10 = vmul.f32 0.125, %v1156_v5 }
 0x8b3   :  { %v1160_v48 = vsub.f32 %v9603_v18, %v1158_v10 }
 0x8b4   :  { %v1203_v12 = vpop.xlane.xlu0 %1202 }
 0x8b5   :  { %v1207_v13 = vmul.f32 0.125, %v1203_v12  ;;  %v1162_v22 = vmul.f32 %v1160_v48, %v1160_v48 }
 0x8b7   :  { %v9863_v24 = vsub.f32 %v9599_v16, %v1207_v13  ;;  %1167 = vrot.lane.b32.xlu1 %v1162_v22, %s11736_s28 }
 0x8b9   :  { %v1211_v44 = vmul.f32 %v9863_v24, %v9863_v24 }
 0x8bb   :  { %1215 = vrot.lane.b32.xlu1 %v1211_v44, %s11734_s0 }
 0x90e   :  { %v1206_v53 = vpop.xlane.xlu0 %1205 }
 0x90f   :  { %v1208_v60 = vmul.f32 0.125, %v1206_v53 }
 0x911   :  { %v1210_v29 = vsub.f32 %v9603_v18, %v1208_v60 }
 0x912   :  { %v1166_v21 = vpop.permute.xlu0 %1165 }
 0x913   :  { %v1212_v38 = vmul.f32 %v1210_v29, %v1210_v29  ;;  %v1171_v50 = vsel %vm390_vm3, %v1166_v21, 0.0 }
 0x915   :  { %1217 = vrot.lane.b32.xlu1 %v1212_v38, %s11734_s0 }
 0x929   :  { %v1168_v52 = vpop.permute.xlu1 %1167 }
 0x92a   :  { %v1174_v9 = vsel %vm390_vm3, %v1168_v52, 0.0 }
 0x92b   :  { %1175 = vadd.xlane.f32.xlu0 %v1174_v9 }
 0x92d   :  { %v1216_v41 = vpop.permute.xlu1 %1215 }
 0x92e   :  { %v1221_v8 = vsel %vm390_vm3, %v1216_v41, 0.0 }
 0x939   :  { %1172 = vadd.xlane.f32.xlu1 %v1171_v50 }
 0x941   :  { %1185 = vrot.lane.b32.xlu0 %v9644_v55, %s11725_s26 }
 0x94a   :  { %1190 = vrot.lane.b32.xlu1 %v9639_v54, %s11725_s26  ;;  %s9944_s26 = sld [smem:[#allocation7 + $0x6]] }
 0x965   :  { %v8011_v56 = vpop.f32.mrb[4].mxu1 }
 0x966   :  { %v1047_v31 = vpop.f32.mrb[5].mxu1 }
 0x967   :  { %8014 = vmatprep.mubr.msk.f32.mxu0 %vm390_vm3, %v1047_v31 }
 0x968   :  { %8015 = vmatmul.mubr.msk.f32.vlgmr.msra.gmra.mrb[6].mxu0 %vm390_vm3, %v8011_v56 }
 0x969   :  { %8025 = vmatpush3.xpose.msk.msra.mxu0 %vm390_vm3, %v7417_v39 }
 0x96e   :  { %1222 = vadd.xlane.f32.xlu1 %v1221_v8  ;;  %v11774_v8 = vmov 0.0  }
 0x97f   :  { %1240 = vrot.lane.b32.xlu1 %v9639_v54, %s11738_s27  ;;  %v11773_v54 = vmov 0.0|0.0  }
 0x980   :  { %8432 = vmatprep.subr.bf16.mxu0 %v11773_v54 }
 0x987   :  { %v1218_v15 = vpop.permute.xlu1 %1217 }
 0x988   :  { %v1224_v42 = vsel %vm390_vm3, %v1218_v15, 0.0 }
 0x989   :  { %1225 = vadd.xlane.f32.xlu0 %v1224_v42 }
 0x99f   :  { %1235 = vrot.lane.b32.xlu0 %v9644_v55, %s11738_s27  ;;  %s10180_s27 = sld [smem:[#allocation5 + $0xa]] }
 0x9b8   :  { %v1176_v43 = vpop.xlane.xlu0 %1175 }
 0x9b9   :  { %v1178_v45 = vmul.f32 0.125, %v1176_v43 }
 0x9bb   :  { %v1180_v32 = vadd.f32 1e-05, %v1178_v45 }
 0x9bc   :  { %v1186_v28 = vpop.permute.xlu0 %1185 }
 0x9bd   :  { %8888 = vrsqrt.f32 %v1180_v32  ;;  %v11775_v32 = vmov 0  }
 0x9c6   :  { %v1173_v47 = vpop.xlane.xlu1 %1172 }
 0x9c7   :  { %v8889_v33 = vpop.eup %8888  ;;  %v1177_v0 = vmul.f32 0.125, %v1173_v47  ;;  %v11776_v47 = vmov 2  }
 0x9c8   :  { %v1184_v4 = vmul.f32 %v8889_v33, %v1160_v48  ;;  %v11777_v33 = vmov 1  }
 0x9c9   :  { %v1179_v55 = vadd.f32 1e-05, %v1177_v0  ;;  %v11778_v0 = vmov 3  }
 0x9ca   :  { %v1189_v34 = vmul.f32 %v1186_v28, %v1184_v4  ;;  %v1191_v40 = vpop.permute.xlu1 %1190 }
 0x9cb   :  { %8890 = vrsqrt.f32 %v1179_v55 }
 0x9cc   :  { %v1194_v61 = vadd.f32 %v1191_v40, %v1189_v34 }
 0x9ce   :  { %1249 = vrot.lane.b32.xlu0 %v1194_v61, %s11736_s28 }
 0x9d5   :  { %v8891_v25 = vpop.eup %8890 }
 0x9d6   :  { %v1183_v51 = vmul.f32 %v8891_v25, %v9854_v19 }
 0x9d8   :  { %v1188_v3 = vmul.f32 %v1186_v28, %v1183_v51 }
 0x9da   :  { %v1193_v58 = vadd.f32 %v1191_v40, %v1188_v3 }
 0x9dc   :  { %1247 = vrot.lane.b32.xlu1 %v1193_v58, %s11736_s28  ;;  %v1509_v58 = vstv %s9924_s22  ;;  %s9963_s22 = sld [smem:[#allocation7 + $0x7]]  ;;  %s10389_s28 = sld [smem:[#allocation2 + $0xe]] }
 0x9fb   :  { %v1223_v5 = vpop.xlane.xlu1 %1222 }
 0x9fc   :  { %v1227_v10 = vmul.f32 0.125, %v1223_v5  ;;  %v1569_v5 = vstv %s9926_s30  ;;  %s9965_s30 = sld [smem:[#allocation5 + $0x7]] }
 0x9fe   :  { %v1229_v12 = vadd.f32 1e-05, %v1227_v10  ;;  %v1577_v10 = vstv %s9928_s5  ;;  %s11740_s5 = smov 56  }
 0x9ff   :  { %v1241_v19 = vpop.permute.xlu1 %1240 }
 0xa00   :  { %8892 = vrsqrt.f32 %v1229_v12  ;;  %v1517_v12 = vstv %s9930_s10  ;;  %s7427_s10 = sld [smem:[#allocation8 + $0x4]] }
 0xa0a   :  { %v8893_v44 = vpop.eup %8892 }
 0xa0b   :  { %v1233_v53 = vmul.f32 %v8893_v44, %v9863_v24  ;;  %v1573_v44 = vstv %s9932_s1  ;;  %s7431_s1 = sld [smem:[#allocation8 + $0x5]] }
 0xa16   :  { %v1226_v13 = vpop.xlane.xlu0 %1225 }
 0xa17   :  { %v1228_v48 = vmul.f32 0.125, %v1226_v13 }
 0xa19   :  { %v1230_v22 = vadd.f32 1e-05, %v1228_v48 }
 0xa1a   :  { %v1236_v46 = vpop.permute.xlu0 %1235 }
 0xa1b   :  { %8894 = vrsqrt.f32 %v1230_v22  ;;  %v1238_v52 = vmul.f32 %v1236_v46, %v1233_v53 }
 0xa1d   :  { %v1243_v21 = vadd.f32 %v1241_v19, %v1238_v52 }
 0xa25   :  { %v8895_v60 = vpop.eup %8894 }
 0xa26   :  { %v1234_v38 = vmul.f32 %v8895_v60, %v1210_v29 }
 0xa28   :  { %v1239_v9 = vmul.f32 %v1236_v46, %v1234_v38  ;;  %v1513_v46 = vstv %s9934_s21  ;;  %s10059_s21 = sld [smem:[#allocation8 + $0x6]] }
 0xa2a   :  { %v1244_v50 = vadd.f32 %v1241_v19, %v1239_v9  ;;  %v1579_v19 = vmul.f32 %v1577_v10, %v9714_v59  ;;  %v1519_v9 = vmul.f32 %v1517_v12, %v9714_v59 }
 0xa2c   :  { %v8721_v56 = vpack.i.bf16 %v1244_v50, %v1243_v21 }
 0xa2e   :  { %8722 = vrot.lane.b32.xlu1 %v8721_v56, %s11734_s0  ;;  %v1637_v56 = vstv %s9936_s25  ;;  %s7439_s25 = sld [smem:[#allocation8 + $0x7]]  ;;  %s11744_s0 = smov 24  }
 0xa40   :  { %v1250_v41 = vpop.permute.xlu0 %1249 }
 0xa4e   :  { %v1248_v31 = vpop.permute.xlu1 %1247 }
 0xa4f   :  { %8021 = vmatprep.mubr.msk.f32.mxu1 %vm390_vm3, %v1248_v31  ;;  %8026 = vmatprep.mubr.msk.f32.mxu0 %vm390_vm3, %v1248_v31  ;;  %v1629_v31 = vstv %s9938_s7  ;;  %s11742_s7 = smov 48  }
 0xa50   :  { %8027 = vmatmul.mubr.msk.f32.vlgmr.msra.gmra.mrb[8].mxu0 %vm390_vm3, %v1250_v41 }
 0xa51   :  { %8033 = vmatprep.mubr.msk.f32.mxu0 %vm9304_vm4, %v11774_v8 }
 0xaa0   :  { %v8723_v24 = vpop.permute.xlu1 %8722 }
 0xaa1   :  { %v8725_v29 = vunpack.i.h.bf16 %v8723_v24  ;;  %v8724_v15 = vunpack.i.l.bf16 %v8723_v24 }
 0xaa3   :  { %v8426_v42 = vpack.c.bf16 %v8725_v29, %v8724_v15 }
 0xaa5   :  { %8428 = vmatprep.subr.msk.bf16.mxu1 %vm9665_vm5, %v8426_v42  ;;  %8435 = vmatpush3.bf16.xpose.msk.msra.mxu0 %vm9665_vm5, %v8426_v42 }
 0xaa6   :  { %8431 = vmatpush3.bf16.xpose.msk.msra.mxu1 %vm9665_vm5, %v8426_v42 }
 0xaac   :  { %8034 = vmatmul.mubr.msk.f32.vlgmr.msra.gmra.mrb[10].mxu0 %vm390_vm3, %v7417_v39 }
 0xaad   :  { %8022 = vmatmul.mubr.msk.f32.vlgmr.msra.gmra.mrb[6].mxu1 %vm390_vm3, %v1250_v41 }
 0xb23   :  { %v8028_v43 = vpop.f32.mrb[8].mxu0 }
 0xb24   :  { %1558 = vperm.xlu0 %8727, %v8028_v43   ;;  %1498 = vperm.xlu1 %8726, %v8028_v43   ;;  %v1411_v45 = vpop.f32.mrb[9].mxu0 }
 0xb28   :  { %8729 = vset.pattern.permute.xlu0 %v11775_v32  ;;  %8728 = vset.pattern.permute.xlu1 %v11776_v47 }
 0xb29   :  { %1618 = vperm.xlu1 %8728, %v8028_v43   ;;  %1493 = vperm.xlu0 %8729, %v1411_v45  }
 0xb2d   :  { %8730 = vset.pattern.permute.xlu1 %v11777_v33  ;;  %8732 = vset.pattern.permute.xlu0 %v11778_v0 }
 0xb2e   :  { %1554 = vperm.xlu1 %8730, %v1411_v45   ;;  %1674 = vperm.xlu0 %8732, %v1411_v45  }
 0xb32   :  { %8731 = vset.pattern.permute.xlu1 %v11776_v47  ;;  %8748 = vset.pattern.permute.xlu0 %v11777_v33 }
 0xb33   :  { %1614 = vperm.xlu1 %8731, %v1411_v45   ;;  %v1633_v45 = vstv %s9944_s26  ;;  %s11730_s26 = smov 80  }
 0xb37   :  { %8733 = vset.pattern.permute.xlu1 %v11778_v0 }
 0xb38   :  { %1678 = vperm.xlu1 %8733, %v8028_v43  }
 0xb3c   :  { %8744 = vset.pattern.permute.xlu1 %v11775_v32 }
 0xb7f   :  { %v1486_v39 = vpop.f32.mrb[10].mxu0 }
 0xb80   :  { %v9920_v28 = vpop.f32.mrb[6].mxu1  ;;  %v8035_v4 = vpop.f32.mrb[11].mxu0  ;;  %v1506_v34 = vrot.slane %v1486_v39, %v9709_v57  ;;  %v1566_v40 = vrot.slane %v1486_v39, %v9718_v62  ;;  %v1626_v22 = vrot.slane %v1486_v39, %v9720_v63 }
 0xb81   :  { %v9922_v55 = vpop.f32.mrb[7].mxu1  ;;  %v1639_v4 = vmul.f32 %v1637_v56, %v9714_v59 }
 0xba3   :  { %v1559_v61 = vpop.permute.xlu0 %1558  ;;  %v1499_v25 = vpop.permute.xlu1 %1498 }
 0xba4   :  { %v1562_v51 = vsub.f32 %v9920_v28, %v1559_v61  ;;  %v1502_v3 = vsub.f32 %v9920_v28, %v1499_v25 }
 0xba6   :  { %v1508_v13 = vsub.f32 %v1502_v3, %v1506_v34  ;;  %v1568_v48 = vsub.f32 %v1562_v51, %v1566_v40 }
 0xba8   :  { %v1619_v53 = vpop.permute.xlu1 %1618  ;;  %v1494_v60 = vpop.permute.xlu0 %1493  ;;  %v1511_v38 = vmul.f32 %v1509_v58, %v1508_v13  ;;  %v1571_v52 = vmul.f32 %v1569_v5, %v1568_v48  ;;  %v1686_v13 = vrot.slane %v1486_v39, %v9722_v27  ;;  %v1518_v48 = vmul.f32 %v1517_v12, %v9728_v1 }
 0xba9   :  { %v1622_v21 = vsub.f32 %v9920_v28, %v1619_v53  ;;  %v1501_v50 = vsub.f32 %v9922_v55, %v1494_v60 }
 0xbaa   :  { %v1575_v41 = vadd.f32 %v1573_v44, %v1571_v52  ;;  %v1515_v24 = vadd.f32 %v1513_v46, %v1511_v38  ;;  %v1689_v52 = vstv %s9951_s9  ;;  %s11732_s9 = smov 112  }
 0xbab   :  { %v1628_v29 = vsub.f32 %v1622_v21, %v1626_v22  ;;  %v1507_v15 = vsub.f32 %v1501_v50, %v1506_v34 }
 0xbac   :  { %v1581_v42 = vadd.f32 %v1579_v19, %v1575_v41  ;;  %v1521_v43 = vadd.f32 %v1519_v9, %v1515_v24 }
 0xbad   :  { %v1631_v61 = vmul.f32 %v1629_v31, %v1628_v29  ;;  %v1510_v25 = vmul.f32 %v1509_v58, %v1507_v15  ;;  %v1555_v51 = vpop.permute.xlu1 %1554  ;;  %v1675_v3 = vpop.permute.xlu0 %1674  ;;  %v1578_v15 = vmul.f32 %v1577_v10, %v9728_v1  ;;  %v1638_v10 = vmul.f32 %v1637_v56, %v9728_v1 }
 0xbae   :  { %v1561_v34 = vsub.f32 %v9922_v55, %v1555_v51  ;;  %v1681_v53 = vsub.f32 %v9922_v55, %v1675_v3  ;;  %v9972_v60 = vadd.f32 %v1581_v42, %v9757_v30  ;;  %v9975_v38 = vadd.f32 %v1521_v43, %v9757_v30 }
 0xbaf   :  { %v1635_v19 = vadd.f32 %v1633_v45, %v1631_v61  ;;  %v1514_v9 = vadd.f32 %v1513_v46, %v1510_v25  ;;  %v1693_v61 = vstv %s9963_s22  ;;  %v1697_v25 = vstv %s9965_s30  ;;  %s10153_s22 = sld [smem:[#allocation2 + $0x9]] }
 0xbb0   :  { %v1567_v58 = vsub.f32 %v1561_v34, %v1566_v40  ;;  %v1687_v21 = vsub.f32 %v1681_v53, %v1686_v13  ;;  %v1587_v39 = vsel %vm760_vm6, %v9972_v60, -inf  ;;  %v1527_v12 = vsel %vm760_vm6, %v9975_v38, -inf  ;;  %s10156_s30 = sld [smem:[#allocation5 + $0x9]] }
 0xbb1   :  { %1588 = vmax.xlane.f32.xlu1 %v1587_v39  ;;  %1528 = vmax.xlane.f32.xlu0 %v1527_v12  ;;  %v1641_v50 = vadd.f32 %v1639_v4, %v1635_v19  ;;  %v1520_v41 = vadd.f32 %v1518_v48, %v1514_v9  ;;  %v1699_v56 = vmul.f32 %v1697_v25, %v9714_v59 }
 0xbb2   :  { %v1570_v24 = vmul.f32 %v1569_v5, %v1567_v58  ;;  %v1615_v29 = vpop.permute.xlu1 %1614  ;;  %v1690_v42 = vmul.f32 %v1689_v52, %v1687_v21 }
 0xbb3   :  { %v1621_v46 = vsub.f32 %v9922_v55, %v1615_v29  ;;  %v1643_v40 = vadd.f32 %v1641_v50, %v9757_v30  ;;  %v9989_v34 = vadd.f32 %v1520_v41, %v9763_v2  ;;  %v1698_v55 = vmul.f32 %v1697_v25, %v9728_v1 }
 0xbb4   :  { %v1574_v43 = vadd.f32 %v1573_v44, %v1570_v24  ;;  %v1694_v53 = vadd.f32 %v1693_v61, %v1690_v42 }
 0xbb5   :  { %v1627_v51 = vsub.f32 %v1621_v46, %v1626_v22  ;;  %v1647_v3 = vsel %vm760_vm6, %v1643_v40, -inf  ;;  %v1524_v22 = vsel %vm760_vm6, %v9989_v34, -inf }
 0xbb6   :  { %1648 = vmax.xlane.f32.xlu1 %v1647_v3  ;;  %v1580_v4 = vadd.f32 %v1578_v15, %v1574_v43  ;;  %v1700_v39 = vadd.f32 %v1698_v55, %v1694_v53 }
 0xbb7   :  { %v1630_v5 = vmul.f32 %v1629_v31, %v1627_v51  ;;  %v1679_v48 = vpop.permute.xlu1 %1678 }
 0xbb8   :  { %v1682_v19 = vsub.f32 %v9920_v28, %v1679_v48  ;;  %v1582_v44 = vadd.f32 %v1580_v4, %v9763_v2  ;;  %v1702_v41 = vadd.f32 %v1700_v39, %v9763_v2 }
 0xbb9   :  { %v1634_v9 = vadd.f32 %v1633_v45, %v1630_v5 }
 0xbba   :  { %v1688_v58 = vsub.f32 %v1682_v19, %v1686_v13  ;;  %1525 = vmax.xlane.f32.xlu1 %v1524_v22  ;;  %v1584_v21 = vsel %vm760_vm6, %v1582_v44, -inf  ;;  %v1704_v13 = vsel %vm760_vm6, %v1702_v41, -inf }
 0xbbb   :  { %1585 = vmax.xlane.f32.xlu0 %v1584_v21  ;;  %v1640_v31 = vadd.f32 %v1638_v10, %v1634_v9 }
 0xbbc   :  { %v1691_v12 = vmul.f32 %v1689_v52, %v1688_v58 }
 0xbbd   :  { %v1642_v1 = vadd.f32 %v1640_v31, %v9763_v2 }
 0xbbe   :  { %v1695_v50 = vadd.f32 %v1693_v61, %v1691_v12 }
 0xbbf   :  { %v1644_v28 = vsel %vm760_vm6, %v1642_v1, -inf }
 0xbc0   :  { %1645 = vmax.xlane.f32.xlu0 %v1644_v28  ;;  %v1701_v24 = vadd.f32 %v1699_v56, %v1695_v50 }
 0xbc2   :  { %v1703_v45 = vadd.f32 %v1701_v24, %v9757_v30 }
 0xbc4   :  { %1705 = vmax.xlane.f32.xlu0 %v1704_v13  ;;  %v1707_v29 = vsel %vm760_vm6, %v1703_v45, -inf }
 0xbc5   :  { %1708 = vmax.xlane.f32.xlu1 %v1707_v29 }
 0xbd6   :  { %1904 = vrot.lane.b32.xlu1 %v9603_v18, %s11732_s9 }
 0xbda   :  { %1902 = vrot.lane.b32.xlu0 %v9599_v16, %s11732_s9 }
 0xbde   :  { %1952 = vrot.lane.b32.xlu0 %v9599_v16, %s11730_s26 }
 0xc3e   :  { %v1589_v59 = vpop.xlane.xlu1 %1588  ;;  %v1529_v2 = vpop.xlane.xlu0 %1528 }
 0xc3f   :  { %v1591_v30 = vsub.f32 %v9972_v60, %v1589_v59  ;;  %v1531_v52 = vsub.f32 %v9975_v38, %v1529_v2 }
 0xc41   :  { %v1594_v15 = vmul.f32 1.442695, %v1591_v30  ;;  %v1534_v42 = vmul.f32 1.442695, %v1531_v52 }
 0xc43   :  { %8896 = vpow2.f32 %v1594_v15  ;;  %v1649_v46 = vpop.xlane.xlu1 %1648 }
 0xc44   :  { %8898 = vpow2.f32 %v1534_v42  ;;  %v1651_v43 = vsub.f32 %v1643_v40, %v1649_v46 }
 0xc46   :  { %v1654_v61 = vmul.f32 1.442695, %v1651_v43 }
 0xc47   :  { %v1526_v10 = vpop.xlane.xlu1 %1525 }
 0xc48   :  { %8900 = vpow2.f32 %v1654_v61  ;;  %v1586_v25 = vpop.xlane.xlu0 %1585  ;;  %v1530_v55 = vsub.f32 %v9989_v34, %v1526_v10 }
 0xc49   :  { %v1590_v51 = vsub.f32 %v1582_v44, %v1586_v25 }
 0xc4a   :  { %v1532_v39 = vmul.f32 1.442695, %v1530_v55 }
 0xc4b   :  { %v1592_v3 = vmul.f32 1.442695, %v1590_v51 }
 0xc4d   :  { %v10013_v4 = vpop.eup %8896  ;;  %v1646_v5 = vpop.xlane.xlu0 %1645  ;;  %8902 = vpow2.f32 %v1592_v3 }
 0xc4e   :  { %v10015_v48 = vpop.eup %8898  ;;  %v1650_v60 = vsub.f32 %v1642_v1, %v1646_v5  ;;  %v1599_v38 = vsel %vm760_vm6, %v10013_v4, 0.0 }
 0xc4f   :  { %v1539_v53 = vsel %vm760_vm6, %v10015_v48, 0.0  ;;  %1600 = vadd.xlane.f32.xlu1 %v1599_v38 }
 0xc50   :  { %v1652_v40 = vmul.f32 1.442695, %v1650_v60  ;;  %1540 = vadd.xlane.f32.xlu0 %v1539_v53 }
 0xc51   :  { %v1706_v19 = vpop.xlane.xlu0 %1705 }
 0xc52   :  { %v10022_v44 = vpop.eup %8900  ;;  %8904 = vpow2.f32 %v1652_v40  ;;  %v1710_v22 = vsub.f32 %v1702_v41, %v1706_v19  ;;  %v1709_v9 = vpop.xlane.xlu1 %1708 }
 0xc53   :  { %v1711_v58 = vsub.f32 %v1703_v45, %v1709_v9  ;;  %v1659_v21 = vsel %vm760_vm6, %v10022_v44, 0.0 }
 0xc54   :  { %v1712_v31 = vmul.f32 1.442695, %v1710_v22  ;;  %1660 = vadd.xlane.f32.xlu1 %v1659_v21 }
 0xc55   :  { %v1714_v12 = vmul.f32 1.442695, %v1711_v58  ;;  %v1903_v30 = vpop.permute.xlu0 %1902 }
 0xc56   :  { %8906 = vpow2.f32 %v1712_v31  ;;  %v1905_v56 = vpop.permute.xlu1 %1904  ;;  %v1908_v52 = vsel %vm390_vm3, %v1903_v30, 0.0  ;;  %v1547_v30 = vstv %s7427_s10  ;;  %s10144_s10 = sld [smem:[#allocation2 + $0x8]] }
 0xc57   :  { %8908 = vpow2.f32 %v1714_v12  ;;  %v1911_v1 = vsel %vm390_vm3, %v1905_v56, 0.0  ;;  %v10027_v34 = vpop.eup %8902 }
 0xc58   :  { %1912 = vadd.xlane.f32.xlu0 %v1911_v1  ;;  %8910 = vpow2.f32 %v1532_v39  ;;  %v1596_v50 = vsel %vm760_vm6, %v10027_v34, 0.0 }
 0xc59   :  { %v1953_v15 = vpop.permute.xlu0 %1952 }
 0xc5a   :  { %v1958_v42 = vsel %vm390_vm3, %v1953_v15, 0.0 }
 0xc5c   :  { %v10031_v28 = vpop.eup %8904  ;;  %1597 = vadd.xlane.f32.xlu0 %v1596_v50 }
 0xc5d   :  { %v1656_v41 = vsel %vm760_vm6, %v10031_v28, 0.0 }
 0xc60   :  { %v10035_v24 = vpop.eup %8906  ;;  %1657 = vadd.xlane.f32.xlu0 %v1656_v41 }
 0xc61   :  { %v10037_v45 = vpop.eup %8908  ;;  %v1716_v59 = vsel %vm760_vm6, %v10035_v24, 0.0 }
 0xc62   :  { %v1719_v13 = vsel %vm760_vm6, %v10037_v45, 0.0  ;;  %v10041_v29 = vpop.eup %8910 }
 0xc63   :  { %1720 = vadd.xlane.f32.xlu1 %v1719_v13  ;;  %v1536_v2 = vsel %vm760_vm6, %v10041_v29, 0.0 }
 0xc64   :  { %1717 = vadd.xlane.f32.xlu0 %v1716_v59 }
 0xc67   :  { %1537 = vadd.xlane.f32.xlu1 %v1536_v2 }
 0xc78   :  { %1954 = vrot.lane.b32.xlu1 %v9603_v18, %s11730_s26 }
 0xc7a   :  { %8735 = vrot.lane.b32.xlu0 %v9824_v49, %s11740_s5  ;;  %s10182_s5 = sld [smem:[#allocation7 + $0xa]] }
 0xc9c   :  { %1909 = vadd.xlane.f32.xlu1 %v1908_v52  ;;  %v1607_v52 = vstv %s7431_s1  ;;  %s11728_s1 = smov 16  }
 0xca0   :  { %1959 = vadd.xlane.f32.xlu1 %v1958_v42 }
 0xcdc   :  { %v1601_v61 = vpop.xlane.xlu1 %1600 }
 0xcdd   :  { %v1541_v46 = vpop.xlane.xlu0 %1540  ;;  %8912 = vrcp.f32 %v1601_v61  ;;  %v1667_v61 = vstv %s10059_s21  ;;  %s10146_s21 = sld [smem:[#allocation5 + $0x8]] }
 0xcde   :  { %8914 = vrcp.f32 %v1541_v46 }
 0xce1   :  { %v1661_v10 = vpop.xlane.xlu1 %1660 }
 0xce2   :  { %8916 = vrcp.f32 %v1661_v10 }
 0xce5   :  { %v1913_v43 = vpop.xlane.xlu0 %1912 }
 0xce6   :  { %v1915_v25 = vmul.f32 0.125, %v1913_v43 }
 0xce7   :  { %v8913_v9 = vpop.eup %8912 }
 0xce8   :  { %v10054_v51 = vsub.f32 %v9603_v18, %v1915_v25  ;;  %v8915_v31 = vpop.eup %8914  ;;  %v1605_v13 = vmul.f32 %v8913_v9, %v10013_v4 }
 0xce9   :  { %v1598_v3 = vpop.xlane.xlu0 %1597  ;;  %v1545_v41 = vmul.f32 %v8915_v31, %v10015_v48 }
 0xcea   :  { %v1919_v5 = vmul.f32 %v10054_v51, %v10054_v51  ;;  %8918 = vrcp.f32 %v1598_v3 }
 0xceb   :  { %v1549_v3 = vmul.f32 %v1547_v30, %v1545_v41 }
 0xcec   :  { %1924 = vrot.lane.b32.xlu0 %v1919_v5, %s11732_s9  ;;  %v8917_v12 = vpop.eup %8916  ;;  %v1609_v5 = vmul.f32 %v1607_v52, %v1605_v13 }
 0xced   :  { %v1658_v60 = vpop.xlane.xlu0 %1657  ;;  %v1665_v42 = vmul.f32 %v8917_v12, %v10022_v44 }
 0xcee   :  { %8920 = vrcp.f32 %v1658_v60  ;;  %v1727_v60 = vstv %s7439_s25  ;;  %s10148_s25 = sld [smem:[#allocation7 + $0x8]] }
 0xcf0   :  { %v1721_v38 = vpop.xlane.xlu1 %1720 }
 0xcf1   :  { %v1718_v53 = vpop.xlane.xlu0 %1717  ;;  %8922 = vrcp.f32 %v1721_v38 }
 0xcf2   :  { %8924 = vrcp.f32 %v1718_v53 }
 0xcf4   :  { %v1538_v40 = vpop.xlane.xlu1 %1537  ;;  %v8919_v56 = vpop.eup %8918 }
 0xcf5   :  { %8926 = vrcp.f32 %v1538_v40  ;;  %v8736_v55 = vpop.permute.xlu0 %8735  ;;  %v1603_v2 = vmul.f32 %v8919_v56, %v10027_v34  ;;  %v1669_v34 = vmul.f32 %v1667_v61, %v1665_v42  ;;  %v386_v56 = vld [vmem:[%s11682_s12 + $0x8] sm:$0xff]  ;;  %v10098_v42 = vld [vmem:[%s11767_s2] ss:$0 sm:$0xff] }
 0xcf6   :  { %v8738_v19 = vunpack.i.h.bf16 %v8736_v55  ;;  %v8737_v22 = vunpack.i.l.bf16 %v8736_v55  ;;  %v1611_v55 = vadd.f32 %v1609_v5, %v1549_v3  ;;  %8043 = vmatprep.subr.mxu0 %v386_v56 }
 0xcf7   :  { %v1608_v10 = vmul.f32 %v1607_v52, %v1603_v2  ;;  %8044 = vmatpush3.msra.mxu0 %v386_v56 }
 0xcf8   :  { %v1955_v58 = vpop.permute.xlu1 %1954  ;;  %v8436_v21 = vpack.c.bf16 %v8738_v19, %v8737_v22  ;;  %v8921_v1 = vpop.eup %8920 }
 0xcf9   :  { %v1961_v39 = vsel %vm390_vm3, %v1955_v58, 0.0  ;;  %v1663_v46 = vmul.f32 %v8921_v1, %v10031_v28  ;;  %v1671_v28 = vadd.f32 %v1669_v34, %v1611_v55 }
 0xcfa   :  { %8437 = vmatprep.subr.bf16.mxu1 %v8436_v21  ;;  %1962 = vadd.xlane.f32.xlu1 %v1961_v39 }
 0xcfb   :  { %8439 = vmatpush3.bf16.msra.mxu1 %v8436_v21  ;;  %v8923_v50 = vpop.eup %8922  ;;  %v1668_v53 = vmul.f32 %v1667_v61, %v1663_v46 }
 0xcfc   :  { %v8925_v59 = vpop.eup %8924  ;;  %v1725_v25 = vmul.f32 %v8923_v50, %v10037_v45 }
 0xcfd   :  { %v1723_v4 = vmul.f32 %v8925_v59, %v10035_v24 }
 0xcfe   :  { %v1729_v40 = vmul.f32 %v1727_v60, %v1725_v25 }
 0xcff   :  { %v8927_v15 = vpop.eup %8926  ;;  %v1728_v19 = vmul.f32 %v1727_v60, %v1723_v4  ;;  %v7448_v60 = vld [vmem:[%s11681_s11 + $0x8] sm:$0xf] }
 0xd00   :  { %v1543_v43 = vmul.f32 %v8927_v15, %v10041_v29  ;;  %v1731_v29 = vadd.f32 %v1729_v40, %v1671_v28  ;;  %v10091_v15 = vld [vmem:[%s11768_s6] ss:$0 sm:$0xff]  ;;  %8055 = vmatprep.subr.msk.mxu0 %vm390_vm3, %v7448_v60 }
 0xd02   :  { %v1548_v48 = vmul.f32 %v1547_v30, %v1543_v43 }
 0xd04   :  { %v1610_v38 = vadd.f32 %v1608_v10, %v1548_v48 }
 0xd06   :  { %v1670_v44 = vadd.f32 %v1668_v53, %v1610_v38 }
 0xd08   :  { %v1730_v22 = vadd.f32 %v1728_v19, %v1670_v44 }
 0xd0a   :  { %8040 = vmatprep.mubr.msk.f32.mxu1 %vm760_vm6, %v1730_v22 }
 0xd0b   :  { %8041 = vmatmul.mubr.msk.f32.vlgmr.msra.gmra.mrb[8].mxu1 %vm760_vm6, %v1731_v29 }
 0xd29   :  { %v1910_v45 = vpop.xlane.xlu1 %1909 }
 0xd2a   :  { %v1914_v9 = vmul.f32 0.125, %v1910_v45 }
 0xd2c   :  { %v1916_v58 = vsub.f32 %v9599_v16, %v1914_v9 }
 0xd2d   :  { %v1960_v24 = vpop.xlane.xlu1 %1959 }
 0xd2e   :  { %v1918_v21 = vmul.f32 %v1916_v58, %v1916_v58  ;;  %v1964_v31 = vmul.f32 0.125, %v1960_v24 }
 0xd30   :  { %v10075_v39 = vsub.f32 %v9599_v16, %v1964_v31  ;;  %1922 = vrot.lane.b32.xlu1 %v1918_v21, %s11732_s9 }
 0xd32   :  { %v1968_v12 = vmul.f32 %v10075_v39, %v10075_v39 }
 0xd34   :  { %1972 = vrot.lane.b32.xlu0 %v1968_v12, %s11730_s26 }
 0xd5e   :  { %v1925_v30 = vpop.permute.xlu0 %1924 }
 0xd5f   :  { %v1931_v52 = vsel %vm390_vm3, %v1925_v30, 0.0 }
 0xd87   :  { %v1963_v1 = vpop.xlane.xlu1 %1962 }
 0xd88   :  { %v1965_v50 = vmul.f32 0.125, %v1963_v1 }
 0xd8a   :  { %v1967_v41 = vsub.f32 %v9603_v18, %v1965_v50 }
 0xd8c   :  { %v1969_v13 = vmul.f32 %v1967_v41, %v1967_v41 }
 0xd8e   :  { %1974 = vrot.lane.b32.xlu1 %v1969_v13, %s11730_s26 }
 0xda2   :  { %v1923_v59 = vpop.permute.xlu1 %1922 }
 0xda3   :  { %v1928_v2 = vsel %vm390_vm3, %v1923_v59, 0.0 }
 0xda4   :  { %1929 = vadd.xlane.f32.xlu0 %v1928_v2 }
 0xda6   :  { %v1973_v46 = vpop.permute.xlu0 %1972 }
 0xda7   :  { %v1978_v43 = vsel %vm390_vm3, %v1973_v46, 0.0 }
 0xdb2   :  { %1932 = vadd.xlane.f32.xlu1 %v1931_v52 }
 0xdba   :  { %1942 = vrot.lane.b32.xlu0 %v10091_v15, %s11728_s1 }
 0xdc3   :  { %1947 = vrot.lane.b32.xlu1 %v10098_v42, %s11728_s1  ;;  %s10161_s1 = sld [smem:[#allocation7 + $0x9]] }
 0xdd9   :  { %1979 = vadd.xlane.f32.xlu0 %v1978_v43 }
 0xdde   :  { %v8042_v61 = vpop.f32.mrb[8].mxu1 }
 0xddf   :  { %v1810_v25 = vpop.f32.mrb[9].mxu1 }
 0xde0   :  { %8045 = vmatprep.mubr.msk.f32.mxu0 %vm390_vm3, %v1810_v25 }
 0xde1   :  { %8046 = vmatmul.mubr.msk.f32.vlgmr.msra.gmra.mrb[6].mxu0 %vm390_vm3, %v8042_v61 }
 0xde2   :  { %8056 = vmatpush3.xpose.msk.msra.mxu0 %vm390_vm3, %v7448_v60 }
 0xdef   :  { %1992 = vrot.lane.b32.xlu0 %v10091_v15, %s11742_s7 }
 0xe00   :  { %v1975_v3 = vpop.permute.xlu1 %1974 }
 0xe01   :  { %v1981_v5 = vsel %vm390_vm3, %v1975_v3, 0.0 }
 0xe02   :  { %1982 = vadd.xlane.f32.xlu1 %v1981_v5 }
 0xe13   :  { %1997 = vrot.lane.b32.xlu1 %v10098_v42, %s11742_s7  ;;  %s10187_s7 = sld [smem:[#allocation7 + $0xb]] }
 0xe31   :  { %v1930_v48 = vpop.xlane.xlu0 %1929 }
 0xe32   :  { %v1934_v10 = vmul.f32 0.125, %v1930_v48 }
 0xe34   :  { %v1936_v4 = vadd.f32 1e-05, %v1934_v10 }
 0xe35   :  { %v1943_v40 = vpop.permute.xlu0 %1942 }
 0xe36   :  { %8928 = vrsqrt.f32 %v1936_v4 }
 0xe3f   :  { %v1933_v34 = vpop.xlane.xlu1 %1932 }
 0xe40   :  { %v8929_v38 = vpop.eup %8928  ;;  %v1935_v53 = vmul.f32 0.125, %v1933_v34 }
 0xe41   :  { %v1940_v55 = vmul.f32 %v8929_v38, %v1916_v58 }
 0xe42   :  { %v1937_v44 = vadd.f32 1e-05, %v1935_v53 }
 0xe43   :  { %v1945_v19 = vmul.f32 %v1943_v40, %v1940_v55  ;;  %v1948_v28 = vpop.permute.xlu1 %1947 }
 0xe44   :  { %8930 = vrsqrt.f32 %v1937_v44 }
 0xe45   :  { %v1950_v22 = vadd.f32 %v1948_v28, %v1945_v19 }
 0xe47   :  { %2004 = vrot.lane.b32.xlu0 %v1950_v22, %s11732_s9 }
 0xe4e   :  { %v8931_v29 = vpop.eup %8930 }
 0xe4f   :  { %v1941_v45 = vmul.f32 %v8931_v29, %v10054_v51  ;;  %v2266_v29 = vstv %s10144_s10  ;;  %s10293_s10 = sld [smem:[#allocation8 + $0xa]] }
 0xe51   :  { %v1946_v9 = vmul.f32 %v1943_v40, %v1941_v45 }
 0xe53   :  { %v1951_v24 = vadd.f32 %v1948_v28, %v1946_v9  ;;  %v2274_v9 = vstv %s10146_s21  ;;  %s10295_s21 = sld [smem:[#allocation8 + $0xb]] }
 0xe55   :  { %2006 = vrot.lane.b32.xlu1 %v1951_v24, %s11732_s9  ;;  %s10170_s9 = sld [smem:[#allocation2 + $0xb]] }
 0xe66   :  { %v1980_v21 = vpop.xlane.xlu0 %1979 }
 0xe67   :  { %v1984_v31 = vmul.f32 0.125, %v1980_v21 }
 0xe69   :  { %v1986_v12 = vadd.f32 1e-05, %v1984_v31  ;;  %v2270_v31 = vstv %s10148_s25  ;;  %s10387_s25 = sld [smem:[#allocation7 + $0xc]] }
 0xe6a   :  { %v1993_v2 = vpop.permute.xlu0 %1992 }
 0xe6b   :  { %8932 = vrsqrt.f32 %v1986_v12 }
 0xe75   :  { %v8933_v50 = vpop.eup %8932 }
 0xe76   :  { %v1990_v13 = vmul.f32 %v8933_v50, %v10075_v39 }
 0xe78   :  { %v1995_v51 = vmul.f32 %v1993_v2, %v1990_v13 }
 0xe8f   :  { %v1983_v56 = vpop.xlane.xlu1 %1982 }
 0xe90   :  { %v1985_v58 = vmul.f32 0.125, %v1983_v56 }
 0xe92   :  { %v1987_v1 = vadd.f32 1e-05, %v1985_v58 }
 0xe93   :  { %v1998_v52 = vpop.permute.xlu1 %1997 }
 0xe94   :  { %8934 = vrsqrt.f32 %v1987_v1  ;;  %v2000_v43 = vadd.f32 %v1998_v52, %v1995_v51  ;;  %v10175_v1 = vld [vmem:[%s11771_s4 + $0x8] sm:$0xff] }
 0xe95   :  { %v2276_v50 = vmul.f32 %v10175_v1, %v2274_v9 }
 0xe9e   :  { %v8935_v59 = vpop.eup %8934 }
 0xe9f   :  { %v1991_v30 = vmul.f32 %v8935_v59, %v1967_v41 }
 0xea1   :  { %v1996_v46 = vmul.f32 %v1993_v2, %v1991_v30 }
 0xea3   :  { %v2001_v61 = vadd.f32 %v1998_v52, %v1996_v46  ;;  %v2326_v52 = vstv %s10153_s22  ;;  %v2334_v46 = vstv %s10156_s30  ;;  %s11780_s22 = smov 56   ;;  %s10393_s30 = sld [smem:[#allocation5 + $0xe]] }
 0xea5   :  { %v8739_v25 = vpack.i.bf16 %v2001_v61, %v2000_v43 }
 0xea7   :  { %8740 = vrot.lane.b32.xlu0 %v8739_v25, %s11730_s26  ;;  %s10164_s26 = sld [smem:[#allocation2 + $0xa]] }
 0xeb9   :  { %v2005_v3 = vpop.permute.xlu0 %2004 }
 0xeba   :  { %8052 = vmatprep.mubr.msk.f32.mxu1 %vm390_vm3, %v2005_v3  ;;  %8057 = vmatprep.mubr.msk.f32.mxu0 %vm390_vm3, %v2005_v3 }
 0xec7   :  { %v2007_v5 = vpop.permute.xlu1 %2006 }
 0xec8   :  { %8058 = vmatmul.mubr.msk.f32.vlgmr.msra.gmra.mrb[12].mxu0 %vm390_vm3, %v2007_v5 }
 0xf19   :  { %v8741_v39 = vpop.permute.xlu0 %8740 }
 0xf1a   :  { %v8743_v48 = vunpack.i.h.bf16 %v8741_v39  ;;  %v8742_v10 = vunpack.i.l.bf16 %v8741_v39  ;;  %v2336_v39 = vmul.f32 %v10175_v1, %v2334_v46 }
 0xf1c   :  { %v8440_v41 = vpack.c.bf16 %v8743_v48, %v8742_v10 }
 0xf1e   :  { %8442 = vmatprep.subr.msk.bf16.mxu1 %vm9665_vm5, %v8440_v41 }
 0xf1f   :  { %8445 = vmatpush3.bf16.xpose.msk.msra.mxu1 %vm9665_vm5, %v8440_v41 }
 0xf20   :  { %8446 = vmatprep.subr.bf16.mxu1 %v11773_v54 }
 0xf26   :  { %8053 = vmatmul.mubr.msk.f32.vlgmr.msra.gmra.mrb[10].mxu1 %vm390_vm3, %v2007_v5  ;;  %v2330_v5 = vstv %s10161_s1  ;;  %s10288_s1 = sld [smem:[#allocation8 + $0x9]] }
 0xf27   :  { %8449 = vmatpush3.bf16.xpose.msk.msra.mxu1 %vm9665_vm5, %v8440_v41  ;;  %8064 = vmatprep.mubr.msk.f32.mxu1 %vm9304_vm4, %v11774_v8 }
 0xf2e   :  { %8065 = vmatmul.mubr.msk.f32.vlgmr.msra.gmra.mrb[12].mxu1 %vm390_vm3, %v7448_v60 }
 0xf9b   :  { %v8059_v4 = vpop.f32.mrb[12].mxu0 }
 0xf9c   :  { %2255 = vperm.xlu1 %8744, %v8059_v4   ;;  %v2168_v34 = vpop.f32.mrb[13].mxu0 }
 0xf9d   :  { %2311 = vperm.xlu0 %8748, %v2168_v34  }
 0xfa0   :  { %8745 = vset.pattern.permute.xlu1 %v11777_v33 }
 0xfa1   :  { %2315 = vperm.xlu1 %8745, %v8059_v4   ;;  %8749 = vset.pattern.permute.xlu0 %v11776_v47 }
 0xfa2   :  { %2371 = vperm.xlu0 %8749, %v2168_v34  }
 0xfa5   :  { %8746 = vset.pattern.permute.xlu1 %v11776_v47 }
 0xfa6   :  { %2375 = vperm.xlu1 %8746, %v8059_v4   ;;  %8751 = vset.pattern.permute.xlu0 %v11778_v0 }
 0xfa7   :  { %2435 = vperm.xlu0 %8751, %v8059_v4   ;;  %v10198_v4 = vld [vmem:[%s11772_s24 + $0x8] sm:$0xff] }
 0xfaa   :  { %8747 = vset.pattern.permute.xlu1 %v11775_v32 }
 0xfab   :  { %2250 = vperm.xlu1 %8747, %v2168_v34   ;;  %8763 = vset.pattern.permute.xlu0 %v11777_v33 }
 0xfaf   :  { %8750 = vset.pattern.permute.xlu1 %v11778_v0 }
 0xfb0   :  { %2431 = vperm.xlu1 %8750, %v2168_v34  }
 0xfb4   :  { %8762 = vset.pattern.permute.xlu1 %v11775_v32 }
 0xff9   :  { %v8054_v60 = vpop.f32.mrb[10].mxu1 }
 0xffa   :  { %v10142_v38 = vpop.f32.mrb[11].mxu1 }
0x1001   :  { %v2243_v53 = vpop.f32.mrb[12].mxu1 }
0x1002   :  { %v8066_v40 = vpop.f32.mrb[13].mxu1  ;;  %v10151_v55 = vrot.slane %v2243_v53, %v9709_v57  ;;  %v2323_v19 = vrot.slane %v2243_v53, %v9718_v62  ;;  %v2383_v58 = vrot.slane %v2243_v53, %v9720_v63 }
0x1003   :  { %v10206_v40 = vld [vmem:[%s11771_s4] sm:$0xff] }
0x101b   :  { %v2256_v44 = vpop.permute.xlu1 %2255 }
0x101c   :  { %v2259_v28 = vsub.f32 %v8054_v60, %v2256_v44  ;;  %v2312_v22 = vpop.permute.xlu0 %2311  ;;  %v2335_v44 = vmul.f32 %v10206_v40, %v2334_v46 }
0x101d   :  { %v2318_v45 = vsub.f32 %v10142_v38, %v2312_v22 }
0x101e   :  { %v2265_v24 = vsub.f32 %v2259_v28, %v10151_v55  ;;  %v2443_v28 = vrot.slane %v2243_v53, %v9722_v27  ;;  %v2450_v53 = vstv %s10187_s7  ;;  %s10291_s7 = sld [smem:[#allocation8 + $0x8]] }
0x101f   :  { %v2324_v21 = vsub.f32 %v2318_v45, %v2323_v19 }
0x1020   :  { %v2268_v12 = vmul.f32 %v2266_v29, %v2265_v24  ;;  %v2316_v56 = vpop.permute.xlu1 %2315 }
0x1021   :  { %v2319_v13 = vsub.f32 %v8054_v60, %v2316_v56  ;;  %v2372_v59 = vpop.permute.xlu0 %2371  ;;  %v2327_v48 = vmul.f32 %v2326_v52, %v2324_v21  ;;  %v2446_v21 = vstv %s10170_s9  ;;  %v2394_v56 = vstv %s10180_s27  ;;  %s9318_s9 = smov 104   ;;  %s10377_s27 = sld [smem:[#allocation2 + $0xc]] }
0x1022   :  { %v2378_v2 = vsub.f32 %v10142_v38, %v2372_v59  ;;  %v2272_v30 = vadd.f32 %v2270_v31, %v2268_v12  ;;  %v2390_v59 = vstv %s10182_s5  ;;  %s11779_s5 = smov 48  }
0x1023   :  { %v2325_v51 = vsub.f32 %v2319_v13, %v2323_v19  ;;  %v2386_v19 = vstv %s10164_s26  ;;  %s9319_s26 = smov 72  }
0x1024   :  { %v2384_v43 = vsub.f32 %v2378_v2, %v2383_v58  ;;  %v2278_v61 = vadd.f32 %v2276_v50, %v2272_v30  ;;  %v2396_v2 = vmul.f32 %v10175_v1, %v2394_v56 }
0x1025   :  { %v2328_v25 = vmul.f32 %v2326_v52, %v2325_v51  ;;  %v2376_v3 = vpop.permute.xlu1 %2375  ;;  %v2331_v51 = vadd.f32 %v2330_v5, %v2327_v48 }
0x1026   :  { %v2379_v10 = vsub.f32 %v8054_v60, %v2376_v3  ;;  %v2436_v41 = vpop.permute.xlu0 %2435  ;;  %v10201_v34 = vadd.f32 %v10198_v4, %v2278_v61  ;;  %v2387_v46 = vmul.f32 %v2386_v19, %v2384_v43 }
0x1027   :  { %v2439_v22 = vsub.f32 %v8054_v60, %v2436_v41  ;;  %v2332_v45 = vadd.f32 %v2330_v5, %v2328_v25  ;;  %v2454_v60 = vstv %s10189_s20  ;;  %s10397_s20 = sld [smem:[#allocation7 + $0xe]] }
0x1028   :  { %v2385_v24 = vsub.f32 %v2379_v10, %v2383_v58  ;;  %v2284_v12 = vsel %vm760_vm6, %v10201_v34, -inf  ;;  %v2456_v5 = vmul.f32 %v10175_v1, %v2454_v60 }
0x1029   :  { %v2445_v50 = vsub.f32 %v2439_v22, %v2443_v28  ;;  %2285 = vmax.xlane.f32.xlu1 %v2284_v12  ;;  %v2338_v13 = vadd.f32 %v2336_v39, %v2332_v45  ;;  %v2337_v22 = vadd.f32 %v2335_v44, %v2331_v51  ;;  %v2395_v12 = vmul.f32 %v10206_v40, %v2394_v56 }
0x102a   :  { %v2388_v30 = vmul.f32 %v2386_v19, %v2385_v24  ;;  %v2251_v52 = vpop.permute.xlu1 %2250  ;;  %v2275_v19 = vmul.f32 %v10206_v40, %v2274_v9  ;;  %v2391_v24 = vadd.f32 %v2390_v59, %v2387_v46 }
0x102b   :  { %v2448_v58 = vmul.f32 %v2446_v21, %v2445_v50  ;;  %v2258_v61 = vsub.f32 %v10142_v38, %v2251_v52  ;;  %v2340_v25 = vadd.f32 %v10198_v4, %v2338_v13 }
0x102c   :  { %v2392_v3 = vadd.f32 %v2390_v59, %v2388_v30  ;;  %v2397_v56 = vadd.f32 %v2395_v12, %v2391_v24 }
0x102d   :  { %v2264_v39 = vsub.f32 %v2258_v61, %v10151_v55  ;;  %v2344_v10 = vsel %vm760_vm6, %v2340_v25, -inf  ;;  %v2452_v45 = vadd.f32 %v2450_v53, %v2448_v58 }
0x102e   :  { %2345 = vmax.xlane.f32.xlu0 %v2344_v10  ;;  %v2398_v41 = vadd.f32 %v2396_v2, %v2392_v3 }
0x102f   :  { %v2267_v48 = vmul.f32 %v2266_v29, %v2264_v39  ;;  %v2432_v43 = vpop.permute.xlu1 %2431  ;;  %v10238_v29 = vld [vmem:[%s11772_s24] sm:$0xff]  ;;  %v2458_v9 = vadd.f32 %v2456_v5, %v2452_v45 }
0x1030   :  { %v2438_v50 = vsub.f32 %v10142_v38, %v2432_v43  ;;  %v2400_v55 = vadd.f32 %v10198_v4, %v2398_v41  ;;  %v2339_v30 = vadd.f32 %v10238_v29, %v2337_v22  ;;  %v2455_v38 = vmul.f32 %v10206_v40, %v2454_v60 }
0x1031   :  { %v2271_v13 = vadd.f32 %v2270_v31, %v2267_v48  ;;  %v2399_v61 = vadd.f32 %v10238_v29, %v2397_v56 }
0x1032   :  { %v2444_v2 = vsub.f32 %v2438_v50, %v2443_v28  ;;  %v2404_v44 = vsel %vm760_vm6, %v2400_v55, -inf  ;;  %v2341_v31 = vsel %vm760_vm6, %v2339_v30, -inf  ;;  %v2460_v28 = vadd.f32 %v10198_v4, %v2458_v9 }
0x1033   :  { %2405 = vmax.xlane.f32.xlu0 %v2404_v44  ;;  %v2277_v59 = vadd.f32 %v2275_v19, %v2271_v13 }
0x1034   :  { %v2447_v52 = vmul.f32 %v2446_v21, %v2444_v2  ;;  %v2464_v39 = vsel %vm760_vm6, %v2460_v28, -inf  ;;  %v2401_v21 = vsel %vm760_vm6, %v2399_v61, -inf }
0x1035   :  { %v2279_v51 = vadd.f32 %v10238_v29, %v2277_v59 }
0x1036   :  { %v2451_v46 = vadd.f32 %v2450_v53, %v2447_v52 }
0x1037   :  { %2342 = vmax.xlane.f32.xlu0 %v2341_v31  ;;  %v2281_v58 = vsel %vm760_vm6, %v2279_v51, -inf }
0x1038   :  { %2282 = vmax.xlane.f32.xlu1 %v2281_v58  ;;  %v2457_v3 = vadd.f32 %v2455_v38, %v2451_v46 }
0x103a   :  { %v2459_v60 = vadd.f32 %v10238_v29, %v2457_v3 }
0x103b   :  { %2465 = vmax.xlane.f32.xlu0 %v2464_v39 }
0x103c   :  { %2402 = vmax.xlane.f32.xlu1 %v2401_v21  ;;  %v2461_v10 = vsel %vm760_vm6, %v2459_v60, -inf }
0x1040   :  { %2462 = vmax.xlane.f32.xlu1 %v2461_v10 }
0x1051   :  { %2661 = vrot.lane.b32.xlu0 %v9603_v18, %s9318_s9  ;;  %2659 = vrot.lane.b32.xlu1 %v9599_v16, %s9318_s9 }
0x1055   :  { %2709 = vrot.lane.b32.xlu1 %v9599_v16, %s9319_s26 }
0x10b6   :  { %v2286_v53 = vpop.xlane.xlu1 %2285 }
0x10b7   :  { %v2288_v41 = vsub.f32 %v10201_v34, %v2286_v53 }
0x10b9   :  { %v2291_v22 = vmul.f32 1.442695, %v2288_v41 }
0x10bb   :  { %8936 = vpow2.f32 %v2291_v22  ;;  %v2346_v45 = vpop.xlane.xlu0 %2345 }
0x10bc   :  { %v2348_v5 = vsub.f32 %v2340_v25, %v2346_v45 }
0x10be   :  { %v2351_v48 = vmul.f32 1.442695, %v2348_v5 }
0x10c0   :  { %8938 = vpow2.f32 %v2351_v48  ;;  %v2406_v43 = vpop.xlane.xlu0 %2405 }
0x10c1   :  { %v2408_v19 = vsub.f32 %v2400_v55, %v2406_v43 }
0x10c3   :  { %v2411_v24 = vmul.f32 1.442695, %v2408_v19 }
0x10c4   :  { %v2343_v12 = vpop.xlane.xlu0 %2342 }
0x10c5   :  { %v10258_v50 = vpop.eup %8936  ;;  %8940 = vpow2.f32 %v2411_v24  ;;  %v2283_v13 = vpop.xlane.xlu1 %2282  ;;  %v2347_v9 = vsub.f32 %v2339_v30, %v2343_v12 }
0x10c6   :  { %v2287_v2 = vsub.f32 %v2279_v51, %v2283_v13  ;;  %v2296_v44 = vsel %vm760_vm6, %v10258_v50, 0.0 }
0x10c7   :  { %2297 = vadd.xlane.f32.xlu1 %v2296_v44  ;;  %v2349_v38 = vmul.f32 1.442695, %v2347_v9 }
0x10c8   :  { %v2289_v34 = vmul.f32 1.442695, %v2287_v2  ;;  %v2466_v59 = vpop.xlane.xlu0 %2465 }
0x10c9   :  { %v2468_v56 = vsub.f32 %v2460_v28, %v2466_v59  ;;  %v2403_v25 = vpop.xlane.xlu1 %2402 }
0x10ca   :  { %v10262_v52 = vpop.eup %8938  ;;  %8942 = vpow2.f32 %v2289_v34  ;;  %v2407_v55 = vsub.f32 %v2399_v61, %v2403_v25 }
0x10cb   :  { %v2471_v31 = vmul.f32 1.442695, %v2468_v56  ;;  %v2356_v46 = vsel %vm760_vm6, %v10262_v52, 0.0 }
0x10cc   :  { %v2409_v58 = vmul.f32 1.442695, %v2407_v55  ;;  %2357 = vadd.xlane.f32.xlu0 %v2356_v46  ;;  %v2662_v24 = vpop.permute.xlu0 %2661 }
0x10cd   :  { %8944 = vpow2.f32 %v2471_v31  ;;  %v2463_v51 = vpop.xlane.xlu1 %2462  ;;  %v2668_v12 = vsel %vm390_vm3, %v2662_v24, 0.0  ;;  %v2364_v24 = vstv %s10288_s1  ;;  %s10379_s1 = sld [smem:[#allocation2 + $0xd]] }
0x10ce   :  { %v2467_v3 = vsub.f32 %v2459_v60, %v2463_v51  ;;  %8946 = vpow2.f32 %v2349_v38 }
0x10cf   :  { %v10266_v30 = vpop.eup %8940  ;;  %8948 = vpow2.f32 %v2409_v58 }
0x10d0   :  { %v2469_v28 = vmul.f32 1.442695, %v2467_v3  ;;  %v2416_v39 = vsel %vm760_vm6, %v10266_v30, 0.0 }
0x10d1   :  { %2417 = vadd.xlane.f32.xlu0 %v2416_v39  ;;  %v2660_v10 = vpop.permute.xlu1 %2659 }
0x10d2   :  { %8950 = vpow2.f32 %v2469_v28  ;;  %v2665_v22 = vsel %vm390_vm3, %v2660_v10, 0.0 }
0x10d4   :  { %v8943_v61 = vpop.eup %8942 }
0x10d5   :  { %v2293_v21 = vsel %vm760_vm6, %v8943_v61, 0.0  ;;  %v2710_v13 = vpop.permute.xlu1 %2709 }
0x10d6   :  { %2294 = vadd.xlane.f32.xlu1 %v2293_v21  ;;  %v2715_v2 = vsel %vm390_vm3, %v2710_v13, 0.0 }
0x10d7   :  { %v10271_v53 = vpop.eup %8944 }
0x10d8   :  { %v2476_v60 = vsel %vm760_vm6, %v10271_v53, 0.0  ;;  %v8947_v41 = vpop.eup %8946 }
0x10d9   :  { %2477 = vadd.xlane.f32.xlu0 %v2476_v60  ;;  %v8949_v45 = vpop.eup %8948  ;;  %v2353_v5 = vsel %vm760_vm6, %v8947_v41, 0.0 }
0x10da   :  { %2666 = vadd.xlane.f32.xlu1 %v2665_v22  ;;  %v2413_v48 = vsel %vm760_vm6, %v8949_v45, 0.0 }
0x10dc   :  { %v10278_v43 = vpop.eup %8950 }
0x10dd   :  { %2354 = vadd.xlane.f32.xlu0 %v2353_v5  ;;  %v2473_v19 = vsel %vm760_vm6, %v10278_v43, 0.0 }
0x10de   :  { %2414 = vadd.xlane.f32.xlu1 %v2413_v48 }
0x10e2   :  { %2474 = vadd.xlane.f32.xlu1 %v2473_v19 }
0x10f3   :  { %2711 = vrot.lane.b32.xlu0 %v9603_v18, %s9319_s26  ;;  %8753 = vrot.lane.b32.xlu1 %v9824_v49, %s11779_s5 }
0x1112   :  { %2669 = vadd.xlane.f32.xlu0 %v2668_v12 }
0x1116   :  { %2716 = vadd.xlane.f32.xlu0 %v2715_v2 }
0x1154   :  { %v2298_v9 = vpop.xlane.xlu1 %2297 }
0x1159   :  { %v2358_v44 = vpop.xlane.xlu0 %2357 }
0x115a   :  { %8952 = vrcp.f32 %v2358_v44 }
0x115e   :  { %v2418_v34 = vpop.xlane.xlu0 %2417 }
0x1163   :  { %v2295_v59 = vpop.xlane.xlu1 %2294 }
0x1164   :  { %8954 = vrcp.f32 %v2295_v59  ;;  %v8953_v51 = vpop.eup %8952  ;;  %v2304_v59 = vstv %s10291_s7  ;;  %s10381_s7 = sld [smem:[#allocation5 + $0xd]] }
0x1165   :  { %8956 = vrcp.f32 %v2298_v9  ;;  %v2362_v60 = vmul.f32 %v8953_v51, %v10262_v52 }
0x1166   :  { %v2478_v56 = vpop.xlane.xlu0 %2477  ;;  %8958 = vrcp.f32 %v2418_v34 }
0x1167   :  { %v2667_v25 = vpop.xlane.xlu1 %2666  ;;  %8960 = vrcp.f32 %v2478_v56  ;;  %v2424_v56 = vstv %s10293_s10  ;;  %s10383_s10 = sld [smem:[#allocation5 + $0xc]] }
0x116a   :  { %v2355_v55 = vpop.xlane.xlu0 %2354 }
0x116b   :  { %8962 = vrcp.f32 %v2355_v55  ;;  %v2415_v38 = vpop.xlane.xlu1 %2414 }
0x116c   :  { %8964 = vrcp.f32 %v2415_v38  ;;  %v2366_v38 = vmul.f32 %v2364_v24, %v2362_v60 }
0x116e   :  { %v2712_v31 = vpop.permute.xlu0 %2711  ;;  %v8955_v3 = vpop.eup %8954 }
0x116f   :  { %v2475_v46 = vpop.xlane.xlu1 %2474  ;;  %v2718_v58 = vsel %vm390_vm3, %v2712_v31, 0.0  ;;  %v8957_v28 = vpop.eup %8956  ;;  %v2300_v22 = vmul.f32 %v8955_v3, %v8943_v61 }
0x1170   :  { %8966 = vrcp.f32 %v2475_v46  ;;  %2719 = vadd.xlane.f32.xlu0 %v2718_v58  ;;  %v8959_v39 = vpop.eup %8958  ;;  %v2302_v13 = vmul.f32 %v8957_v28, %v10258_v50  ;;  %v2484_v46 = vstv %s10295_s21  ;;  %s10385_s21 = sld [smem:[#allocation7 + $0xd]] }
0x1171   :  { %v8961_v10 = vpop.eup %8960  ;;  %v2422_v2 = vmul.f32 %v8959_v39, %v10266_v30  ;;  %v2305_v52 = vmul.f32 %v2304_v59, %v2300_v22 }
0x1172   :  { %v2482_v55 = vmul.f32 %v8961_v10, %v10271_v53  ;;  %v2306_v51 = vmul.f32 %v2304_v59, %v2302_v13 }
0x1173   :  { %v8754_v21 = vpop.permute.xlu1 %8753  ;;  %v2426_v50 = vmul.f32 %v2424_v56, %v2422_v2 }
0x1174   :  { %v8756_v5 = vunpack.i.h.bf16 %v8754_v21  ;;  %v8755_v48 = vunpack.i.l.bf16 %v8754_v21  ;;  %v2368_v39 = vadd.f32 %v2366_v38, %v2306_v51 }
0x1175   :  { %v8963_v19 = vpop.eup %8962 }
0x1176   :  { %v8965_v12 = vpop.eup %8964  ;;  %v2360_v44 = vmul.f32 %v8963_v19, %v8947_v41  ;;  %v8450_v9 = vpack.c.bf16 %v8756_v5, %v8755_v48  ;;  %v2671_v41 = vmul.f32 0.125, %v2667_v25  ;;  %v2428_v5 = vadd.f32 %v2426_v50, %v2368_v39 }
0x1177   :  { %v2420_v34 = vmul.f32 %v8965_v12, %v8949_v45  ;;  %v2486_v45 = vmul.f32 %v2484_v46, %v2482_v55 }
0x1178   :  { %8451 = vmatprep.subr.bf16.mxu0 %v8450_v9  ;;  %v2365_v61 = vmul.f32 %v2364_v24, %v2360_v44  ;;  %v10307_v10 = vsub.f32 %v9599_v16, %v2671_v41  ;;  %v387_v44 = vld [vmem:[%s11682_s12 + $0x10] sm:$0xff]  ;;  %v7479_v41 = vld [vmem:[%s11681_s11 + $0xc] sm:$0xf] }
0x1179   :  { %8453 = vmatpush3.bf16.msra.mxu0 %v8450_v9  ;;  %v2425_v31 = vmul.f32 %v2424_v56, %v2420_v34  ;;  %v2488_v60 = vadd.f32 %v2486_v45, %v2428_v5 }
0x117a   :  { %v8967_v58 = vpop.eup %8966  ;;  %v2367_v3 = vadd.f32 %v2365_v61, %v2305_v52  ;;  %v2675_v22 = vmul.f32 %v10307_v10, %v10307_v10  ;;  %8074 = vmatprep.subr.mxu0 %v387_v44 }
0x117b   :  { %v2480_v30 = vmul.f32 %v8967_v58, %v10278_v43 }
0x117c   :  { %v2427_v28 = vadd.f32 %v2425_v31, %v2367_v3 }
0x117d   :  { %v2485_v21 = vmul.f32 %v2484_v46, %v2480_v30 }
0x117f   :  { %v2487_v53 = vadd.f32 %v2485_v21, %v2427_v28 }
0x1181   :  { %8071 = vmatprep.mubr.msk.f32.mxu0 %vm760_vm6, %v2487_v53 }
0x1182   :  { %8072 = vmatmul.mubr.msk.f32.vlgmr.msra.gmra.mrb[14].mxu0 %vm760_vm6, %v2488_v60 }
0x1183   :  { %8075 = vmatpush3.msra.mxu0 %v387_v44 }
0x1184   :  { %8086 = vmatprep.subr.msk.mxu0 %vm390_vm3, %v7479_v41 }
0x1186   :  { %2679 = vrot.lane.b32.xlu0 %v2675_v22, %s9318_s9 }
0x119f   :  { %v2670_v43 = vpop.xlane.xlu0 %2669 }
0x11a0   :  { %v2672_v25 = vmul.f32 0.125, %v2670_v43 }
0x11a2   :  { %v2674_v48 = vsub.f32 %v9603_v18, %v2672_v25 }
0x11a3   :  { %v2717_v19 = vpop.xlane.xlu0 %2716 }
0x11a4   :  { %v2676_v24 = vmul.f32 %v2674_v48, %v2674_v48  ;;  %v2721_v12 = vmul.f32 0.125, %v2717_v19 }
0x11a6   :  { %v10316_v13 = vsub.f32 %v9599_v16, %v2721_v12  ;;  %2681 = vrot.lane.b32.xlu1 %v2676_v24, %s9318_s9 }
0x11a8   :  { %v2725_v2 = vmul.f32 %v10316_v13, %v10316_v13 }
0x11aa   :  { %2729 = vrot.lane.b32.xlu1 %v2725_v2, %s9319_s26 }
0x11fd   :  { %v2720_v9 = vpop.xlane.xlu0 %2719 }
0x11fe   :  { %v2722_v34 = vmul.f32 0.125, %v2720_v9 }
0x1200   :  { %v2724_v59 = vsub.f32 %v9603_v18, %v2722_v34 }
0x1201   :  { %v2680_v52 = vpop.permute.xlu0 %2679 }
0x1202   :  { %v2726_v56 = vmul.f32 %v2724_v59, %v2724_v59  ;;  %v2685_v61 = vsel %vm390_vm3, %v2680_v52, 0.0 }
0x1204   :  { %2731 = vrot.lane.b32.xlu1 %v2726_v56, %s9319_s26 }
0x1218   :  { %v2682_v16 = vpop.permute.xlu1 %2681 }
0x1219   :  { %v2688_v55 = vsel %vm390_vm3, %v2682_v16, 0.0 }
0x121a   :  { %2689 = vadd.xlane.f32.xlu0 %v2688_v55 }
0x121c   :  { %v2730_v31 = vpop.permute.xlu1 %2729 }
0x121d   :  { %v2735_v46 = vsel %vm390_vm3, %v2730_v31, 0.0 }
0x1228   :  { %2686 = vadd.xlane.f32.xlu1 %v2685_v61 }
0x1230   :  { %2699 = vrot.lane.b32.xlu0 %v10091_v15, %s11744_s0 }
0x1239   :  { %2704 = vrot.lane.b32.xlu1 %v10098_v42, %s11744_s0  ;;  %s10404_s0 = sld [smem:[#allocation2 + $0xf]] }
0x1255   :  { %v8073_v38 = vpop.f32.mrb[14].mxu0 }
0x1256   :  { %v2567_v18 = vpop.f32.mrb[15].mxu0 }
0x1257   :  { %8076 = vmatprep.mubr.msk.f32.mxu0 %vm390_vm3, %v2567_v18 }
0x1258   :  { %8077 = vmatmul.mubr.msk.f32.vlgmr.msra.gmra.mrb[6].mxu0 %vm390_vm3, %v8073_v38 }
0x1259   :  { %8087 = vmatpush3.xpose.msk.msra.mxu0 %vm390_vm3, %v7479_v41 }
0x125a   :  { %8460 = vmatprep.subr.bf16.mxu0 %v11773_v54 }
0x125d   :  { %2736 = vadd.xlane.f32.xlu1 %v2735_v46 }
0x126e   :  { %2754 = vrot.lane.b32.xlu1 %v10098_v42, %s11780_s22 }
0x1276   :  { %v2732_v58 = vpop.permute.xlu1 %2731 }
0x1277   :  { %v2738_v51 = vsel %vm390_vm3, %v2732_v58, 0.0 }
0x1278   :  { %2739 = vadd.xlane.f32.xlu0 %v2738_v51 }
0x128e   :  { %2749 = vrot.lane.b32.xlu0 %v10091_v15, %s11780_s22 }
0x12a7   :  { %v2690_v3 = vpop.xlane.xlu0 %2689 }
0x12a8   :  { %v2692_v50 = vmul.f32 0.125, %v2690_v3 }
0x12aa   :  { %v2694_v30 = vadd.f32 1e-05, %v2692_v50 }
0x12ab   :  { %v2700_v39 = vpop.permute.xlu0 %2699 }
0x12ac   :  { %8968 = vrsqrt.f32 %v2694_v30 }
0x12b5   :  { %v2687_v42 = vpop.xlane.xlu1 %2686 }
0x12b6   :  { %v8969_v28 = vpop.eup %8968  ;;  %v2691_v45 = vmul.f32 0.125, %v2687_v42 }
0x12b7   :  { %v2698_v21 = vmul.f32 %v8969_v28, %v2674_v48 }
0x12b8   :  { %v2693_v15 = vadd.f32 1e-05, %v2691_v45 }
0x12b9   :  { %v2703_v5 = vmul.f32 %v2700_v39, %v2698_v21  ;;  %v2705_v53 = vpop.permute.xlu1 %2704 }
0x12ba   :  { %8970 = vrsqrt.f32 %v2693_v15 }
0x12bb   :  { %v2708_v60 = vadd.f32 %v2705_v53, %v2703_v5 }
0x12bd   :  { %2763 = vrot.lane.b32.xlu0 %v2708_v60, %s9318_s9 }
0x12c4   :  { %v8971_v22 = vpop.eup %8970 }
0x12c5   :  { %v2697_v43 = vmul.f32 %v8971_v22, %v10307_v10 }
0x12c7   :  { %v2702_v25 = vmul.f32 %v2700_v39, %v2697_v43  ;;  %v3023_v43 = vstv %s10377_s27  ;;  %s10416_s27 = sld [smem:[#allocation7 + $0xf]] }
0x12c9   :  { %v2707_v19 = vadd.f32 %v2705_v53, %v2702_v25  ;;  %v3083_v25 = vstv %s10379_s1  ;;  %s10418_s1 = sld [smem:[#allocation5 + $0xf]] }
0x12cb   :  { %2761 = vrot.lane.b32.xlu1 %v2707_v19, %s9318_s9  ;;  %v3091_v19 = vstv %s10381_s7  ;;  %s7547_s7 = sld [smem:[#allocation8 + $0x10]] }
0x12ea   :  { %v2737_v24 = vpop.xlane.xlu1 %2736 }
0x12eb   :  { %v2741_v12 = vmul.f32 0.125, %v2737_v24  ;;  %v3031_v24 = vstv %s10383_s10  ;;  %s7555_s10 = sld [smem:[#allocation8 + $0x12]] }
0x12ed   :  { %v2743_v2 = vadd.f32 1e-05, %v2741_v12 }
0x12ee   :  { %v2755_v10 = vpop.permute.xlu1 %2754 }
0x12ef   :  { %8972 = vrsqrt.f32 %v2743_v2 }
0x12f9   :  { %v8973_v34 = vpop.eup %8972 }
0x12fa   :  { %v2747_v16 = vmul.f32 %v8973_v34, %v10316_v13 }
0x1305   :  { %v2740_v44 = vpop.xlane.xlu0 %2739 }
0x1306   :  { %v2742_v48 = vmul.f32 0.125, %v2740_v44 }
0x1308   :  { %v2744_v9 = vadd.f32 1e-05, %v2742_v48  ;;  %v3087_v48 = vstv %s10385_s21  ;;  %s10468_s21 = sld [smem:[#allocation8 + $0xc]] }
0x1309   :  { %v2750_v56 = vpop.permute.xlu0 %2749 }
0x130a   :  { %8974 = vrsqrt.f32 %v2744_v9  ;;  %v2752_v61 = vmul.f32 %v2750_v56, %v2747_v16  ;;  %v3027_v9 = vstv %s10387_s25  ;;  %s7493_s25 = sld [smem:[#allocation8 + $0xd]] }
0x130c   :  { %v2757_v18 = vadd.f32 %v2755_v10, %v2752_v61  ;;  %v3033_v61 = vmul.f32 %v10175_v1, %v3031_v24 }
0x1314   :  { %v8975_v55 = vpop.eup %8974 }
0x1315   :  { %v2748_v52 = vmul.f32 %v8975_v55, %v2724_v59 }
0x1317   :  { %v2753_v38 = vmul.f32 %v2750_v56, %v2748_v52  ;;  %v3093_v52 = vmul.f32 %v10175_v1, %v3091_v19 }
0x1319   :  { %v2758_v31 = vadd.f32 %v2755_v10, %v2753_v38 }
0x131b   :  { %v8757_v46 = vpack.i.bf16 %v2758_v31, %v2757_v18  ;;  %v3143_v18 = vstv %s10389_s28  ;;  %s10470_s28 = sld [smem:[#allocation8 + $0xe]] }
0x131d   :  { %8758 = vrot.lane.b32.xlu1 %v8757_v46, %s9319_s26 }
0x132f   :  { %v2764_v51 = vpop.permute.xlu0 %2763 }
0x133d   :  { %v2762_v58 = vpop.permute.xlu1 %2761 }
0x133e   :  { %8083 = vmatprep.mubr.msk.f32.mxu1 %vm390_vm3, %v2762_v58  ;;  %8088 = vmatprep.mubr.msk.f32.mxu0 %vm390_vm3, %v2762_v58  ;;  %v3151_v58 = vstv %s10393_s30  ;;  %s10472_s30 = sld [smem:[#allocation8 + $0xf]] }
0x133f   :  { %8089 = vmatmul.mubr.msk.f32.vlgmr.msra.gmra.mrb[16].mxu0 %vm390_vm3, %v2764_v51 }
0x1340   :  { %8095 = vmatprep.mubr.msk.f32.mxu0 %vm9304_vm4, %v11774_v8 }
0x138f   :  { %v8759_v13 = vpop.permute.xlu1 %8758 }
0x1390   :  { %v8761_v59 = vunpack.i.h.bf16 %v8759_v13  ;;  %v8760_v3 = vunpack.i.l.bf16 %v8759_v13 }
0x1392   :  { %v8454_v50 = vpack.c.bf16 %v8761_v59, %v8760_v3 }
0x1394   :  { %8456 = vmatprep.subr.msk.bf16.mxu1 %vm9665_vm5, %v8454_v50  ;;  %8463 = vmatpush3.bf16.xpose.msk.msra.mxu0 %vm9665_vm5, %v8454_v50 }
0x1395   :  { %8459 = vmatpush3.bf16.xpose.msk.msra.mxu1 %vm9665_vm5, %v8454_v50  ;;  %v3032_v50 = vmul.f32 %v10206_v40, %v3031_v24 }
0x139b   :  { %8096 = vmatmul.mubr.msk.f32.vlgmr.msra.gmra.mrb[18].mxu0 %vm390_vm3, %v7479_v41 }
0x139c   :  { %8084 = vmatmul.mubr.msk.f32.vlgmr.msra.gmra.mrb[14].mxu1 %vm390_vm3, %v2764_v51 }
0x1412   :  { %v8090_v30 = vpop.f32.mrb[16].mxu0 }
0x1413   :  { %3072 = vperm.xlu0 %8763, %v8090_v30   ;;  %3012 = vperm.xlu1 %8762, %v8090_v30   ;;  %v2925_v42 = vpop.f32.mrb[17].mxu0 }
0x1417   :  { %8765 = vset.pattern.permute.xlu0 %v11775_v32  ;;  %8764 = vset.pattern.permute.xlu1 %v11776_v47 }
0x1418   :  { %3132 = vperm.xlu1 %8764, %v8090_v30   ;;  %3007 = vperm.xlu0 %8765, %v2925_v42  }
0x141c   :  { %8766 = vset.pattern.permute.xlu1 %v11777_v33  ;;  %8768 = vset.pattern.permute.xlu0 %v11778_v0 }
0x141d   :  { %3068 = vperm.xlu1 %8766, %v2925_v42   ;;  %3188 = vperm.xlu0 %8768, %v2925_v42  }
0x1421   :  { %8767 = vset.pattern.permute.xlu1 %v11776_v47  ;;  %8780 = vset.pattern.permute.xlu0 %v11775_v32 }
0x1422   :  { %3128 = vperm.xlu1 %8767, %v2925_v42  }
0x1426   :  { %8769 = vset.pattern.permute.xlu1 %v11778_v0 }
0x1427   :  { %3192 = vperm.xlu1 %8769, %v8090_v30   ;;  %v3147_v30 = vstv %s10397_s20  ;;  %s11783_s20 = smov 32  }
0x142b   :  { %8781 = vset.pattern.permute.xlu1 %v11775_v32 }
0x146e   :  { %v3000_v41 = vpop.f32.mrb[18].mxu0 }
0x146f   :  { %v10373_v28 = vpop.f32.mrb[14].mxu1  ;;  %v8097_v45 = vpop.f32.mrb[19].mxu0  ;;  %v3020_v21 = vrot.slane %v3000_v41, %v9709_v57  ;;  %v3080_v15 = vrot.slane %v3000_v41, %v9718_v62  ;;  %v3140_v44 = vrot.slane %v3000_v41, %v9720_v63 }
0x1470   :  { %v10375_v39 = vpop.f32.mrb[15].mxu1 }
0x1492   :  { %v3073_v5 = vpop.permute.xlu0 %3072  ;;  %v3013_v53 = vpop.permute.xlu1 %3012 }
0x1493   :  { %v3076_v60 = vsub.f32 %v10373_v28, %v3073_v5  ;;  %v3016_v22 = vsub.f32 %v10373_v28, %v3013_v53 }
0x1495   :  { %v3022_v12 = vsub.f32 %v3016_v22, %v3020_v21  ;;  %v3082_v2 = vsub.f32 %v3076_v60, %v3080_v15  ;;  %v3200_v60 = vrot.slane %v3000_v41, %v9722_v27  ;;  %v3153_v22 = vmul.f32 %v10175_v1, %v3151_v58 }
0x1497   :  { %v3133_v34 = vpop.permute.xlu1 %3132  ;;  %v3008_v56 = vpop.permute.xlu0 %3007  ;;  %v3025_v16 = vmul.f32 %v3023_v43, %v3022_v12  ;;  %v3085_v55 = vmul.f32 %v3083_v25, %v3082_v2 }
0x1498   :  { %v3136_v10 = vsub.f32 %v10373_v28, %v3133_v34  ;;  %v3015_v38 = vsub.f32 %v10375_v39, %v3008_v56  ;;  %v3203_v34 = vstv %s10404_s0  ;;  %s11781_s0 = smov 40  }
0x1499   :  { %v3089_v31 = vadd.f32 %v3087_v48, %v3085_v55  ;;  %v3029_v46 = vadd.f32 %v3027_v9, %v3025_v16 }
0x149a   :  { %v3142_v51 = vsub.f32 %v3136_v10, %v3140_v44  ;;  %v3021_v13 = vsub.f32 %v3015_v38, %v3020_v21 }
0x149b   :  { %v3095_v59 = vadd.f32 %v3093_v52, %v3089_v31  ;;  %v3035_v3 = vadd.f32 %v3033_v61, %v3029_v46  ;;  %v3092_v46 = vmul.f32 %v10206_v40, %v3091_v19 }
0x149c   :  { %v3145_v42 = vmul.f32 %v3143_v18, %v3142_v51  ;;  %v3024_v45 = vmul.f32 %v3023_v43, %v3021_v13  ;;  %v3069_v5 = vpop.permute.xlu1 %3068  ;;  %v3189_v53 = vpop.permute.xlu0 %3188 }
0x149d   :  { %v3075_v21 = vsub.f32 %v10375_v39, %v3069_v5  ;;  %v3195_v12 = vsub.f32 %v10375_v39, %v3189_v53  ;;  %v3097_v2 = vadd.f32 %v10198_v4, %v3095_v59  ;;  %v3037_v24 = vadd.f32 %v10198_v4, %v3035_v3 }
0x149e   :  { %v3028_v56 = vadd.f32 %v3027_v9, %v3024_v45  ;;  %v3149_v16 = vadd.f32 %v3147_v30, %v3145_v42  ;;  %v3207_v59 = vstv %s10416_s27  ;;  %v3211_v3 = vstv %s10418_s1  ;;  %s10714_s1 = sld [smem:[#allocation7 + $0x12]]  ;;  %s11786_s27 = smov 64  }
0x149f   :  { %v3081_v55 = vsub.f32 %v3075_v21, %v3080_v15  ;;  %v3201_v43 = vsub.f32 %v3195_v12, %v3200_v60  ;;  %v3101_v52 = vsel %vm760_vm6, %v3097_v2, -inf  ;;  %v3041_v41 = vsel %vm760_vm6, %v3037_v24, -inf }
0x14a0   :  { %3102 = vmax.xlane.f32.xlu1 %v3101_v52  ;;  %3042 = vmax.xlane.f32.xlu0 %v3041_v41  ;;  %v3034_v61 = vadd.f32 %v3032_v50, %v3028_v56  ;;  %v3155_v10 = vadd.f32 %v3153_v22, %v3149_v16  ;;  %v3152_v22 = vmul.f32 %v10206_v40, %v3151_v58 }
0x14a1   :  { %v3084_v38 = vmul.f32 %v3083_v25, %v3081_v55  ;;  %v3129_v31 = vpop.permute.xlu1 %3128  ;;  %v3204_v51 = vmul.f32 %v3203_v34, %v3201_v43  ;;  %v3212_v21 = vmul.f32 %v10206_v40, %v3211_v3  ;;  %v3213_v58 = vmul.f32 %v10175_v1, %v3211_v3 }
0x14a2   :  { %v3135_v9 = vsub.f32 %v10375_v39, %v3129_v31  ;;  %v3036_v13 = vadd.f32 %v10238_v29, %v3034_v61  ;;  %v3157_v5 = vadd.f32 %v10198_v4, %v3155_v10 }
0x14a3   :  { %v3088_v15 = vadd.f32 %v3087_v48, %v3084_v38  ;;  %v3208_v19 = vadd.f32 %v3207_v59, %v3204_v51 }
0x14a4   :  { %v3141_v42 = vsub.f32 %v3135_v9, %v3140_v44  ;;  %v3038_v45 = vsel %vm760_vm6, %v3036_v13, -inf  ;;  %v3161_v12 = vsel %vm760_vm6, %v3157_v5, -inf }
0x14a5   :  { %3039 = vmax.xlane.f32.xlu1 %v3038_v45  ;;  %v3094_v50 = vadd.f32 %v3092_v46, %v3088_v15 }
0x14a6   :  { %v3144_v53 = vmul.f32 %v3143_v18, %v3141_v42  ;;  %v3193_v25 = vpop.permute.xlu1 %3192  ;;  %v3214_v18 = vadd.f32 %v3212_v21, %v3208_v19 }
0x14a7   :  { %v3196_v39 = vsub.f32 %v10373_v28, %v3193_v25  ;;  %v3096_v48 = vadd.f32 %v10238_v29, %v3094_v50 }
0x14a8   :  { %v3148_v44 = vadd.f32 %v3147_v30, %v3144_v53  ;;  %v3216_v41 = vadd.f32 %v10238_v29, %v3214_v18 }
0x14a9   :  { %v3202_v56 = vsub.f32 %v3196_v39, %v3200_v60  ;;  %3162 = vmax.xlane.f32.xlu1 %v3161_v12  ;;  %v3098_v16 = vsel %vm760_vm6, %v3096_v48, -inf }
0x14aa   :  { %3099 = vmax.xlane.f32.xlu0 %v3098_v16  ;;  %v3154_v55 = vadd.f32 %v3152_v22, %v3148_v44  ;;  %v3218_v60 = vsel %vm760_vm6, %v3216_v41, -inf }
0x14ab   :  { %v3205_v43 = vmul.f32 %v3203_v34, %v3202_v56 }
0x14ac   :  { %v3156_v52 = vadd.f32 %v10238_v29, %v3154_v55 }
0x14ad   :  { %v3209_v40 = vadd.f32 %v3207_v59, %v3205_v43 }
0x14ae   :  { %v3158_v28 = vsel %vm760_vm6, %v3156_v52, -inf }
0x14af   :  { %3159 = vmax.xlane.f32.xlu0 %v3158_v28  ;;  %v3215_v61 = vadd.f32 %v3213_v58, %v3209_v40 }
0x14b1   :  { %v3217_v30 = vadd.f32 %v10198_v4, %v3215_v61 }
0x14b3   :  { %3219 = vmax.xlane.f32.xlu0 %v3218_v60  ;;  %v3221_v10 = vsel %vm760_vm6, %v3217_v30, -inf  ;;  %v388_v60 = vld [vmem:[%s11682_s12 + $0x18] sm:$0xff] }
0x14b4   :  { %3222 = vmax.xlane.f32.xlu1 %v3221_v10  ;;  %8105 = vmatprep.subr.mxu0 %v388_v60 }
0x14b5   :  { %8106 = vmatpush3.msra.mxu0 %v388_v60 }
0x152d   :  { %v3103_v34 = vpop.xlane.xlu1 %3102  ;;  %v3043_v38 = vpop.xlane.xlu0 %3042 }
0x152e   :  { %v3105_v1 = vsub.f32 %v3097_v2, %v3103_v34  ;;  %v3045_v31 = vsub.f32 %v3037_v24, %v3043_v38 }
0x1530   :  { %v3108_v46 = vmul.f32 1.442695, %v3105_v1  ;;  %v3048_v51 = vmul.f32 1.442695, %v3045_v31 }
0x1532   :  { %8976 = vpow2.f32 %v3108_v46  ;;  %v3040_v9 = vpop.xlane.xlu1 %3039 }
0x1533   :  { %8978 = vpow2.f32 %v3048_v51  ;;  %v3044_v29 = vsub.f32 %v3036_v13, %v3040_v9 }
0x1535   :  { %v3046_v15 = vmul.f32 1.442695, %v3044_v29 }
0x1536   :  { %v3163_v59 = vpop.xlane.xlu1 %3162 }
0x1537   :  { %8980 = vpow2.f32 %v3046_v15  ;;  %v3165_v4 = vsub.f32 %v3157_v5, %v3163_v59  ;;  %v3100_v3 = vpop.xlane.xlu0 %3099 }
0x1538   :  { %v3104_v42 = vsub.f32 %v3096_v48, %v3100_v3 }
0x1539   :  { %v3168_v45 = vmul.f32 1.442695, %v3165_v4 }
0x153a   :  { %v3106_v50 = vmul.f32 1.442695, %v3104_v42 }
0x153c   :  { %v10449_v53 = vpop.eup %8976  ;;  %8982 = vpow2.f32 %v3106_v50  ;;  %v3160_v25 = vpop.xlane.xlu0 %3159 }
0x153d   :  { %v10451_v2 = vpop.eup %8978  ;;  %v3164_v24 = vsub.f32 %v3156_v52, %v3160_v25  ;;  %v3113_v22 = vsel %vm760_vm6, %v10449_v53, 0.0  ;;  %8984 = vpow2.f32 %v3168_v45 }
0x153e   :  { %v3053_v13 = vsel %vm760_vm6, %v10451_v2, 0.0  ;;  %3114 = vadd.xlane.f32.xlu1 %v3113_v22 }
0x153f   :  { %v3166_v5 = vmul.f32 1.442695, %v3164_v24  ;;  %3054 = vadd.xlane.f32.xlu0 %v3053_v13  ;;  %v3061_v13 = vstv %s10468_s21  ;;  %s7544_s21 = sld [smem:[#allocation2 + $0x10]] }
0x1540   :  { %v3220_v19 = vpop.xlane.xlu0 %3219 }
0x1541   :  { %v8981_v21 = vpop.eup %8980  ;;  %8986 = vpow2.f32 %v3166_v5  ;;  %v3224_v39 = vsub.f32 %v3216_v41, %v3220_v19  ;;  %v3223_v48 = vpop.xlane.xlu1 %3222  ;;  %v3121_v5 = vstv %s7493_s25  ;;  %s10687_s25 = sld [smem:[#allocation7 + $0x10]] }
0x1542   :  { %v3225_v12 = vsub.f32 %v3217_v30, %v3223_v48  ;;  %v3050_v44 = vsel %vm760_vm6, %v8981_v21, 0.0 }
0x1543   :  { %v3226_v56 = vmul.f32 1.442695, %v3224_v39  ;;  %3051 = vadd.xlane.f32.xlu0 %v3050_v44 }
0x1544   :  { %v3228_v16 = vmul.f32 1.442695, %v3225_v12  ;;  %v3181_v12 = vstv %s10470_s28  ;;  %s10691_s28 = sld [smem:[#allocation2 + $0x11]] }
0x1545   :  { %8988 = vpow2.f32 %v3226_v56 }
0x1546   :  { %v8983_v55 = vpop.eup %8982  ;;  %8990 = vpow2.f32 %v3228_v16 }
0x1547   :  { %v3110_v18 = vsel %vm760_vm6, %v8983_v55, 0.0  ;;  %v8985_v43 = vpop.eup %8984 }
0x1548   :  { %3111 = vadd.xlane.f32.xlu1 %v3110_v18  ;;  %v3173_v52 = vsel %vm760_vm6, %v8985_v43, 0.0 }
0x154b   :  { %v8987_v58 = vpop.eup %8986 }
0x154c   :  { %3174 = vadd.xlane.f32.xlu1 %v3173_v52  ;;  %v3170_v40 = vsel %vm760_vm6, %v8987_v58, 0.0 }
0x154d   :  { %3171 = vadd.xlane.f32.xlu0 %v3170_v40  ;;  %v3241_v40 = vstv %s10472_s30  ;;  %s10693_s30 = sld [smem:[#allocation5 + $0x11]] }
0x154f   :  { %v8989_v28 = vpop.eup %8988 }
0x1550   :  { %v8991_v41 = vpop.eup %8990  ;;  %v3230_v61 = vsel %vm760_vm6, %v8989_v28, 0.0 }
0x1551   :  { %3231 = vadd.xlane.f32.xlu0 %v3230_v61  ;;  %v3233_v30 = vsel %vm760_vm6, %v8991_v41, 0.0 }
0x1552   :  { %3234 = vadd.xlane.f32.xlu1 %v3233_v30 }
0x1567   :  { %8771 = vrot.lane.b32.xlu0 %v9824_v49, %s11781_s0 }
0x15cb   :  { %v3115_v34 = vpop.xlane.xlu1 %3114 }
0x15cc   :  { %v3055_v10 = vpop.xlane.xlu0 %3054  ;;  %8992 = vrcp.f32 %v3115_v34 }
0x15cd   :  { %8994 = vrcp.f32 %v3055_v10 }
0x15d0   :  { %v3052_v38 = vpop.xlane.xlu0 %3051 }
0x15d5   :  { %v3112_v1 = vpop.xlane.xlu1 %3111 }
0x15d6   :  { %8996 = vrcp.f32 %v3112_v1  ;;  %v8993_v49 = vpop.eup %8992 }
0x15d7   :  { %8998 = vrcp.f32 %v3052_v38  ;;  %v8995_v9 = vpop.eup %8994  ;;  %v3119_v45 = vmul.f32 %v8993_v49, %v10449_v53 }
0x15d8   :  { %v3059_v42 = vmul.f32 %v8995_v9, %v10451_v2 }
0x15d9   :  { %v3175_v31 = vpop.xlane.xlu1 %3174 }
0x15da   :  { %9000 = vrcp.f32 %v3175_v31  ;;  %v3172_v46 = vpop.xlane.xlu0 %3171  ;;  %v3063_v16 = vmul.f32 %v3061_v13, %v3059_v42 }
0x15db   :  { %9002 = vrcp.f32 %v3172_v46 }
0x15de   :  { %v3232_v51 = vpop.xlane.xlu0 %3231 }
0x15df   :  { %9004 = vrcp.f32 %v3232_v51  ;;  %v3235_v29 = vpop.xlane.xlu1 %3234 }
0x15e0   :  { %v8997_v15 = vpop.eup %8996  ;;  %9006 = vrcp.f32 %v3235_v29 }
0x15e1   :  { %v8999_v59 = vpop.eup %8998  ;;  %v3117_v4 = vmul.f32 %v8997_v15, %v8983_v55  ;;  %v3123_v55 = vmul.f32 %v3121_v5, %v3119_v45 }
0x15e2   :  { %v8772_v3 = vpop.permute.xlu0 %8771  ;;  %v3057_v22 = vmul.f32 %v8999_v59, %v8981_v21 }
0x15e3   :  { %v8774_v50 = vunpack.i.h.bf16 %v8772_v3  ;;  %v8773_v25 = vunpack.i.l.bf16 %v8772_v3  ;;  %v3122_v56 = vmul.f32 %v3121_v5, %v3117_v4  ;;  %v3125_v10 = vadd.f32 %v3123_v55, %v3063_v16 }
0x15e4   :  { %v9001_v24 = vpop.eup %9000  ;;  %v3062_v2 = vmul.f32 %v3061_v13, %v3057_v22 }
0x15e5   :  { %v9003_v19 = vpop.eup %9002  ;;  %v3179_v39 = vmul.f32 %v9001_v24, %v8985_v43  ;;  %v8464_v48 = vpack.c.bf16 %v8774_v50, %v8773_v25 }
0x15e6   :  { %v3177_v44 = vmul.f32 %v9003_v19, %v8987_v58  ;;  %v3124_v21 = vadd.f32 %v3122_v56, %v3062_v2  ;;  %v3462_v19 = vld [vmem:[%s11686_s16] sm:$0xff] }
0x15e7   :  { %8465 = vmatprep.subr.bf16.mxu1 %v8464_v48  ;;  %v3183_v52 = vmul.f32 %v3181_v12, %v3179_v39  ;;  %v3463_v39 = vld [vmem:[%s11686_s16 + $0x8] sm:$0xff] }
0x15e8   :  { %8467 = vmatpush3.bf16.msra.mxu1 %v8464_v48  ;;  %v3182_v18 = vmul.f32 %v3181_v12, %v3177_v44  ;;  %v3464_v48 = vld [vmem:[%s11686_s16 + $0x10] sm:$0xff]  ;;  %v8468_v12 = vpack.c.bf16 %v3463_v39, %v3462_v19  ;;  %v3465_v44 = vld [vmem:[%s11686_s16 + $0x18] sm:$0xff] }
0x15e9   :  { %v9005_v53 = vpop.eup %9004  ;;  %v3185_v1 = vadd.f32 %v3183_v52, %v3125_v10  ;;  %v8472_v56 = vpack.c.bf16 %v3465_v44, %v3464_v48  ;;  %v3622_v19 = vld [vmem:[%s11688_s18 + $0x70] sm:$0xff]  ;;  %v3623_v39 = vld [vmem:[%s11688_s18 + $0x78] sm:$0xff] }
0x15ea   :  { %v9007_v61 = vpop.eup %9006  ;;  %v3237_v30 = vmul.f32 %v9005_v53, %v8989_v28  ;;  %v3184_v34 = vadd.f32 %v3182_v18, %v3124_v21  ;;  %v7412_v28 = vld [vmem:[%s11683_s13] ss:$0 sm:$0xff]  ;;  %8469 = vmatprep.subr.bf16.mxu1 %v8468_v12  ;;  %v8504_v48 = vpack.c.bf16 %v3623_v39, %v3622_v19 }
0x15eb   :  { %v3239_v60 = vmul.f32 %v9007_v61, %v8991_v41  ;;  %v7506_v61 = vld [vmem:[%s11684_s14] ss:$0 sm:$0xff] }
0x15ec   :  { %v3242_v43 = vmul.f32 %v3241_v40, %v3237_v30  ;;  %v7507_v30 = vld [vmem:[%s11685_s15] ss:$0 sm:$0xff] }
0x15ed   :  { %v3243_v38 = vmul.f32 %v3241_v40, %v3239_v60 }
0x15ee   :  { %v3244_v58 = vadd.f32 %v3242_v43, %v3184_v34 }
0x15ef   :  { %v3245_v31 = vadd.f32 %v3243_v38, %v3185_v1 }
0x15f0   :  { %8102 = vmatprep.mubr.msk.f32.mxu1 %vm760_vm6, %v3244_v58  ;;  %v3608_v58 = vld [vmem:[%s11688_s18] sm:$0xff] }
0x15f1   :  { %8103 = vmatmul.mubr.msk.f32.vlgmr.msra.gmra.mrb[16].mxu1 %vm760_vm6, %v3245_v31  ;;  %v3609_v31 = vld [vmem:[%s11688_s18 + $0x8] sm:$0xff] }
0x15f2   :  { %8471 = vmatpush3.bf16.msra.mxu1 %v8468_v12  ;;  %v7508_v12 = vld [vmem:[%s11687_s17] ss:$0 sm:$0xff] }
0x15f3   :  { %8473 = vmatprep.subr.bf16.mxu1 %v8472_v56 }
0x15f6   :  { %8475 = vmatpush3.bf16.msra.mxu1 %v8472_v56 }
0x16c4   :  { %v8104_v46 = vpop.f32.mrb[16].mxu1 }
0x16c5   :  { %v3324_v49 = vpop.f32.mrb[17].mxu1 }
0x16c6   :  { %8107 = vmatprep.mubr.msk.f32.mxu0 %vm390_vm3, %v3324_v49  ;;  %v3610_v49 = vld [vmem:[%s11688_s18 + $0x10] sm:$0xff] }
0x16c7   :  { %8108 = vmatmul.mubr.msk.f32.vlgmr.msra.gmra.mrb[6].mxu0 %vm390_vm3, %v8104_v46  ;;  %v8476_v46 = vpack.c.bf16 %v3609_v31, %v3608_v58 }
0x16c9   :  { %8477 = vmatprep.subr.bf16.mxu0 %v8476_v46 }
0x16ca   :  { %8479 = vmatpush3.bf16.msra.mxu0 %v8476_v46 }
0x179a   :  { %v8109_v41 = vpop.f32.mrb[6].mxu0 }
0x179b   :  { %v3405_v51 = vpop.f32.mrb[7].mxu0  ;;  %v8660_v9 = vadd.f32 %v8109_v41, %v7412_v28 }
0x179c   :  { %v8661_v29 = vadd.f32 %v7412_v28, %v3405_v51  ;;  %v3611_v28 = vld [vmem:[%s11688_s18 + $0x18] sm:$0xff]  ;;  %v3612_v51 = vld [vmem:[%s11688_s18 + $0x20] sm:$0xff] }
0x179d   :  { %v10490_v59 = vadd.f32 %v8660_v9, %v9566_v37  ;;  %v8480_v41 = vpack.c.bf16 %v3611_v28, %v3610_v49  ;;  %v3613_v9 = vld [vmem:[%s11688_s18 + $0x28] sm:$0xff] }
0x179e   :  { %v10487_v15 = vadd.f32 %v8661_v29, %v9564_v36  ;;  %v8484_v29 = vpack.c.bf16 %v3613_v9, %v3612_v51 }
0x179f   :  { %v3423_v3 = vsel %vm247_vm2, %v10490_v59, 0.0  ;;  %8481 = vmatprep.subr.bf16.mxu0 %v8480_v41 }
0x17a0   :  { %v3420_v4 = vsel %vm247_vm2, %v10487_v15, 0.0  ;;  %8483 = vmatpush3.bf16.msra.mxu0 %v8480_v41 }
0x17a1   :  { %3421 = vadd.xlane.f32.xlu1 %v3420_v4  ;;  %8485 = vmatprep.subr.bf16.mxu0 %v8484_v29  ;;  %v3614_v4 = vld [vmem:[%s11688_s18 + $0x30] sm:$0xff] }
0x17a4   :  { %8487 = vmatpush3.bf16.msra.mxu0 %v8484_v29 }
0x17a5   :  { %3424 = vadd.xlane.f32.xlu1 %v3423_v3  ;;  %v3615_v3 = vld [vmem:[%s11688_s18 + $0x38] sm:$0xff] }
0x182e   :  { %v3422_v42 = vpop.xlane.xlu1 %3421 }
0x182f   :  { %v3426_v45 = vmul.f32 0.03125, %v3422_v42  ;;  %v8488_v42 = vpack.c.bf16 %v3615_v3, %v3614_v4 }
0x1831   :  { %v3428_v50 = vsub.f32 %v10487_v15, %v3426_v45  ;;  %8489 = vmatprep.subr.bf16.mxu0 %v8488_v42  ;;  %v3616_v45 = vld [vmem:[%s11688_s18 + $0x40] sm:$0xff] }
0x1832   :  { %v3425_v25 = vpop.xlane.xlu1 %3424  ;;  %8491 = vmatpush3.bf16.msra.mxu0 %v8488_v42 }
0x1833   :  { %v3427_v24 = vmul.f32 0.03125, %v3425_v25  ;;  %v3430_v22 = vmul.f32 %v3428_v50, %v3428_v50 }
0x1835   :  { %v3429_v36 = vsub.f32 %v10490_v59, %v3427_v24  ;;  %v3432_v37 = vsel %vm247_vm2, %v3430_v22, 0.0  ;;  %v3618_v24 = vld [vmem:[%s11688_s18 + $0x50] sm:$0xff]  ;;  %v3619_v22 = vld [vmem:[%s11688_s18 + $0x58] sm:$0xff] }
0x1836   :  { %3433 = vadd.xlane.f32.xlu1 %v3432_v37  ;;  %v3620_v37 = vld [vmem:[%s11688_s18 + $0x60] sm:$0xff] }
0x1837   :  { %v3431_v13 = vmul.f32 %v3429_v36, %v3429_v36 }
0x1839   :  { %v3435_v5 = vsel %vm247_vm2, %v3431_v13, 0.0  ;;  %v3621_v13 = vld [vmem:[%s11688_s18 + $0x68] sm:$0xff] }
0x183a   :  { %3436 = vadd.xlane.f32.xlu1 %v3435_v5  ;;  %v8500_v5 = vpack.c.bf16 %v3621_v13, %v3620_v37 }
0x18c3   :  { %v3434_v16 = vpop.xlane.xlu1 %3433 }
0x18c4   :  { %v3438_v55 = vmul.f32 0.03125, %v3434_v16 }
0x18c6   :  { %v3440_v2 = vadd.f32 1e-05, %v3438_v55 }
0x18c7   :  { %v3437_v18 = vpop.xlane.xlu1 %3436 }
0x18c8   :  { %9008 = vrsqrt.f32 %v3440_v2  ;;  %v3439_v53 = vmul.f32 0.03125, %v3437_v18 }
0x18ca   :  { %v3441_v52 = vadd.f32 1e-05, %v3439_v53 }
0x18cc   :  { %9010 = vrsqrt.f32 %v3441_v52 }
0x18d2   :  { %v9009_v40 = vpop.eup %9008 }
0x18d3   :  { %v3444_v21 = vmul.f32 %v9009_v40, %v3428_v50  ;;  %v3617_v50 = vld [vmem:[%s11688_s18 + $0x48] sm:$0xff] }
0x18d4   :  { %v8492_v25 = vpack.c.bf16 %v3617_v50, %v3616_v45 }
0x18d5   :  { %v3452_v60 = vmul.f32 %v7506_v61, %v3444_v21 }
0x18d6   :  { %v9011_v10 = vpop.eup %9010  ;;  %8493 = vmatprep.subr.bf16.mxu0 %v8492_v25 }
0x18d7   :  { %v3445_v34 = vmul.f32 %v9011_v10, %v3429_v36  ;;  %v3460_v43 = vadd.f32 %v7507_v30, %v3452_v60  ;;  %8495 = vmatpush3.bf16.msra.mxu0 %v8492_v25  ;;  %v8496_v36 = vpack.c.bf16 %v3619_v22, %v3618_v24 }
0x18d9   :  { %v3453_v38 = vmul.f32 %v7506_v61, %v3445_v34  ;;  %8118 = vmatprep.mubr.msk.f32.mxu1 %vm247_vm2, %v3460_v43  ;;  %8497 = vmatprep.subr.bf16.mxu0 %v8496_v36 }
0x18db   :  { %v3461_v1 = vadd.f32 %v7507_v30, %v3453_v38  ;;  %8499 = vmatpush3.bf16.msra.mxu0 %v8496_v36 }
0x18dc   :  { %8501 = vmatprep.subr.bf16.mxu0 %v8500_v5 }
0x18dd   :  { %8119 = vmatmul.mubr.msk.f32.vlgmr.msra.gmra.mrb[18].mxu1 %vm247_vm2, %v3461_v1 }
0x18df   :  { %8503 = vmatpush3.bf16.msra.mxu0 %v8500_v5 }
0x18e0   :  { %8505 = vmatprep.subr.bf16.mxu0 %v8504_v48 }
0x18e3   :  { %8507 = vmatpush3.bf16.msra.mxu0 %v8504_v48 }
0x19b0   :  { %v8120_v44 = vpop.f32.mrb[18].mxu1 }
0x19b1   :  { %v3551_v56 = vadd.f32 %v8120_v44, %v7508_v12  ;;  %v3545_v16 = vpop.f32.mrb[19].mxu1 }
0x19b2   :  { %v3546_v55 = vadd.f32 %v7508_v12, %v3545_v16 }
0x19b3   :  { %v3557_v2 = vmul.f32 0.70710677, %v3551_v56 }
0x19b4   :  { %v3556_v18 = vmul.f32 0.70710677, %v3546_v55 }
0x19b5   :  { %v3559_v53 = vand.u32 2147483647, %v3557_v2  ;;  %v3587_v60 = vsub.f32 0.0, %v3557_v2  ;;  %vm3599_vm7 = vcmp.ge.f32.partialorder %v3557_v2, 0.0 }
0x19b6   :  { %v3558_v52 = vand.u32 2147483647, %v3556_v18  ;;  %v3586_v10 = vsub.f32 0.0, %v3556_v18  ;;  %vm3598_vm8 = vcmp.ge.f32.partialorder %v3556_v18, 0.0 }
0x19b7   :  { %v3561_v40 = vmul.f32 0.3275911, %v3559_v53  ;;  %v3589_v43 = vmul.f32 %v3587_v60, %v3557_v2  ;;  %v3555_v60 = vmul.f32 0.5, %v3551_v56 }
0x19b8   :  { %v3560_v61 = vmul.f32 0.3275911, %v3558_v52  ;;  %v3588_v58 = vmul.f32 %v3586_v10, %v3556_v18 }
0x19b9   :  { %v3563_v21 = vadd.f32 1.0, %v3561_v40  ;;  %v3592_v49 = vmul.f32 1.442695, %v3589_v43  ;;  %v7511_v43 = vld [vmem:[%s11689_s19] ss:$0 sm:$0xff] }
0x19ba   :  { %v3562_v30 = vadd.f32 1.0, %v3560_v61  ;;  %v3590_v51 = vmul.f32 1.442695, %v3588_v58 }
0x19bb   :  { %9012 = vrcp.f32 %v3563_v21  ;;  %v3554_v21 = vmul.f32 0.5, %v3546_v55 }
0x19bc   :  { %9014 = vrcp.f32 %v3562_v30 }
0x19bd   :  { %9016 = vpow2.f32 %v3592_v49 }
0x19be   :  { %9018 = vpow2.f32 %v3590_v51 }
0x19c5   :  { %v9013_v34 = vpop.eup %9012 }
0x19c6   :  { %v3569_v38 = vmul.f32 1.0614054, %v9013_v34  ;;  %v9015_v1 = vpop.eup %9014 }
0x19c7   :  { %v3568_v46 = vmul.f32 1.0614054, %v9015_v1  ;;  %v9017_v13 = vpop.eup %9016 }
0x19c8   :  { %v3571_v31 = vadd.f32 -1.4531521, %v3569_v38  ;;  %v9019_v39 = vpop.eup %9018 }
0x19c9   :  { %v3570_v41 = vadd.f32 -1.4531521, %v3568_v46 }
0x19ca   :  { %v3573_v28 = vmul.f32 %v9013_v34, %v3571_v31 }
0x19cb   :  { %v3572_v29 = vmul.f32 %v9015_v1, %v3570_v41 }
0x19cc   :  { %v3575_v9 = vadd.f32 1.4214138, %v3573_v28 }
0x19cd   :  { %v3574_v3 = vadd.f32 1.4214138, %v3572_v29 }
0x19ce   :  { %v3577_v4 = vmul.f32 %v9013_v34, %v3575_v9 }
0x19cf   :  { %v3576_v45 = vmul.f32 %v9015_v1, %v3574_v3  ;;  %v7516_v3 = vld [vmem:[%s11763_s23 + $0x20] sm:$0xff] }
0x19d0   :  { %v3579_v42 = vadd.f32 -0.28449672, %v3577_v4 }
0x19d1   :  { %v3578_v25 = vadd.f32 -0.28449672, %v3576_v45  ;;  %v7518_v45 = vld [vmem:[%s11763_s23 + $0x30] sm:$0xff] }
0x19d2   :  { %v3581_v50 = vmul.f32 %v9013_v34, %v3579_v42  ;;  %v7517_v42 = vld [vmem:[%s11763_s23 + $0x28] sm:$0xff] }
0x19d3   :  { %v3580_v22 = vmul.f32 %v9015_v1, %v3578_v25  ;;  %v7519_v25 = vld [vmem:[%s11763_s23 + $0x38] sm:$0xff]  ;;  %s10685_s23 = sld [smem:[#allocation5 + $0x10]] }
0x19d4   :  { %v3583_v24 = vadd.f32 0.2548296, %v3581_v50  ;;  %v8508_v50 = vpack.c.bf16 %v7517_v42, %v7516_v3 }
0x19d5   :  { %v3582_v37 = vadd.f32 0.2548296, %v3580_v22 }
0x19d6   :  { %v3585_v36 = vmul.f32 %v9013_v34, %v3583_v24  ;;  %v8512_v24 = vpack.c.bf16 %v7519_v25, %v7518_v45  ;;  %8509 = vmatprep.subr.bf16.mxu1 %v8508_v50 }
0x19d7   :  { %v3584_v19 = vmul.f32 %v9015_v1, %v3582_v37  ;;  %8511 = vmatpush3.bf16.msra.mxu1 %v8508_v50 }
0x19d8   :  { %v3595_v5 = vmul.f32 %v9017_v13, %v3585_v36  ;;  %8513 = vmatprep.subr.bf16.mxu1 %v8512_v24 }
0x19d9   :  { %v3594_v12 = vmul.f32 %v9019_v39, %v3584_v19 }
0x19da   :  { %v3597_v48 = vsub.f32 1.0, %v3595_v5 }
0x19db   :  { %v3596_v16 = vsub.f32 1.0, %v3594_v12  ;;  %8515 = vmatpush3.bf16.msra.mxu1 %v8512_v24 }
0x19dc   :  { %v3601_v44 = vsub.f32 0.0, %v3597_v48 }
0x19dd   :  { %v3600_v52 = vsub.f32 0.0, %v3596_v16 }
0x19de   :  { %v3603_v53 = vsel %vm3599_vm7, %v3597_v48, %v3601_v44  ;;  %v7514_v48 = vld [vmem:[%s11764_s3 + $0x1] ss:$0 sm:$0xff]  ;;  %s11782_s3 = smov 96  }
0x19df   :  { %v3605_v40 = vadd.f32 1.0, %v3603_v53  ;;  %v3602_v61 = vsel %vm3598_vm8, %v3596_v16, %v3600_v52  ;;  %v7515_v44 = vld [vmem:[%s11765_s29 + $0x1] ss:$0 sm:$0xff]  ;;  %s10702_s29 = sld [smem:[#allocation2 + $0x12]] }
0x19e0   :  { %v3604_v30 = vadd.f32 1.0, %v3602_v61 }
0x19e1   :  { %v3607_v34 = vmul.f32 %v3605_v40, %v3555_v60 }
0x19e2   :  { %v3606_v10 = vmul.f32 %v3604_v30, %v3554_v21  ;;  %v7521_v30 = vld [vmem:[%s11766_s8 + $0x1] ss:$0 sm:$0xff]  ;;  %s10705_s8 = sld [smem:[#allocation5 + $0x12]] }
0x19e4   :  { %8153 = vmatprep.mubr.f32.mxu0 %v3606_v10 }
0x19e5   :  { %8154 = vmatmul.mubr.f32.vlgmr.msra.gmra.mrb[20].mxu0 %v3607_v34 }
0x1ab8   :  { %v8155_v38 = vpop.f32.mrb[20].mxu0 }
0x1ab9   :  { %v3703_v1 = vadd.f32 %v8155_v38, %v7511_v43  ;;  %v3697_v58 = vpop.f32.mrb[21].mxu0 }
0x1aba   :  { %v3698_v2 = vadd.f32 %v7511_v43, %v3697_v58 }
0x1abb   :  { %v10575_v31 = vadd.f32 %v3703_v1, %v10490_v59 }
0x1abc   :  { %v10578_v18 = vadd.f32 %v3698_v2, %v10487_v15 }
0x1abd   :  { %v3715_v56 = vsel %vm247_vm2, %v10575_v31, 0.0 }
0x1abe   :  { %3716 = vadd.xlane.f32.xlu0 %v3715_v56  ;;  %v3712_v55 = vsel %vm247_vm2, %v10578_v18, 0.0 }
0x1abf   :  { %3713 = vadd.xlane.f32.xlu1 %v3712_v55 }
0x1b4b   :  { %v3717_v46 = vpop.xlane.xlu0 %3716 }
0x1b4c   :  { %v3719_v49 = vmul.f32 0.03125, %v3717_v46  ;;  %v3714_v28 = vpop.xlane.xlu1 %3713 }
0x1b4d   :  { %v3718_v41 = vmul.f32 0.03125, %v3714_v28 }
0x1b4e   :  { %v3721_v51 = vsub.f32 %v10575_v31, %v3719_v49 }
0x1b4f   :  { %v3720_v59 = vsub.f32 %v10578_v18, %v3718_v41 }
0x1b50   :  { %v3723_v29 = vmul.f32 %v3721_v51, %v3721_v51 }
0x1b51   :  { %v3722_v9 = vmul.f32 %v3720_v59, %v3720_v59 }
0x1b52   :  { %v3727_v4 = vsel %vm247_vm2, %v3723_v29, 0.0  ;;  %v10632_v29 = vld [vmem:[%s11767_s2 + $0x1] ss:$0 sm:$0xff] }
0x1b53   :  { %v3724_v15 = vsel %vm247_vm2, %v3722_v9, 0.0 }
0x1b54   :  { %3725 = vadd.xlane.f32.xlu1 %v3724_v15 }
0x1b58   :  { %3728 = vadd.xlane.f32.xlu1 %v3727_v4 }
0x1be1   :  { %v3726_v22 = vpop.xlane.xlu1 %3725 }
0x1be2   :  { %v3730_v36 = vmul.f32 0.03125, %v3726_v22 }
0x1be4   :  { %v3732_v37 = vadd.f32 1e-05, %v3730_v36 }
0x1be5   :  { %v3729_v13 = vpop.xlane.xlu1 %3728 }
0x1be6   :  { %9020 = vrsqrt.f32 %v3732_v37  ;;  %v3731_v5 = vmul.f32 0.03125, %v3729_v13  ;;  %v10643_v37 = vld [vmem:[%s11768_s6 + $0x1] ss:$0 sm:$0xff] }
0x1be8   :  { %v3733_v19 = vadd.f32 1e-05, %v3731_v5 }
0x1bea   :  { %9022 = vrsqrt.f32 %v3733_v19 }
0x1bf0   :  { %v9021_v39 = vpop.eup %9020 }
0x1bf1   :  { %v3736_v12 = vmul.f32 %v9021_v39, %v3720_v59 }
0x1bf3   :  { %v3744_v16 = vmul.f32 %v7514_v48, %v3736_v12 }
0x1bf4   :  { %v9023_v53 = vpop.eup %9022 }
0x1bf5   :  { %v3737_v52 = vmul.f32 %v9023_v53, %v3721_v51  ;;  %v3752_v40 = vadd.f32 %v7515_v44, %v3744_v16 }
0x1bf7   :  { %v3745_v61 = vmul.f32 %v7514_v48, %v3737_v52  ;;  %8164 = vmatprep.mubr.msk.f32.mxu1 %vm247_vm2, %v3752_v40 }
0x1bf9   :  { %v3753_v21 = vadd.f32 %v7515_v44, %v3745_v61 }
0x1bfb   :  { %8165 = vmatmul.mubr.msk.f32.vlgmr.msra.gmra.mrb[20].mxu1 %vm247_vm2, %v3753_v21 }
0x1cce   :  { %v8166_v60 = vpop.f32.mrb[20].mxu1 }
0x1ccf   :  { %v3839_v10 = vpop.f32.mrb[21].mxu1  ;;  %v10615_v43 = vadd.f32 %v8166_v60, %v7521_v30 }
0x1cd0   :  { %v10611_v34 = vadd.f32 %v7521_v30, %v3839_v10 }
0x1cd1   :  { %v3862_v2 = vsel %vm390_vm3, %v10615_v43, 0.0 }
0x1cd2   :  { %3903 = vrot.lane.b32.xlu1 %v10611_v34, %s11782_s3  ;;  %v3859_v15 = vsel %vm390_vm3, %v10611_v34, 0.0 }
0x1cd6   :  { %3905 = vrot.lane.b32.xlu1 %v10615_v43, %s11782_s3 }
0x1d44   :  { %v3904_v38 = vpop.permute.xlu1 %3903 }
0x1d45   :  { %v3909_v1 = vsel %vm390_vm3, %v3904_v38, 0.0 }
0x1d46   :  { %3910 = vadd.xlane.f32.xlu1 %v3909_v1 }
0x1d48   :  { %v3906_v58 = vpop.permute.xlu1 %3905 }
0x1d49   :  { %v3912_v56 = vsel %vm390_vm3, %v3906_v58, 0.0 }
0x1d4a   :  { %3863 = vadd.xlane.f32.xlu1 %v3862_v2  ;;  %3913 = vadd.xlane.f32.xlu0 %v3912_v56 }
0x1dd3   :  { %v3911_v55 = vpop.xlane.xlu1 %3910 }
0x1dd4   :  { %v3915_v46 = vmul.f32 0.125, %v3911_v55 }
0x1dd6   :  { %v3917_v49 = vsub.f32 %v10611_v34, %v3915_v46 }
0x1dd7   :  { %v3914_v28 = vpop.xlane.xlu0 %3913  ;;  %v3864_v4 = vpop.xlane.xlu1 %3863 }
0x1dd8   :  { %v3919_v41 = vmul.f32 %v3917_v49, %v3917_v49  ;;  %v3916_v51 = vmul.f32 0.125, %v3914_v28  ;;  %v3866_v3 = vmul.f32 0.125, %v3864_v4 }
0x1dda   :  { %v3918_v59 = vsub.f32 %v10615_v43, %v3916_v51  ;;  %3923 = vrot.lane.b32.xlu0 %v3919_v41, %s11782_s3  ;;  %v3868_v42 = vsub.f32 %v10615_v43, %v3866_v3 }
0x1ddc   :  { %v3920_v9 = vmul.f32 %v3918_v59, %v3918_v59  ;;  %v3870_v45 = vmul.f32 %v3868_v42, %v3868_v42 }
0x1dde   :  { %3925 = vrot.lane.b32.xlu0 %v3920_v9, %s11782_s3  ;;  %v3874_v50 = vsel %vm390_vm3, %v3870_v45, 0.0 }
0x1dfd   :  { %3860 = vadd.xlane.f32.xlu0 %v3859_v15 }
0x1e13   :  { %3948 = vrot.lane.b32.xlu0 %v10632_v29, %s11783_s20 }
0x1e32   :  { %3875 = vadd.xlane.f32.xlu0 %v3874_v50 }
0x1e4c   :  { %v3924_v25 = vpop.permute.xlu0 %3923 }
0x1e4d   :  { %v3929_v36 = vsel %vm390_vm3, %v3924_v25, 0.0 }
0x1e50   :  { %v3926_v24 = vpop.permute.xlu0 %3925 }
0x1e51   :  { %v3932_v22 = vsel %vm390_vm3, %v3926_v24, 0.0 }
0x1e52   :  { %3933 = vadd.xlane.f32.xlu1 %v3932_v22 }
0x1e56   :  { %3930 = vadd.xlane.f32.xlu1 %v3929_v36 }
0x1e67   :  { %3943 = vrot.lane.b32.xlu1 %v10643_v37, %s11783_s20  ;;  %s11785_s20 = smov 88  }
0x1e8a   :  { %v3861_v13 = vpop.xlane.xlu0 %3860 }
0x1e8b   :  { %v3865_v5 = vmul.f32 0.125, %v3861_v13  ;;  %v7537_v13 = vld [vmem:[%s11681_s11 + $0x10] sm:$0xf] }
0x1e8d   :  { %v3867_v19 = vsub.f32 %v10611_v34, %v3865_v5 }
0x1e8e   :  { %v3949_v58 = vpop.permute.xlu0 %3948 }
0x1e8f   :  { %v3869_v39 = vmul.f32 %v3867_v19, %v3867_v19 }
0x1e91   :  { %v3871_v48 = vsel %vm390_vm3, %v3869_v39, 0.0 }
0x1e92   :  { %3872 = vadd.xlane.f32.xlu1 %v3871_v48 }
0x1edf   :  { %v3934_v12 = vpop.xlane.xlu1 %3933 }
0x1ee0   :  { %v3936_v44 = vmul.f32 0.125, %v3934_v12 }
0x1ee2   :  { %v3938_v16 = vadd.f32 1e-05, %v3936_v44 }
0x1ee3   :  { %v3931_v53 = vpop.xlane.xlu1 %3930 }
0x1ee4   :  { %9024 = vrsqrt.f32 %v3938_v16  ;;  %v3935_v52 = vmul.f32 0.125, %v3931_v53 }
0x1ee6   :  { %v3937_v40 = vadd.f32 1e-05, %v3935_v52 }
0x1ee7   :  { %v3944_v30 = vpop.permute.xlu1 %3943 }
0x1ee8   :  { %9026 = vrsqrt.f32 %v3937_v40 }
0x1eee   :  { %v9025_v61 = vpop.eup %9024 }
0x1eef   :  { %v3942_v21 = vmul.f32 %v9025_v61, %v3918_v59 }
0x1ef1   :  { %v3947_v38 = vmul.f32 %v3944_v30, %v3942_v21  ;;  %v4213_v21 = vstv %s7544_s21  ;;  %s7559_s21 = sld [smem:[#allocation8 + $0x13]] }
0x1ef2   :  { %v9027_v60 = vpop.eup %9026 }
0x1ef3   :  { %v3941_v10 = vmul.f32 %v9027_v60, %v3917_v49  ;;  %v3952_v56 = vadd.f32 %v3949_v58, %v3947_v38  ;;  %v3876_v49 = vpop.xlane.xlu0 %3875  ;;  %v4221_v60 = vstv %s10685_s23  ;;  %s10939_s23 = sld [smem:[#allocation7 + $0x16]] }
0x1ef4   :  { %v3878_v4 = vmul.f32 0.125, %v3876_v49 }
0x1ef5   :  { %v3946_v1 = vmul.f32 %v3944_v30, %v3941_v10 }
0x1ef6   :  { %v3880_v3 = vadd.f32 1e-05, %v3878_v4 }
0x1ef7   :  { %v3951_v2 = vadd.f32 %v3949_v58, %v3946_v1  ;;  %v4217_v58 = vstv %s10687_s25  ;;  %s10953_s25 = sld [smem:[#allocation2 + $0x17]] }
0x1ef9   :  { %v8775_v55 = vpack.i.bf16 %v3952_v56, %v3951_v2 }
0x1efb   :  { %8776 = vrot.lane.b32.xlu1 %v8775_v55, %s11782_s3  ;;  %s10696_s3 = sld [smem:[#allocation7 + $0x11]]  ;;  %v10710_v55 = vld [vmem:[%s11771_s4 + $0x8] sm:$0xff] }
0x1f1f   :  { %v3873_v46 = vpop.xlane.xlu1 %3872 }
0x1f20   :  { %v3877_v28 = vmul.f32 0.125, %v3873_v46  ;;  %v4223_v46 = vmul.f32 %v10710_v55, %v4221_v60 }
0x1f22   :  { %v3879_v41 = vadd.f32 1e-05, %v3877_v28 }
0x1f24   :  { %9028 = vrsqrt.f32 %v3879_v41 }
0x1f25   :  { %9030 = vrsqrt.f32 %v3880_v3  ;;  %v4277_v3 = vstv %s10696_s3  ;;  %s10759_s3 = sld [smem:[#allocation5 + $0x13]] }
0x1f2e   :  { %v9029_v51 = vpop.eup %9028 }
0x1f2f   :  { %v3883_v9 = vmul.f32 %v9029_v51, %v3867_v19  ;;  %v9031_v45 = vpop.eup %9030  ;;  %v4273_v51 = vstv %s10691_s28  ;;  %s11787_s28 = smov 8  }
0x1f30   :  { %v3884_v22 = vmul.f32 %v9031_v45, %v3868_v42 }
0x1f31   :  { %v3891_v15 = vmul.f32 %v10643_v37, %v3883_v9 }
0x1f32   :  { %v3892_v5 = vmul.f32 %v10643_v37, %v3884_v22  ;;  %v10725_v22 = vld [vmem:[%s11771_s4] sm:$0xff] }
0x1f33   :  { %v3899_v59 = vadd.f32 %v10632_v29, %v3891_v15  ;;  %v4281_v15 = vstv %s10693_s30  ;;  %s10757_s30 = sld [smem:[#allocation2 + $0x13]] }
0x1f34   :  { %v3900_v19 = vadd.f32 %v10632_v29, %v3892_v5  ;;  %v10732_v5 = vld [vmem:[%s11772_s24 + $0x8] sm:$0xff] }
0x1f35   :  { %8171 = vmatprep.mubr.msk.f32.mxu1 %vm390_vm3, %v3899_v59 }
0x1f6d   :  { %v8777_v50 = vpop.permute.xlu1 %8776 }
0x1f6e   :  { %v8779_v25 = vunpack.i.h.bf16 %v8777_v50  ;;  %v8778_v24 = vunpack.i.l.bf16 %v8777_v50 }
0x1f70   :  { %v8516_v36 = vpack.c.bf16 %v8779_v25, %v8778_v24  ;;  %v4283_v25 = vmul.f32 %v10710_v55, %v4281_v15 }
0x1f72   :  { %8518 = vmatprep.subr.msk.bf16.mxu1 %vm9665_vm5, %v8516_v36 }
0x1f73   :  { %8521 = vmatpush3.bf16.xpose.msk.msra.mxu1 %vm9665_vm5, %v8516_v36 }
0x1f74   :  { %8174 = vmatprep.subr.msk.mxu1 %vm390_vm3, %v7537_v13 }
0x1f7a   :  { %8172 = vmatmul.mubr.msk.f32.vlgmr.msra.gmra.mrb[22].mxu1 %vm390_vm3, %v3900_v19 }
0x1f7b   :  { %8175 = vmatpush3.xpose.msk.msra.mxu1 %vm390_vm3, %v7537_v13  ;;  %8176 = vmatprep.mubr.msk.f32.mxu1 %vm390_vm3, %v3899_v59 }
0x1f7c   :  { %8522 = vmatprep.subr.bf16.mxu1 %v11773_v54 }
0x1f7e   :  { %8177 = vmatmul.mubr.msk.f32.vlgmr.msra.gmra.mrb[24].mxu1 %vm390_vm3, %v3900_v19 }
0x1f7f   :  { %8525 = vmatpush3.bf16.xpose.msk.msra.mxu1 %vm9665_vm5, %v8516_v36  ;;  %8183 = vmatprep.mubr.msk.f32.mxu1 %vm9304_vm4, %v11774_v8  ;;  %v4222_v36 = vmul.f32 %v10725_v22, %v4221_v60 }
0x1f86   :  { %8184 = vmatmul.mubr.msk.f32.vlgmr.msra.gmra.mrb[26].mxu1 %vm390_vm3, %v7537_v13 }
0x204d   :  { %v10673_v42 = vpop.f32.mrb[22].mxu1 }
0x204e   :  { %v10675_v39 = vpop.f32.mrb[23].mxu1 }
0x2051   :  { %v8178_v48 = vpop.f32.mrb[24].mxu1 }
0x2052   :  { %4202 = vperm.xlu1 %8781, %v8178_v48   ;;  %v4115_v12 = vpop.f32.mrb[25].mxu1 }
0x2053   :  { %4197 = vperm.xlu0 %8780, %v4115_v12  }
0x2056   :  { %8782 = vset.pattern.permute.xlu1 %v11777_v33 }
0x2057   :  { %4262 = vperm.xlu1 %8782, %v8178_v48  }
0x2059   :  { %v10678_v44 = vpop.f32.mrb[26].mxu1 }
0x205a   :  { %v8185_v16 = vpop.f32.mrb[27].mxu1  ;;  %v4210_v53 = vrot.slane %v10678_v44, %v9709_v57  ;;  %v4270_v1 = vrot.slane %v10678_v44, %v9718_v62  ;;  %v4330_v49 = vrot.slane %v10678_v44, %v9720_v63 }
0x205b   :  { %8783 = vset.pattern.permute.xlu1 %v11776_v47  ;;  %v4341_v16 = vstv %s10705_s8  ;;  %s11784_s8 = smov 120  }
0x205c   :  { %4322 = vperm.xlu1 %8783, %v8178_v48  }
0x2060   :  { %8784 = vset.pattern.permute.xlu1 %v11777_v33 }
0x2061   :  { %4258 = vperm.xlu1 %8784, %v4115_v12  }
0x2065   :  { %8785 = vset.pattern.permute.xlu1 %v11776_v47 }
0x2066   :  { %4318 = vperm.xlu1 %8785, %v4115_v12  }
0x206a   :  { %8786 = vset.pattern.permute.xlu1 %v11778_v0 }
0x206b   :  { %4378 = vperm.xlu1 %8786, %v4115_v12  }
0x206f   :  { %4382 = vperm.xlu1 %8786, %v8178_v48   ;;  %v4333_v48 = vstv %s10702_s29  ;;  %s10764_s29 = sld [smem:[#allocation7 + $0x13]] }
0x2073   :  { %8797 = vset.pattern.permute.xlu1 %v11777_v33 }
0x20d1   :  { %v4203_v52 = vpop.permute.xlu1 %4202 }
0x20d2   :  { %v4206_v40 = vsub.f32 %v10673_v42, %v4203_v52  ;;  %v4198_v61 = vpop.permute.xlu0 %4197 }
0x20d3   :  { %v4205_v30 = vsub.f32 %v10675_v39, %v4198_v61 }
0x20d4   :  { %v4212_v10 = vsub.f32 %v4206_v40, %v4210_v53 }
0x20d5   :  { %v4211_v38 = vsub.f32 %v4205_v30, %v4210_v53 }
0x20d6   :  { %v4215_v2 = vmul.f32 %v4213_v21, %v4212_v10  ;;  %v4263_v56 = vpop.permute.xlu1 %4262  ;;  %v4343_v10 = vmul.f32 %v10710_v55, %v4341_v16 }
0x20d7   :  { %v4214_v28 = vmul.f32 %v4213_v21, %v4211_v38  ;;  %v4266_v41 = vsub.f32 %v10673_v42, %v4263_v56  ;;  %v4337_v21 = vstv %s10714_s1  ;;  %s7551_s1 = sld [smem:[#allocation8 + $0x11]] }
0x20d8   :  { %v4219_v9 = vadd.f32 %v4217_v58, %v4215_v2 }
0x20d9   :  { %v4272_v59 = vsub.f32 %v4266_v41, %v4270_v1  ;;  %v4218_v24 = vadd.f32 %v4217_v58, %v4214_v28  ;;  %v10752_v28 = vld [vmem:[%s11772_s24] sm:$0xff] }
0x20da   :  { %v4225_v4 = vadd.f32 %v4223_v46, %v4219_v9 }
0x20db   :  { %v4275_v45 = vmul.f32 %v4273_v51, %v4272_v59  ;;  %v4323_v50 = vpop.permute.xlu1 %4322  ;;  %v4224_v61 = vadd.f32 %v4222_v36, %v4218_v24 }
0x20dc   :  { %v4326_v13 = vsub.f32 %v10673_v42, %v4323_v50  ;;  %v10735_v19 = vadd.f32 %v10732_v5, %v4225_v4 }
0x20dd   :  { %v4279_v12 = vadd.f32 %v4277_v3, %v4275_v45  ;;  %v10755_v41 = vadd.f32 %v10752_v28, %v4224_v61 }
0x20de   :  { %v4332_v53 = vsub.f32 %v4326_v13, %v4330_v49  ;;  %v4231_v52 = vsel %vm760_vm6, %v10735_v19, -inf }
0x20df   :  { %4232 = vmax.xlane.f32.xlu1 %v4231_v52  ;;  %v4285_v40 = vadd.f32 %v4283_v25, %v4279_v12  ;;  %v4228_v25 = vsel %vm760_vm6, %v10755_v41, -inf }
0x20e0   :  { %v4335_v30 = vmul.f32 %v4333_v48, %v4332_v53  ;;  %v4259_v60 = vpop.permute.xlu1 %4258  ;;  %v4342_v53 = vmul.f32 %v10725_v22, %v4341_v16 }
0x20e1   :  { %v4265_v38 = vsub.f32 %v10675_v39, %v4259_v60  ;;  %v10745_v58 = vadd.f32 %v10732_v5, %v4285_v40  ;;  %v4390_v40 = vrot.slane %v10678_v44, %v9722_v27 }
0x20e2   :  { %v4339_v2 = vadd.f32 %v4337_v21, %v4335_v30  ;;  %v4401_v30 = vstv %s10759_s3  ;;  %s10962_s3 = sld [smem:[#allocation7 + $0x17]] }
0x20e3   :  { %v4271_v56 = vsub.f32 %v4265_v38, %v4270_v1  ;;  %v4291_v46 = vsel %vm760_vm6, %v10745_v58, -inf  ;;  %v4282_v1 = vmul.f32 %v10725_v22, %v4281_v15 }
0x20e4   :  { %4292 = vmax.xlane.f32.xlu1 %v4291_v46  ;;  %v4345_v9 = vadd.f32 %v4343_v10, %v4339_v2  ;;  %v4397_v2 = vstv %s10764_s29  ;;  %s10916_s29 = sld [smem:[#allocation2 + $0x14]] }
0x20e5   :  { %v4274_v59 = vmul.f32 %v4273_v51, %v4271_v56  ;;  %v4319_v4 = vpop.permute.xlu1 %4318  ;;  %v4402_v56 = vmul.f32 %v10725_v22, %v4401_v30 }
0x20e6   :  { %v4325_v45 = vsub.f32 %v10675_v39, %v4319_v4  ;;  %v4347_v50 = vadd.f32 %v10732_v5, %v4345_v9 }
0x20e7   :  { %v4278_v24 = vadd.f32 %v4277_v3, %v4274_v59  ;;  %v4393_v3 = vstv %s10757_s30  ;;  %s10957_s30 = sld [smem:[#allocation5 + $0x17]] }
0x20e8   :  { %v4331_v36 = vsub.f32 %v4325_v45, %v4330_v49  ;;  %4229 = vmax.xlane.f32.xlu1 %v4228_v25  ;;  %v4351_v13 = vsel %vm760_vm6, %v4347_v50, -inf }
0x20e9   :  { %4352 = vmax.xlane.f32.xlu0 %v4351_v13  ;;  %v4284_v51 = vadd.f32 %v4282_v1, %v4278_v24  ;;  %v4403_v1 = vmul.f32 %v10710_v55, %v4401_v30 }
0x20ea   :  { %v4334_v15 = vmul.f32 %v4333_v48, %v4331_v36  ;;  %v4379_v12 = vpop.permute.xlu1 %4378 }
0x20eb   :  { %v4385_v52 = vsub.f32 %v10675_v39, %v4379_v12  ;;  %v10774_v61 = vadd.f32 %v10752_v28, %v4284_v51 }
0x20ec   :  { %v4338_v49 = vadd.f32 %v4337_v21, %v4334_v15 }
0x20ed   :  { %v4391_v60 = vsub.f32 %v4385_v52, %v4390_v40  ;;  %v4288_v10 = vsel %vm760_vm6, %v10774_v61, -inf }
0x20ee   :  { %v4383_v38 = vpop.permute.xlu1 %4382  ;;  %4289 = vmax.xlane.f32.xlu0 %v4288_v10  ;;  %v4344_v48 = vadd.f32 %v4342_v53, %v4338_v49 }
0x20ef   :  { %v4394_v16 = vmul.f32 %v4393_v3, %v4391_v60  ;;  %v4386_v39 = vsub.f32 %v10673_v42, %v4383_v38 }
0x20f0   :  { %v4346_v44 = vadd.f32 %v10752_v28, %v4344_v48 }
0x20f1   :  { %v4392_v46 = vsub.f32 %v4386_v39, %v4390_v40  ;;  %v4398_v9 = vadd.f32 %v4397_v2, %v4394_v16 }
0x20f2   :  { %v4348_v21 = vsel %vm760_vm6, %v4346_v44, -inf }
0x20f3   :  { %v4395_v59 = vmul.f32 %v4393_v3, %v4392_v46  ;;  %4349 = vmax.xlane.f32.xlu1 %v4348_v21  ;;  %v4404_v4 = vadd.f32 %v4402_v56, %v4398_v9 }
0x20f5   :  { %v4406_v45 = vadd.f32 %v10752_v28, %v4404_v4  ;;  %v4399_v25 = vadd.f32 %v4397_v2, %v4395_v59 }
0x20f7   :  { %v4408_v24 = vsel %vm760_vm6, %v4406_v45, -inf  ;;  %v4405_v36 = vadd.f32 %v4403_v1, %v4399_v25 }
0x20f8   :  { %4409 = vmax.xlane.f32.xlu1 %v4408_v24 }
0x20f9   :  { %v4407_v42 = vadd.f32 %v10732_v5, %v4405_v36 }
0x20fb   :  { %v4411_v13 = vsel %vm760_vm6, %v4407_v42, -inf }
0x20fc   :  { %4412 = vmax.xlane.f32.xlu0 %v4411_v13 }
0x2109   :  { %4612 = vrot.lane.b32.xlu1 %v10611_v34, %s11784_s8 }
0x210d   :  { %4662 = vrot.lane.b32.xlu1 %v10611_v34, %s11785_s20 }
0x2112   :  { %4614 = vrot.lane.b32.xlu0 %v10615_v43, %s11784_s8 }
0x216c   :  { %v4233_v51 = vpop.xlane.xlu1 %4232 }
0x216d   :  { %v4235_v15 = vsub.f32 %v10735_v19, %v4233_v51 }
0x216f   :  { %v4238_v12 = vmul.f32 1.442695, %v4235_v15 }
0x2171   :  { %9032 = vpow2.f32 %v4238_v12  ;;  %v4293_v53 = vpop.xlane.xlu1 %4292 }
0x2172   :  { %v4295_v52 = vsub.f32 %v10745_v58, %v4293_v53 }
0x2174   :  { %v4298_v40 = vmul.f32 1.442695, %v4295_v52 }
0x2175   :  { %v4230_v3 = vpop.xlane.xlu1 %4229 }
0x2176   :  { %9034 = vpow2.f32 %v4298_v40  ;;  %v4234_v49 = vsub.f32 %v10755_v41, %v4230_v3  ;;  %v4353_v30 = vpop.xlane.xlu0 %4352 }
0x2177   :  { %v4355_v60 = vsub.f32 %v4347_v50, %v4353_v30 }
0x2178   :  { %v4236_v10 = vmul.f32 1.442695, %v4234_v49  ;;  %v10829_v49 = vpack.i.bf16 %v10615_v43, %v10611_v34 }
0x2179   :  { %v4358_v38 = vmul.f32 1.442695, %v4355_v60 }
0x217a   :  { %9036 = vpow2.f32 %v4236_v10 }
0x217b   :  { %v10799_v48 = vpop.eup %9032  ;;  %9038 = vpow2.f32 %v4358_v38  ;;  %v4290_v46 = vpop.xlane.xlu0 %4289 }
0x217c   :  { %v4243_v19 = vsel %vm760_vm6, %v10799_v48, 0.0  ;;  %v4294_v4 = vsub.f32 %v10774_v61, %v4290_v46 }
0x217d   :  { %4244 = vadd.xlane.f32.xlu1 %v4243_v19 }
0x217e   :  { %v4296_v51 = vmul.f32 1.442695, %v4294_v4 }
0x2180   :  { %v10803_v2 = vpop.eup %9034  ;;  %v4350_v58 = vpop.xlane.xlu1 %4349 }
0x2181   :  { %v4354_v16 = vsub.f32 %v4346_v44, %v4350_v58  ;;  %v4303_v39 = vsel %vm760_vm6, %v10803_v2, 0.0 }
0x2182   :  { %4304 = vadd.xlane.f32.xlu0 %v4303_v39 }
0x2183   :  { %v4356_v41 = vmul.f32 1.442695, %v4354_v16 }
0x2184   :  { %v10807_v50 = vpop.eup %9036 }
0x2185   :  { %v10809_v56 = vpop.eup %9038  ;;  %9040 = vpow2.f32 %v4356_v41  ;;  %v4410_v9 = vpop.xlane.xlu1 %4409  ;;  %v4240_v21 = vsel %vm760_vm6, %v10807_v50, 0.0 }
0x2186   :  { %v4414_v59 = vsub.f32 %v4406_v45, %v4410_v9  ;;  %4241 = vadd.xlane.f32.xlu1 %v4240_v21  ;;  %v4363_v44 = vsel %vm760_vm6, %v10809_v56, 0.0 }
0x2187   :  { %4364 = vadd.xlane.f32.xlu0 %v4363_v44 }
0x2188   :  { %v4416_v1 = vmul.f32 1.442695, %v4414_v59 }
0x2189   :  { %v4413_v25 = vpop.xlane.xlu0 %4412  ;;  %v4613_v24 = vpop.permute.xlu1 %4612 }
0x218a   :  { %9042 = vpow2.f32 %v4416_v1  ;;  %v4415_v36 = vsub.f32 %v4407_v42, %v4413_v25  ;;  %v4618_v13 = vsel %vm390_vm3, %v4613_v24, 0.0 }
0x218b   :  { %4619 = vadd.xlane.f32.xlu1 %v4618_v13 }
0x218c   :  { %v4418_v15 = vmul.f32 1.442695, %v4415_v36 }
0x218d   :  { %v4615_v30 = vpop.permute.xlu0 %4614  ;;  %v4663_v10 = vpop.permute.xlu1 %4662 }
0x218e   :  { %9044 = vpow2.f32 %v4418_v15  ;;  %v4621_v60 = vsel %vm390_vm3, %v4615_v30, 0.0  ;;  %v4668_v38 = vsel %vm390_vm3, %v4663_v10, 0.0  ;;  %v4311_v10 = vstv %s7551_s1  ;;  %s10924_s1 = sld [smem:[#allocation7 + $0x15]] }
0x218f   :  { %v10817_v12 = vpop.eup %9040  ;;  %9046 = vpow2.f32 %v4296_v51 }
0x2190   :  { %v4360_v45 = vsel %vm760_vm6, %v10817_v12, 0.0 }
0x2191   :  { %4361 = vadd.xlane.f32.xlu1 %v4360_v45 }
0x2194   :  { %v10821_v53 = vpop.eup %9042 }
0x2195   :  { %v4420_v61 = vsel %vm760_vm6, %v10821_v53, 0.0 }
0x2196   :  { %4421 = vadd.xlane.f32.xlu1 %v4420_v61 }
0x2198   :  { %v9045_v42 = vpop.eup %9044 }
0x2199   :  { %v4423_v52 = vsel %vm760_vm6, %v9045_v42, 0.0  ;;  %v9047_v40 = vpop.eup %9046 }
0x219a   :  { %4424 = vadd.xlane.f32.xlu0 %v4423_v52  ;;  %v4300_v3 = vsel %vm760_vm6, %v9047_v40, 0.0 }
0x219e   :  { %4301 = vadd.xlane.f32.xlu0 %v4300_v3 }
0x21a7   :  { %8788 = vrot.lane.b32.xlu1 %v10829_v49, %s11786_s27  ;;  %s10922_s27 = sld [smem:[#allocation5 + $0x14]] }
0x21b4   :  { %4664 = vrot.lane.b32.xlu0 %v10615_v43, %s11785_s20 }
0x21d3   :  { %4622 = vadd.xlane.f32.xlu0 %v4621_v60 }
0x21d7   :  { %4669 = vadd.xlane.f32.xlu0 %v4668_v38 }
0x220a   :  { %v4245_v19 = vpop.xlane.xlu1 %4244 }
0x220b   :  { %9048 = vrcp.f32 %v4245_v19 }
0x220f   :  { %v4305_v39 = vpop.xlane.xlu0 %4304 }
0x2210   :  { %9050 = vrcp.f32 %v4305_v39 }
0x2213   :  { %v4242_v58 = vpop.xlane.xlu1 %4241 }
0x2214   :  { %v4365_v46 = vpop.xlane.xlu0 %4364  ;;  %9052 = vrcp.f32 %v4242_v58 }
0x2215   :  { %9054 = vrcp.f32 %v4365_v46  ;;  %v9049_v24 = vpop.eup %9048  ;;  %v4251_v46 = vstv %s7547_s7  ;;  %s10926_s7 = sld [smem:[#allocation7 + $0x14]] }
0x2216   :  { %v4249_v19 = vmul.f32 %v9049_v24, %v10799_v48 }
0x2218   :  { %v4620_v16 = vpop.xlane.xlu1 %4619 }
0x2219   :  { %v4624_v24 = vmul.f32 0.125, %v4620_v16 }
0x221a   :  { %v9051_v13 = vpop.eup %9050 }
0x221b   :  { %v4309_v3 = vmul.f32 %v9051_v13, %v10803_v2 }
0x221e   :  { %v4362_v41 = vpop.xlane.xlu1 %4361  ;;  %v9053_v15 = vpop.eup %9052 }
0x221f   :  { %9056 = vrcp.f32 %v4362_v41  ;;  %v9055_v45 = vpop.eup %9054  ;;  %v4247_v60 = vmul.f32 %v9053_v15, %v10807_v50  ;;  %v4431_v50 = vstv %s7559_s21  ;;  %s10934_s21 = sld [smem:[#allocation5 + $0x16]] }
0x2220   :  { %v4369_v58 = vmul.f32 %v9055_v45, %v10809_v56 }
0x2223   :  { %v4422_v9 = vpop.xlane.xlu1 %4421 }
0x2224   :  { %9058 = vrcp.f32 %v4422_v9  ;;  %v4371_v9 = vstv %s7555_s10  ;;  %s10928_s10 = sld [smem:[#allocation2 + $0x16]] }
0x2227   :  { %v4425_v21 = vpop.xlane.xlu0 %4424  ;;  %v8789_v59 = vpop.permute.xlu1 %8788 }
0x2228   :  { %v8791_v44 = vunpack.i.h.bf16 %v8789_v59  ;;  %v8790_v4 = vunpack.i.l.bf16 %v8789_v59  ;;  %9060 = vrcp.f32 %v4425_v21  ;;  %v4313_v59 = vmul.f32 %v4311_v10, %v4309_v3 }
0x2229   :  { %v9057_v61 = vpop.eup %9056 }
0x222a   :  { %v8526_v1 = vpack.c.bf16 %v8791_v44, %v8790_v4  ;;  %v4367_v39 = vmul.f32 %v9057_v61, %v10817_v12  ;;  %v4252_v44 = vmul.f32 %v4251_v46, %v4247_v60 }
0x222b   :  { %v4302_v25 = vpop.xlane.xlu0 %4301 }
0x222c   :  { %9062 = vrcp.f32 %v4302_v25  ;;  %8527 = vmatprep.subr.bf16.mxu1 %v8526_v1  ;;  %v4373_v25 = vmul.f32 %v4371_v9, %v4369_v58  ;;  %v4372_v13 = vmul.f32 %v4371_v9, %v4367_v39 }
0x222d   :  { %8529 = vmatpush3.bf16.msra.mxu1 %v8526_v1  ;;  %v4253_v1 = vmul.f32 %v4251_v46, %v4249_v19  ;;  %v7526_v19 = vld [vmem:[%s11682_s12 + $0x20] sm:$0xff] }
0x222e   :  { %v9059_v52 = vpop.eup %9058  ;;  %8193 = vmatprep.subr.mxu0 %v7526_v19 }
0x222f   :  { %v4665_v36 = vpop.permute.xlu0 %4664  ;;  %v4427_v2 = vmul.f32 %v9059_v52, %v10821_v53  ;;  %v4315_v48 = vadd.f32 %v4313_v59, %v4253_v1  ;;  %8194 = vmatpush3.msra.mxu0 %v7526_v19 }
0x2230   :  { %v4671_v51 = vsel %vm390_vm3, %v4665_v36, 0.0 }
0x2231   :  { %4672 = vadd.xlane.f32.xlu0 %v4671_v51  ;;  %v4432_v15 = vmul.f32 %v4431_v50, %v4427_v2  ;;  %v4375_v12 = vadd.f32 %v4373_v25, %v4315_v48 }
0x2232   :  { %v9061_v30 = vpop.eup %9060 }
0x2233   :  { %v4429_v21 = vmul.f32 %v9061_v30, %v9045_v42  ;;  %v10845_v42 = vsub.f32 %v10611_v34, %v4624_v24  ;;  %v7569_v24 = vld [vmem:[%s11681_s11 + $0x14] sm:$0xf] }
0x2234   :  { %8205 = vmatprep.subr.msk.mxu0 %vm390_vm3, %v7569_v24 }
0x2235   :  { %v4433_v51 = vmul.f32 %v4431_v50, %v4429_v21  ;;  %v4628_v53 = vmul.f32 %v10845_v42, %v10845_v42 }
0x2236   :  { %v9063_v38 = vpop.eup %9062 }
0x2237   :  { %v4307_v41 = vmul.f32 %v9063_v38, %v9047_v40  ;;  %v4435_v45 = vadd.f32 %v4433_v51, %v4375_v12 }
0x2239   :  { %v4312_v4 = vmul.f32 %v4311_v10, %v4307_v41 }
0x223b   :  { %v4314_v36 = vadd.f32 %v4312_v4, %v4252_v44 }
0x223d   :  { %v4374_v56 = vadd.f32 %v4372_v13, %v4314_v36 }
0x223f   :  { %v4434_v40 = vadd.f32 %v4432_v15, %v4374_v56 }
0x2241   :  { %8190 = vmatprep.mubr.msk.f32.mxu1 %vm760_vm6, %v4434_v40 }
0x2242   :  { %8191 = vmatmul.mubr.msk.f32.vlgmr.msra.gmra.mrb[28].mxu1 %vm760_vm6, %v4435_v45 }
0x2247   :  { %4632 = vrot.lane.b32.xlu0 %v4628_v53, %s11784_s8 }
0x2260   :  { %v4623_v61 = vpop.xlane.xlu0 %4622 }
0x2261   :  { %v4625_v52 = vmul.f32 0.125, %v4623_v61 }
0x2263   :  { %v4627_v16 = vsub.f32 %v10615_v43, %v4625_v52 }
0x2264   :  { %v4670_v3 = vpop.xlane.xlu0 %4669 }
0x2265   :  { %v4629_v30 = vmul.f32 %v4627_v16, %v4627_v16  ;;  %v4674_v60 = vmul.f32 0.125, %v4670_v3 }
0x2267   :  { %v10854_v10 = vsub.f32 %v10611_v34, %v4674_v60  ;;  %4634 = vrot.lane.b32.xlu1 %v4629_v30, %s11784_s8 }
0x2269   :  { %v4678_v38 = vmul.f32 %v10854_v10, %v10854_v10 }
0x226b   :  { %4682 = vrot.lane.b32.xlu1 %v4678_v38, %s11785_s20 }
0x22be   :  { %v4673_v58 = vpop.xlane.xlu0 %4672 }
0x22bf   :  { %v4675_v39 = vmul.f32 0.125, %v4673_v58 }
0x22c1   :  { %v4677_v41 = vsub.f32 %v10615_v43, %v4675_v39 }
0x22c2   :  { %v4633_v59 = vpop.permute.xlu0 %4632 }
0x22c3   :  { %v4679_v46 = vmul.f32 %v4677_v41, %v4677_v41  ;;  %v4638_v44 = vsel %vm390_vm3, %v4633_v59, 0.0 }
0x22c5   :  { %4684 = vrot.lane.b32.xlu1 %v4679_v46, %s11785_s20 }
0x22d9   :  { %v4635_v9 = vpop.permute.xlu1 %4634 }
0x22da   :  { %v4641_v21 = vsel %vm390_vm3, %v4635_v9, 0.0 }
0x22db   :  { %4642 = vadd.xlane.f32.xlu0 %v4641_v21 }
0x22dd   :  { %v4683_v1 = vpop.permute.xlu1 %4682 }
0x22de   :  { %v4688_v25 = vsel %vm390_vm3, %v4683_v1, 0.0 }
0x22e9   :  { %4639 = vadd.xlane.f32.xlu1 %v4638_v44 }
0x22f1   :  { %4652 = vrot.lane.b32.xlu0 %v10643_v37, %s11787_s28 }
0x22fa   :  { %4657 = vrot.lane.b32.xlu1 %v10632_v29, %s11787_s28 }
0x2315   :  { %v8192_v4 = vpop.f32.mrb[28].mxu1 }
0x2316   :  { %v4514_v2 = vpop.f32.mrb[29].mxu1 }
0x2317   :  { %8195 = vmatprep.mubr.msk.f32.mxu0 %vm390_vm3, %v4514_v2 }
0x2318   :  { %8196 = vmatmul.mubr.msk.f32.vlgmr.msra.gmra.mrb[22].mxu0 %vm390_vm3, %v8192_v4 }
0x2319   :  { %8206 = vmatpush3.xpose.msk.msra.mxu0 %vm390_vm3, %v7569_v24 }
0x231a   :  { %8536 = vmatprep.subr.bf16.mxu0 %v11773_v54 }
0x231e   :  { %4689 = vadd.xlane.f32.xlu1 %v4688_v25 }
0x232f   :  { %4707 = vrot.lane.b32.xlu1 %v10632_v29, %s11781_s0 }
0x2337   :  { %v4685_v50 = vpop.permute.xlu1 %4684 }
0x2338   :  { %v4691_v36 = vsel %vm390_vm3, %v4685_v50, 0.0 }
0x2339   :  { %4692 = vadd.xlane.f32.xlu0 %v4691_v36 }
0x234f   :  { %4702 = vrot.lane.b32.xlu0 %v10643_v37, %s11781_s0 }
0x2368   :  { %v4643_v13 = vpop.xlane.xlu0 %4642 }
0x2369   :  { %v4645_v51 = vmul.f32 0.125, %v4643_v13 }
0x236b   :  { %v4647_v48 = vadd.f32 1e-05, %v4645_v51 }
0x236c   :  { %v4653_v12 = vpop.permute.xlu0 %4652 }
0x236d   :  { %9064 = vrsqrt.f32 %v4647_v48 }
0x2376   :  { %v4640_v29 = vpop.xlane.xlu1 %4639 }
0x2377   :  { %v9065_v56 = vpop.eup %9064  ;;  %v4644_v15 = vmul.f32 0.125, %v4640_v29 }
0x2378   :  { %v4651_v40 = vmul.f32 %v9065_v56, %v4627_v16 }
0x2379   :  { %v4646_v37 = vadd.f32 1e-05, %v4644_v15 }
0x237a   :  { %v4656_v45 = vmul.f32 %v4653_v12, %v4651_v40  ;;  %v4658_v53 = vpop.permute.xlu1 %4657 }
0x237b   :  { %9066 = vrsqrt.f32 %v4646_v37 }
0x237c   :  { %v4661_v61 = vadd.f32 %v4658_v53, %v4656_v45 }
0x237e   :  { %4716 = vrot.lane.b32.xlu0 %v4661_v61, %s11784_s8 }
0x2385   :  { %v9067_v52 = vpop.eup %9066 }
0x2386   :  { %v4650_v3 = vmul.f32 %v9067_v52, %v10845_v42 }
0x2388   :  { %v4655_v30 = vmul.f32 %v4653_v12, %v4650_v3 }
0x238a   :  { %v4660_v60 = vadd.f32 %v4658_v53, %v4655_v30 }
0x238c   :  { %4714 = vrot.lane.b32.xlu1 %v4660_v60, %s11784_s8  ;;  %s10918_s8 = sld [smem:[#allocation5 + $0x15]] }
0x2392   :  { %v5044_v60 = vstv %s10918_s8  ;;  %s11789_s8 = smov 80  }
0x23ab   :  { %v4690_v38 = vpop.xlane.xlu1 %4689 }
0x23ac   :  { %v4694_v19 = vmul.f32 0.125, %v4690_v38  ;;  %v4976_v38 = vstv %s10916_s29  ;;  %s11788_s29 = smov 112  }
0x23ae   :  { %v4696_v58 = vadd.f32 1e-05, %v4694_v19 }
0x23af   :  { %v4708_v42 = vpop.permute.xlu1 %4707 }
0x23b0   :  { %9068 = vrsqrt.f32 %v4696_v58  ;;  %v4984_v58 = vstv %s10922_s27  ;;  %s11044_s27 = sld [smem:[#allocation8 + $0x15]] }
0x23ba   :  { %v9069_v9 = vpop.eup %9068 }
0x23bb   :  { %v4700_v59 = vmul.f32 %v9069_v9, %v10854_v10  ;;  %v5040_v9 = vstv %s10924_s1  ;;  %s11046_s1 = sld [smem:[#allocation8 + $0x16]] }
0x23c6   :  { %v4693_v39 = vpop.xlane.xlu0 %4692 }
0x23c7   :  { %v4695_v16 = vmul.f32 0.125, %v4693_v39 }
0x23c9   :  { %v4697_v46 = vadd.f32 1e-05, %v4695_v16 }
0x23ca   :  { %v4703_v21 = vpop.permute.xlu0 %4702 }
0x23cb   :  { %9070 = vrsqrt.f32 %v4697_v46  ;;  %v4705_v2 = vmul.f32 %v4703_v21, %v4700_v59  ;;  %v4980_v59 = vstv %s10926_s7  ;;  %s11049_s7 = sld [smem:[#allocation8 + $0x17]] }
0x23cd   :  { %v4710_v25 = vadd.f32 %v4708_v42, %v4705_v2 }
0x23d5   :  { %v9071_v44 = vpop.eup %9070 }
0x23d6   :  { %v4701_v4 = vmul.f32 %v9071_v44, %v4677_v41 }
0x23d8   :  { %v4706_v1 = vmul.f32 %v4703_v21, %v4701_v4  ;;  %v5046_v21 = vmul.f32 %v10710_v55, %v5044_v60 }
0x23da   :  { %v4711_v50 = vadd.f32 %v4708_v42, %v4706_v1  ;;  %v4986_v1 = vmul.f32 %v10710_v55, %v4984_v58 }
0x23dc   :  { %v8792_v36 = vpack.i.bf16 %v4711_v50, %v4710_v25  ;;  %v5096_v25 = vstv %s10928_s10  ;;  %s11153_s10 = sld [smem:[#allocation7 + $0x18]] }
0x23de   :  { %8793 = vrot.lane.b32.xlu1 %v8792_v36, %s11785_s20  ;;  %s10920_s20 = sld [smem:[#allocation2 + $0x15]] }
0x23e4   :  { %v5036_v19 = vstv %s10920_s20  ;;  %s11042_s20 = sld [smem:[#allocation8 + $0x14]] }
0x23f0   :  { %v4717_v51 = vpop.permute.xlu0 %4716 }
0x23fe   :  { %v4715_v13 = vpop.permute.xlu1 %4714 }
0x23ff   :  { %8202 = vmatprep.mubr.msk.f32.mxu1 %vm390_vm3, %v4715_v13  ;;  %8207 = vmatprep.mubr.msk.f32.mxu0 %vm390_vm3, %v4715_v13 }
0x2400   :  { %8208 = vmatmul.mubr.msk.f32.vlgmr.msra.gmra.mrb[24].mxu0 %vm390_vm3, %v4717_v51 }
0x2401   :  { %8214 = vmatprep.mubr.msk.f32.mxu0 %vm9304_vm4, %v11774_v8 }
0x2450   :  { %v8794_v10 = vpop.permute.xlu1 %8793 }
0x2451   :  { %v8796_v41 = vunpack.i.h.bf16 %v8794_v10  ;;  %v8795_v48 = vunpack.i.l.bf16 %v8794_v10 }
0x2453   :  { %v8530_v29 = vpack.c.bf16 %v8796_v41, %v8795_v48  ;;  %v5104_v41 = vstv %s10934_s21  ;;  %s11155_s21 = sld [smem:[#allocation5 + $0x1a]] }
0x2455   :  { %8532 = vmatprep.subr.msk.bf16.mxu1 %vm9665_vm5, %v8530_v29  ;;  %8539 = vmatpush3.bf16.xpose.msk.msra.mxu0 %vm9665_vm5, %v8530_v29 }
0x2456   :  { %8535 = vmatpush3.bf16.xpose.msk.msra.mxu1 %vm9665_vm5, %v8530_v29  ;;  %v4985_v29 = vmul.f32 %v10725_v22, %v4984_v58 }
0x245c   :  { %8215 = vmatmul.mubr.msk.f32.vlgmr.msra.gmra.mrb[26].mxu0 %vm390_vm3, %v7569_v24 }
0x245d   :  { %8203 = vmatmul.mubr.msk.f32.vlgmr.msra.gmra.mrb[30].mxu1 %vm390_vm3, %v4717_v51 }
0x24d3   :  { %v8209_v56 = vpop.f32.mrb[24].mxu0 }
0x24d4   :  { %5025 = vperm.xlu1 %8797, %v8209_v56   ;;  %4965 = vperm.xlu0 %8780, %v8209_v56   ;;  %v4878_v15 = vpop.f32.mrb[25].mxu0 }
0x24d8   :  { %8798 = vset.pattern.permute.xlu1 %v11776_v47  ;;  %4960 = vperm.xlu0 %8780, %v4878_v15  }
0x24d9   :  { %5085 = vperm.xlu1 %8798, %v8209_v56  }
0x24dc   :  { %8800 = vset.pattern.permute.xlu0 %v11776_v47 }
0x24dd   :  { %8799 = vset.pattern.permute.xlu1 %v11777_v33  ;;  %5081 = vperm.xlu0 %8800, %v4878_v15  }
0x24de   :  { %5021 = vperm.xlu1 %8799, %v4878_v15  }
0x24e1   :  { %8802 = vset.pattern.permute.xlu0 %v11778_v0 }
0x24e2   :  { %8801 = vset.pattern.permute.xlu1 %v11778_v0  ;;  %5145 = vperm.xlu0 %8802, %v8209_v56  }
0x24e3   :  { %5141 = vperm.xlu1 %8801, %v4878_v15  }
0x24e6   :  { %8814 = vset.pattern.permute.xlu0 %v11777_v33 }
0x24e7   :  { %8813 = vset.pattern.permute.xlu1 %v11775_v32 }
0x252f   :  { %v10910_v24 = vpop.f32.mrb[26].mxu0 }
0x2530   :  { %v10912_v12 = vpop.f32.mrb[30].mxu1  ;;  %v8216_v40 = vpop.f32.mrb[27].mxu0  ;;  %v4973_v45 = vrot.slane %v10910_v24, %v9709_v57  ;;  %v5033_v53 = vrot.slane %v10910_v24, %v9718_v62  ;;  %v5093_v36 = vrot.slane %v10910_v24, %v9720_v63 }
0x2531   :  { %v10914_v37 = vpop.f32.mrb[31].mxu1 }
0x2553   :  { %v5026_v61 = vpop.permute.xlu1 %5025  ;;  %v4966_v52 = vpop.permute.xlu0 %4965 }
0x2554   :  { %v5029_v3 = vsub.f32 %v10912_v12, %v5026_v61  ;;  %v4969_v30 = vsub.f32 %v10912_v12, %v4966_v52  ;;  %v5100_v52 = vstv %s10939_s23  ;;  %s11159_s23 = sld [smem:[#allocation2 + $0x1a]] }
0x2556   :  { %v4975_v39 = vsub.f32 %v4969_v30, %v4973_v45  ;;  %v5035_v16 = vsub.f32 %v5029_v3, %v5033_v53 }
0x2557   :  { %v4961_v46 = vpop.permute.xlu0 %4960 }
0x2558   :  { %v4968_v44 = vsub.f32 %v10914_v37, %v4961_v46  ;;  %v4978_v4 = vmul.f32 %v4976_v38, %v4975_v39  ;;  %v5086_v2 = vpop.permute.xlu1 %5085  ;;  %v5038_v42 = vmul.f32 %v5036_v19, %v5035_v16 }
0x2559   :  { %v5089_v50 = vsub.f32 %v10912_v12, %v5086_v2 }
0x255a   :  { %v4974_v13 = vsub.f32 %v4968_v44, %v4973_v45  ;;  %v5042_v51 = vadd.f32 %v5040_v9, %v5038_v42  ;;  %v4982_v10 = vadd.f32 %v4980_v59, %v4978_v4  ;;  %v5106_v45 = vmul.f32 %v10710_v55, %v5104_v41 }
0x255b   :  { %v5095_v48 = vsub.f32 %v5089_v50, %v5093_v36  ;;  %v5105_v4 = vmul.f32 %v10725_v22, %v5104_v41  ;;  %v5153_v41 = vrot.slane %v10910_v24, %v9722_v27 }
0x255c   :  { %v4977_v56 = vmul.f32 %v4976_v38, %v4974_v13  ;;  %v5082_v15 = vpop.permute.xlu0 %5081  ;;  %v5048_v40 = vadd.f32 %v5046_v21, %v5042_v51  ;;  %v4988_v61 = vadd.f32 %v4986_v1, %v4982_v10  ;;  %v5156_v51 = vstv %s10953_s25  ;;  %s11163_s25 = sld [smem:[#allocation7 + $0x1a]] }
0x255d   :  { %v5098_v3 = vmul.f32 %v5096_v25, %v5095_v48  ;;  %v5088_v30 = vsub.f32 %v10914_v37, %v5082_v15  ;;  %v5022_v39 = vpop.permute.xlu1 %5021 }
0x255e   :  { %v5028_v16 = vsub.f32 %v10914_v37, %v5022_v39  ;;  %v10966_v58 = vadd.f32 %v10732_v5, %v5048_v40  ;;  %v10969_v38 = vadd.f32 %v10732_v5, %v4988_v61  ;;  %v4981_v46 = vadd.f32 %v4980_v59, %v4977_v56 }
0x255f   :  { %v5094_v21 = vsub.f32 %v5088_v30, %v5093_v36  ;;  %v5102_v44 = vadd.f32 %v5100_v52, %v5098_v3  ;;  %v5045_v59 = vmul.f32 %v10725_v22, %v5044_v60  ;;  %v5164_v61 = vstv %s10957_s30  ;;  %s11790_s30 = smov 16  }
0x2560   :  { %v5034_v2 = vsub.f32 %v5028_v16, %v5033_v53  ;;  %v5054_v42 = vsel %vm760_vm6, %v10966_v58, -inf  ;;  %v4994_v1 = vsel %vm760_vm6, %v10969_v38, -inf  ;;  %v4987_v50 = vadd.f32 %v4985_v29, %v4981_v46 }
0x2561   :  { %v5097_v13 = vmul.f32 %v5096_v25, %v5094_v21  ;;  %v5146_v10 = vpop.permute.xlu0 %5145  ;;  %5055 = vmax.xlane.f32.xlu0 %v5054_v42  ;;  %4995 = vmax.xlane.f32.xlu1 %v4994_v1  ;;  %v5108_v48 = vadd.f32 %v5106_v45, %v5102_v44  ;;  %v5160_v45 = vstv %s10962_s3  ;;  %v5166_v46 = vmul.f32 %v10710_v55, %v5164_v61 }
0x2562   :  { %v5037_v36 = vmul.f32 %v5036_v19, %v5034_v2  ;;  %v5149_v53 = vsub.f32 %v10912_v12, %v5146_v10  ;;  %v5142_v56 = vpop.permute.xlu1 %5141  ;;  %v4989_v15 = vadd.f32 %v10752_v28, %v4987_v50 }
0x2563   :  { %v5148_v29 = vsub.f32 %v10914_v37, %v5142_v56  ;;  %v5110_v25 = vadd.f32 %v10732_v5, %v5108_v48  ;;  %v5101_v40 = vadd.f32 %v5100_v52, %v5097_v13  ;;  %v5165_v52 = vmul.f32 %v10725_v22, %v5164_v61 }
0x2564   :  { %v5155_v3 = vsub.f32 %v5149_v53, %v5153_v41  ;;  %v4991_v30 = vsel %vm760_vm6, %v4989_v15, -inf  ;;  %v5041_v60 = vadd.f32 %v5040_v9, %v5037_v36 }
0x2565   :  { %v5154_v19 = vsub.f32 %v5148_v29, %v5153_v41  ;;  %4992 = vmax.xlane.f32.xlu1 %v4991_v30  ;;  %v5114_v12 = vsel %vm760_vm6, %v5110_v25, -inf  ;;  %v5107_v39 = vadd.f32 %v5105_v4, %v5101_v40 }
0x2566   :  { %v5158_v24 = vmul.f32 %v5156_v51, %v5155_v3  ;;  %5115 = vmax.xlane.f32.xlu0 %v5114_v12  ;;  %v5047_v16 = vadd.f32 %v5045_v59, %v5041_v60 }
0x2567   :  { %v5157_v37 = vmul.f32 %v5156_v51, %v5154_v19  ;;  %v5109_v21 = vadd.f32 %v10752_v28, %v5107_v39 }
0x2568   :  { %v5049_v44 = vadd.f32 %v10752_v28, %v5047_v16  ;;  %v5162_v2 = vadd.f32 %v5160_v45, %v5158_v24 }
0x2569   :  { %v5111_v9 = vsel %vm760_vm6, %v5109_v21, -inf  ;;  %v5161_v42 = vadd.f32 %v5160_v45, %v5157_v37 }
0x256a   :  { %5112 = vmax.xlane.f32.xlu1 %v5111_v9  ;;  %v5051_v4 = vsel %vm760_vm6, %v5049_v44, -inf  ;;  %v5168_v1 = vadd.f32 %v5166_v46, %v5162_v2 }
0x256b   :  { %5052 = vmax.xlane.f32.xlu0 %v5051_v4  ;;  %v5167_v50 = vadd.f32 %v5165_v52, %v5161_v42 }
0x256c   :  { %v5170_v13 = vadd.f32 %v10732_v5, %v5168_v1 }
0x256d   :  { %v5169_v55 = vadd.f32 %v10752_v28, %v5167_v50 }
0x256e   :  { %v5174_v51 = vsel %vm760_vm6, %v5170_v13, -inf }
0x256f   :  { %5175 = vmax.xlane.f32.xlu0 %v5174_v51  ;;  %v5171_v22 = vsel %vm760_vm6, %v5169_v55, -inf }
0x2570   :  { %5172 = vmax.xlane.f32.xlu1 %v5171_v22 }
0x2581   :  { %5369 = vrot.lane.b32.xlu1 %v10611_v34, %s11788_s29 }
0x2585   :  { %5371 = vrot.lane.b32.xlu0 %v10615_v43, %s11788_s29  ;;  %5419 = vrot.lane.b32.xlu1 %v10611_v34, %s11789_s8 }
0x25ee   :  { %v5056_v10 = vpop.xlane.xlu0 %5055  ;;  %v4996_v48 = vpop.xlane.xlu1 %4995 }
0x25ef   :  { %v5058_v5 = vsub.f32 %v10966_v58, %v5056_v10  ;;  %v4998_v28 = vsub.f32 %v10969_v38, %v4996_v48 }
0x25f1   :  { %v5061_v59 = vmul.f32 1.442695, %v5058_v5  ;;  %v5001_v36 = vmul.f32 1.442695, %v4998_v28 }
0x25f2   :  { %v4993_v53 = vpop.xlane.xlu1 %4992 }
0x25f3   :  { %9072 = vpow2.f32 %v5061_v59  ;;  %v4997_v41 = vsub.f32 %v4989_v15, %v4993_v53  ;;  %v5116_v56 = vpop.xlane.xlu0 %5115 }
0x25f4   :  { %9074 = vpow2.f32 %v5001_v36  ;;  %v5118_v29 = vsub.f32 %v5110_v25, %v5116_v56 }
0x25f5   :  { %v4999_v40 = vmul.f32 1.442695, %v4997_v41 }
0x25f6   :  { %v5121_v61 = vmul.f32 1.442695, %v5118_v29 }
0x25f7   :  { %9076 = vpow2.f32 %v4999_v40  ;;  %v5113_v3 = vpop.xlane.xlu1 %5112 }
0x25f8   :  { %9078 = vpow2.f32 %v5121_v61  ;;  %v5117_v30 = vsub.f32 %v5109_v21, %v5113_v3  ;;  %v5053_v60 = vpop.xlane.xlu0 %5052 }
0x25f9   :  { %v5057_v12 = vsub.f32 %v5049_v44, %v5053_v60 }
0x25fa   :  { %v5119_v19 = vmul.f32 1.442695, %v5117_v30 }
0x25fb   :  { %v5059_v16 = vmul.f32 1.442695, %v5057_v12 }
0x25fc   :  { %v5176_v58 = vpop.xlane.xlu0 %5175  ;;  %9080 = vpow2.f32 %v5119_v19 }
0x25fd   :  { %v11006_v39 = vpop.eup %9072  ;;  %v5178_v38 = vsub.f32 %v5170_v13, %v5176_v58  ;;  %v5173_v45 = vpop.xlane.xlu1 %5172 }
0x25fe   :  { %v11008_v24 = vpop.eup %9074  ;;  %v5177_v15 = vsub.f32 %v5169_v55, %v5173_v45  ;;  %v5066_v25 = vsel %vm760_vm6, %v11006_v39, 0.0 }
0x25ff   :  { %v5181_v46 = vmul.f32 1.442695, %v5178_v38  ;;  %5067 = vadd.xlane.f32.xlu0 %v5066_v25  ;;  %v5006_v37 = vsel %vm760_vm6, %v11008_v24, 0.0 }
0x2600   :  { %v5179_v21 = vmul.f32 1.442695, %v5177_v15  ;;  %5007 = vadd.xlane.f32.xlu1 %v5006_v37  ;;  %v5372_v5 = vpop.permute.xlu0 %5371 }
0x2601   :  { %v11014_v52 = vpop.eup %9076  ;;  %9082 = vpow2.f32 %v5181_v46  ;;  %v5370_v42 = vpop.permute.xlu1 %5369  ;;  %v5378_v28 = vsel %vm390_vm3, %v5372_v5, 0.0 }
0x2602   :  { %v11016_v44 = vpop.eup %9078  ;;  %9084 = vpow2.f32 %v5179_v21  ;;  %v5003_v2 = vsel %vm760_vm6, %v11014_v52, 0.0  ;;  %v5375_v4 = vsel %vm390_vm3, %v5370_v42, 0.0 }
0x2603   :  { %9086 = vpow2.f32 %v5059_v16  ;;  %v5126_v9 = vsel %vm760_vm6, %v11016_v44, 0.0 }
0x2604   :  { %5004 = vadd.xlane.f32.xlu1 %v5003_v2  ;;  %5127 = vadd.xlane.f32.xlu0 %v5126_v9 }
0x2605   :  { %v5420_v59 = vpop.permute.xlu1 %5419 }
0x2606   :  { %v11023_v1 = vpop.eup %9080  ;;  %v5425_v36 = vsel %vm390_vm3, %v5420_v59, 0.0 }
0x2607   :  { %v5123_v13 = vsel %vm760_vm6, %v11023_v1, 0.0 }
0x2608   :  { %5376 = vadd.xlane.f32.xlu1 %v5375_v4 }
0x260b   :  { %v11025_v50 = vpop.eup %9082 }
0x260c   :  { %v11029_v55 = vpop.eup %9084  ;;  %5124 = vadd.xlane.f32.xlu1 %v5123_v13  ;;  %v5186_v51 = vsel %vm760_vm6, %v11025_v50, 0.0 }
0x260d   :  { %v9087_v22 = vpop.eup %9086  ;;  %5187 = vadd.xlane.f32.xlu0 %v5186_v51  ;;  %v5183_v10 = vsel %vm760_vm6, %v11029_v55, 0.0  ;;  %v5014_v51 = vstv %s11042_s20 }
0x260e   :  { %v5063_v48 = vsel %vm760_vm6, %v9087_v22, 0.0 }
0x2610   :  { %5184 = vadd.xlane.f32.xlu1 %v5183_v10  ;;  %v5074_v10 = vstv %s11044_s27  ;;  %s11147_s27 = sld [smem:[#allocation5 + $0x19]] }
0x2611   :  { %5064 = vadd.xlane.f32.xlu0 %v5063_v48 }
0x2621   :  { %8804 = vrot.lane.b32.xlu1 %v10829_v49, %s11780_s22 }
0x2627   :  { %5421 = vrot.lane.b32.xlu0 %v10615_v43, %s11789_s8 }
0x2646   :  { %5379 = vadd.xlane.f32.xlu0 %v5378_v28 }
0x264a   :  { %5426 = vadd.xlane.f32.xlu0 %v5425_v36  ;;  %v5134_v36 = vstv %s11046_s1  ;;  %s11149_s1 = sld [smem:[#allocation5 + $0x18]] }
0x268c   :  { %v5068_v41 = vpop.xlane.xlu0 %5067 }
0x268d   :  { %v5008_v53 = vpop.xlane.xlu1 %5007  ;;  %9088 = vrcp.f32 %v5068_v41 }
0x268e   :  { %9090 = vrcp.f32 %v5008_v53 }
0x2691   :  { %v5005_v56 = vpop.xlane.xlu1 %5004  ;;  %v5128_v40 = vpop.xlane.xlu0 %5127 }
0x2692   :  { %9092 = vrcp.f32 %v5005_v56 }
0x2693   :  { %9094 = vrcp.f32 %v5128_v40 }
0x2695   :  { %v5377_v29 = vpop.xlane.xlu1 %5376 }
0x2697   :  { %v9089_v12 = vpop.eup %9088 }
0x2698   :  { %v9091_v15 = vpop.eup %9090  ;;  %v5072_v9 = vmul.f32 %v9089_v12, %v11006_v39  ;;  %v5381_v12 = vmul.f32 0.125, %v5377_v29 }
0x2699   :  { %v5125_v61 = vpop.xlane.xlu1 %5124  ;;  %v5012_v42 = vmul.f32 %v9091_v15, %v11008_v24 }
0x269a   :  { %v5188_v3 = vpop.xlane.xlu0 %5187  ;;  %9096 = vrcp.f32 %v5125_v61  ;;  %v5076_v39 = vmul.f32 %v5074_v10, %v5072_v9  ;;  %v5194_v61 = vstv %s11049_s7  ;;  %s11151_s7 = sld [smem:[#allocation7 + $0x19]] }
0x269b   :  { %9098 = vrcp.f32 %v5188_v3  ;;  %v5016_v41 = vmul.f32 %v5014_v51, %v5012_v42 }
0x269c   :  { %v9093_v16 = vpop.eup %9092 }
0x269d   :  { %v5185_v30 = vpop.xlane.xlu1 %5184  ;;  %v9095_v37 = vpop.eup %9094  ;;  %v5010_v13 = vmul.f32 %v9093_v16, %v11014_v52 }
0x269e   :  { %9100 = vrcp.f32 %v5185_v30  ;;  %v5065_v60 = vpop.xlane.xlu0 %5064  ;;  %v5132_v5 = vmul.f32 %v9095_v37, %v11016_v44 }
0x269f   :  { %9102 = vrcp.f32 %v5065_v60  ;;  %v5015_v56 = vmul.f32 %v5014_v51, %v5010_v13 }
0x26a0   :  { %v5136_v3 = vmul.f32 %v5134_v36, %v5132_v5 }
0x26a1   :  { %v8805_v19 = vpop.permute.xlu1 %8804 }
0x26a2   :  { %v8807_v58 = vunpack.i.h.bf16 %v8805_v19  ;;  %v8806_v38 = vunpack.i.l.bf16 %v8805_v19  ;;  %v5422_v45 = vpop.permute.xlu0 %5421  ;;  %v5078_v19 = vadd.f32 %v5076_v39, %v5016_v41 }
0x26a3   :  { %v5428_v25 = vsel %vm390_vm3, %v5422_v45, 0.0 }
0x26a4   :  { %5429 = vadd.xlane.f32.xlu0 %v5428_v25  ;;  %v8540_v46 = vpack.c.bf16 %v8807_v58, %v8806_v38  ;;  %v9097_v21 = vpop.eup %9096 }
0x26a5   :  { %v9099_v2 = vpop.eup %9098  ;;  %v5130_v28 = vmul.f32 %v9097_v21, %v11023_v1  ;;  %v5138_v1 = vadd.f32 %v5136_v3, %v5078_v19 }
0x26a6   :  { %8541 = vmatprep.subr.bf16.mxu1 %v8540_v46  ;;  %v5192_v53 = vmul.f32 %v9099_v2, %v11025_v50  ;;  %v11063_v50 = vsub.f32 %v10611_v34, %v5381_v12  ;;  %v7527_v2 = vld [vmem:[%s11682_s12 + $0x28] sm:$0xff] }
0x26a7   :  { %8543 = vmatpush3.bf16.msra.mxu1 %v8540_v46  ;;  %v5135_v30 = vmul.f32 %v5134_v36, %v5130_v28  ;;  %8224 = vmatprep.subr.mxu0 %v7527_v2  ;;  %v11088_v28 = vld [vmem:[%s11768_s6 + $0x1] ss:$0 sm:$0xff]  ;;  %s11189_s6 = sld [smem:[#allocation5 + $0x1b]] }
0x26a8   :  { %v9101_v4 = vpop.eup %9100  ;;  %v5196_v60 = vmul.f32 %v5194_v61, %v5192_v53  ;;  %8225 = vmatpush3.msra.mxu0 %v7527_v2 }
0x26a9   :  { %v9103_v48 = vpop.eup %9102  ;;  %v5190_v40 = vmul.f32 %v9101_v4, %v11029_v55  ;;  %v5385_v55 = vmul.f32 %v11063_v50, %v11063_v50 }
0x26aa   :  { %v5070_v59 = vmul.f32 %v9103_v48, %v9087_v22  ;;  %v5198_v38 = vadd.f32 %v5196_v60, %v5138_v1 }
0x26ab   :  { %v5195_v58 = vmul.f32 %v5194_v61, %v5190_v40 }
0x26ac   :  { %v5075_v24 = vmul.f32 %v5074_v10, %v5070_v59  ;;  %v11095_v59 = vld [vmem:[%s11767_s2 + $0x1] ss:$0 sm:$0xff]  ;;  %s11186_s2 = sld [smem:[#allocation7 + $0x1b]] }
0x26ae   :  { %v5077_v52 = vadd.f32 %v5075_v24, %v5015_v56 }
0x26b0   :  { %v5137_v44 = vadd.f32 %v5135_v30, %v5077_v52  ;;  %v7600_v52 = vld [vmem:[%s11681_s11 + $0x18] sm:$0xf] }
0x26b1   :  { %8236 = vmatprep.subr.msk.mxu0 %vm390_vm3, %v7600_v52 }
0x26b2   :  { %v5197_v22 = vadd.f32 %v5195_v58, %v5137_v44 }
0x26b4   :  { %8221 = vmatprep.mubr.msk.f32.mxu1 %vm760_vm6, %v5197_v22 }
0x26b5   :  { %8222 = vmatmul.mubr.msk.f32.vlgmr.msra.gmra.mrb[32].mxu1 %vm760_vm6, %v5198_v38 }
0x26ba   :  { %5389 = vrot.lane.b32.xlu0 %v5385_v55, %s11788_s29 }
0x26d3   :  { %v5380_v45 = vpop.xlane.xlu0 %5379 }
0x26d4   :  { %v5382_v15 = vmul.f32 0.125, %v5380_v45 }
0x26d6   :  { %v5384_v29 = vsub.f32 %v10615_v43, %v5382_v15 }
0x26d7   :  { %v5427_v25 = vpop.xlane.xlu0 %5426 }
0x26d8   :  { %v5386_v16 = vmul.f32 %v5384_v29, %v5384_v29  ;;  %v5431_v46 = vmul.f32 0.125, %v5427_v25 }
0x26da   :  { %v11072_v37 = vsub.f32 %v10611_v34, %v5431_v46  ;;  %5391 = vrot.lane.b32.xlu1 %v5386_v16, %s11788_s29 }
0x26dc   :  { %v5435_v21 = vmul.f32 %v11072_v37, %v11072_v37 }
0x26de   :  { %5439 = vrot.lane.b32.xlu1 %v5435_v21, %s11789_s8 }
0x2731   :  { %v5430_v9 = vpop.xlane.xlu0 %5429 }
0x2732   :  { %v5432_v42 = vmul.f32 0.125, %v5430_v9 }
0x2734   :  { %v5434_v4 = vsub.f32 %v10615_v43, %v5432_v42 }
0x2735   :  { %v5390_v48 = vpop.permute.xlu0 %5389 }
0x2736   :  { %v5436_v13 = vmul.f32 %v5434_v4, %v5434_v4  ;;  %v5395_v5 = vsel %vm390_vm3, %v5390_v48, 0.0 }
0x2738   :  { %5441 = vrot.lane.b32.xlu1 %v5436_v13, %s11789_s8 }
0x274c   :  { %v5392_v51 = vpop.permute.xlu1 %5391 }
0x274d   :  { %v5398_v10 = vsel %vm390_vm3, %v5392_v51, 0.0 }
0x274e   :  { %5399 = vadd.xlane.f32.xlu0 %v5398_v10 }
0x2750   :  { %v5440_v41 = vpop.permute.xlu1 %5439 }
0x2751   :  { %v5445_v39 = vsel %vm390_vm3, %v5440_v41, 0.0 }
0x275c   :  { %5396 = vadd.xlane.f32.xlu1 %v5395_v5 }
0x2764   :  { %5409 = vrot.lane.b32.xlu0 %v11088_v28, %s11790_s30 }
0x276d   :  { %5414 = vrot.lane.b32.xlu1 %v11095_v59, %s11790_s30  ;;  %s11172_s30 = sld [smem:[#allocation2 + $0x1b]] }
0x2788   :  { %v8223_v36 = vpop.f32.mrb[32].mxu1 }
0x2789   :  { %v5277_v53 = vpop.f32.mrb[33].mxu1 }
0x278a   :  { %8226 = vmatprep.mubr.msk.f32.mxu0 %vm390_vm3, %v5277_v53 }
0x278b   :  { %8227 = vmatmul.mubr.msk.f32.vlgmr.msra.gmra.mrb[22].mxu0 %vm390_vm3, %v8223_v36 }
0x278c   :  { %8237 = vmatpush3.xpose.msk.msra.mxu0 %vm390_vm3, %v7600_v52 }
0x2791   :  { %5446 = vadd.xlane.f32.xlu1 %v5445_v39 }
0x27a2   :  { %5464 = vrot.lane.b32.xlu1 %v11095_v59, %s11779_s5 }
0x27aa   :  { %v5442_v56 = vpop.permute.xlu1 %5441 }
0x27ab   :  { %v5448_v24 = vsel %vm390_vm3, %v5442_v56, 0.0 }
0x27ac   :  { %5449 = vadd.xlane.f32.xlu0 %v5448_v24 }
0x27c2   :  { %5459 = vrot.lane.b32.xlu0 %v11088_v28, %s11779_s5 }
0x27db   :  { %v5400_v40 = vpop.xlane.xlu0 %5399 }
0x27dc   :  { %v5402_v61 = vmul.f32 0.125, %v5400_v40 }
0x27de   :  { %v5404_v3 = vadd.f32 1e-05, %v5402_v61 }
0x27df   :  { %v5410_v12 = vpop.permute.xlu0 %5409 }
0x27e0   :  { %9104 = vrsqrt.f32 %v5404_v3 }
0x27e9   :  { %v5397_v30 = vpop.xlane.xlu1 %5396 }
0x27ea   :  { %v9105_v60 = vpop.eup %9104  ;;  %v5401_v19 = vmul.f32 0.125, %v5397_v30 }
0x27eb   :  { %v5408_v44 = vmul.f32 %v9105_v60, %v5384_v29 }
0x27ec   :  { %v5403_v58 = vadd.f32 1e-05, %v5401_v19 }
0x27ed   :  { %v5413_v1 = vmul.f32 %v5410_v12, %v5408_v44  ;;  %v5415_v22 = vpop.permute.xlu1 %5414 }
0x27ee   :  { %9106 = vrsqrt.f32 %v5403_v58 }
0x27ef   :  { %v5418_v38 = vadd.f32 %v5415_v22, %v5413_v1 }
0x27f1   :  { %5473 = vrot.lane.b32.xlu0 %v5418_v38, %s11788_s29 }
0x27f8   :  { %v9107_v55 = vpop.eup %9106 }
0x27f9   :  { %v5407_v45 = vmul.f32 %v9107_v55, %v11063_v50 }
0x27fb   :  { %v5412_v15 = vmul.f32 %v5410_v12, %v5407_v45 }
0x27fd   :  { %v5417_v25 = vadd.f32 %v5415_v22, %v5412_v15 }
0x27ff   :  { %5471 = vrot.lane.b32.xlu1 %v5417_v25, %s11788_s29  ;;  %s11143_s29 = sld [smem:[#allocation2 + $0x19]]  ;;  %v5801_v25 = vstv %s11147_s27  ;;  %s11409_s27 = sld [smem:[#allocation5 + $0x1e]] }
0x2805   :  { %v5793_v45 = vstv %s11143_s29  ;;  %s11398_s29 = sld [smem:[#allocation2 + $0x1e]] }
0x281e   :  { %v5447_v16 = vpop.xlane.xlu1 %5446 }
0x281f   :  { %v5451_v46 = vmul.f32 0.125, %v5447_v16  ;;  %v5741_v16 = vstv %s11149_s1  ;;  %s11412_s1 = sld [smem:[#allocation5 + $0x1f]] }
0x2821   :  { %v5453_v21 = vadd.f32 1e-05, %v5451_v46 }
0x2822   :  { %v5465_v50 = vpop.permute.xlu1 %5464 }
0x2823   :  { %9108 = vrsqrt.f32 %v5453_v21 }
0x282d   :  { %v9109_v42 = vpop.eup %9108 }
0x282e   :  { %v5457_v51 = vmul.f32 %v9109_v42, %v11072_v37 }
0x2839   :  { %v5450_v2 = vpop.xlane.xlu0 %5449 }
0x283a   :  { %v5452_v29 = vmul.f32 0.125, %v5450_v2  ;;  %v5797_v2 = vstv %s11151_s7  ;;  %s11418_s7 = sld [smem:[#allocation7 + $0x1f]] }
0x283c   :  { %v5454_v9 = vadd.f32 1e-05, %v5452_v29  ;;  %v5737_v29 = vstv %s11153_s10  ;;  %s11302_s10 = sld [smem:[#allocation8 + $0x1a]] }
0x283d   :  { %v5460_v13 = vpop.permute.xlu0 %5459 }
0x283e   :  { %9110 = vrsqrt.f32 %v5454_v9  ;;  %v5462_v5 = vmul.f32 %v5460_v13, %v5457_v51 }
0x2840   :  { %v5467_v53 = vadd.f32 %v5465_v50, %v5462_v5 }
0x2848   :  { %v9111_v10 = vpop.eup %9110 }
0x2849   :  { %v5458_v48 = vmul.f32 %v9111_v10, %v5434_v4 }
0x284b   :  { %v5463_v36 = vmul.f32 %v5460_v13, %v5458_v48  ;;  %v11177_v48 = vld [vmem:[%s11771_s4 + $0x8] sm:$0xff] }
0x284c   :  { %v5803_v5 = vmul.f32 %v11177_v48, %v5801_v25 }
0x284d   :  { %v5468_v41 = vadd.f32 %v5465_v50, %v5463_v36  ;;  %v5743_v50 = vmul.f32 %v11177_v48, %v5741_v16 }
0x284f   :  { %v8808_v39 = vpack.i.bf16 %v5468_v41, %v5467_v53  ;;  %v5861_v41 = vstv %s11155_s21  ;;  %s7622_s21 = sld [smem:[#allocation8 + $0x1b]] }
0x2851   :  { %8809 = vrot.lane.b32.xlu1 %v8808_v39, %s11789_s8  ;;  %s11145_s8 = sld [smem:[#allocation2 + $0x18]] }
0x2857   :  { %v5733_v15 = vstv %s11145_s8  ;;  %s11402_s8 = sld [smem:[#allocation2 + $0x1f]] }
0x2863   :  { %v5474_v24 = vpop.permute.xlu0 %5473 }
0x2871   :  { %v5472_v56 = vpop.permute.xlu1 %5471 }
0x2872   :  { %8233 = vmatprep.mubr.msk.f32.mxu1 %vm390_vm3, %v5472_v56  ;;  %8238 = vmatprep.mubr.msk.f32.mxu0 %vm390_vm3, %v5472_v56 }
0x2873   :  { %8239 = vmatmul.mubr.msk.f32.vlgmr.msra.gmra.mrb[28].mxu0 %vm390_vm3, %v5474_v24 }
0x28c3   :  { %v8810_v40 = vpop.permute.xlu1 %8809 }
0x28c4   :  { %v8812_v37 = vunpack.i.h.bf16 %v8810_v40  ;;  %v8811_v61 = vunpack.i.l.bf16 %v8810_v40 }
0x28c6   :  { %v8544_v4 = vpack.c.bf16 %v8812_v37, %v8811_v61  ;;  %v5857_v61 = vstv %s11163_s25 }
0x28c8   :  { %8546 = vmatprep.subr.msk.bf16.mxu1 %vm9665_vm5, %v8544_v4 }
0x28c9   :  { %8549 = vmatpush3.bf16.xpose.msk.msra.mxu1 %vm9665_vm5, %v8544_v4 }
0x28ca   :  { %8550 = vmatprep.subr.bf16.mxu1 %v11773_v54 }
0x28d0   :  { %8234 = vmatmul.mubr.msk.f32.vlgmr.msra.gmra.mrb[34].mxu1 %vm390_vm3, %v5474_v24  ;;  %v5853_v24 = vstv %s11159_s23 }
0x28d1   :  { %8553 = vmatpush3.bf16.xpose.msk.msra.mxu1 %vm9665_vm5, %v8544_v4  ;;  %8245 = vmatprep.mubr.msk.f32.mxu1 %vm9304_vm4, %v11774_v8 }
0x28d8   :  { %8246 = vmatmul.mubr.msk.f32.vlgmr.msra.gmra.mrb[36].mxu1 %vm390_vm3, %v7600_v52 }
0x2946   :  { %v8240_v3 = vpop.f32.mrb[28].mxu0 }
0x2947   :  { %5782 = vperm.xlu0 %8814, %v8240_v3   ;;  %5722 = vperm.xlu1 %8813, %v8240_v3   ;;  %v5635_v30 = vpop.f32.mrb[29].mxu0 }
0x294b   :  { %8816 = vset.pattern.permute.xlu0 %v11775_v32  ;;  %8815 = vset.pattern.permute.xlu1 %v11776_v47 }
0x294c   :  { %5842 = vperm.xlu1 %8815, %v8240_v3   ;;  %5717 = vperm.xlu0 %8816, %v5635_v30  }
0x2950   :  { %8817 = vset.pattern.permute.xlu1 %v11777_v33  ;;  %8819 = vset.pattern.permute.xlu0 %v11778_v0 }
0x2951   :  { %5778 = vperm.xlu1 %8817, %v5635_v30   ;;  %5898 = vperm.xlu0 %8819, %v5635_v30  }
0x2955   :  { %8818 = vset.pattern.permute.xlu1 %v11776_v47  ;;  %8835 = vset.pattern.permute.xlu0 %v11777_v33 }
0x2956   :  { %5838 = vperm.xlu1 %8818, %v5635_v30   ;;  %v5863_v30 = vmul.f32 %v11177_v48, %v5861_v41 }
0x295a   :  { %8820 = vset.pattern.permute.xlu1 %v11778_v0 }
0x295b   :  { %5902 = vperm.xlu1 %8820, %v8240_v3  }
0x295f   :  { %8831 = vset.pattern.permute.xlu1 %v11775_v32 }
0x29a3   :  { %v11139_v52 = vpop.f32.mrb[34].mxu1 }
0x29a4   :  { %v11141_v60 = vpop.f32.mrb[35].mxu1 }
0x29ab   :  { %v5710_v19 = vpop.f32.mrb[36].mxu1 }
0x29ac   :  { %v8247_v12 = vpop.f32.mrb[37].mxu1  ;;  %v5790_v44 = vrot.slane %v5710_v19, %v9718_v62  ;;  %v5730_v58 = vrot.slane %v5710_v19, %v9709_v57  ;;  %v5850_v9 = vrot.slane %v5710_v19, %v9720_v63 }
0x29c6   :  { %v5783_v1 = vpop.permute.xlu0 %5782  ;;  %v5723_v22 = vpop.permute.xlu1 %5722 }
0x29c7   :  { %v5786_v38 = vsub.f32 %v11139_v52, %v5783_v1  ;;  %v5726_v55 = vsub.f32 %v11139_v52, %v5723_v22 }
0x29c9   :  { %v5792_v46 = vsub.f32 %v5786_v38, %v5790_v44  ;;  %v5732_v21 = vsub.f32 %v5726_v55, %v5730_v58  ;;  %v5910_v38 = vrot.slane %v5710_v19, %v9722_v27 }
0x29cb   :  { %v5795_v42 = vmul.f32 %v5793_v45, %v5792_v46  ;;  %v5735_v13 = vmul.f32 %v5733_v15, %v5732_v21  ;;  %v5843_v51 = vpop.permute.xlu1 %5842  ;;  %v5718_v10 = vpop.permute.xlu0 %5717 }
0x29cc   :  { %v5846_v36 = vsub.f32 %v11139_v52, %v5843_v51  ;;  %v5725_v53 = vsub.f32 %v11141_v60, %v5718_v10 }
0x29cd   :  { %v5799_v39 = vadd.f32 %v5797_v2, %v5795_v42  ;;  %v5739_v56 = vadd.f32 %v5737_v29, %v5735_v13  ;;  %v11203_v13 = vld [vmem:[%s11772_s24 + $0x8] sm:$0xff] }
0x29ce   :  { %v5852_v40 = vsub.f32 %v5846_v36, %v5850_v9  ;;  %v5731_v37 = vsub.f32 %v5725_v53, %v5730_v58  ;;  %v11195_v58 = vld [vmem:[%s11771_s4] sm:$0xff]  ;;  %s11415_s4 = sld [smem:[#allocation7 + $0x1e]] }
0x29cf   :  { %v5805_v4 = vadd.f32 %v5803_v5, %v5799_v39  ;;  %v5745_v3 = vadd.f32 %v5743_v50, %v5739_v56  ;;  %v5742_v46 = vmul.f32 %v11195_v58, %v5741_v16  ;;  %v5913_v5 = vstv %s11172_s30  ;;  %s11791_s30 = smov 24  }
0x29d0   :  { %v5855_v12 = vmul.f32 %v5853_v24, %v5852_v40  ;;  %v5734_v1 = vmul.f32 %v5733_v15, %v5731_v37  ;;  %v5779_v22 = vpop.permute.xlu1 %5778  ;;  %v5899_v55 = vpop.permute.xlu0 %5898 }
0x29d1   :  { %v5785_v21 = vsub.f32 %v11141_v60, %v5779_v22  ;;  %v5905_v42 = vsub.f32 %v11141_v60, %v5899_v55  ;;  %v11206_v15 = vadd.f32 %v11203_v13, %v5805_v4  ;;  %v11209_v19 = vadd.f32 %v11203_v13, %v5745_v3 }
0x29d2   :  { %v5859_v51 = vadd.f32 %v5857_v61, %v5855_v12  ;;  %v5738_v10 = vadd.f32 %v5737_v29, %v5734_v1  ;;  %v5802_v4 = vmul.f32 %v11195_v58, %v5801_v25  ;;  %v5917_v1 = vstv %s11186_s2  ;;  %s11385_s2 = sld [smem:[#allocation5 + $0x1d]] }
0x29d3   :  { %v5791_v16 = vsub.f32 %v5785_v21, %v5790_v44  ;;  %v5911_v50 = vsub.f32 %v5905_v42, %v5910_v38  ;;  %v5811_v36 = vsel %vm760_vm6, %v11206_v15, -inf  ;;  %v5751_v53 = vsel %vm760_vm6, %v11209_v19, -inf }
0x29d4   :  { %5812 = vmax.xlane.f32.xlu1 %v5811_v36  ;;  %5752 = vmax.xlane.f32.xlu0 %v5751_v53  ;;  %v5865_v39 = vadd.f32 %v5863_v30, %v5859_v51  ;;  %v5744_v56 = vadd.f32 %v5742_v46, %v5738_v10  ;;  %v5921_v22 = vstv %s11189_s6  ;;  %v11225_v30 = vld [vmem:[%s11772_s24] sm:$0xff]  ;;  %s11298_s24 = sld [smem:[#allocation8 + $0x19]]  ;;  %s11390_s6 = sld [smem:[#allocation7 + $0x1d]] }
0x29d5   :  { %v5794_v40 = vmul.f32 %v5793_v45, %v5791_v16  ;;  %v5839_v37 = vpop.permute.xlu1 %5838  ;;  %v5914_v29 = vmul.f32 %v5913_v5, %v5911_v50  ;;  %v5922_v51 = vmul.f32 %v11195_v58, %v5921_v22 }
0x29d6   :  { %v5845_v3 = vsub.f32 %v11141_v60, %v5839_v37  ;;  %v5867_v44 = vadd.f32 %v11203_v13, %v5865_v39  ;;  %v11228_v45 = vadd.f32 %v11225_v30, %v5744_v56 }
0x29d7   :  { %v5798_v12 = vadd.f32 %v5797_v2, %v5794_v40  ;;  %v5918_v46 = vadd.f32 %v5917_v1, %v5914_v29  ;;  %v5862_v2 = vmul.f32 %v11195_v58, %v5861_v41  ;;  %v5923_v41 = vmul.f32 %v11177_v48, %v5921_v22 }
0x29d8   :  { %v5851_v55 = vsub.f32 %v5845_v3, %v5850_v9  ;;  %v5871_v21 = vsel %vm760_vm6, %v5867_v44, -inf  ;;  %v5748_v50 = vsel %vm760_vm6, %v11228_v45, -inf }
0x29d9   :  { %5872 = vmax.xlane.f32.xlu1 %v5871_v21  ;;  %v5804_v25 = vadd.f32 %v5802_v4, %v5798_v12 }
0x29da   :  { %v5854_v60 = vmul.f32 %v5853_v24, %v5851_v55  ;;  %v5903_v42 = vpop.permute.xlu1 %5902  ;;  %v5924_v24 = vadd.f32 %v5922_v51, %v5918_v46 }
0x29db   :  { %v5906_v9 = vsub.f32 %v11139_v52, %v5903_v42  ;;  %v5806_v10 = vadd.f32 %v11225_v30, %v5804_v25 }
0x29dc   :  { %v5858_v16 = vadd.f32 %v5857_v61, %v5854_v60  ;;  %v5926_v61 = vadd.f32 %v11225_v30, %v5924_v24 }
0x29dd   :  { %v5912_v36 = vsub.f32 %v5906_v9, %v5910_v38  ;;  %5749 = vmax.xlane.f32.xlu1 %v5748_v50  ;;  %v5808_v53 = vsel %vm760_vm6, %v5806_v10, -inf }
0x29de   :  { %5809 = vmax.xlane.f32.xlu0 %v5808_v53  ;;  %v5864_v39 = vadd.f32 %v5862_v2, %v5858_v16  ;;  %v5928_v29 = vsel %vm760_vm6, %v5926_v61, -inf }
0x29df   :  { %v5915_v56 = vmul.f32 %v5913_v5, %v5912_v36 }
0x29e0   :  { %v5866_v40 = vadd.f32 %v11225_v30, %v5864_v39 }
0x29e1   :  { %v5919_v37 = vadd.f32 %v5917_v1, %v5915_v56 }
0x29e2   :  { %v5868_v52 = vsel %vm760_vm6, %v5866_v40, -inf }
0x29e3   :  { %5869 = vmax.xlane.f32.xlu0 %v5868_v52  ;;  %v5925_v4 = vadd.f32 %v5923_v41, %v5919_v37 }
0x29e5   :  { %v5927_v38 = vadd.f32 %v11203_v13, %v5925_v4 }
0x29e7   :  { %5929 = vmax.xlane.f32.xlu0 %v5928_v29  ;;  %v5931_v3 = vsel %vm760_vm6, %v5927_v38, -inf }
0x29e8   :  { %5932 = vmax.xlane.f32.xlu1 %v5931_v3 }
0x29f9   :  { %6128 = vrot.lane.b32.xlu1 %v10615_v43, %s9318_s9 }
0x29fd   :  { %6126 = vrot.lane.b32.xlu0 %v10611_v34, %s9318_s9 }
0x2a01   :  { %6176 = vrot.lane.b32.xlu0 %v10611_v34, %s9319_s26 }
0x2a61   :  { %v5813_v5 = vpop.xlane.xlu1 %5812  ;;  %v5753_v12 = vpop.xlane.xlu0 %5752 }
0x2a62   :  { %v5815_v1 = vsub.f32 %v11206_v15, %v5813_v5  ;;  %v5755_v22 = vsub.f32 %v11209_v19, %v5753_v12 }
0x2a64   :  { %v5818_v55 = vmul.f32 1.442695, %v5815_v1  ;;  %v5758_v21 = vmul.f32 1.442695, %v5755_v22 }
0x2a66   :  { %9112 = vpow2.f32 %v5818_v55  ;;  %v5873_v25 = vpop.xlane.xlu1 %5872 }
0x2a67   :  { %9114 = vpow2.f32 %v5758_v21  ;;  %v5875_v46 = vsub.f32 %v5867_v44, %v5873_v25 }
0x2a69   :  { %v5878_v60 = vmul.f32 1.442695, %v5875_v46 }
0x2a6a   :  { %v5750_v36 = vpop.xlane.xlu1 %5749 }
0x2a6b   :  { %9116 = vpow2.f32 %v5878_v60  ;;  %v5810_v42 = vpop.xlane.xlu0 %5809 }
0x2a6c   :  { %v5814_v2 = vsub.f32 %v5806_v10, %v5810_v42  ;;  %v5754_v10 = vsub.f32 %v11228_v45, %v5750_v36 }
0x2a6e   :  { %v5816_v51 = vmul.f32 1.442695, %v5814_v2  ;;  %v5756_v4 = vmul.f32 1.442695, %v5754_v10 }
0x2a70   :  { %v11252_v9 = vpop.eup %9112  ;;  %v5870_v16 = vpop.xlane.xlu0 %5869  ;;  %9118 = vpow2.f32 %v5816_v51 }
0x2a71   :  { %v11254_v50 = vpop.eup %9114  ;;  %v5874_v15 = vsub.f32 %v5866_v40, %v5870_v16  ;;  %v5823_v19 = vsel %vm760_vm6, %v11252_v9, 0.0 }
0x2a72   :  { %5824 = vadd.xlane.f32.xlu1 %v5823_v19  ;;  %v5763_v44 = vsel %vm760_vm6, %v11254_v50, 0.0 }
0x2a73   :  { %v5876_v53 = vmul.f32 1.442695, %v5874_v15  ;;  %5764 = vadd.xlane.f32.xlu0 %v5763_v44 }
0x2a74   :  { %v5930_v39 = vpop.xlane.xlu0 %5929 }
0x2a75   :  { %v11261_v24 = vpop.eup %9116  ;;  %9120 = vpow2.f32 %v5876_v53  ;;  %v5934_v56 = vsub.f32 %v5926_v61, %v5930_v39  ;;  %v5933_v41 = vpop.xlane.xlu1 %5932 }
0x2a76   :  { %v5935_v37 = vsub.f32 %v5927_v38, %v5933_v41  ;;  %v5883_v40 = vsel %vm760_vm6, %v11261_v24, 0.0 }
0x2a77   :  { %v5936_v52 = vmul.f32 1.442695, %v5934_v56  ;;  %5884 = vadd.xlane.f32.xlu1 %v5883_v40 }
0x2a78   :  { %v5938_v29 = vmul.f32 1.442695, %v5935_v37  ;;  %v6127_v60 = vpop.permute.xlu0 %6126 }
0x2a79   :  { %9122 = vpow2.f32 %v5936_v52  ;;  %v6129_v3 = vpop.permute.xlu1 %6128  ;;  %v6132_v42 = vsel %vm390_vm3, %v6127_v60, 0.0 }
0x2a7a   :  { %9124 = vpow2.f32 %v5938_v29  ;;  %v6135_v5 = vsel %vm390_vm3, %v6129_v3, 0.0  ;;  %v11266_v45 = vpop.eup %9118 }
0x2a7b   :  { %6136 = vadd.xlane.f32.xlu0 %v6135_v5  ;;  %9126 = vpow2.f32 %v5756_v4  ;;  %v5820_v61 = vsel %vm760_vm6, %v11266_v45, 0.0 }
0x2a7c   :  { %v6177_v2 = vpop.permute.xlu0 %6176 }
0x2a7d   :  { %v6182_v51 = vsel %vm390_vm3, %v6177_v2, 0.0 }
0x2a7f   :  { %v11270_v38 = vpop.eup %9120  ;;  %5821 = vadd.xlane.f32.xlu0 %v5820_v61 }
0x2a80   :  { %v5880_v12 = vsel %vm760_vm6, %v11270_v38, 0.0 }
0x2a83   :  { %v11274_v1 = vpop.eup %9122  ;;  %5881 = vadd.xlane.f32.xlu0 %v5880_v12 }
0x2a84   :  { %v11276_v22 = vpop.eup %9124  ;;  %v5940_v25 = vsel %vm760_vm6, %v11274_v1, 0.0 }
0x2a85   :  { %v5943_v55 = vsel %vm760_vm6, %v11276_v22, 0.0  ;;  %v11280_v21 = vpop.eup %9126 }
0x2a86   :  { %5944 = vadd.xlane.f32.xlu1 %v5943_v55  ;;  %v5760_v46 = vsel %vm760_vm6, %v11280_v21, 0.0 }
0x2a87   :  { %5941 = vadd.xlane.f32.xlu0 %v5940_v25 }
0x2a8a   :  { %5761 = vadd.xlane.f32.xlu1 %v5760_v46 }
0x2a9b   :  { %6178 = vrot.lane.b32.xlu1 %v10615_v43, %s9319_s26 }
0x2a9d   :  { %8822 = vrot.lane.b32.xlu0 %v10829_v49, %s11779_s5  ;;  %s11300_s5 = sld [smem:[#allocation8 + $0x18]] }
0x2abf   :  { %6133 = vadd.xlane.f32.xlu1 %v6132_v42 }
0x2ac3   :  { %6183 = vadd.xlane.f32.xlu1 %v6182_v51 }
0x2aff   :  { %v5825_v15 = vpop.xlane.xlu1 %5824 }
0x2b00   :  { %v5765_v16 = vpop.xlane.xlu0 %5764  ;;  %9128 = vrcp.f32 %v5825_v15  ;;  %v5771_v15 = vstv %s11300_s5  ;;  %s11794_s5 = sld [smem:[#allocation26_spill]] }
0x2b01   :  { %9130 = vrcp.f32 %v5765_v16 }
0x2b04   :  { %v5885_v39 = vpop.xlane.xlu1 %5884 }
0x2b05   :  { %9132 = vrcp.f32 %v5885_v39 }
0x2b08   :  { %v6137_v36 = vpop.xlane.xlu0 %6136 }
0x2b09   :  { %v6139_v19 = vmul.f32 0.125, %v6137_v36  ;;  %v5831_v36 = vstv %s11298_s24 }
0x2b0a   :  { %v9129_v3 = vpop.eup %9128 }
0x2b0b   :  { %v11293_v44 = vsub.f32 %v10615_v43, %v6139_v19  ;;  %v9131_v12 = vpop.eup %9130  ;;  %v5829_v2 = vmul.f32 %v9129_v3, %v11252_v9 }
0x2b0c   :  { %v5822_v53 = vpop.xlane.xlu0 %5821  ;;  %v5769_v51 = vmul.f32 %v9131_v12, %v11254_v50 }
0x2b0d   :  { %v6143_v10 = vmul.f32 %v11293_v44, %v11293_v44  ;;  %9134 = vrcp.f32 %v5822_v53 }
0x2b0f   :  { %6148 = vrot.lane.b32.xlu0 %v6143_v10, %s9318_s9  ;;  %v9133_v25 = vpop.eup %9132 }
0x2b10   :  { %v5882_v56 = vpop.xlane.xlu0 %5881  ;;  %v5889_v10 = vmul.f32 %v9133_v25, %v11261_v24 }
0x2b11   :  { %9136 = vrcp.f32 %v5882_v56 }
0x2b13   :  { %v5945_v41 = vpop.xlane.xlu1 %5944 }
0x2b14   :  { %v5942_v37 = vpop.xlane.xlu0 %5941  ;;  %9138 = vrcp.f32 %v5945_v41  ;;  %v5891_v41 = vstv %s11302_s10  ;;  %s11483_s10 = sld [smem:[#allocation8 + $0x1c]] }
0x2b15   :  { %9140 = vrcp.f32 %v5942_v37  ;;  %v5833_v37 = vmul.f32 %v5831_v36, %v5829_v2  ;;  %v5893_v3 = vmul.f32 %v5891_v41, %v5889_v10 }
0x2b17   :  { %v5762_v40 = vpop.xlane.xlu1 %5761  ;;  %v9135_v46 = vpop.eup %9134 }
0x2b18   :  { %9142 = vrcp.f32 %v5762_v40  ;;  %v8823_v52 = vpop.permute.xlu0 %8822  ;;  %v5827_v19 = vmul.f32 %v9135_v46, %v11266_v45  ;;  %v5773_v40 = vmul.f32 %v5771_v15, %v5769_v51 }
0x2b19   :  { %v8825_v4 = vunpack.i.h.bf16 %v8823_v52  ;;  %v8824_v29 = vunpack.i.l.bf16 %v8823_v52 }
0x2b1b   :  { %v8554_v5 = vpack.c.bf16 %v8825_v4, %v8824_v29  ;;  %v6179_v61 = vpop.permute.xlu1 %6178  ;;  %v9137_v60 = vpop.eup %9136  ;;  %v5832_v4 = vmul.f32 %v5831_v36, %v5827_v19  ;;  %v5951_v29 = vstv %s7622_s21  ;;  %v7528_v36 = vld [vmem:[%s11682_s12 + $0x30] sm:$0xff]  ;;  %s11487_s21 = sld [smem:[#allocation8 + $0x1f]] }
0x2b1c   :  { %v6185_v55 = vsel %vm390_vm3, %v6179_v61, 0.0  ;;  %v5887_v39 = vmul.f32 %v9137_v60, %v11270_v38  ;;  %v5835_v61 = vadd.f32 %v5833_v37, %v5773_v40 }
0x2b1d   :  { %6186 = vadd.xlane.f32.xlu1 %v6185_v55  ;;  %8555 = vmatprep.subr.bf16.mxu0 %v8554_v5 }
0x2b1e   :  { %8557 = vmatpush3.bf16.msra.mxu0 %v8554_v5  ;;  %v9139_v42 = vpop.eup %9138  ;;  %v5892_v45 = vmul.f32 %v5891_v41, %v5887_v39  ;;  %v5895_v38 = vadd.f32 %v5893_v3, %v5835_v61 }
0x2b1f   :  { %v9141_v16 = vpop.eup %9140  ;;  %v5949_v52 = vmul.f32 %v9139_v42, %v11276_v22  ;;  %8255 = vmatprep.subr.mxu0 %v7528_v36 }
0x2b20   :  { %v5947_v50 = vmul.f32 %v9141_v16, %v11274_v1 }
0x2b21   :  { %v5953_v12 = vmul.f32 %v5951_v29, %v5949_v52 }
0x2b22   :  { %v9143_v53 = vpop.eup %9142  ;;  %v5952_v55 = vmul.f32 %v5951_v29, %v5947_v50 }
0x2b23   :  { %v5767_v56 = vmul.f32 %v9143_v53, %v11280_v21  ;;  %v5955_v21 = vadd.f32 %v5953_v12, %v5895_v38 }
0x2b25   :  { %v5772_v9 = vmul.f32 %v5771_v15, %v5767_v56 }
0x2b27   :  { %v5834_v5 = vadd.f32 %v5832_v4, %v5772_v9 }
0x2b29   :  { %v5894_v24 = vadd.f32 %v5892_v45, %v5834_v5  ;;  %v7631_v5 = vld [vmem:[%s11681_s11 + $0x1c] sm:$0xf]  ;;  %s11377_s11 = sld [smem:[#allocation2 + $0x1c]] }
0x2b2b   :  { %v5954_v25 = vadd.f32 %v5952_v55, %v5894_v24 }
0x2b2d   :  { %8252 = vmatprep.mubr.msk.f32.mxu0 %vm760_vm6, %v5954_v25 }
0x2b2e   :  { %8253 = vmatmul.mubr.msk.f32.vlgmr.msra.gmra.mrb[30].mxu0 %vm760_vm6, %v5955_v21 }
0x2b2f   :  { %8256 = vmatpush3.msra.mxu0 %v7528_v36 }
0x2b30   :  { %8267 = vmatprep.subr.msk.mxu0 %vm390_vm3, %v7631_v5 }
0x2b4c   :  { %v6134_v22 = vpop.xlane.xlu1 %6133 }
0x2b4d   :  { %v6138_v46 = vmul.f32 0.125, %v6134_v22 }
0x2b4f   :  { %v6140_v60 = vsub.f32 %v10611_v34, %v6138_v46 }
0x2b50   :  { %v6184_v1 = vpop.xlane.xlu1 %6183 }
0x2b51   :  { %v6142_v42 = vmul.f32 %v6140_v60, %v6140_v60  ;;  %v6188_v2 = vmul.f32 0.125, %v6184_v1 }
0x2b53   :  { %v11320_v51 = vsub.f32 %v10611_v34, %v6188_v2  ;;  %6146 = vrot.lane.b32.xlu1 %v6142_v42, %s9318_s9 }
0x2b55   :  { %v6192_v16 = vmul.f32 %v11320_v51, %v11320_v51 }
0x2b57   :  { %6196 = vrot.lane.b32.xlu0 %v6192_v16, %s9319_s26 }
0x2b81   :  { %v6149_v56 = vpop.permute.xlu0 %6148 }
0x2b82   :  { %v6155_v41 = vsel %vm390_vm3, %v6149_v56, 0.0 }
0x2baa   :  { %v6187_v15 = vpop.xlane.xlu1 %6186 }
0x2bab   :  { %v6189_v19 = vmul.f32 0.125, %v6187_v15 }
0x2bad   :  { %v6191_v53 = vsub.f32 %v10615_v43, %v6189_v19 }
0x2baf   :  { %v6193_v10 = vmul.f32 %v6191_v53, %v6191_v53 }
0x2bb1   :  { %6198 = vrot.lane.b32.xlu1 %v6193_v10, %s9319_s26 }
0x2bc5   :  { %v6147_v34 = vpop.permute.xlu1 %6146 }
0x2bc6   :  { %v6152_v39 = vsel %vm390_vm3, %v6147_v34, 0.0 }
0x2bc7   :  { %6153 = vadd.xlane.f32.xlu0 %v6152_v39 }
0x2bc9   :  { %v6197_v37 = vpop.permute.xlu0 %6196 }
0x2bca   :  { %v6202_v43 = vsel %vm390_vm3, %v6197_v37, 0.0 }
0x2bd5   :  { %6156 = vadd.xlane.f32.xlu1 %v6155_v41 }
0x2bdd   :  { %6166 = vrot.lane.b32.xlu0 %v11088_v28, %s11791_s30 }
0x2be6   :  { %6171 = vrot.lane.b32.xlu1 %v11095_v59, %s11791_s30 }
0x2bfc   :  { %6203 = vadd.xlane.f32.xlu0 %v6202_v43 }
0x2c01   :  { %v8254_v40 = vpop.f32.mrb[30].mxu0 }
0x2c02   :  { %v6034_v52 = vpop.f32.mrb[31].mxu0 }
0x2c03   :  { %8257 = vmatprep.mubr.msk.f32.mxu0 %vm390_vm3, %v6034_v52 }
0x2c04   :  { %8258 = vmatmul.mubr.msk.f32.vlgmr.msra.gmra.mrb[22].mxu0 %vm390_vm3, %v8254_v40 }
0x2c05   :  { %8268 = vmatpush3.xpose.msk.msra.mxu0 %vm390_vm3, %v7631_v5 }
0x2c06   :  { %8564 = vmatprep.subr.bf16.mxu0 %v11773_v54 }
0x2c12   :  { %6216 = vrot.lane.b32.xlu0 %v11088_v28, %s11780_s22 }
0x2c23   :  { %v6199_v9 = vpop.permute.xlu1 %6198 }
0x2c24   :  { %v6205_v4 = vsel %vm390_vm3, %v6199_v9, 0.0 }
0x2c25   :  { %6206 = vadd.xlane.f32.xlu1 %v6205_v4 }
0x2c36   :  { %6221 = vrot.lane.b32.xlu1 %v11095_v59, %s11780_s22  ;;  %s11383_s22 = sld [smem:[#allocation7 + $0x1c]] }
0x2c54   :  { %v6154_v50 = vpop.xlane.xlu0 %6153 }
0x2c55   :  { %v6158_v29 = vmul.f32 0.125, %v6154_v50 }
0x2c57   :  { %v6160_v3 = vadd.f32 1e-05, %v6158_v29 }
0x2c58   :  { %v6167_v12 = vpop.permute.xlu0 %6166 }
0x2c59   :  { %9144 = vrsqrt.f32 %v6160_v3 }
0x2c62   :  { %v6157_v28 = vpop.xlane.xlu1 %6156 }
0x2c63   :  { %v9145_v45 = vpop.eup %9144  ;;  %v6159_v61 = vmul.f32 0.125, %v6157_v28 }
0x2c64   :  { %v6164_v24 = vmul.f32 %v9145_v45, %v6140_v60 }
0x2c65   :  { %v6161_v59 = vadd.f32 1e-05, %v6159_v61 }
0x2c66   :  { %v6169_v55 = vmul.f32 %v6167_v12, %v6164_v24  ;;  %v6172_v38 = vpop.permute.xlu1 %6171 }
0x2c67   :  { %9146 = vrsqrt.f32 %v6161_v59 }
0x2c68   :  { %v6174_v25 = vadd.f32 %v6172_v38, %v6169_v55 }
0x2c6a   :  { %6228 = vrot.lane.b32.xlu0 %v6174_v25, %s9318_s9 }
0x2c71   :  { %v9147_v21 = vpop.eup %9146 }
0x2c72   :  { %v6165_v22 = vmul.f32 %v9147_v21, %v11293_v44 }
0x2c74   :  { %v6170_v46 = vmul.f32 %v6167_v12, %v6165_v22  ;;  %v6490_v12 = vstv %s11377_s11 }
0x2c76   :  { %v6175_v1 = vadd.f32 %v6172_v38, %v6170_v46  ;;  %v6494_v38 = vstv %s11383_s22 }
0x2c78   :  { %6230 = vrot.lane.b32.xlu1 %v6175_v1, %s9318_s9  ;;  %s11379_s9 = sld [smem:[#allocation5 + $0x1c]] }
0x2c7e   :  { %v6498_v24 = vstv %s11379_s9 }
0x2c7f   :  { %v6500_v22 = vmul.f32 %v11177_v48, %v6498_v24 }
0x2c89   :  { %v6204_v54 = vpop.xlane.xlu0 %6203 }
0x2c8a   :  { %v6208_v42 = vmul.f32 0.125, %v6204_v54 }
0x2c8c   :  { %v6210_v2 = vadd.f32 1e-05, %v6208_v42  ;;  %v6558_v42 = vstv %s11385_s2 }
0x2c8d   :  { %v6217_v34 = vpop.permute.xlu0 %6216 }
0x2c8e   :  { %9148 = vrsqrt.f32 %v6210_v2  ;;  %v6554_v2 = vstv %s11390_s6 }
0x2c98   :  { %v9149_v15 = vpop.eup %9148 }
0x2c99   :  { %v6214_v19 = vmul.f32 %v9149_v15, %v11320_v51 }
0x2c9b   :  { %v6219_v44 = vmul.f32 %v6217_v34, %v6214_v19  ;;  %v6559_v19 = vmul.f32 %v11195_v58, %v6558_v42 }
0x2cb2   :  { %v6207_v16 = vpop.xlane.xlu1 %6206 }
0x2cb3   :  { %v6209_v60 = vmul.f32 0.125, %v6207_v16 }
0x2cb5   :  { %v6211_v36 = vadd.f32 1e-05, %v6209_v60 }
0x2cb6   :  { %v6222_v56 = vpop.permute.xlu1 %6221 }
0x2cb7   :  { %9150 = vrsqrt.f32 %v6211_v36  ;;  %v6224_v37 = vadd.f32 %v6222_v56, %v6219_v44  ;;  %v6560_v44 = vmul.f32 %v11177_v48, %v6558_v42 }
0x2cc1   :  { %v9151_v10 = vpop.eup %9150 }
0x2cc2   :  { %v6215_v39 = vmul.f32 %v9151_v10, %v6191_v53 }
0x2cc4   :  { %v6220_v41 = vmul.f32 %v6217_v34, %v6215_v39 }
0x2cc6   :  { %v6225_v43 = vadd.f32 %v6222_v56, %v6220_v41 }
0x2cc8   :  { %v8826_v40 = vpack.i.bf16 %v6225_v43, %v6224_v37 }
0x2cca   :  { %8827 = vrot.lane.b32.xlu0 %v8826_v40, %s9319_s26  ;;  %s11381_s26 = sld [smem:[#allocation2 + $0x1d]] }
0x2cd0   :  { %v6550_v55 = vstv %s11381_s26 }
0x2cdc   :  { %v6229_v52 = vpop.permute.xlu0 %6228 }
0x2cdd   :  { %8264 = vmatprep.mubr.msk.f32.mxu1 %vm390_vm3, %v6229_v52  ;;  %8269 = vmatprep.mubr.msk.f32.mxu0 %vm390_vm3, %v6229_v52  ;;  %v6610_v52 = vstv %s11398_s29 }
0x2cea   :  { %v6231_v9 = vpop.permute.xlu1 %6230 }
0x2ceb   :  { %8270 = vmatmul.mubr.msk.f32.vlgmr.msra.gmra.mrb[32].mxu0 %vm390_vm3, %v6231_v9 }
0x2cec   :  { %8276 = vmatprep.mubr.msk.f32.mxu0 %vm9304_vm4, %v11774_v8 }
0x2d3c   :  { %v8828_v51 = vpop.permute.xlu0 %8827 }
0x2d3d   :  { %v8830_v53 = vunpack.i.h.bf16 %v8828_v51  ;;  %v8829_v4 = vunpack.i.l.bf16 %v8828_v51 }
0x2d3f   :  { %v8558_v50 = vpack.c.bf16 %v8830_v53, %v8829_v4  ;;  %v6670_v53 = vstv %s11402_s8 }
0x2d41   :  { %8560 = vmatprep.subr.msk.bf16.mxu1 %vm9665_vm5, %v8558_v50  ;;  %8567 = vmatpush3.bf16.xpose.msk.msra.mxu0 %vm9665_vm5, %v8558_v50 }
0x2d42   :  { %8563 = vmatpush3.bf16.xpose.msk.msra.mxu1 %vm9665_vm5, %v8558_v50  ;;  %v6618_v50 = vstv %s11409_s27 }
0x2d48   :  { %8277 = vmatmul.mubr.msk.f32.vlgmr.msra.gmra.mrb[34].mxu0 %vm390_vm3, %v7631_v5 }
0x2d49   :  { %8265 = vmatmul.mubr.msk.f32.vlgmr.msra.gmra.mrb[38].mxu1 %vm390_vm3, %v6231_v9 }
0x2dbe   :  { %v8271_v29 = vpop.f32.mrb[32].mxu0 }
0x2dbf   :  { %6479 = vperm.xlu1 %8831, %v8271_v29   ;;  %v6392_v8 = vpop.f32.mrb[33].mxu0 }
0x2dc0   :  { %6535 = vperm.xlu0 %8835, %v6392_v8  }
0x2dc3   :  { %8832 = vset.pattern.permute.xlu1 %v11777_v33 }
0x2dc4   :  { %6539 = vperm.xlu1 %8832, %v8271_v29   ;;  %8836 = vset.pattern.permute.xlu0 %v11776_v47 }
0x2dc5   :  { %6595 = vperm.xlu0 %8836, %v6392_v8  }
0x2dc8   :  { %8833 = vset.pattern.permute.xlu1 %v11776_v47 }
0x2dc9   :  { %6599 = vperm.xlu1 %8833, %v8271_v29   ;;  %8838 = vset.pattern.permute.xlu0 %v11778_v0 }
0x2dca   :  { %6659 = vperm.xlu0 %8838, %v8271_v29  }
0x2dcd   :  { %8834 = vset.pattern.permute.xlu1 %v11775_v32 }
0x2dce   :  { %6474 = vperm.xlu1 %8834, %v6392_v8  }
0x2dd2   :  { %8837 = vset.pattern.permute.xlu1 %v11778_v0 }
0x2dd3   :  { %6655 = vperm.xlu1 %8837, %v6392_v8  }
0x2e1b   :  { %v6467_v35 = vpop.f32.mrb[34].mxu0 }
0x2e1c   :  { %v8266_v3 = vpop.f32.mrb[38].mxu1  ;;  %v8278_v5 = vpop.f32.mrb[35].mxu0  ;;  %v11388_v32 = vrot.slane %v6467_v35, %v9709_v57  ;;  %v6547_v0 = vrot.slane %v6467_v35, %v9718_v62  ;;  %v6607_v21 = vrot.slane %v6467_v35, %v9720_v63  ;;  %v6667_v56 = vrot.slane %v6467_v35, %v9722_v27 }
0x2e1d   :  { %v11375_v33 = vpop.f32.mrb[39].mxu1  ;;  %v6678_v35 = vstv %s11412_s1  ;;  %v6614_v5 = vstv %s11415_s4 }
0x2e3e   :  { %v6480_v47 = vpop.permute.xlu1 %6479 }
0x2e3f   :  { %v6483_v28 = vsub.f32 %v8266_v3, %v6480_v47  ;;  %v6536_v45 = vpop.permute.xlu0 %6535 }
0x2e40   :  { %v6542_v61 = vsub.f32 %v11375_v33, %v6536_v45  ;;  %v6620_v45 = vmul.f32 %v11177_v48, %v6618_v50 }
0x2e41   :  { %v6489_v59 = vsub.f32 %v6483_v28, %v11388_v32 }
0x2e42   :  { %v6548_v57 = vsub.f32 %v6542_v61, %v6547_v0 }
0x2e43   :  { %v6540_v25 = vpop.permute.xlu1 %6539  ;;  %v6492_v62 = vmul.f32 %v6490_v12, %v6489_v59 }
0x2e44   :  { %v6551_v46 = vmul.f32 %v6550_v55, %v6548_v57  ;;  %v6543_v1 = vsub.f32 %v8266_v3, %v6540_v25  ;;  %v6596_v54 = vpop.permute.xlu0 %6595  ;;  %v6680_v25 = vmul.f32 %v11177_v48, %v6678_v35 }
0x2e45   :  { %v6602_v63 = vsub.f32 %v11375_v33, %v6596_v54  ;;  %v6496_v16 = vadd.f32 %v6494_v38, %v6492_v62 }
0x2e46   :  { %v6549_v60 = vsub.f32 %v6543_v1, %v6547_v0  ;;  %v6555_v10 = vadd.f32 %v6554_v2, %v6551_v46  ;;  %v6674_v0 = vstv %s11418_s7 }
0x2e47   :  { %v6608_v36 = vsub.f32 %v6602_v63, %v6607_v21  ;;  %v6502_v15 = vadd.f32 %v6500_v22, %v6496_v16  ;;  %v6499_v63 = vmul.f32 %v11195_v58, %v6498_v24  ;;  %v6619_v16 = vmul.f32 %v11195_v58, %v6618_v50 }
0x2e48   :  { %v6552_v34 = vmul.f32 %v6550_v55, %v6549_v60  ;;  %v6600_v39 = vpop.permute.xlu1 %6599  ;;  %v6561_v8 = vadd.f32 %v6559_v19, %v6555_v10 }
0x2e49   :  { %v6603_v41 = vsub.f32 %v8266_v3, %v6600_v39  ;;  %v6660_v37 = vpop.permute.xlu0 %6659  ;;  %v11426_v43 = vadd.f32 %v11203_v13, %v6502_v15  ;;  %v6679_v39 = vmul.f32 %v11195_v58, %v6678_v35 }
0x2e4a   :  { %v6556_v40 = vadd.f32 %v6554_v2, %v6552_v34  ;;  %v6663_v9 = vsub.f32 %v8266_v3, %v6660_v37  ;;  %v6611_v3 = vmul.f32 %v6610_v52, %v6608_v36  ;;  %v6563_v46 = vadd.f32 %v11225_v30, %v6561_v8 }
0x2e4b   :  { %v6609_v51 = vsub.f32 %v6603_v41, %v6607_v21  ;;  %v6508_v4 = vsel %vm760_vm6, %v11426_v43, -inf }
0x2e4c   :  { %v6669_v27 = vsub.f32 %v6663_v9, %v6667_v56  ;;  %6509 = vmax.xlane.f32.xlu1 %v6508_v4  ;;  %v6562_v29 = vadd.f32 %v6560_v44, %v6556_v40  ;;  %v6615_v54 = vadd.f32 %v6614_v5, %v6611_v3 }
0x2e4d   :  { %v6612_v47 = vmul.f32 %v6610_v52, %v6609_v51  ;;  %v6475_v28 = vpop.permute.xlu1 %6474 }
0x2e4e   :  { %v6672_v61 = vmul.f32 %v6670_v53, %v6669_v27  ;;  %v6482_v59 = vsub.f32 %v11375_v33, %v6475_v28  ;;  %v6564_v55 = vadd.f32 %v11203_v13, %v6562_v29  ;;  %v6621_v34 = vadd.f32 %v6619_v16, %v6615_v54 }
0x2e4f   :  { %v6616_v57 = vadd.f32 %v6614_v5, %v6612_v47 }
0x2e50   :  { %v6676_v21 = vadd.f32 %v6674_v0, %v6672_v61  ;;  %v6488_v62 = vsub.f32 %v6482_v59, %v11388_v32  ;;  %v6568_v22 = vsel %vm760_vm6, %v6564_v55, -inf  ;;  %v6565_v32 = vsel %vm760_vm6, %v6563_v46, -inf }
0x2e51   :  { %6569 = vmax.xlane.f32.xlu0 %v6568_v22  ;;  %v6622_v1 = vadd.f32 %v6620_v45, %v6616_v57  ;;  %v6623_v37 = vadd.f32 %v11225_v30, %v6621_v34 }
0x2e52   :  { %v6491_v42 = vmul.f32 %v6490_v12, %v6488_v62  ;;  %v6656_v2 = vpop.permute.xlu1 %6655  ;;  %v6682_v15 = vadd.f32 %v6680_v25, %v6676_v21 }
0x2e53   :  { %v6662_v48 = vsub.f32 %v11375_v33, %v6656_v2  ;;  %v6624_v36 = vadd.f32 %v11203_v13, %v6622_v1  ;;  %v6625_v52 = vsel %vm760_vm6, %v6623_v37, -inf }
0x2e54   :  { %v6495_v60 = vadd.f32 %v6494_v38, %v6491_v42  ;;  %v6684_v33 = vadd.f32 %v11203_v13, %v6682_v15 }
0x2e55   :  { %v6668_v19 = vsub.f32 %v6662_v48, %v6667_v56  ;;  %6566 = vmax.xlane.f32.xlu0 %v6565_v32  ;;  %v6628_v24 = vsel %vm760_vm6, %v6624_v36, -inf }
0x2e56   :  { %v6501_v10 = vadd.f32 %v6499_v63, %v6495_v60  ;;  %v6688_v40 = vsel %vm760_vm6, %v6684_v33, -inf }
0x2e57   :  { %v6671_v12 = vmul.f32 %v6670_v53, %v6668_v19 }
0x2e58   :  { %v6503_v44 = vadd.f32 %v11225_v30, %v6501_v10 }
0x2e59   :  { %v6675_v41 = vadd.f32 %v6674_v0, %v6671_v12  ;;  %6629 = vmax.xlane.f32.xlu0 %v6628_v24  ;;  %v7529_v12 = vld [vmem:[%s11682_s12 + $0x38] sm:$0xff]  ;;  %s11485_s12 = sld [smem:[#allocation8 + $0x1e]] }
0x2e5a   :  { %v6505_v38 = vsel %vm760_vm6, %v6503_v44, -inf  ;;  %8286 = vmatprep.subr.mxu0 %v7529_v12 }
0x2e5b   :  { %6506 = vmax.xlane.f32.xlu1 %v6505_v38  ;;  %v6681_v56 = vadd.f32 %v6679_v39, %v6675_v41  ;;  %8287 = vmatpush3.msra.mxu0 %v7529_v12 }
0x2e5d   :  { %6689 = vmax.xlane.f32.xlu0 %v6688_v40  ;;  %v6683_v58 = vadd.f32 %v11225_v30, %v6681_v56 }
0x2e5f   :  { %6626 = vmax.xlane.f32.xlu1 %v6625_v52  ;;  %v6685_v9 = vsel %vm760_vm6, %v6683_v58, -inf }
0x2e63   :  { %6686 = vmax.xlane.f32.xlu1 %v6685_v9 }
0x2ed9   :  { %v6510_v13 = vpop.xlane.xlu1 %6509 }
0x2eda   :  { %v6512_v51 = vsub.f32 %v11426_v43, %v6510_v13 }
0x2edc   :  { %v6515_v53 = vmul.f32 1.442695, %v6512_v51 }
0x2ede   :  { %9152 = vpow2.f32 %v6515_v53  ;;  %v6570_v4 = vpop.xlane.xlu0 %6569 }
0x2edf   :  { %v6572_v50 = vsub.f32 %v6564_v55, %v6570_v4 }
0x2ee1   :  { %v6575_v27 = vmul.f32 1.442695, %v6572_v50 }
0x2ee2   :  { %v6567_v29 = vpop.xlane.xlu0 %6566 }
0x2ee3   :  { %9154 = vpow2.f32 %v6575_v27  ;;  %v6571_v8 = vsub.f32 %v6563_v46, %v6567_v29 }
0x2ee5   :  { %v6573_v35 = vmul.f32 1.442695, %v6571_v8 }
0x2ee6   :  { %v6630_v5 = vpop.xlane.xlu0 %6629 }
0x2ee7   :  { %9156 = vpow2.f32 %v6573_v35  ;;  %v6632_v47 = vsub.f32 %v6624_v36, %v6630_v5  ;;  %v6528_v5 = vstv %s11483_s10 }
0x2ee8   :  { %v11465_v30 = vpop.eup %9152  ;;  %v6507_v0 = vpop.xlane.xlu1 %6506 }
0x2ee9   :  { %v6635_v28 = vmul.f32 1.442695, %v6632_v47  ;;  %v6511_v45 = vsub.f32 %v6503_v44, %v6507_v0  ;;  %v6520_v43 = vsel %vm760_vm6, %v11465_v30, 0.0 }
0x2eea   :  { %v6690_v3 = vpop.xlane.xlu0 %6689  ;;  %6521 = vadd.xlane.f32.xlu1 %v6520_v43 }
0x2eeb   :  { %9158 = vpow2.f32 %v6635_v28  ;;  %v6513_v61 = vmul.f32 1.442695, %v6511_v45  ;;  %v6692_v59 = vsub.f32 %v6684_v33, %v6690_v3  ;;  %v6648_v3 = vstv %s11485_s12  ;;  %s11795_s12 = sld [smem:[#allocation27_spill]] }
0x2eec   :  { %v6627_v55 = vpop.xlane.xlu1 %6626 }
0x2eed   :  { %v9155_v57 = vpop.eup %9154  ;;  %9160 = vpow2.f32 %v6513_v61  ;;  %v6695_v25 = vmul.f32 1.442695, %v6692_v59  ;;  %v6631_v21 = vsub.f32 %v6623_v37, %v6627_v55 }
0x2eee   :  { %v6580_v62 = vsel %vm760_vm6, %v9155_v57, 0.0 }
0x2eef   :  { %9162 = vpow2.f32 %v6695_v25  ;;  %v6633_v22 = vmul.f32 1.442695, %v6631_v21  ;;  %6581 = vadd.xlane.f32.xlu0 %v6580_v62  ;;  %v6708_v25 = vstv %s11487_s21  ;;  %s9321_s21 = smov [#allocation10]  }
0x2ef0   :  { %v6687_v46 = vpop.xlane.xlu1 %6686  ;;  %s7361_s23 = sshll.u32 %s9321_s21, 4  ;;  %s7362_s23 = int_to_ptr.vmem [resolvable:$true] %s7361_s23 }
0x2ef1   :  { %v9157_v1 = vpop.eup %9156  ;;  %9164 = vpow2.f32 %v6633_v22  ;;  %v6691_v54 = vsub.f32 %v6683_v58, %v6687_v46  ;;  %s9264_s25 = scalar_lea.vmem %s7362_s23, 256  ;;  %p9269_p7 = scmp.lt.s32.totalorder %s7362_s23, %s7362_s23 }
0x2ef2   :  { %v6577_v42 = vsel %vm760_vm6, %v9157_v1, 0.0  ;;  %p9265_p6 = scmp.ne.s32.totalorder %s7362_s23, %s9264_s25  ;;  %p9270_p8 = scmp.lt.s32.totalorder %s9264_s25, %s9264_s25 }
0x2ef3   :  { %v6693_v2 = vmul.f32 1.442695, %v6691_v54  ;;  %6578 = vadd.xlane.f32.xlu0 %v6577_v42 }
0x2ef4   :  { %p9271_p9 = por %p9270_p8, %p9269_p7 }
0x2ef5   :  { %v9159_v63 = vpop.eup %9158  ;;  %9166 = vpow2.f32 %v6693_v2 }
0x2ef6   :  { %v6640_v16 = vsel %vm760_vm6, %v9159_v63, 0.0  ;;  %p9272_p10 = pnand %p9271_p9, %p9265_p6 }
0x2ef7   :  { %v9161_v48 = vpop.eup %9160  ;;  %6641 = vadd.xlane.f32.xlu0 %v6640_v16 }
0x2ef8   :  { %v6517_v60 = vsel %vm760_vm6, %v9161_v48, 0.0 }
0x2ef9   :  { %v9163_v32 = vpop.eup %9162  ;;  %6518 = vadd.xlane.f32.xlu1 %v6517_v60 }
0x2efa   :  { %v6700_v36 = vsel %vm760_vm6, %v9163_v32, 0.0 }
0x2efb   :  { %v9165_v15 = vpop.eup %9164  ;;  %6701 = vadd.xlane.f32.xlu0 %v6700_v36  ;;  %v7564_v36 = vld [vmem:[%s11683_s13 + $0x1] ss:$0 sm:$0xff] }
0x2efc   :  { %v6637_v19 = vsel %vm760_vm6, %v9165_v15, 0.0 }
0x2efd   :  { %6638 = vadd.xlane.f32.xlu1 %v6637_v19 }
0x2eff   :  { %v9167_v10 = vpop.eup %9166 }
0x2f00   :  { %v6697_v34 = vsel %vm760_vm6, %v9167_v10, 0.0 }
0x2f01   :  { %6698 = vadd.xlane.f32.xlu1 %v6697_v34 }
0x2f12   :  { %8840 = vrot.lane.b32.xlu1 %v10829_v49, %s11781_s0  ;;  %s11481_s0 = sld [smem:[#allocation8 + $0x1d]] }
0x2f18   :  { %v6588_v29 = vstv %s11481_s0 }
0x2f77   :  { %v6522_v44 = vpop.xlane.xlu1 %6521 }
0x2f78   :  { %9168 = vrcp.f32 %v6522_v44 }
0x2f7c   :  { %v6582_v39 = vpop.xlane.xlu0 %6581 }
0x2f7d   :  { %9170 = vrcp.f32 %v6582_v39 }
0x2f80   :  { %v6579_v24 = vpop.xlane.xlu0 %6578 }
0x2f81   :  { %9172 = vrcp.f32 %v6579_v24 }
0x2f82   :  { %v9169_v49 = vpop.eup %9168 }
0x2f83   :  { %v6526_v47 = vmul.f32 %v9169_v49, %v11465_v30 }
0x2f84   :  { %v6642_v33 = vpop.xlane.xlu0 %6641 }
0x2f85   :  { %v6530_v62 = vmul.f32 %v6528_v5, %v6526_v47 }
0x2f86   :  { %v6519_v41 = vpop.xlane.xlu1 %6518 }
0x2f87   :  { %9174 = vrcp.f32 %v6519_v41  ;;  %v9171_v40 = vpop.eup %9170 }
0x2f88   :  { %9176 = vrcp.f32 %v6642_v33  ;;  %v6702_v38 = vpop.xlane.xlu0 %6701  ;;  %v6586_v53 = vmul.f32 %v9171_v40, %v9155_v57 }
0x2f89   :  { %9178 = vrcp.f32 %v6702_v38 }
0x2f8a   :  { %v6639_v37 = vpop.xlane.xlu1 %6638  ;;  %v6590_v61 = vmul.f32 %v6588_v29, %v6586_v53  ;;  %v7665_v53 = vld [vmem:[%s11686_s16 + $0x38] sm:$0xff] }
0x2f8b   :  { %9180 = vrcp.f32 %v6639_v37  ;;  %v9173_v52 = vpop.eup %9172 }
0x2f8c   :  { %v6584_v8 = vmul.f32 %v9173_v52, %v9157_v1  ;;  %v6592_v54 = vadd.f32 %v6590_v61, %v6530_v62 }
0x2f8e   :  { %v6699_v56 = vpop.xlane.xlu1 %6698  ;;  %v6589_v55 = vmul.f32 %v6588_v29, %v6584_v8 }
0x2f8f   :  { %9182 = vrcp.f32 %v6699_v56 }
0x2f91   :  { %v9175_v58 = vpop.eup %9174 }
0x2f92   :  { %v9177_v9 = vpop.eup %9176  ;;  %v6524_v13 = vmul.f32 %v9175_v58, %v9161_v48  ;;  %v8841_v51 = vpop.permute.xlu1 %8840  ;;  %v7662_v58 = vld [vmem:[%s11686_s16 + $0x20] sm:$0xff] }
0x2f93   :  { %v8843_v4 = vunpack.i.h.bf16 %v8841_v51  ;;  %v8842_v50 = vunpack.i.l.bf16 %v8841_v51  ;;  %v9179_v27 = vpop.eup %9178  ;;  %v6646_v0 = vmul.f32 %v9177_v9, %v9159_v63  ;;  %v7663_v9 = vld [vmem:[%s11686_s16 + $0x28] sm:$0xff]  ;;  %v7664_v51 = vld [vmem:[%s11686_s16 + $0x30] sm:$0xff] }
0x2f94   :  { %v6529_v43 = vmul.f32 %v6528_v5, %v6524_v13  ;;  %v6706_v59 = vmul.f32 %v9179_v27, %v9163_v32  ;;  %v8572_v13 = vpack.c.bf16 %v7663_v9, %v7662_v58 }
0x2f95   :  { %v9181_v35 = vpop.eup %9180  ;;  %v8568_v28 = vpack.c.bf16 %v8843_v4, %v8842_v50  ;;  %v6650_v22 = vmul.f32 %v6648_v3, %v6646_v0  ;;  %v8576_v4 = vpack.c.bf16 %v7665_v53, %v7664_v51  ;;  %v7660_v0 = vld [vmem:[%s11684_s14 + $0x1] ss:$0 sm:$0xff] }
0x2f96   :  { %v6644_v45 = vmul.f32 %v9181_v35, %v9165_v15  ;;  %v6591_v46 = vadd.f32 %v6589_v55, %v6529_v43  ;;  %v6710_v42 = vmul.f32 %v6708_v25, %v6706_v59 }
0x2f97   :  { %8569 = vmatprep.subr.bf16.mxu1 %v8568_v28  ;;  %v6652_v63 = vadd.f32 %v6650_v22, %v6592_v54  ;;  %v7672_v22 = vld [vmem:[%s11688_s18 + $0x90] sm:$0xff]  ;;  %v7674_v54 = vld [vmem:[%s11688_s18 + $0xa0] sm:$0xff] }
0x2f98   :  { %8571 = vmatpush3.bf16.msra.mxu1 %v8568_v28  ;;  %v6649_v57 = vmul.f32 %v6648_v3, %v6644_v45  ;;  %v7661_v45 = vld [vmem:[%s11685_s15 + $0x1] ss:$0 sm:$0xff] }
0x2f99   :  { %v9183_v21 = vpop.eup %9182  ;;  %v6712_v48 = vadd.f32 %v6710_v42, %v6652_v63  ;;  %8573 = vmatprep.subr.bf16.mxu1 %v8572_v13  ;;  %v7675_v42 = vld [vmem:[%s11688_s18 + $0xa8] sm:$0xff]  ;;  %v7677_v63 = vld [vmem:[%s11688_s18 + $0xb8] sm:$0xff] }
0x2f9a   :  { %v6704_v1 = vmul.f32 %v9183_v21, %v9167_v10  ;;  %v6651_v30 = vadd.f32 %v6649_v57, %v6591_v46  ;;  %v7671_v21 = vld [vmem:[%s11688_s18 + $0x88] sm:$0xff]  ;;  %v7673_v46 = vld [vmem:[%s11688_s18 + $0x98] sm:$0xff] }
0x2f9c   :  { %v6709_v2 = vmul.f32 %v6708_v25, %v6704_v1  ;;  %v7670_v25 = vld [vmem:[%s11688_s18 + $0x80] sm:$0xff]  ;;  %v8584_v1 = vpack.c.bf16 %v7673_v46, %v7672_v22 }
0x2f9d   :  { %v8580_v62 = vpack.c.bf16 %v7671_v21, %v7670_v25 }
0x2f9e   :  { %v6711_v16 = vadd.f32 %v6709_v2, %v6651_v30  ;;  %v8588_v30 = vpack.c.bf16 %v7675_v42, %v7674_v54  ;;  %v7676_v2 = vld [vmem:[%s11688_s18 + $0xb0] sm:$0xff] }
0x2f9f   :  { %8581 = vmatprep.subr.bf16.mxu0 %v8580_v62 }
0x2fa0   :  { %8283 = vmatprep.mubr.msk.f32.mxu1 %vm760_vm6, %v6711_v16  ;;  %v8592_v16 = vpack.c.bf16 %v7677_v63, %v7676_v2 }
0x2fa1   :  { %8284 = vmatmul.mubr.msk.f32.vlgmr.msra.gmra.mrb[40].mxu1 %vm760_vm6, %v6712_v48  ;;  %v7678_v48 = vld [vmem:[%s11688_s18 + $0xc0] sm:$0xff] }
0x2fa2   :  { %8575 = vmatpush3.bf16.msra.mxu1 %v8572_v13 }
0x2fa3   :  { %8577 = vmatprep.subr.bf16.mxu1 %v8576_v4 }
0x2fa6   :  { %8579 = vmatpush3.bf16.msra.mxu1 %v8576_v4 }
0x2fa7   :  { %8614 = vmatprep.subr.msk.bf16.mxu1 %vm11595_vm11, %v9486_v6 }
0x3074   :  { %v8285_v60 = vpop.f32.mrb[40].mxu1 }
0x3075   :  { %v6791_v32 = vpop.f32.mrb[41].mxu1 }
0x3076   :  { %8288 = vmatprep.mubr.msk.f32.mxu0 %vm390_vm3, %v6791_v32 }
0x3077   :  { %8289 = vmatmul.mubr.msk.f32.vlgmr.msra.gmra.mrb[22].mxu0 %vm390_vm3, %v8285_v60  ;;  %v7679_v60 = vld [vmem:[%s11688_s18 + $0xc8] sm:$0xff] }
0x3078   :  { %8583 = vmatpush3.bf16.msra.mxu0 %v8580_v62  ;;  %v8596_v32 = vpack.c.bf16 %v7679_v60, %v7678_v48 }
0x3079   :  { %8585 = vmatprep.subr.bf16.mxu0 %v8584_v1 }
0x307c   :  { %8587 = vmatpush3.bf16.msra.mxu0 %v8584_v1 }
0x307d   :  { %8589 = vmatprep.subr.bf16.mxu0 %v8588_v30 }
0x3080   :  { %8591 = vmatpush3.bf16.msra.mxu0 %v8588_v30 }
0x3081   :  { %8593 = vmatprep.subr.bf16.mxu0 %v8592_v16 }
0x3084   :  { %8595 = vmatpush3.bf16.msra.mxu0 %v8592_v16 }
0x3085   :  { %8597 = vmatprep.subr.bf16.mxu0 %v8596_v32 }
0x3088   :  { %8599 = vmatpush3.bf16.msra.mxu0 %v8596_v32 }
0x314a   :  { %v8290_v15 = vpop.f32.mrb[22].mxu0 }
0x314b   :  { %v6872_v19 = vpop.f32.mrb[23].mxu0  ;;  %v8662_v10 = vadd.f32 %v8290_v15, %v7564_v36  ;;  %v7681_v15 = vld [vmem:[%s11688_s18 + $0xd8] sm:$0xff] }
0x314c   :  { %v8663_v34 = vadd.f32 %v7564_v36, %v6872_v19  ;;  %v7680_v36 = vld [vmem:[%s11688_s18 + $0xd0] sm:$0xff] }
0x314d   :  { %v11505_v39 = vadd.f32 %v8662_v10, %v10575_v31  ;;  %v8600_v19 = vpack.c.bf16 %v7681_v15, %v7680_v36  ;;  %v7682_v10 = vld [vmem:[%s11688_s18 + $0xe0] sm:$0xff] }
0x314e   :  { %v11502_v12 = vadd.f32 %v8663_v34, %v10578_v18  ;;  %v7683_v34 = vld [vmem:[%s11688_s18 + $0xe8] sm:$0xff] }
0x314f   :  { %v6892_v44 = vsel %vm247_vm2, %v11505_v39, 0.0  ;;  %8601 = vmatprep.subr.bf16.mxu0 %v8600_v19 }
0x3150   :  { %v6889_v24 = vsel %vm247_vm2, %v11502_v12, 0.0  ;;  %8603 = vmatpush3.bf16.msra.mxu0 %v8600_v19 }
0x3151   :  { %6890 = vadd.xlane.f32.xlu0 %v6889_v24  ;;  %v8604_v24 = vpack.c.bf16 %v7683_v34, %v7682_v10 }
0x3153   :  { %8605 = vmatprep.subr.bf16.mxu0 %v8604_v24 }
0x3154   :  { %8607 = vmatpush3.bf16.msra.mxu0 %v8604_v24 }
0x3155   :  { %6893 = vadd.xlane.f32.xlu0 %v6892_v44  ;;  %v7684_v44 = vld [vmem:[%s11688_s18 + $0xf0] sm:$0xff] }
0x31de   :  { %v6891_v33 = vpop.xlane.xlu0 %6890 }
0x31df   :  { %v6895_v41 = vmul.f32 0.03125, %v6891_v33  ;;  %v7685_v33 = vld [vmem:[%s11688_s18 + $0xf8] sm:$0xff] }
0x31e1   :  { %v6897_v38 = vsub.f32 %v11502_v12, %v6895_v41  ;;  %v8608_v41 = vpack.c.bf16 %v7685_v33, %v7684_v44 }
0x31e2   :  { %v6894_v37 = vpop.xlane.xlu0 %6893 }
0x31e3   :  { %v6896_v49 = vmul.f32 0.03125, %v6894_v37  ;;  %v6899_v56 = vmul.f32 %v6897_v38, %v6897_v38  ;;  %8609 = vmatprep.subr.bf16.mxu0 %v8608_v41 }
0x31e4   :  { %8611 = vmatpush3.bf16.msra.mxu0 %v8608_v41 }
0x31e5   :  { %v6898_v18 = vsub.f32 %v11505_v39, %v6896_v49  ;;  %v6901_v31 = vsel %vm247_vm2, %v6899_v56, 0.0 }
0x31e6   :  { %6902 = vadd.xlane.f32.xlu0 %v6901_v31 }
0x31e7   :  { %v6900_v40 = vmul.f32 %v6898_v18, %v6898_v18 }
0x31e9   :  { %v6904_v52 = vsel %vm247_vm2, %v6900_v40, 0.0 }
0x31ea   :  { %6905 = vadd.xlane.f32.xlu0 %v6904_v52 }
0x3273   :  { %v6903_v50 = vpop.xlane.xlu0 %6902 }
0x3274   :  { %v6907_v27 = vmul.f32 0.03125, %v6903_v50 }
0x3276   :  { %v6909_v29 = vadd.f32 1e-05, %v6907_v27 }
0x3277   :  { %v6906_v8 = vpop.xlane.xlu0 %6905 }
0x3278   :  { %9184 = vrsqrt.f32 %v6909_v29  ;;  %v6908_v35 = vmul.f32 0.03125, %v6906_v8 }
0x327a   :  { %v6910_v5 = vadd.f32 1e-05, %v6908_v35 }
0x327c   :  { %9186 = vrsqrt.f32 %v6910_v5 }
0x3282   :  { %v9185_v47 = vpop.eup %9184 }
0x3283   :  { %v6913_v28 = vmul.f32 %v9185_v47, %v6897_v38  ;;  %v7667_v38 = vld [vmem:[%s11687_s17 + $0x1] ss:$0 sm:$0xff] }
0x3285   :  { %v6921_v43 = vmul.f32 %v7660_v0, %v6913_v28 }
0x3286   :  { %v9187_v3 = vpop.eup %9186 }
0x3287   :  { %v6914_v61 = vmul.f32 %v9187_v3, %v6898_v18  ;;  %v6929_v59 = vadd.f32 %v7661_v45, %v6921_v43 }
0x3289   :  { %v6922_v55 = vmul.f32 %v7660_v0, %v6914_v61  ;;  %8299 = vmatprep.mubr.msk.f32.mxu1 %vm247_vm2, %v6929_v59 }
0x328b   :  { %v6930_v57 = vadd.f32 %v7661_v45, %v6922_v55 }
0x328d   :  { %8300 = vmatmul.mubr.msk.f32.vlgmr.msra.gmra.mrb[42].mxu1 %vm247_vm2, %v6930_v57 }
0x328e   :  { %8617 = vmatpush3.bf16.xpose.msk.msra.mxu1 %vm11595_vm11, %v9486_v6 }
0x328f   :  { %8620 = vmatprep.subr.msk.bf16.mxu1 %vm11595_vm11, %v9488_v7 }
0x3296   :  { %8623 = vmatpush3.bf16.xpose.msk.msra.mxu1 %vm11595_vm11, %v9488_v7 }
0x3297   :  { %8626 = vmatprep.subr.msk.bf16.mxu1 %vm11595_vm11, %v9502_v11 }
0x329e   :  { %8629 = vmatpush3.bf16.xpose.msk.msra.mxu1 %vm11595_vm11, %v9502_v11 }
0x329f   :  { %8632 = vmatprep.subr.msk.bf16.mxu1 %vm11595_vm11, %v9512_v14 }
0x32a6   :  { %8635 = vmatpush3.bf16.xpose.msk.msra.mxu1 %vm11595_vm11, %v9512_v14 }
0x32a7   :  { %8638 = vmatprep.subr.msk.bf16.mxu1 %vm11595_vm11, %v9522_v17 }
0x32ae   :  { %8641 = vmatpush3.bf16.xpose.msk.msra.mxu1 %vm11595_vm11, %v9522_v17 }
0x32af   :  { %8644 = vmatprep.subr.msk.bf16.mxu1 %vm11595_vm11, %v9532_v20 }
0x32b6   :  { %8647 = vmatpush3.bf16.xpose.msk.msra.mxu1 %vm11595_vm11, %v9532_v20 }
0x32b7   :  { %8650 = vmatprep.subr.msk.bf16.mxu1 %vm11595_vm11, %v9542_v23 }
0x32be   :  { %8653 = vmatpush3.bf16.xpose.msk.msra.mxu1 %vm11595_vm11, %v9542_v23 }
0x32bf   :  { %8656 = vmatprep.subr.msk.bf16.mxu1 %vm11595_vm11, %v9552_v26 }
0x32c6   :  { %8659 = vmatpush3.bf16.xpose.msk.msra.mxu1 %vm11595_vm11, %v9552_v26 }
0x3360   :  { %v8301_v37 = vpop.f32.mrb[42].mxu1 }
0x3361   :  { %v7022_v49 = vadd.f32 %v8301_v37, %v7667_v38  ;;  %v7016_v56 = vpop.f32.mrb[43].mxu1  ;;  %v7687_v37 = vld [vmem:[%s11689_s19 + $0x1] ss:$0 sm:$0xff] }
0x3362   :  { %v7017_v18 = vadd.f32 %v7667_v38, %v7016_v56 }
0x3363   :  { %v7028_v31 = vmul.f32 0.70710677, %v7022_v49  ;;  %v7026_v33 = vmul.f32 0.5, %v7022_v49 }
0x3364   :  { %v7027_v40 = vmul.f32 0.70710677, %v7017_v18  ;;  %v7025_v24 = vmul.f32 0.5, %v7017_v18 }
0x3365   :  { %v7030_v52 = vand.u32 2147483647, %v7028_v31  ;;  %v7058_v4 = vsub.f32 0.0, %v7028_v31  ;;  %vm7070_vm9 = vcmp.ge.f32.partialorder %v7028_v31, 0.0 }
0x3366   :  { %v7029_v58 = vand.u32 2147483647, %v7027_v40  ;;  %v7057_v50 = vsub.f32 0.0, %v7027_v40  ;;  %vm7069_vm10 = vcmp.ge.f32.partialorder %v7027_v40, 0.0 }
0x3367   :  { %v7032_v9 = vmul.f32 0.3275911, %v7030_v52  ;;  %v7060_v29 = vmul.f32 %v7058_v4, %v7028_v31 }
0x3368   :  { %v7031_v13 = vmul.f32 0.3275911, %v7029_v58  ;;  %v7059_v5 = vmul.f32 %v7057_v50, %v7027_v40 }
0x3369   :  { %v7034_v51 = vadd.f32 1.0, %v7032_v9  ;;  %v7063_v28 = vmul.f32 1.442695, %v7060_v29 }
0x336a   :  { %v7033_v53 = vadd.f32 1.0, %v7031_v13  ;;  %v7061_v3 = vmul.f32 1.442695, %v7059_v5 }
0x336b   :  { %9188 = vrcp.f32 %v7034_v51 }
0x336c   :  { %9190 = vrcp.f32 %v7033_v53 }
0x336d   :  { %9192 = vpow2.f32 %v7063_v28 }
0x336e   :  { %9194 = vpow2.f32 %v7061_v3 }
0x3375   :  { %v9189_v27 = vpop.eup %9188 }
0x3376   :  { %v7040_v8 = vmul.f32 1.0614054, %v9189_v27  ;;  %v9191_v35 = vpop.eup %9190 }
0x3377   :  { %v7039_v0 = vmul.f32 1.0614054, %v9191_v35  ;;  %v9193_v30 = vpop.eup %9192 }
0x3378   :  { %v7042_v47 = vadd.f32 -1.4531521, %v7040_v8  ;;  %v9195_v16 = vpop.eup %9194 }
0x3379   :  { %v7041_v43 = vadd.f32 -1.4531521, %v7039_v0 }
0x337a   :  { %v7044_v45 = vmul.f32 %v9189_v27, %v7042_v47  ;;  %v7689_v47 = vld [vmem:[%s11795_s12] ss:$0 sm:$0xff] }
0x337b   :  { %v7043_v59 = vmul.f32 %v9191_v35, %v7041_v43 }
0x337c   :  { %v7046_v61 = vadd.f32 1.4214138, %v7044_v45 }
0x337d   :  { %v7045_v57 = vadd.f32 1.4214138, %v7043_v59 }
0x337e   :  { %v7048_v55 = vmul.f32 %v9189_v27, %v7046_v61 }
0x337f   :  { %v7047_v21 = vmul.f32 %v9191_v35, %v7045_v57 }
0x3380   :  { %v7050_v25 = vadd.f32 -0.28449672, %v7048_v55 }
0x3381   :  { %v7049_v22 = vadd.f32 -0.28449672, %v7047_v21 }
0x3382   :  { %v7052_v62 = vmul.f32 %v9189_v27, %v7050_v25 }
0x3383   :  { %v7051_v1 = vmul.f32 %v9191_v35, %v7049_v22 }
0x3384   :  { %v7054_v46 = vadd.f32 0.2548296, %v7052_v62 }
0x3385   :  { %v7053_v42 = vadd.f32 0.2548296, %v7051_v1 }
0x3386   :  { %v7056_v54 = vmul.f32 %v9189_v27, %v7054_v46 }
0x3387   :  { %v7055_v63 = vmul.f32 %v9191_v35, %v7053_v42  ;;  %v7688_v35 = vld [vmem:[%s11794_s5] ss:$0 sm:$0xff] }
0x3388   :  { %v7066_v2 = vmul.f32 %v9193_v30, %v7056_v54 }
0x3389   :  { %v7065_v60 = vmul.f32 %v9195_v16, %v7055_v63 }
0x338a   :  { %v7068_v48 = vsub.f32 1.0, %v7066_v2 }
0x338b   :  { %v7067_v36 = vsub.f32 1.0, %v7065_v60 }
0x338c   :  { %v7072_v32 = vsub.f32 0.0, %v7068_v48 }
0x338d   :  { %v7071_v19 = vsub.f32 0.0, %v7067_v36 }
0x338e   :  { %v7074_v15 = vsel %vm7070_vm9, %v7068_v48, %v7072_v32 }
0x338f   :  { %v7076_v10 = vadd.f32 1.0, %v7074_v15  ;;  %v7073_v34 = vsel %vm7069_vm10, %v7067_v36, %v7071_v19 }
0x3390   :  { %v7075_v44 = vadd.f32 1.0, %v7073_v34 }
0x3391   :  { %v7078_v38 = vmul.f32 %v7076_v10, %v7026_v33 }
0x3392   :  { %v7077_v41 = vmul.f32 %v7075_v44, %v7025_v24 }
0x3394   :  { %8334 = vmatprep.mubr.f32.mxu0 %v7077_v41 }
0x3395   :  { %8335 = vmatmul.mubr.f32.vlgmr.msra.gmra.mrb[36].mxu0 %v7078_v38 }
0x3468   :  { %v8336_v56 = vpop.f32.mrb[36].mxu0 }
0x3469   :  { %v7176_v52 = vadd.f32 %v8336_v56, %v7687_v37  ;;  %v7170_v58 = vpop.f32.mrb[37].mxu0 }
0x346a   :  { %v7171_v31 = vadd.f32 %v7687_v37, %v7170_v58 }
0x346b   :  { %v7180_v9 = vadd.f32 %v7176_v52, %v11505_v39 }
0x346c   :  { %v7179_v40 = vadd.f32 %v7171_v31, %v11502_v12 }
0x346d   :  { %v7186_v18 = vsel %vm247_vm2, %v7180_v9, 0.0 }
0x346e   :  { %7187 = vadd.xlane.f32.xlu1 %v7186_v18  ;;  %v7183_v49 = vsel %vm247_vm2, %v7179_v40, 0.0 }
0x346f   :  { %7184 = vadd.xlane.f32.xlu0 %v7183_v49 }
0x34fb   :  { %v7188_v6 = vpop.xlane.xlu1 %7187 }
0x34fc   :  { %v7190_v7 = vmul.f32 0.03125, %v7188_v6  ;;  %v7185_v11 = vpop.xlane.xlu0 %7184 }
0x34fd   :  { %v7189_v14 = vmul.f32 0.03125, %v7185_v11 }
0x34fe   :  { %v7192_v17 = vsub.f32 %v7180_v9, %v7190_v7 }
0x34ff   :  { %v7191_v20 = vsub.f32 %v7179_v40, %v7189_v14 }
0x3500   :  { %v7194_v51 = vmul.f32 %v7192_v17, %v7192_v17 }
0x3501   :  { %v7193_v12 = vmul.f32 %v7191_v20, %v7191_v20 }
0x3502   :  { %v7198_v23 = vsel %vm247_vm2, %v7194_v51, 0.0 }
0x3503   :  { %v7195_v39 = vsel %vm247_vm2, %v7193_v12, 0.0 }
0x3504   :  { %7196 = vadd.xlane.f32.xlu0 %v7195_v39 }
0x3508   :  { %7199 = vadd.xlane.f32.xlu0 %v7198_v23 }
0x3591   :  { %v7197_v53 = vpop.xlane.xlu0 %7196 }
0x3592   :  { %v7201_v4 = vmul.f32 0.03125, %v7197_v53 }
0x3594   :  { %v7203_v50 = vadd.f32 1e-05, %v7201_v4 }
0x3595   :  { %v7200_v27 = vpop.xlane.xlu0 %7199 }
0x3596   :  { %9196 = vrsqrt.f32 %v7203_v50  ;;  %v7202_v26 = vmul.f32 0.03125, %v7200_v27 }
0x3598   :  { %v7204_v29 = vadd.f32 1e-05, %v7202_v26 }
0x359a   :  { %9198 = vrsqrt.f32 %v7204_v29 }
0x35a0   :  { %v9197_v8 = vpop.eup %9196 }
0x35a1   :  { %v7207_v5 = vmul.f32 %v9197_v8, %v7191_v20 }
0x35a3   :  { %v7215_v0 = vmul.f32 %v7688_v35, %v7207_v5 }
0x35a4   :  { %v9199_v28 = vpop.eup %9198 }
0x35a5   :  { %v7208_v45 = vmul.f32 %v9199_v28, %v7192_v17  ;;  %v7223_v43 = vadd.f32 %v7689_v47, %v7215_v0 }
0x35a7   :  { %v7216_v3 = vmul.f32 %v7688_v35, %v7208_v45  ;;  %8369 = vmatprep.mubr.msk.f32.mxu1 %vm247_vm2, %v7223_v43 }
0x35a9   :  { %v7224_v61 = vadd.f32 %v7689_v47, %v7216_v3 }
0x35ab   :  { %8370 = vmatmul.mubr.msk.f32.vlgmr.msra.gmra.mrb[44].mxu1 %vm247_vm2, %v7224_v61 }
0x367e   :  { %v8371_v59 = vpop.f32.mrb[44].mxu1 }
0x367f   :  { %7355 = vst [vmem:[#allocation10 + $0x8] sm:$0xff] %v8371_v59  ;;  %v7345_v55 = vpop.f32.mrb[45].mxu1 }
0x3680   :  { %7354 = vst [vmem:[#allocation10] sm:$0xff] %v7345_v55 }
0x3681   :  { %9275 = shalt.err (!%p9272_p10)
}
0x3682   :  { %s11796_s3 = sld [smem:[#allocation28_spill]] }
0x3688   :  { %s9276_s20 = scalar_lea.hbm %s11796_s3, 256 }
0x3689   :  { %p9277_p11 = scmp.ne.s32.totalorder %s11796_s3, %s9276_s20  ;;  %p9280_p12 = scmp.lt.u32.totalorder %s9276_s20, %s11796_s3 }
0x368b   :  { %p9282_p13 = pnand %p9280_p12, %p9277_p11 }
0x368d   :  { %9285 = shalt.err (!%p9282_p13)
}
0x368e   :  { %s9322_s2 = smov 128  }
0x368f   :  { %7367 = dma.vmem_to_hbm [thread:$0]  %s7362_s23, 256, %s11796_s3, [#allocation3], %s9322_s2, %s9322_s2, %s11787_s28  }
0x3690   :  { %9292 = dma.done.wait [#allocation3], 256  }
0x3691   :  { %9293 = vsyncadd [#allocation3], 4294967040 }
0x3692   :  { %7371 = vsyncpa [#allocation3], 1 }
0x3693   :  { %7372 = vsyncpa [#allocation4], 1 }
0x3694   :  { %7373 = vsyncpa [#allocation6], 1 }
0x3695   :  { %7374 = vsyncpa [#allocation9], 1 }

</bundles_post_ra>
